<compile_context>
chip_gen: v7x
topology: tpu7x:2x2x1
jax: 0.10.0
libtpu: 0.0.40
codegen_flags: <defaults>
</compile_context>

<pallas_src>
import functools

import jax
import jax.numpy as jnp
from jax.experimental import pallas as pl
from jax.experimental.pallas import tpu as pltpu


_LANE = 128                 # TPU lane width: pad channels to a multiple of it
_MXU_DTYPE = jnp.bfloat16   # native MXU input dtype (f32 accumulation kept)


# ------------------------------ Pallas kernel -------------------------------

def _nconv_fused_kernel(x_ref, w_ref, b_ref, o_ref, buf_a, buf_b,
                        *, H, W, lead, n_layers):
    """One batch element: N x (3x3 SAME conv + ReLU) then 2x2/stride-2 maxpool.

    Flat halo layout: halo pixel (y, x), y in [0,H+2), x in [0,W+2), lives at
    flat row `lead + y*(W+2) + x`; image pixel (h, w) == halo (h+1, w+1).

    x_ref:    (R, Cp) bf16   pre-padded input (halo + channel pad), flat rows
    w_ref:    (N*9, Cp, Cp)  per-(layer, tap) GEMM weights, bf16
    b_ref:    (N, 1, Cp)     per-layer bias, f32
    o_ref:    (Ho, Wo, Cp)   pooled output (channel-padded, lane-dense)
    buf_a/b:  (R, Cp) bf16   ping-pong flat halo activation buffers
    """
    Wp = W + 2
    M = H * Wp                       # GEMM rows per tap (incl. 2 garbage cols/row)
    Ho, Wo = H // 2, W // 2
    Cp = x_ref.shape[-1]
    R = buf_a.shape[0]
    store_off = lead + Wp + 1        # pixel (0,0) row; `lead` makes this 16-aligned
    bufs = (buf_a, buf_b)

    # Per-image zeroing of ONLY the rows a layer store never covers (top halo
    # row + bottom halo rows + alignment tail).  ~2*(W+2) bf16 rows per buffer,
    # vs. two full f32 buffers before.  Everything else is overwritten below.
    top_n = store_off
    bot0 = store_off + M
    for buf in bufs:
        buf[pl.ds(0, top_n), :] = jnp.zeros((top_n, Cp), buf.dtype)
        buf[pl.ds(bot0, R - bot0), :] = jnp.zeros((R - bot0, Cp), buf.dtype)

    # Valid-column mask: flat-row i covers halo column (i mod (W+2)); the two
    # columns >= W are garbage produced by the contiguous-slice trick.  Zeroing
    # them before the store also re-zeroes the interleaved halo border rows.
    col = jax.lax.broadcasted_iota(jnp.int32, (M, 1), 0) % Wp
    keep = col < W

    src = x_ref                                   # layer 0 reads the input block
    for layer in range(n_layers):                 # static unroll (N is small)
        acc = None
        for tap in range(9):                      # 3x3 taps, static unroll
            dy, dx = divmod(tap, 3)
            # Contiguous row-slice: no reshape, no copy -> straight into the MXU.
            xs = src[pl.ds(lead + dy * Wp + dx, M), :]
            part = jnp.dot(xs, w_ref[9 * layer + tap],
                           preferred_element_type=jnp.float32)
            acc = part if acc is None else acc + part
        acc = jnp.maximum(acc + b_ref[layer], 0.0)       # bias + ReLU in f32
        acc = jnp.where(keep, acc, 0.0)                  # drop garbage columns
        dst = bufs[layer % 2]
        dst[pl.ds(store_off, M), :] = acc.astype(dst.dtype)   # aligned bf16 store
        src = dst

    # Fused 2x2 / stride-2 max pool straight off the last halo buffer: per
    # pooled row, two CONTIGUOUS (W, Cp) pixel-row reads, a vertical max, and a
    # tiny (W,Cp)->(Wo,2,Cp) reshape+max for the horizontal pairs.
    for ho in range(Ho):
        top = src[pl.ds(lead + (2 * ho + 1) * Wp + 1, W), :]   # image row 2*ho
        bot = src[pl.ds(lead + (2 * ho + 2) * Wp + 1, W), :]   # image row 2*ho+1
        v = jnp.maximum(top, bot).reshape(Wo, 2, Cp)
        o_ref[ho, :, :] = v.max(axis=1).astype(o_ref.dtype)


# --------------------------------- wrapper -----------------------------------

def _round_up(x, m):
    return (x + m - 1) // m * m


def _vmem_capacity_bytes():
    """Generation-aware VMEM capacity (v5e/v6e: 128 MiB, v7x: 64 MiB)."""
    try:
        cap = getattr(pltpu.get_tpu_info(), "vmem_capacity_bytes", None)
        if cap:
            return int(cap)
    except Exception:
        pass
    return 64 * 1024 * 1024          # conservative fallback (v7x physical)


@jax.jit
def n_conv_forward(x_nchw, weights, biases):
    """N_conv.forward: N x (Conv3x3 pad=1 + ReLU) then MaxPool2x2. NCHW in/out."""
    B, Cin, H, W = x_nchw.shape
    n_layers = len(weights)
    assert n_layers >= 1
    assert H % 2 == 0 and W % 2 == 0, "MaxPool2d(2,2) needs even H, W"
    channels = [Cin] + [int(w.shape[0]) for w in weights]
    Cp = _round_up(max(channels), _LANE)
    Ho, Wo = H // 2, W // 2

    Wp = W + 2
    lead = (-(Wp + 1)) % 16          # makes the layer-output store row-aligned
    R_img = (H + 2) * Wp             # flat halo rows of one image
    # tap (2,2) reads up to row lead + R_img + 1 -> pad the flat row count.
    R_flat = _round_up(lead + R_img + 2, 8)

    # Guard: this kernel keeps a whole image's activations + all weights in
    # VMEM.  Budget is generation-aware; shapes beyond it need a spatially
    # tiled variant with halo exchange (not implemented).
    vmem_need = (2 * R_flat * Cp * 2              # pipelined input block (bf16 x2)
                 + 2 * R_flat * Cp * 2            # two resident bf16 halo buffers
                 + 2 * n_layers * 9 * Cp * Cp * 2  # weights (pipeline double-buffers)
                 + 2 * n_layers * Cp * 4          # bias
                 + 2 * Ho * Wo * Cp * 4)          # pipelined output block (f32 x2)
    budget = int(_vmem_capacity_bytes() * 0.85)
    if vmem_need > budget:
        raise ValueError(
            f"Fused N_conv kernel needs ~{vmem_need >> 20} MiB of VMEM "
            f"(budget {budget >> 20} MiB); a spatially-tiled variant is "
            "required for feature maps this large.")
    vmem_limit = int(min(budget, max(vmem_need + (8 << 20), 32 << 20)))

    # Input: NHWC, 1-px zero halo, channel pad to Cp, flatten rows, align pad.
    # The kernel reads layer-0 taps straight out of this lane-dense block.
    x = jnp.transpose(x_nchw, (0, 2, 3, 1))                 # NCHW -> NHWC
    x = jnp.pad(x, ((0, 0), (1, 1), (1, 1), (0, Cp - Cin)))
    x = x.reshape(B, R_img, Cp)
    x = jnp.pad(x, ((0, 0), (lead, R_flat - R_img - lead), (0, 0)))
    x = x.astype(_MXU_DTYPE)

    # Weights as per-(layer, tap) GEMM blocks (Cin, Cout), zero-padded to
    # (Cp, Cp); biases zero-padded to Cp.  Tap order (dy, dx) row-major matches
    # the kernel's contiguous slice offsets.
    w_blocks, b_blocks = [], []
    for w, b in zip(weights, biases):
        co, ci = int(w.shape[0]), int(w.shape[1])
        wt = jnp.transpose(w, (2, 3, 1, 0)).reshape(9, ci, co)   # (tap,Cin,Cout)
        w_blocks.append(jnp.pad(wt, ((0, 0), (0, Cp - ci), (0, Cp - co))))
        b_blocks.append(jnp.pad(b, (0, Cp - co))[None, :])
    w_packed = jnp.concatenate(w_blocks, 0).astype(_MXU_DTYPE)   # (N*9, Cp, Cp)
    b_packed = jnp.stack(b_blocks, 0).astype(jnp.float32)        # (N, 1, Cp)

    kernel = functools.partial(_nconv_fused_kernel,
                               H=H, W=W, lead=lead, n_layers=n_layers)

    out_padded = pl.pallas_call(
        kernel,
        out_shape=jax.ShapeDtypeStruct((B, Ho, Wo, Cp), jnp.float32),
        grid=(B,),
        in_specs=[
            # one image per grid step; batch dim squeezed out of the kernel ref
            pl.BlockSpec((None, R_flat, Cp), lambda b: (b, 0, 0)),
            # weights & bias: constant index_map -> stay resident across steps
            pl.BlockSpec((n_layers * 9, Cp, Cp), lambda b: (0, 0, 0)),
            pl.BlockSpec((n_layers, 1, Cp), lambda b: (0, 0, 0)),
        ],
        out_specs=pl.BlockSpec((None, Ho, Wo, Cp), lambda b: (b, 0, 0, 0)),
        scratch_shapes=[
            pltpu.VMEM((R_flat, Cp), _MXU_DTYPE),   # ping-pong halo buffer A
            pltpu.VMEM((R_flat, Cp), _MXU_DTYPE),   # ping-pong halo buffer B
        ],
        compiler_params=pltpu.CompilerParams(
            dimension_semantics=("parallel",),      # batch is parallel
            vmem_limit_bytes=vmem_limit,
        ),
    )(x, w_packed, b_packed)

    out = out_padded[..., :channels[-1]]            # drop channel padding
    return jnp.transpose(out, (0, 3, 1, 2))         # NHWC -> NCHW


# ---------------------------- param construction -----------------------------

def init_n_conv_params(key, in_channels, out_channels, n_layers=2):
    """N_conv params: Kaiming-normal (fan_out, relu) conv weights.

    The PyTorch module initializes conv biases to zero; small random biases
    are used here instead so the self-test also exercises the bias path.
    """
    weights, biases = [], []
    cin = in_channels
    for _ in range(n_layers):
        key, kw, kb = jax.random.split(key, 3)
        fan_out = out_channels * 3 * 3
        std = (2.0 / fan_out) ** 0.5
        weights.append(std * jax.random.normal(kw, (out_channels, cin, 3, 3),
                                               jnp.float32))
        biases.append(0.05 * jax.random.normal(kb, (out_channels,), jnp.float32))
        cin = out_channels
    return weights, biases


# --------------------------------- reference ---------------------------------

def n_conv_reference(x_nchw, weights, biases):
    x = x_nchw
    for w, b in zip(weights, biases):
        w_hwio = jnp.transpose(w, (2, 3, 1, 0))
        x = jax.lax.conv_general_dilated(
            x, w_hwio, window_strides=(1, 1), padding="SAME",
            dimension_numbers=("NCHW", "HWIO", "NCHW"))
        x = jax.nn.relu(x + b[None, :, None, None])
    x = jax.lax.reduce_window(
        x, -jnp.inf, jax.lax.max,
        window_dimensions=(1, 1, 2, 2), window_strides=(1, 1, 2, 2),
        padding="VALID")
    return x


# ----------------------------------- main -------------------------------------

if __name__ == "__main__":
    key = jax.random.PRNGKey(0)
    k_x, k_p = jax.random.split(key)

    B, Cin, H, W = 2, 4, 16, 16          # small N_conv(4, 8, N=2)
    Cout = 8
    x = jax.random.normal(k_x, (B, Cin, H, W), jnp.float32)
    weights, biases = init_n_conv_params(k_p, Cin, Cout, n_layers=2)

    out = jax.block_until_ready(n_conv_forward(x, weights, biases))
    ref = n_conv_reference(x, weights, biases)

    assert out.shape == (B, Cout, H // 2, W // 2), out.shape
    max_err = float(jnp.max(jnp.abs(out - ref)))
    # bf16 MXU inputs + bf16 inter-layer activations (f32 accumulation) ->
    # looser tolerance than pure f32.
    assert jnp.allclose(out, ref, atol=7.5e-2, rtol=7.5e-2), max_err
    print("KERNEL_OK")
</pallas_src>

<mosaic_0001>
module attributes {stable_mosaic.version = 11 : i64} {
  func.func @_nconv_fused_kernel(%arg0: i32, %arg1: memref<1x344x128xbf16, #tpu.memory_space<vmem>>, %arg2: memref<18x128x128xbf16, #tpu.memory_space<vmem>>, %arg3: memref<2x1x128xf32, #tpu.memory_space<vmem>>, %arg4: memref<1x8x8x128xf32, #tpu.memory_space<vmem>>, %arg5: memref<344x128xbf16, #tpu.memory_space<vmem>>, %arg6: memref<344x128xbf16, #tpu.memory_space<vmem>>) attributes {dimension_semantics = [#tpu.dimension_semantics<parallel>], iteration_bounds = array<i64: 2>, scalar_prefetch = 0 : i64, scratch_operands = 2 : i64, tpu.core_type = #tpu.core_type<tc>, window_params = [{transform_indices = @transform_0, window_bounds = array<i64: 1, 344, 128>}, {pipeline_mode = #tpu.pipeline_mode<synchronous>, transform_indices = @transform_1, window_bounds = array<i64: 18, 128, 128>}, {pipeline_mode = #tpu.pipeline_mode<synchronous>, transform_indices = @transform_2, window_bounds = array<i64: 2, 1, 128>}, {transform_indices = @transform_3, window_bounds = array<i64: 1, 8, 8, 128>}]} {
    %cst = arith.constant 0.000000e+00 : bf16
    %0 = vector.broadcast %cst : bf16 to vector<32x128xbf16>
    %c0 = arith.constant 0 : index
    %c0_0 = arith.constant 0 : index
    %1 = vector.load %arg5[%c0, %c0_0] : memref<344x128xbf16, #tpu.memory_space<vmem>>, vector<32x128xbf16>
    tpu.vector_store %arg5[%c0, %c0_0], %0 {strides = array<i32>} : memref<344x128xbf16, #tpu.memory_space<vmem>>, vector<32x128xbf16>,
    %cst_1 = arith.constant 0.000000e+00 : bf16
    %2 = vector.broadcast %cst_1 : bf16 to vector<24x128xbf16>
    %c320 = arith.constant 320 : index
    %c0_2 = arith.constant 0 : index
    %3 = vector.load %arg5[%c320, %c0_2] : memref<344x128xbf16, #tpu.memory_space<vmem>>, vector<24x128xbf16>
    tpu.vector_store %arg5[%c320, %c0_2], %2 {strides = array<i32>} : memref<344x128xbf16, #tpu.memory_space<vmem>>, vector<24x128xbf16>,
    %cst_3 = arith.constant 0.000000e+00 : bf16
    %4 = vector.broadcast %cst_3 : bf16 to vector<32x128xbf16>
    %c0_4 = arith.constant 0 : index
    %c0_5 = arith.constant 0 : index
    %5 = vector.load %arg6[%c0_4, %c0_5] : memref<344x128xbf16, #tpu.memory_space<vmem>>, vector<32x128xbf16>
    tpu.vector_store %arg6[%c0_4, %c0_5], %4 {strides = array<i32>} : memref<344x128xbf16, #tpu.memory_space<vmem>>, vector<32x128xbf16>,
    %cst_6 = arith.constant 0.000000e+00 : bf16
    %6 = vector.broadcast %cst_6 : bf16 to vector<24x128xbf16>
    %c320_7 = arith.constant 320 : index
    %c0_8 = arith.constant 0 : index
    %7 = vector.load %arg6[%c320_7, %c0_8] : memref<344x128xbf16, #tpu.memory_space<vmem>>, vector<24x128xbf16>
    tpu.vector_store %arg6[%c320_7, %c0_8], %6 {strides = array<i32>} : memref<344x128xbf16, #tpu.memory_space<vmem>>, vector<24x128xbf16>,
    %8 = tpu.iota {dimensions = array<i32: 0>} : vector<288x1xi32>
    %c18_i32 = arith.constant 18 : i32
    %c0_i32 = arith.constant 0 : i32
    %9 = arith.cmpi eq, %c18_i32, %c0_i32 : i32
    %c1_i32 = arith.constant 1 : i32
    %10 = arith.select %9, %c1_i32, %c18_i32 : i32
    %11 = vector.broadcast %10 : i32 to vector<288x1xi32>
    %12 = arith.remsi %8, %11 : vector<288x1xi32>
    %c0_i32_9 = arith.constant 0 : i32
    %13 = vector.broadcast %c0_i32_9 : i32 to vector<288x1xi32>
    %14 = arith.cmpi ne, %12, %13 : vector<288x1xi32>
    %c0_i32_10 = arith.constant 0 : i32
    %15 = vector.broadcast %c0_i32_10 : i32 to vector<288x1xi32>
    %16 = arith.cmpi slt, %12, %15 : vector<288x1xi32>
    %c0_i32_11 = arith.constant 0 : i32
    %17 = arith.cmpi slt, %10, %c0_i32_11 : i32
    %18 = vector.broadcast %17 : i1 to vector<288x1xi1>
    %19 = vector.broadcast %18 : vector<288x1xi1> to vector<288x1xi1>
    %20 = arith.xori %16, %19 : vector<288x1xi1>
    %21 = arith.andi %20, %14 : vector<288x1xi1>
    %22 = vector.broadcast %10 : i32 to vector<288x1xi32>
    %23 = arith.addi %12, %22 : vector<288x1xi32>
    %24 = arith.select %21, %23, %12 : vector<288x1xi1>, vector<288x1xi32>
    %c16_i32 = arith.constant 16 : i32
    %25 = vector.broadcast %c16_i32 : i32 to vector<288x1xi32>
    %26 = arith.cmpi slt, %24, %25 : vector<288x1xi32>
    %c0_12 = arith.constant 0 : index
    %c13 = arith.constant 13 : index
    %c0_13 = arith.constant 0 : index
    %27 = vector.load %arg1[%c0_12, %c13, %c0_13] : memref<1x344x128xbf16, #tpu.memory_space<vmem>>, vector<1x288x128xbf16>
    %28 = vector.shape_cast %27 : vector<1x288x128xbf16> to vector<288x128xbf16>
    %c0_14 = arith.constant 0 : index
    %c0_15 = arith.constant 0 : index
    %c0_16 = arith.constant 0 : index
    %29 = vector.load %arg2[%c0_14, %c0_15, %c0_16] : memref<18x128x128xbf16, #tpu.memory_space<vmem>>, vector<1x128x128xbf16>
    %30 = vector.shape_cast %29 : vector<1x128x128xbf16> to vector<128x128xbf16>
    %cst_17 = arith.constant dense<0.000000e+00> : vector<288x128xf32>
    %31 = tpu.matmul %28, %30, %cst_17 {dimension_numbers = #tpu.dot_dimension_numbers<[1], [0], [0], [1], [0, 0, 1, 1], [], []>} : vector<288x128xbf16>, vector<128x128xbf16>, vector<288x128xf32> -> vector<288x128xf32>
    %c0_18 = arith.constant 0 : index
    %c14 = arith.constant 14 : index
    %c0_19 = arith.constant 0 : index
    %32 = vector.load %arg1[%c0_18, %c14, %c0_19] : memref<1x344x128xbf16, #tpu.memory_space<vmem>>, vector<1x288x128xbf16>
    %33 = vector.shape_cast %32 : vector<1x288x128xbf16> to vector<288x128xbf16>
    %c1 = arith.constant 1 : index
    %c0_20 = arith.constant 0 : index
    %c0_21 = arith.constant 0 : index
    %34 = vector.load %arg2[%c1, %c0_20, %c0_21] : memref<18x128x128xbf16, #tpu.memory_space<vmem>>, vector<1x128x128xbf16>
    %35 = vector.shape_cast %34 : vector<1x128x128xbf16> to vector<128x128xbf16>
    %cst_22 = arith.constant dense<0.000000e+00> : vector<288x128xf32>
    %36 = tpu.matmul %33, %35, %cst_22 {dimension_numbers = #tpu.dot_dimension_numbers<[1], [0], [0], [1], [0, 0, 1, 1], [], []>} : vector<288x128xbf16>, vector<128x128xbf16>, vector<288x128xf32> -> vector<288x128xf32>
    %37 = arith.addf %31, %36 : vector<288x128xf32>
    %c0_23 = arith.constant 0 : index
    %c15 = arith.constant 15 : index
    %c0_24 = arith.constant 0 : index
    %38 = vector.load %arg1[%c0_23, %c15, %c0_24] : memref<1x344x128xbf16, #tpu.memory_space<vmem>>, vector<1x288x128xbf16>
    %39 = vector.shape_cast %38 : vector<1x288x128xbf16> to vector<288x128xbf16>
    %c2 = arith.constant 2 : index
    %c0_25 = arith.constant 0 : index
    %c0_26 = arith.constant 0 : index
    %40 = vector.load %arg2[%c2, %c0_25, %c0_26] : memref<18x128x128xbf16, #tpu.memory_space<vmem>>, vector<1x128x128xbf16>
    %41 = vector.shape_cast %40 : vector<1x128x128xbf16> to vector<128x128xbf16>
    %cst_27 = arith.constant dense<0.000000e+00> : vector<288x128xf32>
    %42 = tpu.matmul %39, %41, %cst_27 {dimension_numbers = #tpu.dot_dimension_numbers<[1], [0], [0], [1], [0, 0, 1, 1], [], []>} : vector<288x128xbf16>, vector<128x128xbf16>, vector<288x128xf32> -> vector<288x128xf32>
    %43 = arith.addf %37, %42 : vector<288x128xf32>
    %c0_28 = arith.constant 0 : index
    %c31 = arith.constant 31 : index
    %c0_29 = arith.constant 0 : index
    %44 = vector.load %arg1[%c0_28, %c31, %c0_29] : memref<1x344x128xbf16, #tpu.memory_space<vmem>>, vector<1x288x128xbf16>
    %45 = vector.shape_cast %44 : vector<1x288x128xbf16> to vector<288x128xbf16>
    %c3 = arith.constant 3 : index
    %c0_30 = arith.constant 0 : index
    %c0_31 = arith.constant 0 : index
    %46 = vector.load %arg2[%c3, %c0_30, %c0_31] : memref<18x128x128xbf16, #tpu.memory_space<vmem>>, vector<1x128x128xbf16>
    %47 = vector.shape_cast %46 : vector<1x128x128xbf16> to vector<128x128xbf16>
    %cst_32 = arith.constant dense<0.000000e+00> : vector<288x128xf32>
    %48 = tpu.matmul %45, %47, %cst_32 {dimension_numbers = #tpu.dot_dimension_numbers<[1], [0], [0], [1], [0, 0, 1, 1], [], []>} : vector<288x128xbf16>, vector<128x128xbf16>, vector<288x128xf32> -> vector<288x128xf32>
    %49 = arith.addf %43, %48 : vector<288x128xf32>
    %c0_33 = arith.constant 0 : index
    %c32 = arith.constant 32 : index
    %c0_34 = arith.constant 0 : index
    %50 = vector.load %arg1[%c0_33, %c32, %c0_34] : memref<1x344x128xbf16, #tpu.memory_space<vmem>>, vector<1x288x128xbf16>
    %51 = vector.shape_cast %50 : vector<1x288x128xbf16> to vector<288x128xbf16>
    %c4 = arith.constant 4 : index
    %c0_35 = arith.constant 0 : index
    %c0_36 = arith.constant 0 : index
    %52 = vector.load %arg2[%c4, %c0_35, %c0_36] : memref<18x128x128xbf16, #tpu.memory_space<vmem>>, vector<1x128x128xbf16>
    %53 = vector.shape_cast %52 : vector<1x128x128xbf16> to vector<128x128xbf16>
    %cst_37 = arith.constant dense<0.000000e+00> : vector<288x128xf32>
    %54 = tpu.matmul %51, %53, %cst_37 {dimension_numbers = #tpu.dot_dimension_numbers<[1], [0], [0], [1], [0, 0, 1, 1], [], []>} : vector<288x128xbf16>, vector<128x128xbf16>, vector<288x128xf32> -> vector<288x128xf32>
    %55 = arith.addf %49, %54 : vector<288x128xf32>
    %c0_38 = arith.constant 0 : index
    %c33 = arith.constant 33 : index
    %c0_39 = arith.constant 0 : index
    %56 = vector.load %arg1[%c0_38, %c33, %c0_39] : memref<1x344x128xbf16, #tpu.memory_space<vmem>>, vector<1x288x128xbf16>
    %57 = vector.shape_cast %56 : vector<1x288x128xbf16> to vector<288x128xbf16>
    %c5 = arith.constant 5 : index
    %c0_40 = arith.constant 0 : index
    %c0_41 = arith.constant 0 : index
    %58 = vector.load %arg2[%c5, %c0_40, %c0_41] : memref<18x128x128xbf16, #tpu.memory_space<vmem>>, vector<1x128x128xbf16>
    %59 = vector.shape_cast %58 : vector<1x128x128xbf16> to vector<128x128xbf16>
    %cst_42 = arith.constant dense<0.000000e+00> : vector<288x128xf32>
    %60 = tpu.matmul %57, %59, %cst_42 {dimension_numbers = #tpu.dot_dimension_numbers<[1], [0], [0], [1], [0, 0, 1, 1], [], []>} : vector<288x128xbf16>, vector<128x128xbf16>, vector<288x128xf32> -> vector<288x128xf32>
    %61 = arith.addf %55, %60 : vector<288x128xf32>
    %c0_43 = arith.constant 0 : index
    %c49 = arith.constant 49 : index
    %c0_44 = arith.constant 0 : index
    %62 = vector.load %arg1[%c0_43, %c49, %c0_44] : memref<1x344x128xbf16, #tpu.memory_space<vmem>>, vector<1x288x128xbf16>
    %63 = vector.shape_cast %62 : vector<1x288x128xbf16> to vector<288x128xbf16>
    %c6 = arith.constant 6 : index
    %c0_45 = arith.constant 0 : index
    %c0_46 = arith.constant 0 : index
    %64 = vector.load %arg2[%c6, %c0_45, %c0_46] : memref<18x128x128xbf16, #tpu.memory_space<vmem>>, vector<1x128x128xbf16>
    %65 = vector.shape_cast %64 : vector<1x128x128xbf16> to vector<128x128xbf16>
    %cst_47 = arith.constant dense<0.000000e+00> : vector<288x128xf32>
    %66 = tpu.matmul %63, %65, %cst_47 {dimension_numbers = #tpu.dot_dimension_numbers<[1], [0], [0], [1], [0, 0, 1, 1], [], []>} : vector<288x128xbf16>, vector<128x128xbf16>, vector<288x128xf32> -> vector<288x128xf32>
    %67 = arith.addf %61, %66 : vector<288x128xf32>
    %c0_48 = arith.constant 0 : index
    %c50 = arith.constant 50 : index
    %c0_49 = arith.constant 0 : index
    %68 = vector.load %arg1[%c0_48, %c50, %c0_49] : memref<1x344x128xbf16, #tpu.memory_space<vmem>>, vector<1x288x128xbf16>
    %69 = vector.shape_cast %68 : vector<1x288x128xbf16> to vector<288x128xbf16>
    %c7 = arith.constant 7 : index
    %c0_50 = arith.constant 0 : index
    %c0_51 = arith.constant 0 : index
    %70 = vector.load %arg2[%c7, %c0_50, %c0_51] : memref<18x128x128xbf16, #tpu.memory_space<vmem>>, vector<1x128x128xbf16>
    %71 = vector.shape_cast %70 : vector<1x128x128xbf16> to vector<128x128xbf16>
    %cst_52 = arith.constant dense<0.000000e+00> : vector<288x128xf32>
    %72 = tpu.matmul %69, %71, %cst_52 {dimension_numbers = #tpu.dot_dimension_numbers<[1], [0], [0], [1], [0, 0, 1, 1], [], []>} : vector<288x128xbf16>, vector<128x128xbf16>, vector<288x128xf32> -> vector<288x128xf32>
    %73 = arith.addf %67, %72 : vector<288x128xf32>
    %c0_53 = arith.constant 0 : index
    %c51 = arith.constant 51 : index
    %c0_54 = arith.constant 0 : index
    %74 = vector.load %arg1[%c0_53, %c51, %c0_54] : memref<1x344x128xbf16, #tpu.memory_space<vmem>>, vector<1x288x128xbf16>
    %75 = vector.shape_cast %74 : vector<1x288x128xbf16> to vector<288x128xbf16>
    %c8 = arith.constant 8 : index
    %c0_55 = arith.constant 0 : index
    %c0_56 = arith.constant 0 : index
    %76 = vector.load %arg2[%c8, %c0_55, %c0_56] : memref<18x128x128xbf16, #tpu.memory_space<vmem>>, vector<1x128x128xbf16>
    %77 = vector.shape_cast %76 : vector<1x128x128xbf16> to vector<128x128xbf16>
    %cst_57 = arith.constant dense<0.000000e+00> : vector<288x128xf32>
    %78 = tpu.matmul %75, %77, %cst_57 {dimension_numbers = #tpu.dot_dimension_numbers<[1], [0], [0], [1], [0, 0, 1, 1], [], []>} : vector<288x128xbf16>, vector<128x128xbf16>, vector<288x128xf32> -> vector<288x128xf32>
    %79 = arith.addf %73, %78 : vector<288x128xf32>
    %c0_58 = arith.constant 0 : index
    %c0_59 = arith.constant 0 : index
    %c0_60 = arith.constant 0 : index
    %80 = vector.load %arg3[%c0_58, %c0_59, %c0_60] : memref<2x1x128xf32, #tpu.memory_space<vmem>>, vector<1x1x128xf32>
    %81 = vector.shape_cast %80 : vector<1x1x128xf32> to vector<1x128xf32>
    %82 = vector.broadcast %81 : vector<1x128xf32> to vector<288x128xf32>
    %83 = arith.addf %79, %82 : vector<288x128xf32>
    %cst_61 = arith.constant 0.000000e+00 : f32
    %84 = vector.broadcast %cst_61 : f32 to vector<288x128xf32>
    %85 = arith.maximumf %83, %84 : vector<288x128xf32>
    %cst_62 = arith.constant 0.000000e+00 : f32
    %86 = vector.shape_cast %26 : vector<288x1xi1> to vector<288x1xi1>
    %87 = vector.broadcast %86 : vector<288x1xi1> to vector<288x128xi1>
    %88 = vector.broadcast %cst_62 : f32 to vector<288x128xf32>
    %89 = arith.select %87, %85, %88 : vector<288x128xi1>, vector<288x128xf32>
    %90 = arith.truncf %89 : vector<288x128xf32> to vector<288x128xbf16>
    %c32_63 = arith.constant 32 : index
    %c0_64 = arith.constant 0 : index
    %91 = vector.load %arg5[%c32_63, %c0_64] : memref<344x128xbf16, #tpu.memory_space<vmem>>, vector<288x128xbf16>
    tpu.vector_store %arg5[%c32_63, %c0_64], %90 {strides = array<i32>} : memref<344x128xbf16, #tpu.memory_space<vmem>>, vector<288x128xbf16>,
    %c13_65 = arith.constant 13 : index
    %c0_66 = arith.constant 0 : index
    %92 = vector.load %arg5[%c13_65, %c0_66] : memref<344x128xbf16, #tpu.memory_space<vmem>>, vector<288x128xbf16>
    %c9 = arith.constant 9 : index
    %c0_67 = arith.constant 0 : index
    %c0_68 = arith.constant 0 : index
    %93 = vector.load %arg2[%c9, %c0_67, %c0_68] : memref<18x128x128xbf16, #tpu.memory_space<vmem>>, vector<1x128x128xbf16>
    %94 = vector.shape_cast %93 : vector<1x128x128xbf16> to vector<128x128xbf16>
    %cst_69 = arith.constant dense<0.000000e+00> : vector<288x128xf32>
    %95 = tpu.matmul %92, %94, %cst_69 {dimension_numbers = #tpu.dot_dimension_numbers<[1], [0], [0], [1], [0, 0, 1, 1], [], []>} : vector<288x128xbf16>, vector<128x128xbf16>, vector<288x128xf32> -> vector<288x128xf32>
    %c14_70 = arith.constant 14 : index
    %c0_71 = arith.constant 0 : index
    %96 = vector.load %arg5[%c14_70, %c0_71] : memref<344x128xbf16, #tpu.memory_space<vmem>>, vector<288x128xbf16>
    %c10 = arith.constant 10 : index
    %c0_72 = arith.constant 0 : index
    %c0_73 = arith.constant 0 : index
    %97 = vector.load %arg2[%c10, %c0_72, %c0_73] : memref<18x128x128xbf16, #tpu.memory_space<vmem>>, vector<1x128x128xbf16>
    %98 = vector.shape_cast %97 : vector<1x128x128xbf16> to vector<128x128xbf16>
    %cst_74 = arith.constant dense<0.000000e+00> : vector<288x128xf32>
    %99 = tpu.matmul %96, %98, %cst_74 {dimension_numbers = #tpu.dot_dimension_numbers<[1], [0], [0], [1], [0, 0, 1, 1], [], []>} : vector<288x128xbf16>, vector<128x128xbf16>, vector<288x128xf32> -> vector<288x128xf32>
    %100 = arith.addf %95, %99 : vector<288x128xf32>
    %c15_75 = arith.constant 15 : index
    %c0_76 = arith.constant 0 : index
    %101 = vector.load %arg5[%c15_75, %c0_76] : memref<344x128xbf16, #tpu.memory_space<vmem>>, vector<288x128xbf16>
    %c11 = arith.constant 11 : index
    %c0_77 = arith.constant 0 : index
    %c0_78 = arith.constant 0 : index
    %102 = vector.load %arg2[%c11, %c0_77, %c0_78] : memref<18x128x128xbf16, #tpu.memory_space<vmem>>, vector<1x128x128xbf16>
    %103 = vector.shape_cast %102 : vector<1x128x128xbf16> to vector<128x128xbf16>
    %cst_79 = arith.constant dense<0.000000e+00> : vector<288x128xf32>
    %104 = tpu.matmul %101, %103, %cst_79 {dimension_numbers = #tpu.dot_dimension_numbers<[1], [0], [0], [1], [0, 0, 1, 1], [], []>} : vector<288x128xbf16>, vector<128x128xbf16>, vector<288x128xf32> -> vector<288x128xf32>
    %105 = arith.addf %100, %104 : vector<288x128xf32>
    %c31_80 = arith.constant 31 : index
    %c0_81 = arith.constant 0 : index
    %106 = vector.load %arg5[%c31_80, %c0_81] : memref<344x128xbf16, #tpu.memory_space<vmem>>, vector<288x128xbf16>
    %c12 = arith.constant 12 : index
    %c0_82 = arith.constant 0 : index
    %c0_83 = arith.constant 0 : index
    %107 = vector.load %arg2[%c12, %c0_82, %c0_83] : memref<18x128x128xbf16, #tpu.memory_space<vmem>>, vector<1x128x128xbf16>
    %108 = vector.shape_cast %107 : vector<1x128x128xbf16> to vector<128x128xbf16>
    %cst_84 = arith.constant dense<0.000000e+00> : vector<288x128xf32>
    %109 = tpu.matmul %106, %108, %cst_84 {dimension_numbers = #tpu.dot_dimension_numbers<[1], [0], [0], [1], [0, 0, 1, 1], [], []>} : vector<288x128xbf16>, vector<128x128xbf16>, vector<288x128xf32> -> vector<288x128xf32>
    %110 = arith.addf %105, %109 : vector<288x128xf32>
    %c32_85 = arith.constant 32 : index
    %c0_86 = arith.constant 0 : index
    %111 = vector.load %arg5[%c32_85, %c0_86] : memref<344x128xbf16, #tpu.memory_space<vmem>>, vector<288x128xbf16>
    %c13_87 = arith.constant 13 : index
    %c0_88 = arith.constant 0 : index
    %c0_89 = arith.constant 0 : index
    %112 = vector.load %arg2[%c13_87, %c0_88, %c0_89] : memref<18x128x128xbf16, #tpu.memory_space<vmem>>, vector<1x128x128xbf16>
    %113 = vector.shape_cast %112 : vector<1x128x128xbf16> to vector<128x128xbf16>
    %cst_90 = arith.constant dense<0.000000e+00> : vector<288x128xf32>
    %114 = tpu.matmul %111, %113, %cst_90 {dimension_numbers = #tpu.dot_dimension_numbers<[1], [0], [0], [1], [0, 0, 1, 1], [], []>} : vector<288x128xbf16>, vector<128x128xbf16>, vector<288x128xf32> -> vector<288x128xf32>
    %115 = arith.addf %110, %114 : vector<288x128xf32>
    %c33_91 = arith.constant 33 : index
    %c0_92 = arith.constant 0 : index
    %116 = vector.load %arg5[%c33_91, %c0_92] : memref<344x128xbf16, #tpu.memory_space<vmem>>, vector<288x128xbf16>
    %c14_93 = arith.constant 14 : index
    %c0_94 = arith.constant 0 : index
    %c0_95 = arith.constant 0 : index
    %117 = vector.load %arg2[%c14_93, %c0_94, %c0_95] : memref<18x128x128xbf16, #tpu.memory_space<vmem>>, vector<1x128x128xbf16>
    %118 = vector.shape_cast %117 : vector<1x128x128xbf16> to vector<128x128xbf16>
    %cst_96 = arith.constant dense<0.000000e+00> : vector<288x128xf32>
    %119 = tpu.matmul %116, %118, %cst_96 {dimension_numbers = #tpu.dot_dimension_numbers<[1], [0], [0], [1], [0, 0, 1, 1], [], []>} : vector<288x128xbf16>, vector<128x128xbf16>, vector<288x128xf32> -> vector<288x128xf32>
    %120 = arith.addf %115, %119 : vector<288x128xf32>
    %c49_97 = arith.constant 49 : index
    %c0_98 = arith.constant 0 : index
    %121 = vector.load %arg5[%c49_97, %c0_98] : memref<344x128xbf16, #tpu.memory_space<vmem>>, vector<288x128xbf16>
    %c15_99 = arith.constant 15 : index
    %c0_100 = arith.constant 0 : index
    %c0_101 = arith.constant 0 : index
    %122 = vector.load %arg2[%c15_99, %c0_100, %c0_101] : memref<18x128x128xbf16, #tpu.memory_space<vmem>>, vector<1x128x128xbf16>
    %123 = vector.shape_cast %122 : vector<1x128x128xbf16> to vector<128x128xbf16>
    %cst_102 = arith.constant dense<0.000000e+00> : vector<288x128xf32>
    %124 = tpu.matmul %121, %123, %cst_102 {dimension_numbers = #tpu.dot_dimension_numbers<[1], [0], [0], [1], [0, 0, 1, 1], [], []>} : vector<288x128xbf16>, vector<128x128xbf16>, vector<288x128xf32> -> vector<288x128xf32>
    %125 = arith.addf %120, %124 : vector<288x128xf32>
    %c50_103 = arith.constant 50 : index
    %c0_104 = arith.constant 0 : index
    %126 = vector.load %arg5[%c50_103, %c0_104] : memref<344x128xbf16, #tpu.memory_space<vmem>>, vector<288x128xbf16>
    %c16 = arith.constant 16 : index
    %c0_105 = arith.constant 0 : index
    %c0_106 = arith.constant 0 : index
    %127 = vector.load %arg2[%c16, %c0_105, %c0_106] : memref<18x128x128xbf16, #tpu.memory_space<vmem>>, vector<1x128x128xbf16>
    %128 = vector.shape_cast %127 : vector<1x128x128xbf16> to vector<128x128xbf16>
    %cst_107 = arith.constant dense<0.000000e+00> : vector<288x128xf32>
    %129 = tpu.matmul %126, %128, %cst_107 {dimension_numbers = #tpu.dot_dimension_numbers<[1], [0], [0], [1], [0, 0, 1, 1], [], []>} : vector<288x128xbf16>, vector<128x128xbf16>, vector<288x128xf32> -> vector<288x128xf32>
    %130 = arith.addf %125, %129 : vector<288x128xf32>
    %c51_108 = arith.constant 51 : index
    %c0_109 = arith.constant 0 : index
    %131 = vector.load %arg5[%c51_108, %c0_109] : memref<344x128xbf16, #tpu.memory_space<vmem>>, vector<288x128xbf16>
    %c17 = arith.constant 17 : index
    %c0_110 = arith.constant 0 : index
    %c0_111 = arith.constant 0 : index
    %132 = vector.load %arg2[%c17, %c0_110, %c0_111] : memref<18x128x128xbf16, #tpu.memory_space<vmem>>, vector<1x128x128xbf16>
    %133 = vector.shape_cast %132 : vector<1x128x128xbf16> to vector<128x128xbf16>
    %cst_112 = arith.constant dense<0.000000e+00> : vector<288x128xf32>
    %134 = tpu.matmul %131, %133, %cst_112 {dimension_numbers = #tpu.dot_dimension_numbers<[1], [0], [0], [1], [0, 0, 1, 1], [], []>} : vector<288x128xbf16>, vector<128x128xbf16>, vector<288x128xf32> -> vector<288x128xf32>
    %135 = arith.addf %130, %134 : vector<288x128xf32>
    %c1_113 = arith.constant 1 : index
    %c0_114 = arith.constant 0 : index
    %c0_115 = arith.constant 0 : index
    %136 = vector.load %arg3[%c1_113, %c0_114, %c0_115] : memref<2x1x128xf32, #tpu.memory_space<vmem>>, vector<1x1x128xf32>
    %137 = vector.shape_cast %136 : vector<1x1x128xf32> to vector<1x128xf32>
    %138 = vector.broadcast %137 : vector<1x128xf32> to vector<288x128xf32>
    %139 = arith.addf %135, %138 : vector<288x128xf32>
    %cst_116 = arith.constant 0.000000e+00 : f32
    %140 = vector.broadcast %cst_116 : f32 to vector<288x128xf32>
    %141 = arith.maximumf %139, %140 : vector<288x128xf32>
    %cst_117 = arith.constant 0.000000e+00 : f32
    %142 = vector.shape_cast %26 : vector<288x1xi1> to vector<288x1xi1>
    %143 = vector.broadcast %142 : vector<288x1xi1> to vector<288x128xi1>
    %144 = vector.broadcast %cst_117 : f32 to vector<288x128xf32>
    %145 = arith.select %143, %141, %144 : vector<288x128xi1>, vector<288x128xf32>
    %146 = arith.truncf %145 : vector<288x128xf32> to vector<288x128xbf16>
    %c32_118 = arith.constant 32 : index
    %c0_119 = arith.constant 0 : index
    %147 = vector.load %arg6[%c32_118, %c0_119] : memref<344x128xbf16, #tpu.memory_space<vmem>>, vector<288x128xbf16>
    tpu.vector_store %arg6[%c32_118, %c0_119], %146 {strides = array<i32>} : memref<344x128xbf16, #tpu.memory_space<vmem>>, vector<288x128xbf16>,
    %c32_120 = arith.constant 32 : index
    %c0_121 = arith.constant 0 : index
    %148 = vector.load %arg6[%c32_120, %c0_121] : memref<344x128xbf16, #tpu.memory_space<vmem>>, vector<16x128xbf16>
    %c50_122 = arith.constant 50 : index
    %c0_123 = arith.constant 0 : index
    %149 = vector.load %arg6[%c50_122, %c0_123] : memref<344x128xbf16, #tpu.memory_space<vmem>>, vector<16x128xbf16>
    %150 = arith.maximumf %148, %149 : vector<16x128xbf16>
    %151 = vector.shape_cast %150 : vector<16x128xbf16> to vector<8x2x128xbf16>
    %cst_124 = arith.constant dense<0xFF80> : vector<8x128xbf16>
    %152 = vector.multi_reduction <maximumf>, %151, %cst_124 [1] : vector<8x2x128xbf16> to vector<8x128xbf16>
    %153 = arith.extf %152 : vector<8x128xbf16> to vector<8x128xf32>
    %c0_125 = arith.constant 0 : index
    %c0_126 = arith.constant 0 : index
    %c0_127 = arith.constant 0 : index
    %c0_128 = arith.constant 0 : index
    %154 = vector.load %arg4[%c0_125, %c0_126, %c0_127, %c0_128] : memref<1x8x8x128xf32, #tpu.memory_space<vmem>>, vector<1x1x8x128xf32>
    %155 = vector.shape_cast %154 : vector<1x1x8x128xf32> to vector<8x128xf32>
    %156 = vector.shape_cast %153 : vector<8x128xf32> to vector<1x1x8x128xf32>
    tpu.vector_store %arg4[%c0_125, %c0_126, %c0_127, %c0_128], %156 {strides = array<i32>} : memref<1x8x8x128xf32, #tpu.memory_space<vmem>>, vector<1x1x8x128xf32>,
    %c68 = arith.constant 68 : index
    %c0_129 = arith.constant 0 : index
    %157 = vector.load %arg6[%c68, %c0_129] : memref<344x128xbf16, #tpu.memory_space<vmem>>, vector<16x128xbf16>
    %c86 = arith.constant 86 : index
    %c0_130 = arith.constant 0 : index
    %158 = vector.load %arg6[%c86, %c0_130] : memref<344x128xbf16, #tpu.memory_space<vmem>>, vector<16x128xbf16>
    %159 = arith.maximumf %157, %158 : vector<16x128xbf16>
    %160 = vector.shape_cast %159 : vector<16x128xbf16> to vector<8x2x128xbf16>
    %cst_131 = arith.constant dense<0xFF80> : vector<8x128xbf16>
    %161 = vector.multi_reduction <maximumf>, %160, %cst_131 [1] : vector<8x2x128xbf16> to vector<8x128xbf16>
    %162 = arith.extf %161 : vector<8x128xbf16> to vector<8x128xf32>
    %c0_132 = arith.constant 0 : index
    %c1_133 = arith.constant 1 : index
    %c0_134 = arith.constant 0 : index
    %c0_135 = arith.constant 0 : index
    %163 = vector.load %arg4[%c0_132, %c1_133, %c0_134, %c0_135] : memref<1x8x8x128xf32, #tpu.memory_space<vmem>>, vector<1x1x8x128xf32>
    %164 = vector.shape_cast %163 : vector<1x1x8x128xf32> to vector<8x128xf32>
    %165 = vector.shape_cast %162 : vector<8x128xf32> to vector<1x1x8x128xf32>
    tpu.vector_store %arg4[%c0_132, %c1_133, %c0_134, %c0_135], %165 {strides = array<i32>} : memref<1x8x8x128xf32, #tpu.memory_space<vmem>>, vector<1x1x8x128xf32>,
    %c104 = arith.constant 104 : index
    %c0_136 = arith.constant 0 : index
    %166 = vector.load %arg6[%c104, %c0_136] : memref<344x128xbf16, #tpu.memory_space<vmem>>, vector<16x128xbf16>
    %c122 = arith.constant 122 : index
    %c0_137 = arith.constant 0 : index
    %167 = vector.load %arg6[%c122, %c0_137] : memref<344x128xbf16, #tpu.memory_space<vmem>>, vector<16x128xbf16>
    %168 = arith.maximumf %166, %167 : vector<16x128xbf16>
    %169 = vector.shape_cast %168 : vector<16x128xbf16> to vector<8x2x128xbf16>
    %cst_138 = arith.constant dense<0xFF80> : vector<8x128xbf16>
    %170 = vector.multi_reduction <maximumf>, %169, %cst_138 [1] : vector<8x2x128xbf16> to vector<8x128xbf16>
    %171 = arith.extf %170 : vector<8x128xbf16> to vector<8x128xf32>
    %c0_139 = arith.constant 0 : index
    %c2_140 = arith.constant 2 : index
    %c0_141 = arith.constant 0 : index
    %c0_142 = arith.constant 0 : index
    %172 = vector.load %arg4[%c0_139, %c2_140, %c0_141, %c0_142] : memref<1x8x8x128xf32, #tpu.memory_space<vmem>>, vector<1x1x8x128xf32>
    %173 = vector.shape_cast %172 : vector<1x1x8x128xf32> to vector<8x128xf32>
    %174 = vector.shape_cast %171 : vector<8x128xf32> to vector<1x1x8x128xf32>
    tpu.vector_store %arg4[%c0_139, %c2_140, %c0_141, %c0_142], %174 {strides = array<i32>} : memref<1x8x8x128xf32, #tpu.memory_space<vmem>>, vector<1x1x8x128xf32>,
    %c140 = arith.constant 140 : index
    %c0_143 = arith.constant 0 : index
    %175 = vector.load %arg6[%c140, %c0_143] : memref<344x128xbf16, #tpu.memory_space<vmem>>, vector<16x128xbf16>
    %c158 = arith.constant 158 : index
    %c0_144 = arith.constant 0 : index
    %176 = vector.load %arg6[%c158, %c0_144] : memref<344x128xbf16, #tpu.memory_space<vmem>>, vector<16x128xbf16>
    %177 = arith.maximumf %175, %176 : vector<16x128xbf16>
    %178 = vector.shape_cast %177 : vector<16x128xbf16> to vector<8x2x128xbf16>
    %cst_145 = arith.constant dense<0xFF80> : vector<8x128xbf16>
    %179 = vector.multi_reduction <maximumf>, %178, %cst_145 [1] : vector<8x2x128xbf16> to vector<8x128xbf16>
    %180 = arith.extf %179 : vector<8x128xbf16> to vector<8x128xf32>
    %c0_146 = arith.constant 0 : index
    %c3_147 = arith.constant 3 : index
    %c0_148 = arith.constant 0 : index
    %c0_149 = arith.constant 0 : index
    %181 = vector.load %arg4[%c0_146, %c3_147, %c0_148, %c0_149] : memref<1x8x8x128xf32, #tpu.memory_space<vmem>>, vector<1x1x8x128xf32>
    %182 = vector.shape_cast %181 : vector<1x1x8x128xf32> to vector<8x128xf32>
    %183 = vector.shape_cast %180 : vector<8x128xf32> to vector<1x1x8x128xf32>
    tpu.vector_store %arg4[%c0_146, %c3_147, %c0_148, %c0_149], %183 {strides = array<i32>} : memref<1x8x8x128xf32, #tpu.memory_space<vmem>>, vector<1x1x8x128xf32>,
    %c176 = arith.constant 176 : index
    %c0_150 = arith.constant 0 : index
    %184 = vector.load %arg6[%c176, %c0_150] : memref<344x128xbf16, #tpu.memory_space<vmem>>, vector<16x128xbf16>
    %c194 = arith.constant 194 : index
    %c0_151 = arith.constant 0 : index
    %185 = vector.load %arg6[%c194, %c0_151] : memref<344x128xbf16, #tpu.memory_space<vmem>>, vector<16x128xbf16>
    %186 = arith.maximumf %184, %185 : vector<16x128xbf16>
    %187 = vector.shape_cast %186 : vector<16x128xbf16> to vector<8x2x128xbf16>
    %cst_152 = arith.constant dense<0xFF80> : vector<8x128xbf16>
    %188 = vector.multi_reduction <maximumf>, %187, %cst_152 [1] : vector<8x2x128xbf16> to vector<8x128xbf16>
    %189 = arith.extf %188 : vector<8x128xbf16> to vector<8x128xf32>
    %c0_153 = arith.constant 0 : index
    %c4_154 = arith.constant 4 : index
    %c0_155 = arith.constant 0 : index
    %c0_156 = arith.constant 0 : index
    %190 = vector.load %arg4[%c0_153, %c4_154, %c0_155, %c0_156] : memref<1x8x8x128xf32, #tpu.memory_space<vmem>>, vector<1x1x8x128xf32>
    %191 = vector.shape_cast %190 : vector<1x1x8x128xf32> to vector<8x128xf32>
    %192 = vector.shape_cast %189 : vector<8x128xf32> to vector<1x1x8x128xf32>
    tpu.vector_store %arg4[%c0_153, %c4_154, %c0_155, %c0_156], %192 {strides = array<i32>} : memref<1x8x8x128xf32, #tpu.memory_space<vmem>>, vector<1x1x8x128xf32>,
    %c212 = arith.constant 212 : index
    %c0_157 = arith.constant 0 : index
    %193 = vector.load %arg6[%c212, %c0_157] : memref<344x128xbf16, #tpu.memory_space<vmem>>, vector<16x128xbf16>
    %c230 = arith.constant 230 : index
    %c0_158 = arith.constant 0 : index
    %194 = vector.load %arg6[%c230, %c0_158] : memref<344x128xbf16, #tpu.memory_space<vmem>>, vector<16x128xbf16>
    %195 = arith.maximumf %193, %194 : vector<16x128xbf16>
    %196 = vector.shape_cast %195 : vector<16x128xbf16> to vector<8x2x128xbf16>
    %cst_159 = arith.constant dense<0xFF80> : vector<8x128xbf16>
    %197 = vector.multi_reduction <maximumf>, %196, %cst_159 [1] : vector<8x2x128xbf16> to vector<8x128xbf16>
    %198 = arith.extf %197 : vector<8x128xbf16> to vector<8x128xf32>
    %c0_160 = arith.constant 0 : index
    %c5_161 = arith.constant 5 : index
    %c0_162 = arith.constant 0 : index
    %c0_163 = arith.constant 0 : index
    %199 = vector.load %arg4[%c0_160, %c5_161, %c0_162, %c0_163] : memref<1x8x8x128xf32, #tpu.memory_space<vmem>>, vector<1x1x8x128xf32>
    %200 = vector.shape_cast %199 : vector<1x1x8x128xf32> to vector<8x128xf32>
    %201 = vector.shape_cast %198 : vector<8x128xf32> to vector<1x1x8x128xf32>
    tpu.vector_store %arg4[%c0_160, %c5_161, %c0_162, %c0_163], %201 {strides = array<i32>} : memref<1x8x8x128xf32, #tpu.memory_space<vmem>>, vector<1x1x8x128xf32>,
    %c248 = arith.constant 248 : index
    %c0_164 = arith.constant 0 : index
    %202 = vector.load %arg6[%c248, %c0_164] : memref<344x128xbf16, #tpu.memory_space<vmem>>, vector<16x128xbf16>
    %c266 = arith.constant 266 : index
    %c0_165 = arith.constant 0 : index
    %203 = vector.load %arg6[%c266, %c0_165] : memref<344x128xbf16, #tpu.memory_space<vmem>>, vector<16x128xbf16>
    %204 = arith.maximumf %202, %203 : vector<16x128xbf16>
    %205 = vector.shape_cast %204 : vector<16x128xbf16> to vector<8x2x128xbf16>
    %cst_166 = arith.constant dense<0xFF80> : vector<8x128xbf16>
    %206 = vector.multi_reduction <maximumf>, %205, %cst_166 [1] : vector<8x2x128xbf16> to vector<8x128xbf16>
    %207 = arith.extf %206 : vector<8x128xbf16> to vector<8x128xf32>
    %c0_167 = arith.constant 0 : index
    %c6_168 = arith.constant 6 : index
    %c0_169 = arith.constant 0 : index
    %c0_170 = arith.constant 0 : index
    %208 = vector.load %arg4[%c0_167, %c6_168, %c0_169, %c0_170] : memref<1x8x8x128xf32, #tpu.memory_space<vmem>>, vector<1x1x8x128xf32>
    %209 = vector.shape_cast %208 : vector<1x1x8x128xf32> to vector<8x128xf32>
    %210 = vector.shape_cast %207 : vector<8x128xf32> to vector<1x1x8x128xf32>
    tpu.vector_store %arg4[%c0_167, %c6_168, %c0_169, %c0_170], %210 {strides = array<i32>} : memref<1x8x8x128xf32, #tpu.memory_space<vmem>>, vector<1x1x8x128xf32>,
    %c284 = arith.constant 284 : index
    %c0_171 = arith.constant 0 : index
    %211 = vector.load %arg6[%c284, %c0_171] : memref<344x128xbf16, #tpu.memory_space<vmem>>, vector<16x128xbf16>
    %c302 = arith.constant 302 : index
    %c0_172 = arith.constant 0 : index
    %212 = vector.load %arg6[%c302, %c0_172] : memref<344x128xbf16, #tpu.memory_space<vmem>>, vector<16x128xbf16>
    %213 = arith.maximumf %211, %212 : vector<16x128xbf16>
    %214 = vector.shape_cast %213 : vector<16x128xbf16> to vector<8x2x128xbf16>
    %cst_173 = arith.constant dense<0xFF80> : vector<8x128xbf16>
    %215 = vector.multi_reduction <maximumf>, %214, %cst_173 [1] : vector<8x2x128xbf16> to vector<8x128xbf16>
    %216 = arith.extf %215 : vector<8x128xbf16> to vector<8x128xf32>
    %c0_174 = arith.constant 0 : index
    %c7_175 = arith.constant 7 : index
    %c0_176 = arith.constant 0 : index
    %c0_177 = arith.constant 0 : index
    %217 = vector.load %arg4[%c0_174, %c7_175, %c0_176, %c0_177] : memref<1x8x8x128xf32, #tpu.memory_space<vmem>>, vector<1x1x8x128xf32>
    %218 = vector.shape_cast %217 : vector<1x1x8x128xf32> to vector<8x128xf32>
    %219 = vector.shape_cast %216 : vector<8x128xf32> to vector<1x1x8x128xf32>
    tpu.vector_store %arg4[%c0_174, %c7_175, %c0_176, %c0_177], %219 {strides = array<i32>} : memref<1x8x8x128xf32, #tpu.memory_space<vmem>>, vector<1x1x8x128xf32>,
    return
  }
  func.func @transform_0(%arg0: i32) -> (i32, i32, i32) {
    %c0_i32 = arith.constant 0 : i32
    %c0_i32_0 = arith.constant 0 : i32
    %c0_i32_1 = arith.constant 0 : i32
    return %arg0, %c0_i32, %c0_i32_0 : i32, i32, i32
  }
  func.func @transform_1(%arg0: i32) -> (i32, i32, i32) {
    %c0_i32 = arith.constant 0 : i32
    %c0_i32_0 = arith.constant 0 : i32
    %c0_i32_1 = arith.constant 0 : i32
    %c0_i32_2 = arith.constant 0 : i32
    return %c0_i32, %c0_i32_0, %c0_i32_1 : i32, i32, i32
  }
  func.func @transform_2(%arg0: i32) -> (i32, i32, i32) {
    %c0_i32 = arith.constant 0 : i32
    %c0_i32_0 = arith.constant 0 : i32
    %c0_i32_1 = arith.constant 0 : i32
    %c0_i32_2 = arith.constant 0 : i32
    return %c0_i32, %c0_i32_0, %c0_i32_1 : i32, i32, i32
  }
  func.func @transform_3(%arg0: i32) -> (i32, i32, i32, i32) {
    %c0_i32 = arith.constant 0 : i32
    %c0_i32_0 = arith.constant 0 : i32
    %c0_i32_1 = arith.constant 0 : i32
    %c0_i32_2 = arith.constant 0 : i32
    return %arg0, %c0_i32, %c0_i32_0, %c0_i32_1 : i32, i32, i32, i32
  }
}

</mosaic_0001>

<bundles_post_ra>
// kernel: n_conv_forward.1
= control target key start
LH: loop header
LB: loop body
LE: loop exit
PB: predicated region body
PF: predicated region fallthrough
CT: control target
= control target key end

     0   :  { %s14781_s12 = smov 0   ;;  %s19136_s0 = inlined_call_operand.vmem [shape: bf16[2,344,128], index: 0, kind: input, shape index: {}]   ;;  %s19137_s1 = inlined_call_operand.vmem [shape: bf16[18,128,128], index: 1, kind: input, shape index: {}]   ;;  %s19138_s2 = inlined_call_operand.vmem [shape: f32[2,1,128], index: 2, kind: input, shape index: {}]   ;;  %s19139_s3 = inlined_call_operand.vmem [shape: f32[2,8,8,128], index: 3, kind: output, shape index: {}]  }
   0x1 LB: > { %s11322_s13 = sadd.s32 4294967295, %s14757_s12   ;;  %p11326_p0 = scmp.ge.s32.totalorder %s14757_s12, 1  ;;  %s14757_s12 = sphi %s14781_s12, %s13_s12  }
   0x2   : > { %p137_p1 = scmp.lt.s32.totalorder %s14757_s12, 3 }
   0x4   : > { %p138_p2 = pnand %p11326_p0, %p137_p1 }
   0x6   : > { %141 = sbr.rel (%p138_p2) target bundleno = 1995 (0x7cb), region = 32 }
   0xd   : > { %v14386_v0 = vld [vmem:[%s19137_s1 + $0x40] sm:$0xff]   ;;  %p161_p3 = scmp.lt.s32.totalorder %s11322_s13, 1  ;;  %v14387_v1 = vld [vmem:[%s19137_s1 + $0x48] sm:$0xff]   ;;  %v14388_v2 = vld [vmem:[%s19137_s1 + $0x50] sm:$0xff]   ;;  %vm19175_vm0 = vcmask 1044480   ;;  %vm19172_vm4 = vcmask 1046528  }
   0xe   : > { %12791 = vmatprep.subr.bf16.mxu0 %v14386_v0  ;;  %v14389_v3 = vld [vmem:[%s19137_s1 + $0x58] sm:$0xff]   ;;  %v14390_v9 = vld [vmem:[%s19137_s1 + $0x60] sm:$0xff]   ;;  %v14391_v12 = vld [vmem:[%s19137_s1 + $0x68] sm:$0xff]   ;;  %vm19174_vm1 = vsmask.f32 5376 }
   0xf   : > { %s20163_s13 = smov (!%p161_p3, %s11322_s13), 1  ;;  %12792 = vmatpush3.bf16.msra.mxu0 %v14386_v0  ;;  %v14392_v14 = vld [vmem:[%s19137_s1 + $0x70] sm:$0xff]   ;;  %v14393_v20 = vld [vmem:[%s19137_s1 + $0x78] sm:$0xff]   ;;  %v14397_v29 = vld [vmem:[%s19137_s1] sm:$0xff]   ;;  %vm19173_vm2 = vsmask.f32 4352 }
  0x10   : > { %12793 = vmatprep.subr.bf16.mxu0 %v14387_v1  ;;  %s14303_s20 = smul.u32 172, %s20163_s13  ;;  %v14400_v45 = vld [vmem:[%s19137_s1 + $0x8] sm:$0xff]   ;;  %v14403_v57 = vld [vmem:[%s19137_s1 + $0x10] sm:$0xff]   ;;  %vm19170_vm3 = vsmask.f32 7424  ;;  %s12034_s17 = sshll.u32 %s20163_s13, 6 }
  0x11   : > { %vm19171_vm5 = vsmask.f32 6400  ;;  %s18773_s19 = scalar_lea.vmem %s19139_s3, %s12034_s17 }
  0x12   : > { %s14804_s23 = scalar_lea.vmem %s19136_s0, %s14303_s20 }
  0x13   : > { %12794 = vmatpush3.bf16.msra.mxu0 %v14387_v1  ;;  %v14810_v4 = vld [vmem:[%s14804_s23 + $0x8] sm:$0xf]  ;;  %v889_v5 = vld [vmem:[%s14804_s23 + $0x4] sm:$0x8]  ;;  %v14814_v6 = vld [vmem:[%s14804_s23 + $0xc] sm:$0xff]  }
  0x14   : > { %12795 = vmatprep.subr.bf16.mxu0 %v14388_v2  ;;  %v14817_v7 = vcombine.low %v889_v5, %v14810_v4  ;;  %v1002_v8 = vrot.slane %v14814_v6, 3  ;;  %v14829_v13 = vld [vmem:[%s14804_s23 + $0x14] sm:$0xff]   ;;  %v14835_v15 = vld [vmem:[%s14804_s23 + $0x1c] sm:$0xff]   ;;  %v14838_v16 = vld [vmem:[%s14804_s23 + $0x24] sm:$0xff]   ;;  %v1294_v24 = vshrl.u32 %v14814_v6, 16  ;;  %v1297_v31 = vshll.u32 %v14814_v6, 16 }
  0x15   : > { %v14841_v17 = vld [vmem:[%s14804_s23 + $0x2c] sm:$0xff]   ;;  %v1004_v18 = vrot.slane %v14829_v13, 3  ;;  %v14845_v19 = vld [vmem:[%s14804_s23 + $0x34] sm:$0xff]   ;;  %v1006_v21 = vrot.slane %v14835_v15, 3  ;;  %v14852_v22 = vld [vmem:[%s14804_s23 + $0x3c] sm:$0xff]   ;;  %v1008_v25 = vrot.slane %v14838_v16, 3 }
  0x16   : > { %v1001_v10 = vrot.slane %v14817_v7, 3  ;;  %v14855_v23 = vld [vmem:[%s14804_s23 + $0x44] sm:$0xff]   ;;  %v14860_v26 = vld [vmem:[%s14804_s23 + $0x4c] sm:$0xff]   ;;  %v1010_v27 = vrot.slane %v14841_v17, 3  ;;  %v14864_v28 = vld [vmem:[%s14804_s23 + $0x54] sm:$0xff]   ;;  %v1012_v30 = vrot.slane %v14845_v19, 3 }
  0x17   : > { %12796 = vmatpush3.bf16.msra.mxu0 %v14388_v2  ;;  %v1014_v32 = vrot.slane %v14852_v22, 3  ;;  %v1296_v33 = vrot.slane %v1294_v24, 2  ;;  %v1016_v34 = vrot.slane %v14855_v23, 3  ;;  %v14876_v35 = vld [vmem:[%s14804_s23 + $0x5c] sm:$0xff]   ;;  %v1018_v36 = vrot.slane %v14860_v26, 3  ;;  %v14881_v38 = vld [vmem:[%s14804_s23 + $0x64] sm:$0xff]  }
  0x18   : > { %12797 = vmatprep.subr.bf16.mxu0 %v14389_v3  ;;  %v1003_v11 = vsel %vm19175_vm0, %v1001_v10, %v1002_v8  ;;  %v1020_v37 = vrot.slane %v14864_v28, 3  ;;  %v1299_v39 = vrot.slane %v1297_v31, 3  ;;  %v1005_v40 = vsel %vm19175_vm0, %v1002_v8, %v1004_v18  ;;  %v14887_v41 = vld [vmem:[%s14804_s23 + $0x6c] sm:$0xff]   ;;  %v14914_v54 = vld [vmem:[%s14804_s23 + $0x74] sm:$0xff]   ;;  %v836_v55 = vld [vmem:[%s14804_s23 + $0x4] sm:$0xc] }
  0x19   : > { %12807 = vmatprep.mubr.bf16.mxu0 %v1003_v11  ;;  %v1303_v42 = vshrl.u32 %v14829_v13, 16  ;;  %v1007_v43 = vsel %vm19175_vm0, %v1004_v18, %v1006_v21  ;;  %v1009_v44 = vsel %vm19175_vm0, %v1006_v21, %v1008_v25  ;;  %v19147_v46 = vrot.slane %v14876_v35, 3  ;;  %v15045_v53 = vld [vmem:[%s14804_s23 + $0x8c] sm:$0xff]  }
  0x1a   : > { %v1011_v47 = vsel %vm19175_vm0, %v1008_v25, %v1010_v27  ;;  %v14898_v48 = vsel %vm19175_vm0, %v1010_v27, %v1012_v30  ;;  %v14901_v49 = vsel %vm19175_vm0, %v1012_v30, %v1014_v32  ;;  %v14904_v50 = vsel %vm19175_vm0, %v1014_v32, %v1016_v34 }
  0x1b   : > { %12798 = vmatpush3.bf16.msra.mxu0 %v14389_v3  ;;  %v14907_v51 = vsel %vm19175_vm0, %v1016_v34, %v1018_v36  ;;  %v14910_v52 = vsel %vm19175_vm0, %v1018_v36, %v1020_v37  ;;  %v1300_v56 = vor.u32 %v1299_v39, %v1296_v33  ;;  %v11373_v59 = vcombine.low %v836_v55, %v14810_v4 }
  0x1c   : > { %12799 = vmatprep.subr.bf16.mxu0 %v14390_v9  ;;  %v1305_v60 = vrot.slane %v1303_v42, 2  ;;  %v1306_v61 = vshll.u32 %v14829_v13, 16  ;;  %v14928_v62 = vsel %vm19175_vm0, %v1020_v37, %v19147_v46  ;;  %v1312_v63 = vshrl.u32 %v14835_v15, 16 }
  0x1d   : > { %v1315_v0 = vshll.u32 %v14835_v15, 16  ;;  %v1286_v1 = vshrl.u32 %v11373_v59, 16  ;;  %v1289_v2 = vshll.u32 %v11373_v59, 16  ;;  %v1321_v4 = vshrl.u32 %v14838_v16, 16 }
  0x1e   : > { %v1308_v3 = vrot.slane %v1306_v61, 3  ;;  %v1314_v8 = vrot.slane %v1312_v63, 2  ;;  %v1324_v10 = vshll.u32 %v14838_v16, 16  ;;  %v19166_v27 = vshrl.u32 %v14841_v17, 16 }
  0x1f   : > { %12800 = vmatpush3.bf16.msra.mxu0 %v14390_v9  ;;  %v1317_v9 = vrot.slane %v1315_v0, 3  ;;  %v1288_v11 = vrot.slane %v1286_v1, 2  ;;  %v1323_v18 = vrot.slane %v1321_v4, 2  ;;  %v19161_v33 = vshrl.u32 %v14845_v19, 16 }
  0x20   : > { %12801 = vmatprep.subr.bf16.mxu0 %v14391_v12  ;;  %v1326_v25 = vrot.slane %v1324_v10, 3  ;;  %v19160_v34 = vshll.u32 %v14845_v19, 16  ;;  %v1332_v39 = vrot.slane %v19166_v27, 2  ;;  %v19156_v59 = vshrl.u32 %v14852_v22, 16 }
  0x21   : > { %v1318_v21 = vor.u32 %v1317_v9, %v1314_v8  ;;  %v19150_v1 = vshrl.u32 %v14855_v23, 16  ;;  %v19140_v8 = vshrl.u32 %v14860_v26, 16  ;;  %v19145_v5 = vshll.u32 %v14876_v35, 16 }
  0x22   : > { %v1327_v37 = vor.u32 %v1326_v25, %v1323_v18  ;;  %v1344_v55 = vrot.slane %v19160_v34, 3  ;;  %v19155_v46 = vshll.u32 %v14914_v54, 16  ;;  %v1737_v6 = vrot.slane %v1315_v0, 4 }
  0x23   : > { %12802 = vmatpush3.bf16.msra.mxu0 %v14391_v12  ;;  %v1291_v12 = vrot.slane %v1289_v2, 3  ;;  %v1368_v25 = vrot.slane %v19140_v8, 2  ;;  %v19146_v8 = vshrl.u32 %v14881_v38, 16  ;;  %v1741_v13 = vrot.slane %v1324_v10, 4 }
  0x24   : > { %12803 = vmatprep.subr.bf16.mxu0 %v14392_v14  ;;  %v19301_v15 = vshrl.u32 %v14841_v17, 16  ;;  %v19304_v10 = vshll.u32 %v14845_v19, 16 }
  0x25   : > { %v1292_v30 = vor.u32 %v1291_v12, %v1288_v11  ;;  %v1359_v12 = vrot.slane %v19150_v1, 2 }
  0x26   : > { %v1744_v0 = vrot.slane %v19301_v15, 3 }
  0x27   : > { %12804 = vmatpush3.bf16.msra.mxu0 %v14392_v14  ;;  %v1309_v14 = vor.u32 %v1308_v3, %v1305_v60  ;;  %v14974_v60 = vsel %vm19174_vm1, %v1318_v21, %v1327_v37  ;;  %v19149_v3 = vshll.u32 %v14855_v23, 16 }
  0x28   : > { %12805 = vmatprep.subr.bf16.mxu0 %v14393_v20 }
  0x29   : > { %v14951_v32 = vsel %vm19174_vm1, %v1300_v56, %v1309_v14  ;;  %v14956_v36 = vsel %vm19174_vm1, %v1309_v14, %v1318_v21  ;;  %v19141_v14 = vshll.u32 %v14860_v26, 16  ;;  %v1362_v21 = vrot.slane %v19149_v3, 3 }
  0x2b   : > { %12806 = vmatpush3.bf16.msra.mxu0 %v14393_v20  ;;  %v14406_v20 = vld [vmem:[%s19137_s1 + $0x18] sm:$0xff]  }
  0x2c   : > { %12843 = vmatprep.subr.bf16.mxu0 %v14397_v29 }
  0x2e   : > { %12808 = vmatmul.mubr.bf16.vlgmr.msra.gmra.mrb[0].mxu0 %v1005_v40 }
  0x2f   : > { %12844 = vmatpush3.bf16.msra.mxu0 %v14397_v29  ;;  %12811 = vmatprep.mubr.bf16.mxu0 %v1007_v43  ;;  %v19164_v29 = vshll.u32 %v14841_v17, 16  ;;  %v14409_v43 = vld [vmem:[%s19137_s1 + $0x20] sm:$0xff]  }
  0x30   : > { %12845 = vmatprep.subr.bf16.mxu0 %v14400_v45 }
  0x31   : > { %v1335_v40 = vrot.slane %v19164_v29, 3 }
  0x33   : > { %12846 = vmatpush3.bf16.msra.mxu0 %v14400_v45  ;;  %v14966_v45 = vsel %vm19174_vm1, %v1292_v30, %v1300_v56  ;;  %v1350_v56 = vrot.slane %v19156_v59, 2  ;;  %v19142_v30 = vshrl.u32 %v14864_v28, 16 }
  0x34   : > { %12847 = vmatprep.subr.bf16.mxu0 %v14403_v57 }
  0x36   : > { %12812 = vmatmul.mubr.bf16.gmra.mrb[4].mxu0 %v1009_v44  ;;  %v1341_v44 = vrot.slane %v19161_v33, 2  ;;  %v1724_v33 = vshll.u32 %v14817_v7, 16 }
  0x37   : > { %12815 = vmatprep.mubr.bf16.mxu0 %v1011_v47  ;;  %12848 = vmatpush3.bf16.msra.mxu0 %v14403_v57  ;;  %v1336_v47 = vor.u32 %v1335_v40, %v1332_v39  ;;  %v19153_v57 = vshll.u32 %v14852_v22, 16  ;;  %v19144_v40 = vshll.u32 %v14864_v28, 16 }
  0x38   : > { %12849 = vmatprep.subr.bf16.mxu0 %v14406_v20  ;;  %v1345_v2 = vor.u32 %v1344_v55, %v1341_v44  ;;  %v19143_v44 = vshrl.u32 %v14876_v35, 16  ;;  %v1363_v55 = vor.u32 %v1362_v21, %v1359_v12  ;;  %v1726_v27 = vrot.slane %v1724_v33, 4 }
  0x39   : > { %v14983_v9 = vsel %vm19174_vm1, %v1327_v37, %v1336_v47  ;;  %v1353_v11 = vrot.slane %v19153_v57, 3  ;;  %v14412_v37 = vld [vmem:[%s19137_s1 + $0x28] sm:$0xff]   ;;  %v1380_v12 = vrot.slane %v19144_v40, 3  ;;  %v19151_v40 = vshll.u32 %v14887_v41, 16 }
  0x3a   : > { %v14991_v18 = vsel %vm19174_vm1, %v1336_v47, %v1345_v2  ;;  %v1377_v47 = vrot.slane %v19142_v30, 2  ;;  %v1386_v21 = vrot.slane %v19143_v44, 2  ;;  %v1736_v33 = vrot.slane %v1312_v63, 3 }
  0x3b   : > { %12850 = vmatpush3.bf16.msra.mxu0 %v14406_v20  ;;  %v1354_v39 = vor.u32 %v1353_v11, %v1350_v56  ;;  %v1371_v20 = vrot.slane %v19141_v14, 3  ;;  %v14415_v56 = vld [vmem:[%s19137_s1 + $0x30] sm:$0xff]  }
  0x3c   : > { %12851 = vmatprep.subr.bf16.mxu0 %v14409_v43  ;;  %v1738_v63 = vor.u32 %v1737_v6, %v1736_v33  ;;  %v19311_v33 = vrot.slane %v14887_v41, 3 }
  0x3d   : > { %v15014_v11 = vsel %vm19174_vm1, %v1345_v2, %v1354_v39  ;;  %v1372_v14 = vor.u32 %v1371_v20, %v1368_v25  ;;  %v15025_v30 = vsel %vm19174_vm1, %v1354_v39, %v1363_v55  ;;  %v1389_v2 = vrot.slane %v19145_v5, 3  ;;  %v15038_v39 = vld [vmem:[%s14804_s23 + $0x84] sm:$0xff]  }
  0x3e   : > { %12816 = vmatmul.mubr.bf16.gmra.mrb[8].mxu0 %v14898_v48  ;;  %v15022_v48 = vld [vmem:[%s14804_s23 + $0x7c] sm:$0xff]   ;;  %v1395_v25 = vrot.slane %v19146_v8, 2  ;;  %v19148_v20 = vshll.u32 %v14881_v38, 16  ;;  %v19154_v8 = vshrl.u32 %v14914_v54, 16 }
  0x3f   : > { %12819 = vmatprep.mubr.bf16.mxu0 %v14901_v49  ;;  %12852 = vmatpush3.bf16.msra.mxu0 %v14409_v43  ;;  %v15033_v44 = vsel %vm19174_vm1, %v1363_v55, %v1372_v14  ;;  %v1381_v49 = vor.u32 %v1380_v12, %v1377_v47  ;;  %v19152_v43 = vshrl.u32 %v14887_v41, 16  ;;  %v1390_v58 = vor.u32 %v1389_v2, %v1386_v21  ;;  %v15056_v2 = vld [vmem:[%s14804_s23 + $0x94] ss:$0 sps:$4 sm:$0x77]  }
  0x40   : > { %12853 = vmatprep.subr.bf16.mxu0 %v14412_v37  ;;  %v1398_v5 = vrot.slane %v19148_v20, 3  ;;  %v1407_v12 = vrot.slane %v19151_v40, 3  ;;  %v19157_v21 = vshrl.u32 %v15022_v48, 16  ;;  %v1413_v1 = vrot.slane %v19154_v8, 2  ;;  %v14419_v40 = vld [vmem:[%s19137_s1 + $0x38] sm:$0xff]  }
  0x41   : > { %v15048_v55 = vsel %vm19174_vm1, %v1372_v14, %v1381_v49  ;;  %v1404_v47 = vrot.slane %v19152_v43, 2  ;;  %v15059_v20 = vsel %vm19174_vm1, %v1381_v49, %v1390_v58  ;;  %v1416_v14 = vrot.slane %v19155_v46, 3 }
  0x42   : > { %v1399_v3 = vor.u32 %v1398_v5, %v1395_v25  ;;  %v19159_v57 = vshll.u32 %v15022_v48, 16  ;;  %v19158_v49 = vshrl.u32 %v15038_v39, 16  ;;  %v19162_v8 = vshll.u32 %v15038_v39, 16 }
  0x43   : > { %12854 = vmatpush3.bf16.msra.mxu0 %v14412_v37  ;;  %v1408_v43 = vor.u32 %v1407_v12, %v1404_v47  ;;  %v1422_v37 = vrot.slane %v19157_v21, 2  ;;  %v1417_v25 = vor.u32 %v1416_v14, %v1413_v1  ;;  %v19163_v46 = vshrl.u32 %v15045_v53, 16 }
  0x44   : > { %12855 = vmatprep.subr.bf16.mxu0 %v14415_v56  ;;  %v15073_v5 = vsel %vm19174_vm1, %v1390_v58, %v1399_v3  ;;  %v1425_v47 = vrot.slane %v19159_v57, 3  ;;  %v1431_v12 = vrot.slane %v19158_v49, 2  ;;  %v19165_v21 = vshll.u32 %v15045_v53, 16  ;;  %v15090_v58 = vld [vmem:[%s19137_s1 + $0x80] sm:$0xff]  }
  0x45   : > { %v15079_v59 = vsel %vm19174_vm1, %v1399_v3, %v1408_v43  ;;  %v1434_v1 = vrot.slane %v19162_v8, 3  ;;  %v1440_v3 = vrot.slane %v19163_v46, 2  ;;  %v1447_v14 = vshrl.u32 %v15056_v2, 16 }
  0x46   : > { %12820 = vmatmul.mubr.bf16.gmra.mrb[12].mxu0 %v14904_v50  ;;  %v15093_v50 = vsel %vm19174_vm1, %v1408_v43, %v1417_v25  ;;  %v1426_v49 = vor.u32 %v1425_v47, %v1422_v37  ;;  %v1721_v43 = vshrl.u32 %v14817_v7, 16  ;;  %v1728_v37 = vrot.slane %v1294_v24, 3 }
  0x47   : > { %12823 = vmatprep.mubr.bf16.mxu0 %v14907_v51  ;;  %12856 = vmatpush3.bf16.msra.mxu0 %v14415_v56  ;;  %v1443_v51 = vrot.slane %v19165_v21, 3  ;;  %v1450_v56 = vshll.u32 %v15056_v2, 16  ;;  %v1435_v57 = vor.u32 %v1434_v1, %v1431_v12  ;;  %v1449_v34 = vrot.slane %v1447_v14, 2 }
  0x48   : > { %12857 = vmatprep.subr.bf16.mxu0 %v14419_v40  ;;  %v15106_v8 = vsel %vm19174_vm1, %v1417_v25, %v1426_v49  ;;  %v1723_v21 = vrot.slane %v1721_v43, 3  ;;  %v1729_v12 = vrot.slane %v1297_v31, 4  ;;  %v1732_v1 = vrot.slane %v1303_v42, 3 }
  0x49   : > { %v1444_v46 = vor.u32 %v1443_v51, %v1440_v3  ;;  %v1452_v29 = vrot.slane %v1450_v56, 3  ;;  %v15111_v47 = vsel %vm19174_vm1, %v1426_v49, %v1435_v57  ;;  %v1733_v24 = vrot.slane %v1306_v61, 4 }
  0x4a   : > { %v1730_v49 = vor.u32 %v1729_v12, %v1728_v37  ;;  %v1740_v42 = vrot.slane %v1321_v4, 3  ;;  %v19303_v4 = vshrl.u32 %v14845_v19, 16  ;;  %v19305_v3 = vshrl.u32 %v14852_v22, 16 }
  0x4b   : > { %12858 = vmatpush3.bf16.msra.mxu0 %v14419_v40  ;;  %v15117_v7 = vsel %vm19174_vm1, %v1435_v57, %v1444_v46  ;;  %v1453_v25 = vor.u32 %v1452_v29, %v1449_v34  ;;  %v1727_v40 = vor.u32 %v1726_v27, %v1723_v21  ;;  %v1734_v29 = vor.u32 %v1733_v24, %v1732_v1 }
  0x4c   : > { %12895 = vmatprep.subr.bf16.mxu0 %v15090_v58  ;;  %v1742_v34 = vor.u32 %v1741_v13, %v1740_v42  ;;  %v1748_v16 = vrot.slane %v19303_v4, 3  ;;  %v1752_v14 = vrot.slane %v19305_v3, 3  ;;  %v19307_v37 = vshrl.u32 %v14855_v23, 16 }
  0x4d   : > { %v15129_v31 = vsel %vm19174_vm1, %v1444_v46, %v1453_v25  ;;  %v15137_v61 = vsel %vm19173_vm2, %v1727_v40, %v1730_v49  ;;  %v15144_v27 = vsel %vm19173_vm2, %v1730_v49, %v1734_v29  ;;  %v15151_v57 = vsel %vm19173_vm2, %v1734_v29, %v1738_v63 }
  0x4e   : > { %12824 = vmatmul.mubr.bf16.gmra.mrb[16].mxu0 %v14910_v52  ;;  %v19302_v52 = vshll.u32 %v14841_v17, 16  ;;  %v19306_v17 = vshll.u32 %v14852_v22, 16  ;;  %v15158_v56 = vsel %vm19173_vm2, %v1738_v63, %v1742_v34  ;;  %v1756_v12 = vrot.slane %v19307_v37, 3 }
  0x4f   : > { %12827 = vmatprep.mubr.bf16.mxu0 %v14928_v62  ;;  %v1749_v62 = vrot.slane %v19304_v10, 4  ;;  %v19308_v19 = vshll.u32 %v14855_v23, 16  ;;  %v19309_v1 = vrot.slane %v14881_v38, 3  ;;  %v19310_v24 = vrot.slane %v14876_v35, 3 }
  0x50   : > { %v1745_v46 = vrot.slane %v19302_v52, 4  ;;  %v1753_v51 = vrot.slane %v19306_v17, 4  ;;  %v1030_v63 = vrot.slane %v15022_v48, 3  ;;  %v19315_v4 = vshrl.u32 %v14864_v28, 16 }
  0x51   : > { %v1750_v43 = vor.u32 %v1749_v62, %v1748_v16  ;;  %v1757_v25 = vrot.slane %v19308_v19, 4  ;;  %v1025_v40 = vsel %vm19175_vm0, %v19310_v24, %v19309_v1  ;;  %v19312_v6 = vmov %v19309_v1 }
  0x52   : > { %v1746_v21 = vor.u32 %v1745_v46, %v1744_v0  ;;  %v1754_v22 = vor.u32 %v1753_v51, %v1752_v14  ;;  %v1027_v29 = vsel %vm19175_vm0, %v19312_v6, %v19311_v33  ;;  %v19313_v0 = vshrl.u32 %v14860_v26, 16 }
  0x53   : > { %v1758_v23 = vor.u32 %v1757_v25, %v1756_v12  ;;  %v19314_v46 = vshll.u32 %v14860_v26, 16  ;;  %v1764_v16 = vrot.slane %v19315_v4, 3  ;;  %v19316_v10 = vshll.u32 %v14864_v28, 16 }
  0x54   : > { %v15170_v49 = vsel %vm19173_vm2, %v1742_v34, %v1746_v21  ;;  %v15178_v42 = vsel %vm19173_vm2, %v1746_v21, %v1750_v43  ;;  %v15181_v13 = vsel %vm19173_vm2, %v1750_v43, %v1754_v22  ;;  %v1760_v52 = vrot.slane %v19313_v0, 3 }
  0x55   : > { %v15185_v15 = vsel %vm19173_vm2, %v1754_v22, %v1758_v23  ;;  %v1761_v34 = vrot.slane %v19314_v46, 4  ;;  %v1765_v62 = vrot.slane %v19316_v10, 4  ;;  %v19317_v17 = vrot.slane %v14914_v54, 3 }
  0x56   : > { %12828 = vmatmul.mubr.bf16.gmra.mrb[20].mxu0 %v1025_v40  ;;  %v19318_v51 = vmov %v19311_v33  ;;  %v1032_v28 = vrot.slane %v15038_v39, 3  ;;  %v1034_v19 = vrot.slane %v15045_v53, 3  ;;  %v19320_v25 = vshrl.u32 %v14876_v35, 16 }
  0x57   : > { %12831 = vmatprep.mubr.bf16.mxu0 %v1027_v29  ;;  %v1762_v21 = vor.u32 %v1761_v34, %v1760_v52  ;;  %v1766_v3 = vor.u32 %v1765_v62, %v1764_v16  ;;  %v1029_v43 = vsel %vm19175_vm0, %v19318_v51, %v19317_v17  ;;  %v19319_v37 = vmov %v19317_v17 }
  0x58   : > { %v1031_v12 = vsel %vm19175_vm0, %v19319_v37, %v1030_v63  ;;  %v1768_v1 = vrot.slane %v19320_v25, 3  ;;  %v19321_v24 = vshll.u32 %v14876_v35, 16  ;;  %v19322_v22 = vshrl.u32 %v14881_v38, 16 }
  0x59   : > { %v15196_v14 = vsel %vm19173_vm2, %v1758_v23, %v1762_v21  ;;  %v15204_v26 = vsel %vm19173_vm2, %v1762_v21, %v1766_v3  ;;  %v19323_v6 = vshll.u32 %v14881_v38, 16  ;;  %v1033_v46 = vsel %vm19175_vm0, %v1030_v63, %v1032_v28 }
  0x5a   : > { %v1769_v40 = vrot.slane %v19321_v24, 4  ;;  %v1772_v33 = vrot.slane %v19322_v22, 3  ;;  %v1035_v35 = vsel %vm19175_vm0, %v1032_v28, %v1034_v19  ;;  %v1036_v4 = vrot.slane %v15056_v2, 3 }
  0x5b   : > { %v1773_v29 = vrot.slane %v19323_v6, 4  ;;  %v19324_v16 = vshrl.u32 %v14887_v41, 16  ;;  %v19325_v38 = vshll.u32 %v14887_v41, 16  ;;  %v19326_v21 = vshrl.u32 %v14914_v54, 16  ;;  %v14423_v6 = vld [vmem:[%s19137_s1 + $0x88] sm:$0xff]  }
  0x5c   : > { %v1770_v23 = vor.u32 %v1769_v40, %v1768_v1  ;;  %v19327_v63 = vshll.u32 %v14914_v54, 16  ;;  %v1037_v2 = vsel %vm19175_vm0, %v1034_v19, %v1036_v4  ;;  %v19328_v41 = vshrl.u32 %v15022_v48, 16  ;;  %v15376_v4 = vld [vmem:[%s14804_s23 + $0x28] sm:$0xf] }
  0x5d   : > { %v1774_v0 = vor.u32 %v1773_v29, %v1772_v33  ;;  %v1776_v10 = vrot.slane %v19324_v16, 3  ;;  %v1777_v62 = vrot.slane %v19325_v38, 4  ;;  %v19329_v25 = vshll.u32 %v15022_v48, 16 }
  0x5e   : > { %12832 = vmatmul.mubr.bf16.gmra.mrb[24].mxu0 %v1029_v43  ;;  %v15220_v52 = vsel %vm19173_vm2, %v1766_v3, %v1770_v23  ;;  %v1780_v3 = vrot.slane %v19326_v21, 3  ;;  %v1781_v17 = vrot.slane %v19327_v63, 4  ;;  %v1784_v28 = vrot.slane %v19328_v41, 3 }
  0x5f   : > { %12835 = vmatprep.mubr.bf16.mxu0 %v1031_v12  ;;  %v15224_v34 = vsel %vm19173_vm2, %v1770_v23, %v1774_v0  ;;  %v1778_v51 = vor.u32 %v1777_v62, %v1776_v10  ;;  %v1785_v1 = vrot.slane %v19329_v25, 4  ;;  %v19330_v54 = vshrl.u32 %v15038_v39, 16  ;;  %v15385_v25 = vld [vmem:[%s14804_s23 + $0x2c] sm:$0xf] }
  0x60   : > { %v1782_v43 = vor.u32 %v1781_v17, %v1780_v3  ;;  %v19331_v40 = vshll.u32 %v15038_v39, 16  ;;  %v19333_v39 = vshll.u32 %v15045_v53, 16 }
  0x61   : > { %v15237_v37 = vsel %vm19173_vm2, %v1774_v0, %v1778_v51  ;;  %v1788_v24 = vrot.slane %v19330_v54, 3  ;;  %v1786_v33 = vor.u32 %v1785_v1, %v1784_v28  ;;  %v15388_v1 = vld [vmem:[%s14804_s23 + $0x30] sm:$0xf]  ;;  %v15391_v54 = vld [vmem:[%s14804_s23 + $0x34] sm:$0xf] }
  0x62   : > { %v15241_v12 = vsel %vm19173_vm2, %v1778_v51, %v1782_v43  ;;  %v1789_v22 = vrot.slane %v19331_v40, 4  ;;  %v1793_v0 = vrot.slane %v19333_v39, 4 }
  0x63   : > { %v15256_v29 = vsel %vm19173_vm2, %v1782_v43, %v1786_v33 }
  0x64   : > { %v1790_v19 = vor.u32 %v1789_v22, %v1788_v24  ;;  %v15394_v24 = vld [vmem:[%s14804_s23 + $0x38] sm:$0xf] }
  0x66   : > { %12836 = vmatmul.mubr.bf16.gmra.mrb[28].mxu0 %v1033_v46  ;;  %v15259_v48 = vsel %vm19173_vm2, %v1786_v33, %v1790_v19  ;;  %v14424_v46 = vld [vmem:[%s19137_s1 + $0x90] sm:$0xff]  }
  0x67   : > { %12839 = vmatprep.mubr.bf16.mxu0 %v1035_v35 }
  0x6e   : > { %12840 = vmatmul.mubr.bf16.gmra.mrb[32].mxu0 %v1037_v2 }
  0x6f   : > { %12859 = vmatprep.mubr.bf16.mxu0 %v14966_v45  ;;  %v19332_v45 = vshrl.u32 %v15045_v53, 16  ;;  %v14425_v53 = vld [vmem:[%s19137_s1 + $0x98] sm:$0xff]  }
  0x71   : > { %v1792_v23 = vrot.slane %v19332_v45, 3  ;;  %v11428_v45 = vcombine.low %v15391_v54, %v15394_v24 }
  0x73   : > { %v15271_v35 = vor.u32 %v1793_v0, %v1792_v23 }
  0x76   : > { %12860 = vmatmul.mubr.bf16.vlgmr.msra.gmra.mrb[0].mxu0 %v14951_v32  ;;  %v15275_v32 = vsel %vm19173_vm2, %v1790_v19, %v15271_v35  ;;  %v11427_v19 = vcombine.low %v15385_v25, %v15388_v1 }
  0x77   : > { %12896 = vmatpush3.bf16.msra.mxu0 %v15090_v58  ;;  %12863 = vmatprep.mubr.bf16.mxu0 %v14956_v36  ;;  %v14426_v36 = vld [vmem:[%s19137_s1 + $0xa0] sm:$0xff]   ;;  %v14427_v58 = vld [vmem:[%s19137_s1 + $0xa8] sm:$0xff]  }
  0x78   : > { %12897 = vmatprep.subr.bf16.mxu0 %v14423_v6  ;;  %v2267_v39 = vshrl.u32 %v11427_v19, 16  ;;  %v2270_v0 = vshll.u32 %v11427_v19, 16  ;;  %v15459_v19 = vld [vmem:[%s14804_s23 + $0x64] sm:$0xf] }
  0x7b   : > { %12898 = vmatpush3.bf16.msra.mxu0 %v14423_v6 }
  0x7c   : > { %12899 = vmatprep.subr.bf16.mxu0 %v14424_v46 }
  0x7e   : > { %12864 = vmatmul.mubr.bf16.gmra.mrb[4].mxu0 %v14974_v60  ;;  %v14428_v60 = vld [vmem:[%s19137_s1 + $0xb0] sm:$0xff]  }
  0x7f   : > { %12867 = vmatprep.mubr.bf16.mxu0 %v14983_v9  ;;  %12900 = vmatpush3.bf16.msra.mxu0 %v14424_v46  ;;  %v14429_v9 = vld [vmem:[%s19137_s1 + $0xb8] sm:$0xff]  }
  0x80   : > { %12901 = vmatprep.subr.bf16.mxu0 %v14425_v53 }
  0x83   : > { %12902 = vmatpush3.bf16.msra.mxu0 %v14425_v53  ;;  %v15404_v53 = vld [vmem:[%s14804_s23 + $0x3c] sm:$0xf] }
  0x84   : > { %12903 = vmatprep.subr.bf16.mxu0 %v14426_v36 }
  0x86   : > { %12868 = vmatmul.mubr.bf16.gmra.mrb[8].mxu0 %v14991_v18  ;;  %v14430_v18 = vld [vmem:[%s19137_s1 + $0xc0] sm:$0xff]  }
  0x87   : > { %12871 = vmatprep.mubr.bf16.mxu0 %v15014_v11  ;;  %12904 = vmatpush3.bf16.msra.mxu0 %v14426_v36  ;;  %v14435_v11 = vld [vmem:[%s19137_s1 + $0xe8] sm:$0xff]   ;;  %v15407_v36 = vld [vmem:[%s14804_s23 + $0x40] sm:$0xf] }
  0x88   : > { %12905 = vmatprep.subr.bf16.mxu0 %v14427_v58 }
  0x8b   : > { %12906 = vmatpush3.bf16.msra.mxu0 %v14427_v58  ;;  %v15410_v58 = vld [vmem:[%s14804_s23 + $0x44] sm:$0xf] }
  0x8c   : > { %12907 = vmatprep.subr.bf16.mxu0 %v14428_v60 }
  0x8e   : > { %12872 = vmatmul.mubr.bf16.gmra.mrb[12].mxu0 %v15025_v30  ;;  %v14431_v30 = vld [vmem:[%s19137_s1 + $0xc8] sm:$0xff]  }
  0x8f   : > { %12875 = vmatprep.mubr.bf16.mxu0 %v15033_v44  ;;  %12908 = vmatpush3.bf16.msra.mxu0 %v14428_v60  ;;  %v14434_v44 = vld [vmem:[%s19137_s1 + $0xe0] sm:$0xff]   ;;  %v15413_v60 = vld [vmem:[%s14804_s23 + $0x48] sm:$0xf] }
  0x90   : > { %12909 = vmatprep.subr.bf16.mxu0 %v14429_v9 }
  0x93   : > { %12910 = vmatpush3.bf16.msra.mxu0 %v14429_v9 }
  0x94   : > { %12947 = vmatprep.subr.bf16.mxu0 %v14430_v18 }
  0x96   : > { %12876 = vmatmul.mubr.bf16.gmra.mrb[16].mxu0 %v15048_v55  ;;  %v14437_v55 = vld [vmem:[%s19137_s1 + $0xf8] sm:$0xff]  }
  0x97   : > { %12879 = vmatprep.mubr.bf16.mxu0 %v15059_v20  ;;  %v14436_v20 = vld [vmem:[%s19137_s1 + $0xf0] sm:$0xff]  }
  0x9e   : > { %12880 = vmatmul.mubr.bf16.gmra.mrb[20].mxu0 %v15073_v5  ;;  %v15343_v5 = vld [vmem:[%s19137_s1 + $0x100] sm:$0xff]  }
  0x9f   : > { %12883 = vmatprep.mubr.bf16.mxu0 %v15079_v59  ;;  %v14432_v59 = vld [vmem:[%s19137_s1 + $0xd0] sm:$0xff]  }
  0xa6   : > { %12884 = vmatmul.mubr.bf16.gmra.mrb[24].mxu0 %v15093_v50  ;;  %v2084_v50 = vld [vmem:[%s14804_s23 + $0xc] sm:$0x8] }
  0xa7   : > { %12887 = vmatprep.mubr.bf16.mxu0 %v15106_v8  ;;  %v14433_v8 = vld [vmem:[%s19137_s1 + $0xd8] sm:$0xff]  }
  0xae   : > { %12888 = vmatmul.mubr.bf16.gmra.mrb[28].mxu0 %v15111_v47  ;;  %v15352_v47 = vld [vmem:[%s14804_s23 + $0x10] sm:$0xf] }
  0xaf   : > { %12891 = vmatprep.mubr.bf16.mxu0 %v15117_v7  ;;  %v15355_v7 = vld [vmem:[%s14804_s23 + $0x14] sm:$0xf] }
  0xb6   : > { %12892 = vmatmul.mubr.bf16.gmra.mrb[32].mxu0 %v15129_v31  ;;  %v15358_v31 = vld [vmem:[%s14804_s23 + $0x18] sm:$0xf] }
  0xb7   : > { %12911 = vmatprep.mubr.bf16.mxu0 %v15137_v61  ;;  %v14438_v61 = vld [vmem:[%s14804_s23 + $0x94] ss:$0 sps:$4 sm:$0xff]  }
  0xbe   : > { %12912 = vmatmul.mubr.bf16.vlgmr.msra.gmra.mrb[0].mxu0 %v15144_v27  ;;  %v11423_v27 = vcombine.low %v2084_v50, %v15352_v47 }
  0xbf   : > { %12948 = vmatpush3.bf16.msra.mxu0 %v14430_v18  ;;  %12915 = vmatprep.mubr.bf16.mxu0 %v15151_v57  ;;  %v11424_v57 = vcombine.low %v15355_v7, %v15358_v31  ;;  %v2269_v18 = vrot.slane %v2267_v39, 3 }
  0xc0   : > { %12949 = vmatprep.subr.bf16.mxu0 %v14431_v30 }
  0xc3   : > { %12950 = vmatpush3.bf16.msra.mxu0 %v14431_v30  ;;  %v2272_v30 = vrot.slane %v2270_v0, 4 }
  0xc4   : > { %12951 = vmatprep.subr.bf16.mxu0 %v14432_v59 }
  0xc5   : > { %v2273_v50 = vor.u32 %v2272_v30, %v2269_v18 }
  0xc6   : > { %12916 = vmatmul.mubr.bf16.gmra.mrb[4].mxu0 %v15158_v56  ;;  %v1797_v56 = vshrl.u32 %v14438_v61, 16 }
  0xc7   : > { %12919 = vmatprep.mubr.bf16.mxu0 %v15170_v49  ;;  %12952 = vmatpush3.bf16.msra.mxu0 %v14432_v59  ;;  %v1800_v49 = vshll.u32 %v14438_v61, 16  ;;  %v11429_v59 = vcombine.low %v15404_v53, %v15407_v36 }
  0xc8   : > { %12953 = vmatprep.subr.bf16.mxu0 %v14433_v8  ;;  %v1799_v16 = vrot.slane %v1797_v56, 3 }
  0xc9   : > { %v1802_v10 = vrot.slane %v1800_v49, 4  ;;  %v2285_v61 = vshrl.u32 %v11429_v59, 16  ;;  %v14448_v49 = vld [vmem:[%s19137_s1 + $0x110] sm:$0xff]  }
  0xcb   : > { %12954 = vmatpush3.bf16.msra.mxu0 %v14433_v8  ;;  %v1803_v51 = vor.u32 %v1802_v10, %v1799_v16  ;;  %v15438_v16 = vld [vmem:[%s14804_s23 + $0x58] sm:$0xf]  ;;  %v2287_v10 = vrot.slane %v2285_v61, 3 }
  0xcc   : > { %12955 = vmatprep.subr.bf16.mxu0 %v14434_v44  ;;  %v15486_v61 = vld [vmem:[%s14804_s23 + $0x78] sm:$0xf] }
  0xcd   : > { %v1804_v40 = vsel %vm19173_vm2, %v15271_v35, %v1803_v51  ;;  %v2276_v35 = vshrl.u32 %v11428_v45, 16 }
  0xce   : > { %12920 = vmatmul.mubr.bf16.gmra.mrb[8].mxu0 %v15178_v42  ;;  %v2232_v42 = vshrl.u32 %v11423_v27, 16 }
  0xcf   : > { %12923 = vmatprep.mubr.bf16.mxu0 %v15181_v13  ;;  %12956 = vmatpush3.bf16.msra.mxu0 %v14434_v44  ;;  %v15367_v13 = vld [vmem:[%s14804_s23 + $0x1c] sm:$0xf]  ;;  %v14445_v44 = vld [vmem:[%s19137_s1 + $0x108] sm:$0xff]  }
  0xd0   : > { %12957 = vmatprep.subr.bf16.mxu0 %v14435_v11  ;;  %v2234_v38 = vrot.slane %v2232_v42, 3 }
  0xd3   : > { %12958 = vmatpush3.bf16.msra.mxu0 %v14435_v11  ;;  %v2278_v11 = vrot.slane %v2276_v35, 3 }
  0xd4   : > { %12959 = vmatprep.subr.bf16.mxu0 %v14436_v20 }
  0xd6   : > { %12924 = vmatmul.mubr.bf16.gmra.mrb[12].mxu0 %v15185_v15  ;;  %v2235_v15 = vshll.u32 %v11423_v27, 16  ;;  %v2288_v27 = vshll.u32 %v11429_v59, 16  ;;  %v15474_v59 = vld [vmem:[%s14804_s23 + $0x6c] sm:$0xf] }
  0xd7   : > { %12927 = vmatprep.mubr.bf16.mxu0 %v15196_v14  ;;  %12960 = vmatpush3.bf16.msra.mxu0 %v14436_v20  ;;  %v2240_v14 = vshrl.u32 %v11424_v57, 16 }
  0xd8   : > { %12961 = vmatprep.subr.bf16.mxu0 %v14437_v55  ;;  %v2237_v21 = vrot.slane %v2235_v15, 4 }
  0xd9   : > { %v2242_v3 = vrot.slane %v2240_v14, 3  ;;  %v15432_v14 = vld [vmem:[%s14804_s23 + $0x50] sm:$0xf] }
  0xda   : > { %v2238_v2 = vor.u32 %v2237_v21, %v2234_v38  ;;  %v2290_v38 = vrot.slane %v2288_v27, 4 }
  0xdb   : > { %12962 = vmatpush3.bf16.msra.mxu0 %v14437_v55  ;;  %v11430_v55 = vcombine.low %v15410_v58, %v15413_v60 }
  0xdc   : > { %12999 = vmatprep.subr.bf16.mxu0 %v15343_v5 }
  0xdd   : > { %v2294_v42 = vshrl.u32 %v11430_v55, 16  ;;  %v2297_v15 = vshll.u32 %v11430_v55, 16  ;;  %v14460_v55 = vld [vmem:[%s19137_s1 + $0x130] sm:$0xff]  }
  0xde   : > { %12928 = vmatmul.mubr.bf16.gmra.mrb[16].mxu0 %v15204_v26  ;;  %v2243_v26 = vshll.u32 %v11424_v57, 16  ;;  %v15426_v57 = vld [vmem:[%s14804_s23 + $0x4c] sm:$0xf] }
  0xdf   : > { %12931 = vmatprep.mubr.bf16.mxu0 %v15220_v52  ;;  %v15370_v52 = vld [vmem:[%s14804_s23 + $0x20] sm:$0xf] }
  0xe0   : > { %v11425_v62 = vcombine.low %v15367_v13, %v15370_v52  ;;  %v2245_v63 = vrot.slane %v2243_v26, 4  ;;  %v15435_v26 = vld [vmem:[%s14804_s23 + $0x54] sm:$0xf] }
  0xe1   : > { %v11432_v51 = vcombine.low %v15435_v26, %v15438_v16 }
  0xe2   : > { %v2249_v43 = vshrl.u32 %v11425_v62, 16 }
  0xe4   : > { %v2251_v22 = vrot.slane %v2249_v43, 3  ;;  %v2291_v43 = vor.u32 %v2290_v38, %v2287_v10 }
  0xe6   : > { %12932 = vmatmul.mubr.bf16.gmra.mrb[20].mxu0 %v15224_v34  ;;  %v15373_v34 = vld [vmem:[%s14804_s23 + $0x24] sm:$0xf] }
  0xe7   : > { %12935 = vmatprep.mubr.bf16.mxu0 %v15237_v37  ;;  %v11426_v17 = vcombine.low %v15373_v34, %v15376_v4  ;;  %v2252_v37 = vshll.u32 %v11425_v62, 16  ;;  %v11431_v62 = vcombine.low %v15426_v57, %v15432_v14 }
  0xe9   : > { %v2258_v41 = vshrl.u32 %v11426_v17, 16  ;;  %v2261_v28 = vshll.u32 %v11426_v17, 16  ;;  %v2254_v33 = vrot.slane %v2252_v37, 4  ;;  %v14451_v17 = vld [vmem:[%s19137_s1 + $0x118] sm:$0xff]   ;;  %v2303_v37 = vshrl.u32 %v11431_v62, 16 }
  0xeb   : > { %v2255_v23 = vor.u32 %v2254_v33, %v2251_v22  ;;  %v15453_v22 = vld [vmem:[%s14804_s23 + $0x60] sm:$0xf] }
  0xec   : > { %v14454_v33 = vld [vmem:[%s19137_s1 + $0x120] sm:$0xff]  }
  0xee   : > { %12936 = vmatmul.mubr.bf16.gmra.mrb[24].mxu0 %v15241_v12  ;;  %v2246_v12 = vor.u32 %v2245_v63, %v2242_v3  ;;  %v2296_v3 = vrot.slane %v2294_v42, 3  ;;  %v2299_v63 = vrot.slane %v2297_v15, 4 }
  0xef   : > { %12939 = vmatprep.mubr.bf16.mxu0 %v15256_v29  ;;  %v2260_v29 = vrot.slane %v2258_v41, 3 }
  0xf0   : > { %v2247_v6 = vsel %vm19173_vm2, %v2238_v2, %v2246_v12  ;;  %v2256_v9 = vsel %vm19173_vm2, %v2246_v12, %v2255_v23  ;;  %v2306_v2 = vshll.u32 %v11431_v62, 16  ;;  %v15450_v12 = vld [vmem:[%s14804_s23 + $0x5c] sm:$0xf]  ;;  %v2300_v41 = vor.u32 %v2299_v63, %v2296_v3 }
  0xf1   : > { %v14464_v62 = vld [vmem:[%s19137_s1 + $0x138] sm:$0xff]  }
  0xf2   : > { %v2301_v39 = vsel %vm19173_vm2, %v2291_v43, %v2300_v41 }
  0xf6   : > { %12940 = vmatmul.mubr.bf16.gmra.mrb[28].mxu0 %v15259_v48  ;;  %v2263_v48 = vrot.slane %v2261_v28, 4  ;;  %v2312_v28 = vshrl.u32 %v11432_v51, 16 }
  0xf7   : > { %12943 = vmatprep.mubr.bf16.mxu0 %v15275_v32  ;;  %v2279_v32 = vshll.u32 %v11428_v45, 16  ;;  %v2308_v45 = vrot.slane %v2306_v2, 4  ;;  %v15501_v2 = vld [vmem:[%s14804_s23 + $0x80] sm:$0xf] }
  0xf8   : > { %v2264_v46 = vor.u32 %v2263_v48, %v2260_v29  ;;  %v2305_v48 = vrot.slane %v2303_v37, 3  ;;  %v2314_v0 = vrot.slane %v2312_v28, 3  ;;  %v15509_v28 = vld [vmem:[%s14804_s23 + $0x84] sm:$0xf] }
  0xf9   : > { %v2281_v20 = vrot.slane %v2279_v32, 4  ;;  %v14457_v32 = vld [vmem:[%s19137_s1 + $0x128] sm:$0xff]  }
  0xfa   : > { %v2265_v8 = vsel %vm19173_vm2, %v2255_v23, %v2264_v46  ;;  %v11433_v23 = vcombine.low %v15450_v12, %v15453_v22 }
  0xfb   : > { %v2282_v56 = vor.u32 %v2281_v20, %v2278_v11  ;;  %v15477_v20 = vld [vmem:[%s14804_s23 + $0x70] sm:$0xf] }
  0xfc   : > { %v2321_v18 = vshrl.u32 %v11433_v23, 16  ;;  %v2324_v30 = vshll.u32 %v11433_v23, 16  ;;  %v11435_v42 = vcombine.low %v15474_v59, %v15477_v20 }
  0xfd   : > { %v2283_v21 = vsel %vm19173_vm2, %v2273_v50, %v2282_v56  ;;  %v2292_v29 = vsel %vm19173_vm2, %v2282_v56, %v2291_v43 }
  0xfe   : > { %12944 = vmatmul.mubr.bf16.gmra.mrb[32].mxu0 %v1804_v40  ;;  %v2315_v40 = vshll.u32 %v11432_v51, 16  ;;  %v2323_v56 = vrot.slane %v2321_v18, 3  ;;  %v2339_v3 = vshrl.u32 %v11435_v42, 16  ;;  %v2342_v63 = vshll.u32 %v11435_v42, 16 }
  0xff   : > { %12963 = vmatprep.mubr.bf16.mxu0 %v2247_v6  ;;  %v15462_v6 = vld [vmem:[%s14804_s23 + $0x68] sm:$0xf] }
 0x100   : > { %v11434_v35 = vcombine.low %v15459_v19, %v15462_v6 }
 0x102   : > { %v2333_v11 = vshll.u32 %v11434_v35, 16 }
 0x104   : > { %v2335_v10 = vrot.slane %v2333_v11, 4  ;;  %v15525_v11 = vld [vmem:[%s14804_s23 + $0x90] sm:$0xf] }
 0x106   : > { %12964 = vmatmul.mubr.bf16.vlgmr.msra.gmra.mrb[0].mxu0 %v2256_v9  ;;  %v2309_v9 = vor.u32 %v2308_v45, %v2305_v48  ;;  %v2344_v48 = vrot.slane %v2342_v63, 4 }
 0x107   : > { %13000 = vmatpush3.bf16.msra.mxu0 %v15343_v5  ;;  %12967 = vmatprep.mubr.bf16.mxu0 %v2265_v8  ;;  %v2274_v5 = vsel %vm19173_vm2, %v2264_v46, %v2273_v50  ;;  %v2317_v46 = vrot.slane %v2315_v40, 4  ;;  %v15483_v50 = vld [vmem:[%s14804_s23 + $0x74] sm:$0xf]  ;;  %v15512_v40 = vld [vmem:[%s14804_s23 + $0x88] sm:$0xf] }
 0x108   : > { %13001 = vmatprep.subr.bf16.mxu0 %v14445_v44  ;;  %v2310_v27 = vsel %vm19173_vm2, %v2300_v41, %v2309_v9  ;;  %v11436_v38 = vcombine.low %v15483_v50, %v15486_v61  ;;  %v15506_v41 = vld [vmem:[%s19137_s1 + $0x140] sm:$0xff]  }
 0x109   : > { %v2318_v8 = vor.u32 %v2317_v46, %v2314_v0  ;;  %v11438_v46 = vcombine.low %v15509_v28, %v15512_v40 }
 0x10a   : > { %v2348_v43 = vshrl.u32 %v11436_v38, 16  ;;  %v2351_v37 = vshll.u32 %v11436_v38, 16 }
 0x10b   : > { %13002 = vmatpush3.bf16.msra.mxu0 %v14445_v44  ;;  %v2330_v44 = vshrl.u32 %v11434_v35, 16  ;;  %v2319_v15 = vsel %vm19173_vm2, %v2309_v9, %v2318_v8 }
 0x10c   : > { %13003 = vmatprep.subr.bf16.mxu0 %v14448_v49  ;;  %v2353_v0 = vrot.slane %v2351_v37, 4 }
 0x10e   : > { %12968 = vmatmul.mubr.bf16.gmra.mrb[4].mxu0 %v2274_v5  ;;  %v2332_v5 = vrot.slane %v2330_v44, 3  ;;  %v15522_v44 = vld [vmem:[%s14804_s23 + $0x8c] sm:$0xf] }
 0x10f   : > { %12971 = vmatprep.mubr.bf16.mxu0 %v2283_v21  ;;  %13004 = vmatpush3.bf16.msra.mxu0 %v14448_v49  ;;  %v2326_v49 = vrot.slane %v2324_v30, 4  ;;  %v2366_v30 = vshrl.u32 %v11438_v46, 16 }
 0x110   : > { %13005 = vmatprep.subr.bf16.mxu0 %v14451_v17  ;;  %v2336_v51 = vor.u32 %v2335_v10, %v2332_v5 }
 0x111   : > { %v2327_v21 = vor.u32 %v2326_v49, %v2323_v56  ;;  %v2368_v10 = vrot.slane %v2366_v30, 3 }
 0x113   : > { %13006 = vmatpush3.bf16.msra.mxu0 %v14451_v17  ;;  %v15498_v17 = vld [vmem:[%s14804_s23 + $0x7c] sm:$0xf]  ;;  %v2337_v23 = vsel %vm19173_vm2, %v2327_v21, %v2336_v51 }
 0x114   : > { %13007 = vmatprep.subr.bf16.mxu0 %v14454_v33  ;;  %v11437_v45 = vcombine.low %v15498_v17, %v15501_v2 }
 0x116   : > { %12972 = vmatmul.mubr.bf16.gmra.mrb[8].mxu0 %v2292_v29  ;;  %v2341_v29 = vrot.slane %v2339_v3, 3  ;;  %v2360_v9 = vshll.u32 %v11437_v45, 16 }
 0x117   : > { %12975 = vmatprep.mubr.bf16.mxu0 %v2301_v39  ;;  %13008 = vmatpush3.bf16.msra.mxu0 %v14454_v33  ;;  %v2328_v33 = vsel %vm19173_vm2, %v2318_v8, %v2327_v21  ;;  %v2350_v39 = vrot.slane %v2348_v43, 3  ;;  %v2369_v8 = vshll.u32 %v11438_v46, 16 }
 0x118   : > { %13009 = vmatprep.subr.bf16.mxu0 %v14457_v32  ;;  %v2345_v35 = vor.u32 %v2344_v48, %v2341_v29  ;;  %v2362_v42 = vrot.slane %v2360_v9, 4 }
 0x119   : > { %v2354_v18 = vor.u32 %v2353_v0, %v2350_v39  ;;  %v2371_v38 = vrot.slane %v2369_v8, 4 }
 0x11a   : > { %v2346_v56 = vsel %vm19173_vm2, %v2336_v51, %v2345_v35 }
 0x11b   : > { %13010 = vmatpush3.bf16.msra.mxu0 %v14457_v32  ;;  %v2357_v32 = vshrl.u32 %v11437_v45, 16  ;;  %v2355_v5 = vsel %vm19173_vm2, %v2345_v35, %v2354_v18  ;;  %v2372_v43 = vor.u32 %v2371_v38, %v2368_v10  ;;  %v11467_v10 = vcombine.low %v15358_v31, %v15367_v13  ;;  %v14477_v13 = vld [vmem:[%s19137_s1 + $0x158] sm:$0xff]  }
 0x11c   : > { %13011 = vmatprep.subr.bf16.mxu0 %v14460_v55  ;;  %v11468_v38 = vcombine.low %v15370_v52, %v15373_v34  ;;  %v11470_v31 = vcombine.low %v15388_v1, %v15391_v54  ;;  %v14480_v52 = vld [vmem:[%s19137_s1 + $0x160] sm:$0xff]   ;;  %v11471_v34 = vcombine.low %v15394_v24, %v15404_v53  ;;  %v14486_v1 = vld [vmem:[%s19137_s1 + $0x170] sm:$0xff]   ;;  %v11473_v54 = vcombine.low %v15413_v60, %v15426_v57  ;;  %v14490_v53 = vld [vmem:[%s19137_s1 + $0x178] sm:$0xff]  }
 0x11d   : > { %v2359_v49 = vrot.slane %v2357_v32, 3  ;;  %v11474_v24 = vcombine.low %v15432_v14, %v15435_v26  ;;  %v11476_v60 = vcombine.low %v15453_v22, %v15459_v19  ;;  %v11477_v57 = vcombine.low %v15462_v6, %v15474_v59  ;;  %v14493_v22 = vld [vmem:[%s14804_s23 + $0x18] sm:$0xff]  }
 0x11e   : > { %12976 = vmatmul.mubr.bf16.gmra.mrb[12].mxu0 %v2310_v27  ;;  %v15531_v27 = vld [vmem:[%s14804_s23 + $0x98] sm:$0xf]  ;;  %v11478_v14 = vcombine.low %v15477_v20, %v15483_v50  ;;  %v11479_v26 = vcombine.low %v15486_v61, %v15498_v17  ;;  %v11481_v6 = vcombine.low %v15512_v40, %v15522_v44  ;;  %v14494_v61 = vld [vmem:[%s14804_s23 + $0x20] sm:$0xff]   ;;  %v3154_v40 = vshrl.u32 %v14493_v22, 16 }
 0x11f   : > { %12979 = vmatprep.mubr.bf16.mxu0 %v2319_v15  ;;  %13012 = vmatpush3.bf16.msra.mxu0 %v14460_v55  ;;  %v15528_v55 = vld [vmem:[%s14804_s23 + $0x94] sm:$0xf]  ;;  %v11439_v15 = vcombine.low %v15522_v44, %v15525_v11  ;;  %v2363_v21 = vor.u32 %v2362_v42, %v2359_v49 }
 0x120   : > { %13013 = vmatprep.subr.bf16.mxu0 %v14464_v62  ;;  %v11482_v59 = vcombine.low %v15525_v11, %v15528_v55  ;;  %v3162_v11 = vshrl.u32 %v14494_v61, 16 }
 0x121   : > { %v2375_v3 = vshrl.u32 %v11439_v15, 16  ;;  %v2378_v63 = vshll.u32 %v11439_v15, 16  ;;  %v2364_v29 = vsel %vm19173_vm2, %v2354_v18, %v2363_v21  ;;  %v2373_v39 = vsel %vm19173_vm2, %v2363_v21, %v2372_v43 }
 0x123   : > { %13014 = vmatpush3.bf16.msra.mxu0 %v14464_v62  ;;  %v11440_v62 = vcombine.low %v15528_v55, %v15531_v27  ;;  %v2377_v48 = vrot.slane %v2375_v3, 3  ;;  %v2380_v45 = vrot.slane %v2378_v63, 4  ;;  %v3158_v3 = vshll.u32 %v14494_v61, 16  ;;  %v14517_v61 = vld [vmem:[%s19137_s1 + $0x1b8] sm:$0xff]  }
 0x124   : > { %13051 = vmatprep.subr.bf16.mxu0 %v15506_v41 }
 0x125   : > { %v2384_v51 = vshrl.u32 %v11440_v62, 16  ;;  %v2387_v37 = vshll.u32 %v11440_v62, 16  ;;  %v2381_v35 = vor.u32 %v2380_v45, %v2377_v48  ;;  %v14471_v62 = vld [vmem:[%s19137_s1 + $0x148] sm:$0xff]   ;;  %v3160_v63 = vrot.slane %v3158_v3, 1  ;;  %v14499_v48 = vld [vmem:[%s14804_s23 + $0x38] sm:$0xff]  }
 0x126   : > { %12980 = vmatmul.mubr.bf16.gmra.mrb[16].mxu0 %v2328_v33  ;;  %v15540_v33 = vld [vmem:[%s14804_s23 + $0x9c] sm:$0xf] }
 0x127   : > { %12983 = vmatprep.mubr.bf16.mxu0 %v2337_v23  ;;  %v11441_v23 = vcombine.low %v15540_v33, %v15540_v33  ;;  %v2386_v0 = vrot.slane %v2384_v51, 3  ;;  %v2389_v46 = vrot.slane %v2387_v37, 4  ;;  %v2382_v8 = vsel %vm19173_vm2, %v2372_v43, %v2381_v35  ;;  %v14497_v43 = vld [vmem:[%s14804_s23 + $0x30] sm:$0xff]  }
 0x128   : > { %v11483_v21 = vcombine.low %v15531_v27, %v15540_v33  ;;  %v3164_v37 = vor.u32 %v3162_v11, %v3160_v63  ;;  %v3174_v45 = vshll.u32 %v14497_v43, 16 }
 0x129   : > { %v2393_v32 = vshrl.u32 %v11441_v23, 16  ;;  %v2396_v9 = vshll.u32 %v11441_v23, 16  ;;  %v2390_v30 = vor.u32 %v2389_v46, %v2386_v0  ;;  %v3178_v0 = vshrl.u32 %v14497_v43, 16 }
 0x12a   : > { %v3182_v46 = vshll.u32 %v14499_v48, 16 }
 0x12b   : > { %v2398_v49 = vrot.slane %v2396_v9, 4  ;;  %v2391_v18 = vsel %vm19173_vm2, %v2381_v35, %v2390_v30  ;;  %v3176_v35 = vrot.slane %v3174_v45, 1 }
 0x12e   : > { %12984 = vmatmul.mubr.bf16.gmra.mrb[20].mxu0 %v2346_v56  ;;  %v2395_v56 = vrot.slane %v2393_v32, 3  ;;  %v14500_v32 = vld [vmem:[%s14804_s23 + $0x40] sm:$0xff]  }
 0x12f   : > { %12987 = vmatprep.mubr.bf16.mxu0 %v2355_v5  ;;  %v11466_v5 = vcombine.low %v15352_v47, %v15355_v7  ;;  %v14474_v47 = vld [vmem:[%s19137_s1 + $0x150] sm:$0xff]   ;;  %v11469_v7 = vcombine.low %v15376_v4, %v15385_v25  ;;  %v11472_v4 = vcombine.low %v15407_v36, %v15410_v58  ;;  %v14483_v25 = vld [vmem:[%s19137_s1 + $0x168] sm:$0xff]   ;;  %v14495_v36 = vld [vmem:[%s19137_s1 + $0x180] sm:$0xff]   ;;  %v11475_v58 = vcombine.low %v15438_v16, %v15450_v12 }
 0x130   : > { %v2399_v42 = vor.u32 %v2398_v49, %v2395_v56  ;;  %v11480_v16 = vcombine.low %v15501_v2, %v15509_v28  ;;  %v14492_v12 = vld [vmem:[%s14804_s23 + $0x10] sm:$0xff]   ;;  %v14496_v28 = vld [vmem:[%s14804_s23 + $0x28] sm:$0xff]  }
 0x131   : > { %v3145_v19 = vshll.u32 %v14492_v12, 16  ;;  %v3143_v20 = vshrl.u32 %v14492_v12, 16  ;;  %v3166_v55 = vshll.u32 %v14496_v28, 16  ;;  %v3170_v27 = vshrl.u32 %v14496_v28, 16  ;;  %v14501_v56 = vld [vmem:[%s19137_s1 + $0x190] sm:$0xff]   ;;  %v14502_v49 = vld [vmem:[%s14804_s23 + $0x48] sm:$0xff]  }
 0x132   : > { %v2400_v15 = vsel %vm19173_vm2, %v2390_v30, %v2399_v42  ;;  %v3180_v30 = vor.u32 %v3178_v0, %v3176_v35  ;;  %v14508_v12 = vld [vmem:[%s14804_s23 + $0x68] sm:$0xff]  }
 0x133   : > { %v3147_v50 = vrot.slane %v3145_v19, 1 }
 0x135   : > { %v3148_v17 = vor.u32 %v3147_v50, %v3143_v20 }
 0x136   : > { %12988 = vmatmul.mubr.bf16.gmra.mrb[24].mxu0 %v2364_v29  ;;  %v3168_v29 = vrot.slane %v3166_v55, 1 }
 0x137   : > { %12991 = vmatprep.mubr.bf16.mxu0 %v2373_v39  ;;  %v14498_v39 = vld [vmem:[%s19137_s1 + $0x188] sm:$0xff]  }
 0x138   : > { %v3169_v33 = vsel %vm19170_vm3, %v3164_v37, %v3168_v29  ;;  %v3172_v9 = vor.u32 %v3170_v27, %v3168_v29 }
 0x13a   : > { %v3177_v42 = vsel %vm19170_vm3, %v3172_v9, %v3176_v35 }
 0x13e   : > { %12992 = vmatmul.mubr.bf16.gmra.mrb[28].mxu0 %v2382_v8  ;;  %v3184_v8 = vrot.slane %v3182_v46, 1 }
 0x13f   : > { %12995 = vmatprep.mubr.bf16.mxu0 %v2391_v18  ;;  %v3190_v18 = vshll.u32 %v14500_v32, 16 }
 0x146   : > { %12996 = vmatmul.mubr.bf16.gmra.mrb[32].mxu0 %v2400_v15  ;;  %v3186_v15 = vshrl.u32 %v14499_v48, 16  ;;  %v14512_v48 = vld [vmem:[%s14804_s23 + $0x80] sm:$0xff]  }
 0x147   : > { %13015 = vmatprep.mubr.bf16.mxu0 %v11466_v5  ;;  %v3185_v5 = vsel %vm19170_vm3, %v3180_v30, %v3184_v8 }
 0x14e   : > { %13016 = vmatmul.mubr.bf16.vlgmr.msra.gmra.mrb[0].mxu0 %v11467_v10  ;;  %v3194_v10 = vshrl.u32 %v14500_v32, 16  ;;  %v3258_v32 = vshrl.u32 %v14512_v48, 16 }
 0x14f   : > { %13052 = vmatpush3.bf16.msra.mxu0 %v15506_v41  ;;  %13019 = vmatprep.mubr.bf16.mxu0 %v11468_v38  ;;  %v3150_v41 = vshll.u32 %v14493_v22, 16  ;;  %v3198_v38 = vshll.u32 %v14502_v49, 16  ;;  %v14513_v22 = vld [vmem:[%s19137_s1 + $0x1b0] sm:$0xff]  }
 0x150   : > { %13053 = vmatprep.subr.bf16.mxu0 %v14471_v62 }
 0x151   : > { %v3152_v2 = vrot.slane %v3150_v41, 1  ;;  %v3230_v41 = vshll.u32 %v14508_v12, 16 }
 0x153   : > { %13054 = vmatpush3.bf16.msra.mxu0 %v14471_v62  ;;  %v3153_v44 = vsel %vm19170_vm3, %v3148_v17, %v3152_v2  ;;  %v3156_v51 = vor.u32 %v3154_v40, %v3152_v2  ;;  %v14504_v62 = vld [vmem:[%s19137_s1 + $0x198] sm:$0xff]   ;;  %v14509_v2 = vld [vmem:[%s14804_s23 + $0x70] sm:$0xff]   ;;  %v3232_v3 = vrot.slane %v3230_v41, 1 }
 0x154   : > { %13055 = vmatprep.subr.bf16.mxu0 %v14474_v47  ;;  %v14511_v40 = vld [vmem:[%s14804_s23 + $0x78] sm:$0xff]   ;;  %v3238_v11 = vshll.u32 %v14509_v2, 16 }
 0x155   : > { %v3161_v23 = vsel %vm19170_vm3, %v3156_v51, %v3160_v63  ;;  %v3234_v63 = vshrl.u32 %v14508_v12, 16  ;;  %v3242_v51 = vshrl.u32 %v14509_v2, 16  ;;  %v3246_v37 = vshll.u32 %v14511_v40, 16 }
 0x156   : > { %13020 = vmatmul.mubr.bf16.gmra.mrb[4].mxu0 %v11469_v7  ;;  %v14503_v7 = vld [vmem:[%s14804_s23 + $0x50] sm:$0xff]   ;;  %v3240_v29 = vrot.slane %v3238_v11, 1  ;;  %v3250_v46 = vshrl.u32 %v14511_v40, 16 }
 0x157   : > { %13023 = vmatprep.mubr.bf16.mxu0 %v11470_v31  ;;  %13056 = vmatpush3.bf16.msra.mxu0 %v14474_v47  ;;  %v3192_v47 = vrot.slane %v3190_v18, 1  ;;  %v3188_v31 = vor.u32 %v3186_v15, %v3184_v8  ;;  %v3236_v45 = vor.u32 %v3234_v63, %v3232_v3  ;;  %v3248_v27 = vrot.slane %v3246_v37, 1  ;;  %v14515_v8 = vld [vmem:[%s14804_s23 + $0x90] sm:$0xff]   ;;  %v3569_v15 = vld [vmem:[%s14804_s23 + $0x18] sm:$0xf] }
 0x158   : > { %13057 = vmatprep.subr.bf16.mxu0 %v14477_v13 }
 0x159   : > { %v3241_v0 = vsel %vm19170_vm3, %v3236_v45, %v3240_v29 }
 0x15b   : > { %13058 = vmatpush3.bf16.msra.mxu0 %v14477_v13  ;;  %v3196_v13 = vor.u32 %v3194_v10, %v3192_v47  ;;  %v3270_v10 = vshll.u32 %v14515_v8, 16 }
 0x15c   : > { %13059 = vmatprep.subr.bf16.mxu0 %v14480_v52 }
 0x15e   : > { %13024 = vmatmul.mubr.bf16.gmra.mrb[8].mxu0 %v11471_v34  ;;  %v14505_v34 = vld [vmem:[%s14804_s23 + $0x58] sm:$0xff]  }
 0x15f   : > { %13027 = vmatprep.mubr.bf16.mxu0 %v11472_v4  ;;  %13060 = vmatpush3.bf16.msra.mxu0 %v14480_v52  ;;  %v3200_v52 = vrot.slane %v3198_v38, 1  ;;  %v14507_v4 = vld [vmem:[%s19137_s1 + $0x1a0] sm:$0xff]  }
 0x160   : > { %13061 = vmatprep.subr.bf16.mxu0 %v14483_v25 }
 0x163   : > { %13062 = vmatpush3.bf16.msra.mxu0 %v14483_v25  ;;  %v3206_v25 = vshll.u32 %v14503_v7, 16 }
 0x164   : > { %13063 = vmatprep.subr.bf16.mxu0 %v14486_v1 }
 0x166   : > { %13028 = vmatmul.mubr.bf16.gmra.mrb[12].mxu0 %v11473_v54  ;;  %v3202_v54 = vshrl.u32 %v14502_v49, 16 }
 0x167   : > { %13031 = vmatprep.mubr.bf16.mxu0 %v11474_v24  ;;  %13064 = vmatpush3.bf16.msra.mxu0 %v14486_v1  ;;  %v3193_v1 = vsel %vm19170_vm3, %v3188_v31, %v3192_v47  ;;  %v3201_v24 = vsel %vm19170_vm3, %v3196_v13, %v3200_v52 }
 0x168   : > { %13065 = vmatprep.subr.bf16.mxu0 %v14490_v53 }
 0x16b   : > { %13066 = vmatpush3.bf16.msra.mxu0 %v14490_v53  ;;  %v3210_v53 = vshrl.u32 %v14503_v7, 16  ;;  %v3274_v7 = vshrl.u32 %v14515_v8, 16 }
 0x16c   : > { %13103 = vmatprep.subr.bf16.mxu0 %v14495_v36 }
 0x16e   : > { %13032 = vmatmul.mubr.bf16.gmra.mrb[16].mxu0 %v11475_v58  ;;  %v14510_v58 = vld [vmem:[%s19137_s1 + $0x1a8] sm:$0xff]  }
 0x16f   : > { %13035 = vmatprep.mubr.bf16.mxu0 %v11476_v60  ;;  %v3208_v60 = vrot.slane %v3206_v25, 1 }
 0x176   : > { %13036 = vmatmul.mubr.bf16.gmra.mrb[20].mxu0 %v11477_v57  ;;  %v14506_v57 = vld [vmem:[%s14804_s23 + $0x60] sm:$0xff]  }
 0x177   : > { %13039 = vmatprep.mubr.bf16.mxu0 %v11478_v14  ;;  %v3204_v14 = vor.u32 %v3202_v54, %v3200_v52  ;;  %v3222_v19 = vshll.u32 %v14506_v57, 16  ;;  %v3226_v50 = vshrl.u32 %v14506_v57, 16  ;;  %v3272_v52 = vrot.slane %v3270_v10, 1  ;;  %v15677_v54 = vld [vmem:[%s14804_s23 + $0x20] sm:$0xff]  }
 0x178   : > { %v3728_v41 = vshrl.u32 %v15677_v54, 16 }
 0x179   : > { %v3224_v17 = vrot.slane %v3222_v19, 1  ;;  %v3276_v25 = vor.u32 %v3274_v7, %v3272_v52 }
 0x17e   : > { %13040 = vmatmul.mubr.bf16.gmra.mrb[24].mxu0 %v11479_v26  ;;  %v3212_v26 = vor.u32 %v3210_v53, %v3208_v60 }
 0x17f   : > { %13043 = vmatprep.mubr.bf16.mxu0 %v11480_v16 }
 0x186   : > { %13044 = vmatmul.mubr.bf16.gmra.mrb[28].mxu0 %v11481_v6  ;;  %v3209_v6 = vsel %vm19170_vm3, %v3204_v14, %v3208_v60 }
 0x187   : > { %13047 = vmatprep.mubr.bf16.mxu0 %v11482_v59  ;;  %v3218_v59 = vshrl.u32 %v14505_v34, 16 }
 0x18e   : > { %13048 = vmatmul.mubr.bf16.gmra.mrb[32].mxu0 %v11483_v21  ;;  %v3228_v21 = vor.u32 %v3226_v50, %v3224_v17 }
 0x18f   : > { %13067 = vmatprep.mubr.bf16.mxu0 %v3153_v44  ;;  %v15657_v44 = vld [vmem:[%s19137_s1 + $0x1c0] sm:$0xff]  }
 0x190   : > { %v3233_v43 = vsel %vm19170_vm3, %v3228_v21, %v3232_v3  ;;  %v15699_v21 = vld [vmem:[%s14804_s23 + $0x38] sm:$0xff]  }
 0x191   : > { %v3748_v63 = vshll.u32 %v15699_v21, 16 }
 0x196   : > { %13068 = vmatmul.mubr.bf16.vlgmr.msra.gmra.mrb[0].mxu0 %v3161_v23  ;;  %v3244_v23 = vor.u32 %v3242_v51, %v3240_v29  ;;  %v14525_v29 = vld [vmem:[%s19137_s1 + $0x1c8] sm:$0xff]  }
 0x197   : > { %13104 = vmatpush3.bf16.msra.mxu0 %v14495_v36  ;;  %13071 = vmatprep.mubr.bf16.mxu0 %v3169_v33  ;;  %v3214_v36 = vshll.u32 %v14505_v34, 16  ;;  %v14514_v33 = vld [vmem:[%s14804_s23 + $0x88] sm:$0xff]  }
 0x198   : > { %13105 = vmatprep.subr.bf16.mxu0 %v14498_v39  ;;  %v3249_v35 = vsel %vm19170_vm3, %v3244_v23, %v3248_v27  ;;  %v3262_v9 = vshll.u32 %v14514_v33, 16  ;;  %v3750_v23 = vrot.slane %v3748_v63, 1 }
 0x199   : > { %v3216_v16 = vrot.slane %v3214_v36, 1 }
 0x19a   : > { %v3264_v18 = vrot.slane %v3262_v9, 1 }
 0x19b   : > { %13106 = vmatpush3.bf16.msra.mxu0 %v14498_v39  ;;  %v3217_v20 = vsel %vm19170_vm3, %v3212_v26, %v3216_v16  ;;  %v3220_v28 = vor.u32 %v3218_v59, %v3216_v16  ;;  %v3254_v39 = vshll.u32 %v14512_v48, 16  ;;  %v3724_v26 = vshll.u32 %v15677_v54, 16  ;;  %v15683_v16 = vld [vmem:[%s14804_s23 + $0x28] sm:$0xff]   ;;  %v15688_v59 = vld [vmem:[%s14804_s23 + $0x30] sm:$0xff]  }
 0x19c   : > { %13107 = vmatprep.subr.bf16.mxu0 %v14501_v56  ;;  %v3740_v2 = vshll.u32 %v15688_v59, 16  ;;  %v3744_v51 = vshrl.u32 %v15688_v59, 16  ;;  %v3752_v48 = vshrl.u32 %v15699_v21, 16 }
 0x19d   : > { %v3225_v55 = vsel %vm19170_vm3, %v3220_v28, %v3224_v17  ;;  %v3256_v30 = vrot.slane %v3254_v39, 1  ;;  %v3736_v17 = vshrl.u32 %v15683_v16, 16 }
 0x19e   : > { %13072 = vmatmul.mubr.bf16.gmra.mrb[4].mxu0 %v3177_v42  ;;  %v14516_v42 = vld [vmem:[%s14804_s23 + $0x98] sm:$0xff]   ;;  %v3742_v11 = vrot.slane %v3740_v2, 1  ;;  %v3754_v39 = vor.u32 %v3752_v48, %v3750_v23 }
 0x19f   : > { %13075 = vmatprep.mubr.bf16.mxu0 %v3185_v5  ;;  %13108 = vmatpush3.bf16.msra.mxu0 %v14501_v56  ;;  %v3252_v56 = vor.u32 %v3250_v46, %v3248_v27  ;;  %v3260_v49 = vor.u32 %v3258_v32, %v3256_v30  ;;  %v15670_v5 = vld [vmem:[%s14804_s23 + $0x1c] sm:$0xf]  ;;  %v3278_v31 = vshll.u32 %v14516_v42, 16  ;;  %v3282_v36 = vshrl.u32 %v14516_v42, 16  ;;  %v15722_v27 = vld [vmem:[%s14804_s23 + $0x48] sm:$0xff]   ;;  %v14528_v46 = vld [vmem:[%s19137_s1 + $0x1d0] sm:$0xff]  }
 0x1a0   : > { %13109 = vmatprep.subr.bf16.mxu0 %v14504_v62  ;;  %v11551_v13 = vcombine.low %v3569_v15, %v15670_v5  ;;  %v3768_v8 = vshrl.u32 %v15722_v27, 16  ;;  %v15749_v42 = vld [vmem:[%s14804_s23 + $0x58] sm:$0xff]  }
 0x1a1   : > { %v3257_v38 = vsel %vm19170_vm3, %v3252_v56, %v3256_v30  ;;  %v3265_v47 = vsel %vm19170_vm3, %v3260_v49, %v3264_v18  ;;  %v14531_v49 = vld [vmem:[%s19137_s1 + $0x1d8] sm:$0xff]   ;;  %v3780_v7 = vshll.u32 %v15749_v42, 16 }
 0x1a2   : > { %v3717_v57 = vshrl.u32 %v11551_v13, 16 }
 0x1a3   : > { %13110 = vmatpush3.bf16.msra.mxu0 %v14504_v62  ;;  %v3266_v62 = vshrl.u32 %v14514_v33, 16  ;;  %v3746_v33 = vor.u32 %v3744_v51, %v3742_v11 }
 0x1a4   : > { %13111 = vmatprep.subr.bf16.mxu0 %v14507_v4 }
 0x1a5   : > { %v3268_v34 = vor.u32 %v3266_v62, %v3264_v18  ;;  %v3751_v32 = vsel %vm19170_vm3, %v3746_v33, %v3750_v23  ;;  %v15758_v62 = vld [vmem:[%s14804_s23 + $0x60] sm:$0xff]  }
 0x1a6   : > { %13076 = vmatmul.mubr.bf16.gmra.mrb[8].mxu0 %v3193_v1  ;;  %v3280_v1 = vrot.slane %v3278_v31, 1 }
 0x1a7   : > { %13079 = vmatprep.mubr.bf16.mxu0 %v3201_v24  ;;  %13112 = vmatpush3.bf16.msra.mxu0 %v14507_v4  ;;  %v14518_v4 = vld [vmem:[%s14804_s23 + $0xa0] ss:$0 sps:$4 sm:$0x11]   ;;  %v3719_v24 = vshll.u32 %v11551_v13, 16  ;;  %v3273_v53 = vsel %vm19170_vm3, %v3268_v34, %v3272_v52  ;;  %v3784_v34 = vshrl.u32 %v15749_v42, 16 }
 0x1a8   : > { %13113 = vmatprep.subr.bf16.mxu0 %v14510_v58  ;;  %v3281_v60 = vsel %vm19170_vm3, %v3276_v25, %v3280_v1  ;;  %v3284_v12 = vor.u32 %v3282_v36, %v3280_v1  ;;  %v14537_v25 = vld [vmem:[%s19137_s1 + $0x1e8] sm:$0xff]   ;;  %v3782_v1 = vrot.slane %v3780_v7, 1 }
 0x1a9   : > { %v3721_v14 = vrot.slane %v3719_v24, 1  ;;  %v15775_v24 = vld [vmem:[%s14804_s23 + $0x68] sm:$0xff]  }
 0x1aa   : > { %v3786_v36 = vor.u32 %v3784_v34, %v3782_v1 }
 0x1ab   : > { %13114 = vmatpush3.bf16.msra.mxu0 %v14510_v58  ;;  %v3286_v58 = vshll.u32 %v14518_v4, 16  ;;  %v3722_v19 = vor.u32 %v3721_v14, %v3717_v57  ;;  %v3788_v4 = vshll.u32 %v15758_v62, 16  ;;  %v14540_v57 = vld [vmem:[%s19137_s1 + $0x1f0] sm:$0xff]   ;;  %v3796_v14 = vshll.u32 %v15775_v24, 16 }
 0x1ac   : > { %13115 = vmatprep.subr.bf16.mxu0 %v14513_v22 }
 0x1ae   : > { %13080 = vmatmul.mubr.bf16.gmra.mrb[12].mxu0 %v3209_v6  ;;  %v3726_v6 = vrot.slane %v3724_v26, 1 }
 0x1af   : > { %13083 = vmatprep.mubr.bf16.mxu0 %v3217_v20  ;;  %13116 = vmatpush3.bf16.msra.mxu0 %v14513_v22  ;;  %v3288_v22 = vrot.slane %v3286_v58, 1  ;;  %v3732_v20 = vshll.u32 %v15683_v16, 16  ;;  %v3790_v58 = vrot.slane %v3788_v4, 1 }
 0x1b0   : > { %13117 = vmatprep.subr.bf16.mxu0 %v14517_v61  ;;  %v3730_v3 = vor.u32 %v3728_v41, %v3726_v6 }
 0x1b1   : > { %v3289_v50 = vsel %vm19170_vm3, %v3284_v12, %v3288_v22  ;;  %v3734_v28 = vrot.slane %v3732_v20, 1  ;;  %v3792_v22 = vshrl.u32 %v15758_v62, 16 }
 0x1b3   : > { %13118 = vmatpush3.bf16.msra.mxu0 %v14517_v61  ;;  %v3727_v61 = vsel %vm19170_vm3, %v3722_v19, %v3726_v6  ;;  %v3738_v40 = vor.u32 %v3736_v17, %v3734_v28  ;;  %v3791_v19 = vsel %vm19170_vm3, %v3786_v36, %v3790_v58  ;;  %v3800_v6 = vshrl.u32 %v15775_v24, 16 }
 0x1b4   : > { %13155 = vmatprep.subr.bf16.mxu0 %v15657_v44 }
 0x1b5   : > { %v3743_v37 = vsel %vm19170_vm3, %v3738_v40, %v3742_v11  ;;  %v3794_v40 = vor.u32 %v3792_v22, %v3790_v58  ;;  %v15847_v58 = vld [vmem:[%s14804_s23 + $0x98] sm:$0xff]  }
 0x1b6   : > { %13084 = vmatmul.mubr.bf16.gmra.mrb[16].mxu0 %v3225_v55  ;;  %v15708_v55 = vld [vmem:[%s14804_s23 + $0x40] sm:$0xff]  }
 0x1b7   : > { %13087 = vmatprep.mubr.bf16.mxu0 %v3233_v43  ;;  %v3735_v43 = vsel %vm19170_vm3, %v3730_v3, %v3734_v28  ;;  %v3756_v45 = vshll.u32 %v15708_v55, 16  ;;  %v3760_v9 = vshrl.u32 %v15708_v55, 16  ;;  %v3798_v28 = vrot.slane %v3796_v14, 1  ;;  %v15801_v3 = vld [vmem:[%s14804_s23 + $0x78] sm:$0xff]  }
 0x1b8   : > { %v3812_v23 = vshll.u32 %v15801_v3, 16 }
 0x1b9   : > { %v3802_v11 = vor.u32 %v3800_v6, %v3798_v28  ;;  %v3799_v33 = vsel %vm19170_vm3, %v3794_v40, %v3798_v28  ;;  %v19167_v28 = vshll.u32 %v15847_v58, 16 }
 0x1be   : > { %13088 = vmatmul.mubr.bf16.gmra.mrb[20].mxu0 %v3241_v0  ;;  %v3758_v0 = vrot.slane %v3756_v45, 1 }
 0x1bf   : > { %13091 = vmatprep.mubr.bf16.mxu0 %v3249_v35  ;;  %v15735_v35 = vld [vmem:[%s14804_s23 + $0x50] sm:$0xff]  }
 0x1c0   : > { %v3759_v30 = vsel %vm19170_vm3, %v3754_v39, %v3758_v0  ;;  %v3772_v56 = vshll.u32 %v15735_v35, 16  ;;  %v3762_v15 = vor.u32 %v3760_v9, %v3758_v0  ;;  %v3776_v13 = vshrl.u32 %v15735_v35, 16 }
 0x1c6   : > { %13092 = vmatmul.mubr.bf16.gmra.mrb[24].mxu0 %v3257_v38  ;;  %v3774_v38 = vrot.slane %v3772_v56, 1 }
 0x1c7   : > { %13095 = vmatprep.mubr.bf16.mxu0 %v3265_v47  ;;  %v14534_v47 = vld [vmem:[%s19137_s1 + $0x1e0] sm:$0xff]  }
 0x1ce   : > { %13096 = vmatmul.mubr.bf16.gmra.mrb[28].mxu0 %v3273_v53  ;;  %v3778_v53 = vor.u32 %v3776_v13, %v3774_v38 }
 0x1cf   : > { %13099 = vmatprep.mubr.bf16.mxu0 %v3281_v60  ;;  %v15784_v60 = vld [vmem:[%s14804_s23 + $0x70] sm:$0xff]  }
 0x1d0   : > { %v3783_v12 = vsel %vm19170_vm3, %v3778_v53, %v3782_v1  ;;  %v3808_v39 = vshrl.u32 %v15784_v60, 16 }
 0x1d6   : > { %13100 = vmatmul.mubr.bf16.gmra.mrb[32].mxu0 %v3289_v50  ;;  %v3804_v50 = vshll.u32 %v15784_v60, 16 }
 0x1d7   : > { %13119 = vmatprep.mubr.bf16.mxu0 %v3727_v61  ;;  %v14544_v61 = vld [vmem:[%s19137_s1 + $0x1f8] sm:$0xff]  }
 0x1de   : > { %13120 = vmatmul.mubr.bf16.vlgmr.msra.gmra.mrb[0].mxu0 %v3735_v43  ;;  %v3806_v43 = vrot.slane %v3804_v50, 1 }
 0x1df   : > { %13156 = vmatpush3.bf16.msra.mxu0 %v15657_v44  ;;  %13123 = vmatprep.mubr.bf16.mxu0 %v3743_v37  ;;  %v3764_v44 = vshll.u32 %v15722_v27, 16  ;;  %v15810_v37 = vld [vmem:[%s14804_s23 + $0x80] sm:$0xff]  }
 0x1e0   : > { %13157 = vmatprep.subr.bf16.mxu0 %v14525_v29  ;;  %v3807_v0 = vsel %vm19170_vm3, %v3802_v11, %v3806_v43 }
 0x1e1   : > { %v3766_v18 = vrot.slane %v3764_v44, 1 }
 0x1e3   : > { %13158 = vmatpush3.bf16.msra.mxu0 %v14525_v29  ;;  %v3770_v10 = vor.u32 %v3768_v8, %v3766_v18  ;;  %v3767_v31 = vsel %vm19170_vm3, %v3762_v15, %v3766_v18  ;;  %v15815_v29 = vld [vmem:[%s19137_s1 + $0x200] sm:$0xff]   ;;  %v3810_v18 = vor.u32 %v3808_v39, %v3806_v43 }
 0x1e4   : > { %13159 = vmatprep.subr.bf16.mxu0 %v14528_v46 }
 0x1e5   : > { %v3775_v52 = vsel %vm19170_vm3, %v3770_v10, %v3774_v38  ;;  %v15836_v38 = vld [vmem:[%s14804_s23 + $0x90] sm:$0xff]  }
 0x1e6   : > { %13124 = vmatmul.mubr.bf16.gmra.mrb[4].mxu0 %v3751_v32  ;;  %v3820_v32 = vshll.u32 %v15810_v37, 16  ;;  %v3836_v53 = vshll.u32 %v15836_v38, 16  ;;  %v3840_v11 = vshrl.u32 %v15836_v38, 16 }
 0x1e7   : > { %13127 = vmatprep.mubr.bf16.mxu0 %v3759_v30  ;;  %13160 = vmatpush3.bf16.msra.mxu0 %v14528_v46  ;;  %v3816_v46 = vshrl.u32 %v15801_v3, 16  ;;  %v3814_v30 = vrot.slane %v3812_v23, 1 }
 0x1e8   : > { %13161 = vmatprep.subr.bf16.mxu0 %v14531_v49  ;;  %v3822_v10 = vrot.slane %v3820_v32, 1 }
 0x1e9   : > { %v3818_v15 = vor.u32 %v3816_v46, %v3814_v30 }
 0x1eb   : > { %13162 = vmatpush3.bf16.msra.mxu0 %v14531_v49  ;;  %v15827_v49 = vld [vmem:[%s14804_s23 + $0x88] sm:$0xff]  }
 0x1ec   : > { %13163 = vmatprep.subr.bf16.mxu0 %v14534_v47  ;;  %v3832_v1 = vshrl.u32 %v15827_v49, 16 }
 0x1ee   : > { %13128 = vmatmul.mubr.bf16.gmra.mrb[8].mxu0 %v3767_v31  ;;  %v3815_v31 = vsel %vm19170_vm3, %v3810_v18, %v3814_v30  ;;  %v3846_v30 = vrot.slane %v19167_v28, 1 }
 0x1ef   : > { %13131 = vmatprep.mubr.bf16.mxu0 %v3775_v52  ;;  %13164 = vmatpush3.bf16.msra.mxu0 %v14534_v47  ;;  %v3828_v47 = vshll.u32 %v15827_v49, 16  ;;  %v3824_v52 = vshrl.u32 %v15810_v37, 16 }
 0x1f0   : > { %13165 = vmatprep.subr.bf16.mxu0 %v14537_v25 }
 0x1f1   : > { %v3830_v36 = vrot.slane %v3828_v47, 1 }
 0x1f3   : > { %13166 = vmatpush3.bf16.msra.mxu0 %v14537_v25  ;;  %v3823_v25 = vsel %vm19170_vm3, %v3818_v15, %v3822_v10  ;;  %v15869_v15 = vld [vmem:[%s14804_s23 + $0xa8] ss:$0 sps:$4 sm:$0x11]  }
 0x1f4   : > { %13167 = vmatprep.subr.bf16.mxu0 %v14540_v57 }
 0x1f6   : > { %13132 = vmatmul.mubr.bf16.gmra.mrb[12].mxu0 %v3783_v12  ;;  %v3834_v12 = vor.u32 %v3832_v1, %v3830_v36 }
 0x1f7   : > { %13135 = vmatprep.mubr.bf16.mxu0 %v3791_v19  ;;  %13168 = vmatpush3.bf16.msra.mxu0 %v14540_v57  ;;  %v3826_v57 = vor.u32 %v3824_v52, %v3822_v10  ;;  %v3838_v19 = vrot.slane %v3836_v53, 1 }
 0x1f8   : > { %13169 = vmatprep.subr.bf16.mxu0 %v14544_v61 }
 0x1f9   : > { %v3831_v40 = vsel %vm19170_vm3, %v3826_v57, %v3830_v36  ;;  %v3839_v43 = vsel %vm19170_vm3, %v3834_v12, %v3838_v19  ;;  %v3842_v18 = vor.u32 %v3840_v11, %v3838_v19  ;;  %v3860_v12 = vshll.u32 %v15869_v15, 16 }
 0x1fb   : > { %13170 = vmatpush3.bf16.msra.mxu0 %v14544_v61  ;;  %v15856_v61 = vld [vmem:[%s14804_s23 + $0xa0] sm:$0xff]   ;;  %v3847_v36 = vsel %vm19170_vm3, %v3842_v18, %v3846_v30  ;;  %v3862_v28 = vrot.slane %v3860_v12, 1  ;;  %v14549_v12 = vld [vmem:[%s19137_s1 + $0x210] sm:$0xff]  }
 0x1fc   : > { %13207 = vmatprep.subr.bf16.mxu0 %v15815_v29  ;;  %v3856_v57 = vshrl.u32 %v15856_v61, 16 }
 0x1fe   : > { %13136 = vmatmul.mubr.bf16.gmra.mrb[16].mxu0 %v3799_v33  ;;  %v19169_v33 = vshrl.u32 %v15847_v58, 16 }
 0x1ff   : > { %13139 = vmatprep.mubr.bf16.mxu0 %v3807_v0  ;;  %v19168_v0 = vshll.u32 %v15856_v61, 16 }
 0x200   : > { %v3850_v10 = vor.u32 %v19169_v33, %v3846_v30  ;;  %v4166_v33 = vrot.slane %v15677_v54, 1  ;;  %v4519_v54 = vrot.slane %v3744_v51, 1  ;;  %v4527_v51 = vrot.slane %v3760_v9, 1 }
 0x201   : > { %v4535_v9 = vrot.slane %v3776_v13, 1  ;;  %v4543_v13 = vrot.slane %v3792_v22, 1  ;;  %v4551_v22 = vrot.slane %v3808_v39, 1  ;;  %v4559_v39 = vrot.slane %v3824_v52, 1 }
 0x202   : > { %v4567_v52 = vrot.slane %v3840_v11, 1  ;;  %v4575_v11 = vrot.slane %v3856_v57, 1 }
 0x206   : > { %13140 = vmatmul.mubr.bf16.gmra.mrb[20].mxu0 %v3815_v31  ;;  %v3854_v31 = vrot.slane %v19168_v0, 1 }
 0x207   : > { %13143 = vmatprep.mubr.bf16.mxu0 %v3823_v25  ;;  %v4143_v25 = vld [vmem:[%s14804_s23 + $0x18] sm:$0xe] }
 0x208   : > { %v3858_v19 = vor.u32 %v3856_v57, %v3854_v31 }
 0x20a   : > { %v3863_v30 = vsel %vm19170_vm3, %v3858_v19, %v3862_v28  ;;  %v4172_v28 = vrot.slane %v15699_v21, 1  ;;  %v14556_v19 = vld [vmem:[%s19137_s1 + $0x280] sm:$0xff]   ;;  %v4532_v21 = vrot.slane %v3764_v44, 2 }
 0x20b   : > { %13259 = vmatprep.subr.bf16.mxu1 %v14556_v19 }
 0x20c   : > { %13260 = vmatpush3.bf16.msra.mxu1 %v14556_v19  ;;  %v4184_v19 = vrot.slane %v15775_v24, 1  ;;  %v4556_v24 = vrot.slane %v3812_v23, 2 }
 0x20e   : > { %13144 = vmatmul.mubr.bf16.gmra.mrb[24].mxu0 %v3831_v40  ;;  %v3855_v40 = vsel %vm19170_vm3, %v3850_v10, %v3854_v31  ;;  %v4170_v10 = vrot.slane %v15688_v59, 1  ;;  %v4528_v59 = vrot.slane %v3756_v45, 2 }
 0x20f   : > { %13147 = vmatprep.mubr.bf16.mxu0 %v3839_v43  ;;  %v15881_v43 = vcombine.low %v4143_v25, %v15670_v5  ;;  %v4168_v5 = vrot.slane %v15683_v16, 1  ;;  %v4524_v16 = vrot.slane %v3748_v63, 2 }
 0x211   : > { %v4165_v0 = vrot.slane %v15881_v43, 1  ;;  %v4169_v25 = vsel %vm19172_vm4, %v4166_v33, %v4168_v5  ;;  %v4171_v31 = vsel %vm19172_vm4, %v4168_v5, %v4170_v10  ;;  %v4178_v5 = vrot.slane %v15735_v35, 1 }
 0x212   : > { %v4544_v35 = vrot.slane %v3788_v4, 2 }
 0x213   : > { %v4167_v18 = vsel %vm19172_vm4, %v4165_v0, %v4166_v33  ;;  %v4174_v0 = vrot.slane %v15708_v55, 1  ;;  %v4173_v33 = vsel %vm19172_vm4, %v4170_v10, %v4172_v28  ;;  %v14551_v10 = vld [vmem:[%s19137_s1 + $0x220] sm:$0xff]   ;;  %v4536_v55 = vrot.slane %v3772_v56, 2 }
 0x216   : > { %13148 = vmatmul.mubr.bf16.gmra.mrb[28].mxu0 %v3847_v36  ;;  %v14548_v36 = vld [vmem:[%s19137_s1 + $0x208] sm:$0xff]  }
 0x217   : > { %13151 = vmatprep.mubr.bf16.mxu0 %v3855_v40  ;;  %v4175_v40 = vsel %vm19172_vm4, %v4172_v28, %v4174_v0  ;;  %v4180_v28 = vrot.slane %v15749_v42, 1  ;;  %v4548_v42 = vrot.slane %v3796_v14, 2 }
 0x21e   : > { %13152 = vmatmul.mubr.bf16.gmra.mrb[32].mxu0 %v3863_v30  ;;  %v14557_v30 = vld [vmem:[%s19137_s1 + $0x288] sm:$0xff]  }
 0x21f   : > { %13171 = vmatprep.mubr.bf16.mxu0 %v4167_v18  ;;  %v4176_v18 = vrot.slane %v15722_v27, 1  ;;  %13261 = vmatprep.subr.bf16.mxu1 %v14557_v30  ;;  %v4540_v27 = vrot.slane %v3780_v7, 2 }
 0x220   : > { %13262 = vmatpush3.bf16.msra.mxu1 %v14557_v30  ;;  %v4186_v30 = vrot.slane %v15784_v60, 1  ;;  %v4560_v60 = vrot.slane %v3820_v32, 2 }
 0x226   : > { %13172 = vmatmul.mubr.bf16.vlgmr.msra.gmra.mrb[0].mxu0 %v4169_v25  ;;  %v4177_v25 = vsel %vm19172_vm4, %v4174_v0, %v4176_v18  ;;  %v14553_v0 = vld [vmem:[%s19137_s1 + $0x230] sm:$0xff]  }
 0x227   : > { %13208 = vmatpush3.bf16.msra.mxu0 %v15815_v29  ;;  %13175 = vmatprep.mubr.bf16.mxu0 %v4171_v31  ;;  %v14550_v29 = vld [vmem:[%s19137_s1 + $0x218] sm:$0xff]   ;;  %v4179_v31 = vsel %vm19172_vm4, %v4176_v18, %v4178_v5 }
 0x228   : > { %13209 = vmatprep.subr.bf16.mxu0 %v14548_v36 }
 0x22b   : > { %13210 = vmatpush3.bf16.msra.mxu0 %v14548_v36  ;;  %v14552_v36 = vld [vmem:[%s19137_s1 + $0x228] sm:$0xff]  }
 0x22c   : > { %13211 = vmatprep.subr.bf16.mxu0 %v14549_v12 }
 0x22e   : > { %13176 = vmatmul.mubr.bf16.gmra.mrb[4].mxu0 %v4173_v33  ;;  %v4181_v33 = vsel %vm19172_vm4, %v4178_v5, %v4180_v28  ;;  %v4187_v5 = vsel %vm19172_vm4, %v4184_v19, %v4186_v30 }
 0x22f   : > { %13179 = vmatprep.mubr.bf16.mxu0 %v4175_v40  ;;  %13212 = vmatpush3.bf16.msra.mxu0 %v14549_v12  ;;  %v4182_v12 = vrot.slane %v15758_v62, 1  ;;  %v4552_v62 = vrot.slane %v3804_v50, 2 }
 0x230   : > { %13213 = vmatprep.subr.bf16.mxu0 %v14550_v29 }
 0x231   : > { %v4183_v40 = vsel %vm19172_vm4, %v4180_v28, %v4182_v12  ;;  %v4185_v18 = vsel %vm19172_vm4, %v4182_v12, %v4184_v19  ;;  %v4192_v28 = vrot.slane %v15827_v49, 1  ;;  %v4504_v19 = vshrl.u32 %v15881_v43, 16 }
 0x232   : > { %v19335_v49 = vshll.u32 %v15847_v58, 16 }
 0x233   : > { %13214 = vmatpush3.bf16.msra.mxu0 %v14550_v29  ;;  %v14554_v29 = vld [vmem:[%s19137_s1 + $0x238] sm:$0xff]  }
 0x234   : > { %13215 = vmatprep.subr.bf16.mxu0 %v14551_v10 }
 0x236   : > { %13180 = vmatmul.mubr.bf16.gmra.mrb[8].mxu0 %v4177_v25  ;;  %v4190_v25 = vrot.slane %v15810_v37, 1  ;;  %v4568_v37 = vrot.slane %v3836_v53, 2 }
 0x237   : > { %13183 = vmatprep.mubr.bf16.mxu0 %v4179_v31  ;;  %13216 = vmatpush3.bf16.msra.mxu0 %v14551_v10  ;;  %v4188_v10 = vrot.slane %v15801_v3, 1  ;;  %v4564_v3 = vrot.slane %v3828_v47, 2  ;;  %v4572_v47 = vrot.slane %v19335_v49, 2 }
 0x238   : > { %13217 = vmatprep.subr.bf16.mxu0 %v14552_v36  ;;  %v4193_v12 = vsel %vm19172_vm4, %v4190_v25, %v4192_v28 }
 0x239   : > { %v4189_v31 = vsel %vm19172_vm4, %v4186_v30, %v4188_v10  ;;  %v4507_v30 = vshll.u32 %v15881_v43, 16  ;;  %v4515_v43 = vrot.slane %v3736_v17, 1  ;;  %v4523_v17 = vrot.slane %v3752_v48, 1 }
 0x23a   : > { %v4531_v48 = vrot.slane %v3768_v8, 1  ;;  %v4539_v8 = vrot.slane %v3784_v34, 1  ;;  %v4547_v34 = vrot.slane %v3800_v6, 1  ;;  %v4555_v6 = vrot.slane %v3816_v46, 1 }
 0x23b   : > { %13218 = vmatpush3.bf16.msra.mxu0 %v14552_v36  ;;  %v4191_v36 = vsel %vm19172_vm4, %v4188_v10, %v4190_v25  ;;  %v4506_v10 = vrot.slane %v4504_v19, 1  ;;  %v4511_v25 = vrot.slane %v3728_v41, 1  ;;  %v4563_v46 = vrot.slane %v3832_v1, 1 }
 0x23c   : > { %13219 = vmatprep.subr.bf16.mxu0 %v14553_v0  ;;  %v4533_v45 = vor.u32 %v4532_v21, %v4531_v48  ;;  %v4541_v56 = vor.u32 %v4540_v27, %v4539_v8  ;;  %v4549_v4 = vor.u32 %v4548_v42, %v4547_v34  ;;  %v4557_v50 = vor.u32 %v4556_v24, %v4555_v6  ;;  %v14563_v21 = vld [vmem:[%s19137_s1 + $0x2b8] sm:$0xff]  }
 0x23d   : > { %v4565_v32 = vor.u32 %v4564_v3, %v4563_v46  ;;  %v14759_v48 = vmov 0  }
 0x23e   : > { %13184 = vmatmul.mubr.bf16.gmra.mrb[12].mxu0 %v4181_v33  ;;  %174 = vst [vmem:[#allocation2 + $0x4] sm:$0xf] %v14759_v48  ;;  %175 = vst [vmem:[#allocation2 + $0x8] sm:$0xf] %v14759_v48 }
 0x23f   : > { %13187 = vmatprep.mubr.bf16.mxu0 %v4183_v40  ;;  %13220 = vmatpush3.bf16.msra.mxu0 %v14553_v0  ;;  %v4194_v0 = vrot.slane %v15836_v38, 1  ;;  %v4196_v40 = vrot.slane %v15847_v58, 1  ;;  %v19336_v38 = vshll.u32 %v15856_v61, 16  ;;  %176 = vst [vmem:[#allocation2 + $0xc] sm:$0xf] %v14759_v48 }
 0x240   : > { %13221 = vmatprep.subr.bf16.mxu0 %v14554_v29  ;;  %177 = vst [vmem:[#allocation2 + $0xa0] sm:$0xf] %v14759_v48  ;;  %178 = vst [vmem:[#allocation2 + $0xa4] sm:$0xf] %v14759_v48 }
 0x241   : > { %v4195_v33 = vsel %vm19172_vm4, %v4192_v28, %v4194_v0  ;;  %v4200_v28 = vrot.slane %v15869_v15, 1  ;;  %v4576_v53 = vrot.slane %v19336_v38, 2  ;;  %179 = vst [vmem:[#allocation2 + $0xa8] sm:$0xf] %v14759_v48 }
 0x243   : > { %13222 = vmatpush3.bf16.msra.mxu0 %v14554_v29  ;;  %v4198_v29 = vrot.slane %v15856_v61, 1  ;;  %v14558_v61 = vld [vmem:[%s19137_s1 + $0x290] sm:$0xff]  }
 0x244   : > { %13263 = vmatprep.subr.bf16.mxu1 %v14558_v61 }
 0x245   : > { %13264 = vmatpush3.bf16.msra.mxu1 %v14558_v61 }
 0x246   : > { %13188 = vmatmul.mubr.bf16.gmra.mrb[16].mxu0 %v4185_v18  ;;  %v4197_v18 = vsel %vm19172_vm4, %v4194_v0, %v4196_v40  ;;  %v4201_v0 = vsel %vm19172_vm4, %v4198_v29, %v4200_v28 }
 0x247   : > { %13191 = vmatprep.mubr.bf16.mxu0 %v4187_v5  ;;  %v4199_v5 = vsel %vm19172_vm4, %v4196_v40, %v4198_v29  ;;  %v4516_v40 = vrot.slane %v3732_v20, 2  ;;  %v4529_v29 = vor.u32 %v4528_v59, %v4527_v51  ;;  %v14559_v59 = vld [vmem:[%s19137_s1 + $0x298] sm:$0xff]  }
 0x248   : > { %13265 = vmatprep.subr.bf16.mxu1 %v14559_v59 }
 0x249   : > { %v4517_v15 = vor.u32 %v4516_v40, %v4515_v43  ;;  %v4569_v43 = vor.u32 %v4568_v37, %v4567_v52  ;;  %v19334_v40 = vshrl.u32 %v15847_v58, 16  ;;  %13266 = vmatpush3.bf16.msra.mxu1 %v14559_v59 }
 0x24b   : > { %v4571_v1 = vrot.slane %v19334_v40, 1 }
 0x24e   : > { %13192 = vmatmul.mubr.bf16.gmra.mrb[20].mxu0 %v4189_v31  ;;  %v4509_v31 = vrot.slane %v4507_v30, 2 }
 0x24f   : > { %13195 = vmatprep.mubr.bf16.mxu0 %v4191_v36  ;;  %v4512_v36 = vrot.slane %v3724_v26, 2  ;;  %v4520_v26 = vrot.slane %v3740_v2, 2  ;;  %v4525_v2 = vor.u32 %v4524_v16, %v4523_v17 }
 0x251   : > { %v4521_v19 = vor.u32 %v4520_v26, %v4519_v54  ;;  %v4530_v63 = vsel %vm19171_vm5, %v4525_v2, %v4529_v29  ;;  %v4570_v54 = vsel %vm19171_vm5, %v4565_v32, %v4569_v43  ;;  %v4573_v26 = vor.u32 %v4572_v47, %v4571_v1 }
 0x253   : > { %v4522_v20 = vsel %vm19171_vm5, %v4517_v15, %v4521_v19  ;;  %v4574_v17 = vsel %vm19171_vm5, %v4569_v43, %v4573_v26 }
 0x256   : > { %13196 = vmatmul.mubr.bf16.gmra.mrb[24].mxu0 %v4193_v12  ;;  %v4510_v12 = vor.u32 %v4509_v31, %v4506_v10  ;;  %v4534_v10 = vsel %vm19171_vm5, %v4529_v29, %v4533_v45  ;;  %v4545_v31 = vor.u32 %v4544_v35, %v4543_v13  ;;  %v14561_v29 = vld [vmem:[%s19137_s1 + $0x2a8] sm:$0xff]  }
 0x257   : > { %13199 = vmatprep.mubr.bf16.mxu0 %v4195_v33  ;;  %v4513_v33 = vor.u32 %v4512_v36, %v4511_v25  ;;  %v4553_v36 = vor.u32 %v4552_v62, %v4551_v22 }
 0x258   : > { %v4546_v7 = vsel %vm19171_vm5, %v4541_v56, %v4545_v31  ;;  %v4550_v28 = vsel %vm19171_vm5, %v4545_v31, %v4549_v4 }
 0x259   : > { %v4514_v41 = vsel %vm19171_vm5, %v4510_v12, %v4513_v33  ;;  %v4518_v30 = vsel %vm19171_vm5, %v4513_v33, %v4517_v15  ;;  %v4554_v14 = vsel %vm19171_vm5, %v4549_v4, %v4553_v36  ;;  %v4561_v12 = vor.u32 %v4560_v60, %v4559_v39 }
 0x25a   : > { %v4558_v33 = vsel %vm19171_vm5, %v4553_v36, %v4557_v50 }
 0x25b   : > { %v4562_v23 = vsel %vm19171_vm5, %v4557_v50, %v4561_v12 }
 0x25e   : > { %13200 = vmatmul.mubr.bf16.gmra.mrb[28].mxu0 %v4197_v18  ;;  %v4526_v18 = vsel %vm19171_vm5, %v4521_v19, %v4525_v2  ;;  %v14560_v2 = vld [vmem:[%s19137_s1 + $0x2a0] sm:$0xff]  }
 0x25f   : > { %13203 = vmatprep.mubr.bf16.mxu0 %v4199_v5  ;;  %v4537_v5 = vor.u32 %v4536_v55, %v4535_v9  ;;  %13267 = vmatprep.subr.bf16.mxu1 %v14560_v2  ;;  %v187_v9 = vlaneseq }
 0x260   : > { %13268 = vmatpush3.bf16.msra.mxu1 %v14560_v2 }
 0x261   : > { %v4538_v44 = vsel %vm19171_vm5, %v4533_v45, %v4537_v5  ;;  %v4542_v25 = vsel %vm19171_vm5, %v4537_v5, %v4541_v56  ;;  %13269 = vmatprep.subr.bf16.mxu1 %v14561_v29  ;;  %v16064_v55 = vshrl.u32 %v187_v9, 7 }
 0x263   : > { %19338 = vst [vmem:[#allocation5_spill] sm:$0xff] %v16064_v55  ;;  %v190_v45 = vadd.s32 16, %v16064_v55  ;;  %v191_v8 = vadd.s32 24, %v16064_v55  ;;  %v189_v27 = vadd.s32 8, %v16064_v55  ;;  %v16088_v62 = vadd.s32 32, %v16064_v55 }
 0x264   : > { %13270 = vmatpush3.bf16.msra.mxu1 %v14561_v29  ;;  %v16074_v13 = vmul.u32.u64.low 3817748708, %v16064_v55  ;;  %v16075_v35 = vmul.u32.u64.high 3817748708, %v16064_v55, %v16074_v13  ;;  %v16091_v4 = vadd.s32 56, %v16064_v55  ;;  %v16100_v39 = vadd.s32 40, %v16064_v55 }
 0x265   : > { %v16077_v56 = vmul.u32.u64.low 3817748708, %v191_v8  ;;  %v16078_v31 = vmul.u32.u64.high 3817748708, %v191_v8, %v16077_v56  ;;  %v16103_v60 = vadd.s32 80, %v16064_v55 }
 0x266   : > { %13204 = vmatmul.mubr.bf16.gmra.mrb[32].mxu0 %v4201_v0  ;;  %v4566_v0 = vsel %vm19171_vm5, %v4561_v12, %v4565_v32  ;;  %v230_v36 = vshrl.u32 %v16075_v35, 4  ;;  %v16117_v32 = vadd.s32 88, %v16064_v55 }
 0x267   : > { %13223 = vmatprep.mubr.bf16.mxu0 %v4514_v41  ;;  %v14555_v41 = vld [vmem:[%s14804_s23 + $0xa8] ss:$0 sps:$4 sm:$0x33]   ;;  %v263_v6 = vshrl.u32 %v16078_v31, 4  ;;  %v16124_v40 = vmul.u32.u64.low 3817748708, %v16103_v60  ;;  %v16125_v1 = vmul.u32.u64.high 3817748708, %v16103_v60, %v16124_v40 }
 0x268   : > { %v4580_v15 = vshrl.u32 %v14555_v41, 16  ;;  %v4583_v19 = vshll.u32 %v14555_v41, 16  ;;  %v231_v3 = vmul.u32 18, %v230_v36 }
 0x269   : > { %v264_v37 = vmul.u32 18, %v263_v6  ;;  %v340_v2 = vshrl.u32 %v16125_v1, 4 }
 0x26a   : > { %v4582_v16 = vrot.slane %v4580_v15, 1  ;;  %v4585_v58 = vrot.slane %v4583_v19, 2  ;;  %v16128_v41 = vsub.s32 %v16064_v55, %v231_v3 }
 0x26b   : > { %v16134_v38 = vsub.s32 %v191_v8, %v264_v37 }
 0x26c   : > { %v4586_v51 = vor.u32 %v4585_v58, %v4582_v16  ;;  %vm620_vm8 = vcmp.ne.s32.totalorder %v16128_v41, 0  ;;  %vm656_vm9 = vcmp.lt.s32.totalorder %v16128_v41, 0  ;;  %v16154_v58 = vadd.s32 72, %v16064_v55 }
 0x26d   : > { %vm623_vm10 = vcmp.ne.s32.totalorder %v16134_v38, 0  ;;  %vm659_vm11 = vcmp.lt.s32.totalorder %v16134_v38, 0  ;;  %vm16184_vm3 = vmand %vm656_vm9, %vm620_vm8 }
 0x26e   : > { %13224 = vmatmul.mubr.bf16.vlgmr.msra.gmra.mrb[0].mxu0 %v4518_v30  ;;  %v4577_v30 = vor.u32 %v4576_v53, %v4575_v11 }
 0x26f   : > { %13227 = vmatprep.mubr.bf16.mxu0 %v4522_v20 }
 0x270   : > { %v4578_v20 = vsel %vm19171_vm5, %v4573_v26, %v4577_v30  ;;  %v4587_v57 = vsel %vm19171_vm5, %v4577_v30, %v4586_v51  ;;  %v16137_v53 = vmul.u32.u64.low 3817748708, %v16117_v32  ;;  %v16138_v26 = vmul.u32.u64.high 3817748708, %v16117_v32, %v16137_v53 }
 0x271   : > { %v16162_v51 = vadd.s32 112, %v16064_v55 }
 0x272   : > { %v351_v8 = vshrl.u32 %v16138_v26, 4 }
 0x276   : > { %13228 = vmatmul.mubr.bf16.gmra.mrb[4].mxu0 %v4526_v18  ;;  %v14562_v18 = vld [vmem:[%s19137_s1 + $0x2b0] sm:$0xff]  }
 0x277   : > { %13231 = vmatprep.mubr.bf16.mxu0 %v4530_v63  ;;  %13271 = vmatprep.subr.bf16.mxu1 %v14562_v18  ;;  %v16061_v63 = vld [vmem:[%s19137_s1 + $0x240] sm:$0xff]  }
 0x278   : > { %13272 = vmatpush3.bf16.msra.mxu1 %v14562_v18  ;;  %19337 = vst [vmem:[#allocation4_spill] sm:$0xff] %v16061_v63 }
 0x279   : > { %13273 = vmatprep.subr.bf16.mxu1 %v14563_v21 }
 0x27c   : > { %13274 = vmatpush3.bf16.msra.mxu1 %v14563_v21 }
 0x27d   : > { %13311 = vmatprep.subr.bf16.mxu1 %v16061_v63 }
 0x27e   : > { %13232 = vmatmul.mubr.bf16.gmra.mrb[8].mxu0 %v4534_v10  ;;  %v16067_v5 = vmul.u32.u64.low 3817748708, %v190_v45  ;;  %v16068_v10 = vmul.u32.u64.high 3817748708, %v190_v45, %v16067_v5 }
 0x27f   : > { %13235 = vmatprep.mubr.bf16.mxu0 %v4538_v44  ;;  %v194_v44 = vadd.s32 48, %v16064_v55 }
 0x280   : > { %v252_v22 = vshrl.u32 %v16068_v10, 4 }
 0x286   : > { %13236 = vmatmul.mubr.bf16.gmra.mrb[12].mxu0 %v4542_v25  ;;  %v16080_v25 = vmul.u32.u64.low 3817748708, %v189_v27  ;;  %v16081_v34 = vmul.u32.u64.high 3817748708, %v189_v27, %v16080_v25 }
 0x287   : > { %13239 = vmatprep.mubr.bf16.mxu0 %v4546_v7  ;;  %v16083_v42 = vmul.u32.u64.low 3817748708, %v194_v44  ;;  %v16084_v7 = vmul.u32.u64.high 3817748708, %v194_v44, %v16083_v42  ;;  %v341_v25 = vmul.u32 18, %v340_v2  ;;  %v16341_v2 = vadd.s32 152, %v16064_v55 }
 0x288   : > { %v241_v50 = vshrl.u32 %v16081_v34, 4  ;;  %v16227_v42 = vadd.s32 96, %v16064_v55 }
 0x289   : > { %v296_v12 = vshrl.u32 %v16084_v7, 4  ;;  %v16230_v7 = vadd.s32 120, %v16064_v55 }
 0x28a   : > { %v242_v49 = vmul.u32 18, %v241_v50 }
 0x28b   : > { %v297_v47 = vmul.u32 18, %v296_v12  ;;  %v16260_v12 = vsub.s32 %v16103_v60, %v341_v25  ;;  %v16267_v3 = vmul.u32.u64.low 3817748708, %v16230_v7  ;;  %v16268_v37 = vmul.u32.u64.high 3817748708, %v16230_v7, %v16267_v3 }
 0x28c   : > { %v16143_v19 = vsub.s32 %v189_v27, %v242_v49  ;;  %v16290_v49 = vadd.s32 104, %v16064_v55 }
 0x28d   : > { %v16145_v30 = vsub.s32 %v194_v44, %v297_v47  ;;  %v16207_v27 = vmul.u32.u64.low 3817748708, %v16162_v51  ;;  %v16208_v44 = vmul.u32.u64.high 3817748708, %v16162_v51, %v16207_v27  ;;  %19350 = vst [vmem:[#allocation7_spill] sm:$0xff] %v16260_v12  ;;  %vm630_vm5 = vcmp.ne.s32.totalorder %v16260_v12, 0 }
 0x28e   : > { %13240 = vmatmul.mubr.bf16.gmra.mrb[16].mxu0 %v4550_v28  ;;  %v253_v28 = vmul.u32 18, %v252_v22  ;;  %vm621_vm13 = vcmp.ne.s32.totalorder %v16143_v19, 0  ;;  %vm657_vm14 = vcmp.lt.s32.totalorder %v16143_v19, 0  ;;  %v16203_v10 = vadd.s32 18, %v16143_v19 }
 0x28f   : > { %13243 = vmatprep.mubr.bf16.mxu0 %v4554_v14  ;;  %v16096_v24 = vmul.u32.u64.low 3817748708, %v16088_v62  ;;  %v16097_v14 = vmul.u32.u64.high 3817748708, %v16088_v62, %v16096_v24  ;;  %vm626_vm15 = vcmp.ne.s32.totalorder %v16145_v30, 0  ;;  %vm16210_vm8 = vmand %vm657_vm14, %vm621_vm13  ;;  %v16215_v35 = vadd.s32 18, %v16145_v30 }
 0x290   : > { %v16114_v52 = vsub.s32 %v190_v45, %v253_v28  ;;  %v16191_v9 = vmul.u32.u64.low 3817748708, %v16154_v58  ;;  %v16192_v45 = vmul.u32.u64.high 3817748708, %v16154_v58, %v16191_v9  ;;  %v384_v40 = vshrl.u32 %v16208_v44, 4 }
 0x291   : > { %v274_v15 = vshrl.u32 %v16097_v14, 4  ;;  %v352_v14 = vmul.u32 18, %v351_v8  ;;  %v16357_v8 = vmul.u32.u64.low 3817748708, %v16290_v49  ;;  %v16358_v27 = vmul.u32.u64.high 3817748708, %v16290_v49, %v16357_v8 }
 0x292   : > { %vm622_vm6 = vcmp.ne.s32.totalorder %v16114_v52, 0  ;;  %vm658_vm7 = vcmp.lt.s32.totalorder %v16114_v52, 0  ;;  %v16149_v16 = vadd.s32 18, %v16114_v52  ;;  %v19368_v44 = vmov 0 }
 0x293   : > { %v275_v61 = vmul.u32 18, %v274_v15  ;;  %vm16173_vm12 = vmand %vm658_vm7, %vm622_vm6  ;;  %vm662_vm6 = vcmp.lt.s32.totalorder %v16145_v30, 0  ;;  %v16280_v60 = vsub.s32 %v16117_v32, %v352_v14  ;;  %v16298_v32 = vadd.s32 18, %v16260_v12 }
 0x294   : > { %vm16198_vm7 = vmand %vm659_vm11, %vm623_vm10  ;;  %v16395_v8 = vadd.s32 176, %v16064_v55  ;;  %v16455_v28 = vadd.s32 192, %v16064_v55  ;;  %v373_v22 = vshrl.u32 %v16358_v27, 4 }
 0x295   : > { %v16218_v56 = vsub.s32 %v16088_v62, %v275_v61  ;;  %vm16222_vm9 = vmand %vm662_vm6, %vm626_vm15  ;;  %19352 = vst [vmem:[#allocation9_spill] sm:$0xff] %v16280_v60  ;;  %v19360_v61 = vmov 0 }
 0x296   : > { %13244 = vmatmul.mubr.bf16.gmra.mrb[20].mxu0 %v4558_v33  ;;  %v16108_v33 = vmul.u32.u64.low 3817748708, %v16091_v4  ;;  %v16109_v46 = vmul.u32.u64.high 3817748708, %v16091_v4, %v16108_v33  ;;  %19354 = vst [vmem:[#allocation11_spill] sm:$0xff] %v16298_v32  ;;  %v16504_v32 = vadd.s32 240, %v16064_v55 }
 0x297   : > { %13247 = vmatprep.mubr.bf16.mxu0 %v4562_v23  ;;  %v16112_v23 = vadd.s32 64, %v16064_v55  ;;  %vm624_vm10 = vcmp.ne.s32.totalorder %v16218_v56, 0  ;;  %vm660_vm11 = vcmp.lt.s32.totalorder %v16218_v56, 0 }
 0x298   : > { %vm16304_vm2 = vmand %vm660_vm11, %vm624_vm10 }
 0x29e   : > { %13248 = vmatmul.mubr.bf16.gmra.mrb[24].mxu0 %v4566_v0  ;;  %v16120_v43 = vmul.u32.u64.low 3817748708, %v16100_v39  ;;  %v16121_v0 = vmul.u32.u64.high 3817748708, %v16100_v39, %v16120_v43 }
 0x29f   : > { %13251 = vmatprep.mubr.bf16.mxu0 %v4570_v54  ;;  %v16131_v54 = vmul.u32.u64.low 3817748708, %v16112_v23  ;;  %v16132_v11 = vmul.u32.u64.high 3817748708, %v16112_v23, %v16131_v54  ;;  %v16272_v43 = vadd.s32 18, %v16218_v56 }
 0x2a0   : > { %v285_v59 = vshrl.u32 %v16121_v0, 4  ;;  %v329_v0 = vshrl.u32 %v16192_v45, 4  ;;  %v16311_v54 = vadd.s32 144, %v16064_v55  ;;  %v395_v45 = vshrl.u32 %v16268_v37, 4 }
 0x2a1   : > { %v318_v21 = vshrl.u32 %v16132_v11, 4  ;;  %v16314_v11 = vadd.s32 128, %v16064_v55  ;;  %v19420_v53 = vsel %vm16304_vm2, %v16272_v43, %v16218_v56 }
 0x2a2   : > { %v286_v31 = vmul.u32 18, %v285_v59  ;;  %v330_v15 = vmul.u32 18, %v329_v0  ;;  %v16338_v59 = vadd.s32 18, %v16280_v60  ;;  %v16392_v0 = vld [vmem:[#allocation2 + $0x8] sm:$0xf] }
 0x2a3   : > { %v319_v36 = vmul.u32 18, %v318_v21  ;;  %v19365_v21 = vmov 0  ;;  %19375 = vst [vmem:[#allocation18_spill] sm:$0xff] %v16392_v0 }
 0x2a4   : > { %v16257_v50 = vsub.s32 %v16100_v39, %v286_v31  ;;  %19363 = vst [vmem:[#allocation14_spill] sm:$0xff] %v16338_v59  ;;  %v16369_v31 = vmul.u32.u64.low 3817748708, %v16311_v54  ;;  %v16370_v25 = vmul.u32.u64.high 3817748708, %v16311_v54, %v16369_v31  ;;  %v16387_v3 = vsub.s32 %v16154_v58, %v330_v15 }
 0x2a5   : > { %v16276_v39 = vsub.s32 %v16112_v23, %v319_v36  ;;  %v16373_v36 = vmul.u32.u64.low 3817748708, %v16314_v11  ;;  %v16374_v14 = vmul.u32.u64.high 3817748708, %v16314_v11, %v16373_v36 }
 0x2a6   : > { %13252 = vmatmul.mubr.bf16.gmra.mrb[28].mxu0 %v4574_v17  ;;  %v307_v17 = vshrl.u32 %v16109_v46, 4  ;;  %19349 = vst [vmem:[#allocation6_spill] sm:$0xff] %v16257_v50  ;;  %v16263_v33 = vmul.u32.u64.low 3817748708, %v16227_v42  ;;  %v16264_v46 = vmul.u32.u64.high 3817748708, %v16227_v42, %v16263_v33  ;;  %vm625_vm15 = vcmp.ne.s32.totalorder %v16257_v50, 0 }
 0x2a7   : > { %13255 = vmatprep.mubr.bf16.mxu0 %v4578_v20  ;;  %v16157_v20 = vadd.s32 18, %v16128_v41  ;;  %19351 = vst [vmem:[#allocation8_spill] sm:$0xff] %v16276_v39  ;;  %vm661_vm6 = vcmp.lt.s32.totalorder %v16257_v50, 0  ;;  %v16293_v23 = vadd.s32 18, %v16257_v50  ;;  %vm628_vm1 = vcmp.ne.s32.totalorder %v16276_v39, 0 }
 0x2a8   : > { %v308_v18 = vmul.u32 18, %v307_v17  ;;  %vm664_vm0 = vcmp.lt.s32.totalorder %v16276_v39, 0  ;;  %v16325_v26 = vadd.s32 18, %v16276_v39  ;;  %v385_v17 = vmul.u32 18, %v384_v40  ;;  %vm16332_vm11 = vmand %vm661_vm6, %vm625_vm15  ;;  %v5288_v40 = vld [vmem:[#allocation2 + $0x4] sm:$0x8] }
 0x2a9   : > { %19353 = vst [vmem:[#allocation10_spill] sm:$0xff] %v16293_v23  ;;  %v19361_v61 = vsel %vm16332_vm11, 4294967295, %v19360_v61  ;;  %v362_v9 = vshrl.u32 %v16264_v46, 4  ;;  %vm16364_vm15 = vmand %vm664_vm0, %vm628_vm1  ;;  %v19372_v46 = vmov 0  ;;  %v16426_v58 = vcombine.low %v5288_v40, %v16392_v0 }
 0x2aa   : > { %v16237_v62 = vsub.s32 %v16091_v4, %v308_v18  ;;  %19359 = vst [vmem:[#allocation12_spill] sm:$0xff] %v16325_v26  ;;  %19362 = vst [vmem:[#allocation13_spill] sm:$0xff] %v19361_v61  ;;  %v16344_v18 = vadd.s32 136, %v16064_v55  ;;  %v19369_v44 = vsel %vm16364_vm15, 4294967295, %v19368_v44  ;;  %v16390_v37 = vsub.s32 %v16162_v51, %v385_v17 }
 0x2ab   : > { %19370 = vst [vmem:[#allocation16_spill] sm:$0xff] %v19369_v44  ;;  %v16398_v31 = vmul.u32.u64.low 3817748708, %v16341_v2  ;;  %v16399_v36 = vmul.u32.u64.high 3817748708, %v16341_v2, %v16398_v31  ;;  %v363_v17 = vmul.u32 18, %v362_v9  ;;  %19376 = vst [vmem:[#allocation19_spill] sm:$0xff] %v16426_v58  ;;  %vm629_vm0 = vcmp.ne.s32.totalorder %v16387_v3, 0 }
 0x2ac   : > { %vm627_vm13 = vcmp.ne.s32.totalorder %v16237_v62, 0  ;;  %vm663_vm14 = vcmp.lt.s32.totalorder %v16237_v62, 0  ;;  %v16285_v1 = vadd.s32 18, %v16237_v62  ;;  %v396_v51 = vmul.u32 18, %v395_v45 }
 0x2ad   : > { %vm16320_vm4 = vmand %vm663_vm14, %vm627_vm13  ;;  %vm667_vm13 = vcmp.lt.s32.totalorder %v16280_v60, 0  ;;  %vm19364_vm14 = vcmp.lt.s32.totalorder %v16260_v12, 0  ;;  %v16402_v33 = vmul.u32.u64.low 3817748708, %v16344_v18  ;;  %v16403_v4 = vmul.u32.u64.high 3817748708, %v16344_v18, %v16402_v33 }
 0x2ae   : > { %13256 = vmatmul.mubr.bf16.gmra.mrb[32].mxu0 %v4587_v57  ;;  %v16165_v57 = vadd.s32 18, %v16134_v38  ;;  %vm16350_vm10 = vmand %vm19364_vm14, %vm630_vm5  ;;  %vm19371_vm5 = vcmp.ne.s32.totalorder %v16280_v60, 0  ;;  %v16430_v24 = vmul.u32.u64.low 3817748708, %v16395_v8  ;;  %v16431_v15 = vmul.u32.u64.high 3817748708, %v16395_v8, %v16430_v24 }
 0x2af   : > { %v19366_v21 = vsel %vm16350_vm10, 4294967295, %v19365_v21  ;;  %vm16382_vm6 = vmand %vm667_vm13, %vm19371_vm5  ;;  %v16434_v9 = vadd.s32 160, %v16064_v55  ;;  %v16437_v33 = vadd.s32 184, %v16064_v55  ;;  %v16441_v31 = vadd.s32 18, %v16387_v3 }
 0x2b0   : > { %19367 = vst [vmem:[#allocation15_spill] sm:$0xff] %v19366_v21  ;;  %v19373_v46 = vsel %vm16382_vm6, 4294967295, %v19372_v46  ;;  %v16445_v45 = vadd.s32 168, %v16064_v55  ;;  %v16449_v24 = vsub.s32 %v16227_v42, %v363_v17  ;;  %v16452_v40 = vadd.s32 208, %v16064_v55 }
 0x2b1   : > { %19374 = vst [vmem:[#allocation17_spill] sm:$0xff] %v19373_v46  ;;  %v16458_v6 = vsub.s32 %v16230_v7, %v396_v51  ;;  %v428_v63 = vshrl.u32 %v16370_v25, 4  ;;  %v406_v39 = vshrl.u32 %v16374_v14, 4  ;;  %v439_v0 = vshrl.u32 %v16399_v36, 4 }
 0x2b2   : > { %v16464_v26 = vmul.u32.u64.low 3817748708, %v16434_v9  ;;  %v16465_v44 = vmul.u32.u64.high 3817748708, %v16434_v9, %v16464_v26  ;;  %v16468_v42 = vmul.u32.u64.low 3817748708, %v16437_v33  ;;  %v16469_v17 = vmul.u32.u64.high 3817748708, %v16437_v33, %v16468_v42 }
 0x2b3   : > { %v417_v60 = vshrl.u32 %v16403_v4, 4  ;;  %v16474_v7 = vmul.u32.u64.low 3817748708, %v16445_v45  ;;  %v16475_v51 = vmul.u32.u64.high 3817748708, %v16445_v45, %v16474_v7  ;;  %v16486_v26 = vadd.s32 18, %v16390_v37 }
 0x2b4   : > { %v16478_v27 = vmul.u32.u64.low 3817748708, %v16452_v40  ;;  %v16479_v25 = vmul.u32.u64.high 3817748708, %v16452_v40, %v16478_v27  ;;  %v16482_v14 = vmul.u32.u64.low 3817748708, %v16455_v28  ;;  %v16483_v59 = vmul.u32.u64.high 3817748708, %v16455_v28, %v16482_v14 }
 0x2b5   : > { %v16490_v36 = vadd.s32 216, %v16064_v55  ;;  %v16493_v4 = vadd.s32 200, %v16064_v55  ;;  %v374_v7 = vmul.u32 18, %v373_v22  ;;  %v472_v27 = vshrl.u32 %v16431_v15, 4 }
 0x2b6   : > { %v16499_v14 = vadd.s32 18, %v16449_v24  ;;  %v429_v46 = vmul.u32 18, %v428_v63  ;;  %v407_v42 = vmul.u32 18, %v406_v39  ;;  %vm19379_vm14 = vcmp.lt.s32.totalorder %v16387_v3, 0 }
 0x2b7   : > { %19377 = vst [vmem:[#allocation20_spill] sm:$0xff] %v16490_v36  ;;  %19378 = vst [vmem:[#allocation21_spill] sm:$0xff] %v16493_v4  ;;  %v440_v58 = vmul.u32 18, %v439_v0  ;;  %v418_v12 = vmul.u32 18, %v417_v60  ;;  %vm19382_vm1 = vcmp.ne.s32.totalorder %v16390_v37, 0  ;;  %vm19383_vm13 = vcmp.lt.s32.totalorder %v16390_v37, 0 }
 0x2b8   : > { %vm16510_vm5 = vmand %vm19379_vm14, %vm629_vm0  ;;  %v16515_v15 = vmul.u32.u64.low 3817748708, %v16490_v36  ;;  %v16516_v21 = vmul.u32.u64.high 3817748708, %v16490_v36, %v16515_v15  ;;  %v16519_v63 = vmul.u32.u64.low 3817748708, %v16493_v4  ;;  %v16520_v39 = vmul.u32.u64.high 3817748708, %v16493_v4, %v16519_v63 }
 0x2b9   : > { %vm16526_vm15 = vmand %vm19383_vm13, %vm19382_vm1  ;;  %v16531_v0 = vadd.s32 18, %v16458_v6  ;;  %v473_v50 = vmul.u32 18, %v472_v27  ;;  %v450_v23 = vshrl.u32 %v16465_v44, 4  ;;  %v483_v15 = vshrl.u32 %v16469_v17, 4 }
 0x2ba   : > { %vm19386_vm0 = vcmp.ne.s32.totalorder %v16449_v24, 0  ;;  %vm19387_vm14 = vcmp.lt.s32.totalorder %v16449_v24, 0  ;;  %v16544_v4 = vsub.s32 %v16290_v49, %v374_v7  ;;  %v16547_v36 = vsub.s32 %v16311_v54, %v429_v46 }
 0x2bb   : > { %vm16539_vm6 = vmand %vm19387_vm14, %vm19386_vm0  ;;  %v16550_v27 = vsub.s32 %v16314_v11, %v407_v42  ;;  %v461_v44 = vshrl.u32 %v16475_v51, 4  ;;  %vm19390_vm1 = vcmp.ne.s32.totalorder %v16458_v6, 0  ;;  %vm19391_vm13 = vcmp.lt.s32.totalorder %v16458_v6, 0 }
 0x2bc   : > { %vm16557_vm10 = vmand %vm19391_vm13, %vm19390_vm1  ;;  %v516_v61 = vshrl.u32 %v16479_v25, 4  ;;  %v494_v49 = vshrl.u32 %v16483_v59, 4  ;;  %v16564_v54 = vmul.u32.u64.low 3817748708, %v16504_v32  ;;  %v16565_v46 = vmul.u32.u64.high 3817748708, %v16504_v32, %v16564_v54 }
 0x2bd   : > { %v16576_v42 = vsub.s32 %v16341_v2, %v440_v58  ;;  %v16579_v25 = vsub.s32 %v16344_v18, %v418_v12  ;;  %v19394_v59 = vsel %vm16173_vm12, %v16149_v16, %v16114_v52  ;;  %v19395_v7 = vmov 0 }
 0x2be   : > { %vm16586_vm0 = vcmp.lt.s32.totalorder %v19394_v59, 16  ;;  %v19398_v54 = vsel %vm16198_vm7, %v16165_v57, %v16134_v38  ;;  %v19399_v2 = vmov 0  ;;  %v16604_v52 = vsub.s32 %v16395_v8, %v473_v50 }
 0x2bf   : > { %v19396_v7 = vsel %vm16586_vm0, 4294967295, %v19395_v7  ;;  %vm16595_vm14 = vcmp.lt.s32.totalorder %v19398_v54, 16  ;;  %v451_v16 = vmul.u32 18, %v450_v23  ;;  %v484_v12 = vmul.u32 18, %v483_v15 }
 0x2c0   : > { %19397 = vst [vmem:[#allocation22_spill] sm:$0xff] %v19396_v7  ;;  %v19400_v2 = vsel %vm16595_vm14, 4294967295, %v19399_v2  ;;  %v19402_v5 = vsel %vm16184_vm3, %v16157_v20, %v16128_v41  ;;  %v19403_v38 = vmov 0  ;;  %v19406_v57 = vsel %vm16210_vm8, %v16203_v10, %v16143_v19  ;;  %v16637_v19 = vld [vmem:[%s19138_s2] ss:$0 sm:$0xff] }
 0x2c1   : > { %19401 = vst [vmem:[#allocation23_spill] sm:$0xff] %v19400_v2  ;;  %vm16611_vm12 = vcmp.lt.s32.totalorder %v19402_v5, 16  ;;  %vm16620_vm7 = vcmp.lt.s32.totalorder %v19406_v57, 16  ;;  %v19407_v18 = vmov 0  ;;  %v16629_v41 = vadd.s32 18, %v16544_v4 }
 0x2c2   : > { %v19404_v38 = vsel %vm16611_vm12, 4294967295, %v19403_v38  ;;  %v19408_v18 = vsel %vm16620_vm7, 4294967295, %v19407_v18  ;;  %v462_v20 = vmul.u32 18, %v461_v44  ;;  %v16632_v50 = vadd.s32 224, %v16064_v55 }
 0x2c3   : > { %19405 = vst [vmem:[#allocation24_spill] sm:$0xff] %v19404_v38  ;;  %19409 = vst [vmem:[#allocation25_spill] sm:$0xff] %v19408_v18  ;;  %v16640_v10 = vadd.s32 18, %v16547_v36  ;;  %v16643_v13 = vadd.s32 18, %v16550_v27  ;;  %v517_v23 = vmul.u32 18, %v516_v61  ;;  %v495_v8 = vmul.u32 18, %v494_v49 }
 0x2c4   : > { %v16646_v58 = vadd.s32 18, %v16576_v42  ;;  %v16649_v15 = vadd.s32 18, %v16579_v25  ;;  %v527_v44 = vshrl.u32 %v16516_v21, 4  ;;  %v505_v59 = vshrl.u32 %v16520_v39, 4  ;;  %v19447_v38 = vld [vmem:[#allocation17_spill] sm:$0xff] }
 0x2c5   : > { %v16654_v5 = vadd.s32 18, %v16604_v52  ;;  %v16657_v57 = vsub.s32 %v16434_v9, %v451_v16  ;;  %v16660_v61 = vsub.s32 %v16437_v33, %v484_v12  ;;  %v16663_v49 = vadd.s32 248, %v16064_v55 }
 0x2c6   : > { %19410 = vst [vmem:[#allocation26_spill] sm:$0xff] %v16649_v15  ;;  %v16667_v21 = vsub.s32 %v16445_v45, %v462_v20  ;;  %v16670_v39 = vmul.u32.u64.low 3817748708, %v16632_v50  ;;  %v16671_v51 = vmul.u32.u64.high 3817748708, %v16632_v50, %v16670_v39  ;;  %v16677_v33 = vsub.s32 %v16452_v40, %v517_v23  ;;  %v19426_v23 = vld [vmem:[#allocation6_spill] sm:$0xff] }
 0x2c7   : > { %19411 = vst [vmem:[#allocation27_spill] sm:$0xff] %v16654_v5  ;;  %v16680_v16 = vsub.s32 %v16455_v28, %v495_v8  ;;  %v560_v45 = vshrl.u32 %v16565_v46, 4  ;;  %v506_v39 = vmul.u32 18, %v505_v59  ;;  %v19412_v28 = vsel %vm16222_vm9, %v16215_v35, %v16145_v30 }
 0x2c8   : > { %vm16692_vm8 = vcmp.lt.s32.totalorder %v19412_v28, 16  ;;  %v19413_v40 = vmov 0  ;;  %v19416_v46 = vsel %vm16320_vm4, %v16285_v1, %v16237_v62  ;;  %vm16716_vm9 = vcmp.lt.s32.totalorder %v19420_v53, 16  ;;  %v19435_v1 = vld [vmem:[#allocation21_spill] sm:$0xff] }
 0x2c9   : > { %v19414_v40 = vsel %vm16692_vm8, 4294967295, %v19413_v40  ;;  %vm16701_vm13 = vcmp.lt.s32.totalorder %v19416_v46, 16  ;;  %v16708_v34 = vmul.u32.u64.low 3817748708, %v16663_v49  ;;  %v16709_v30 = vmul.u32.u64.high 3817748708, %v16663_v49, %v16708_v34 }
 0x2ca   : > { %19415 = vst [vmem:[#allocation28_spill] sm:$0xff] %v19414_v40  ;;  %v19421_v62 = vmov 0  ;;  %v16730_v59 = vadd.s32 18, %v16657_v57  ;;  %v16733_v47 = vadd.s32 18, %v16660_v61  ;;  %v16736_v56 = vadd.s32 18, %v16667_v21  ;;  %v19434_v34 = vld [vmem:[#allocation20_spill] sm:$0xff] }
 0x2cb   : > { %v19422_v62 = vsel %vm16716_vm9, 4294967295, %v19421_v62  ;;  %v16759_v7 = vadd.s32 232, %v16064_v55  ;;  %vm19448_vm2 = vnez %v19447_v38  ;;  %v19458_v38 = vld [vmem:[#allocation12_spill] sm:$0xff]  ;;  %v19490_v60 = vsel %vm16539_vm6, %v16499_v14, %v16449_v24 }
 0x2cc   : > { %19423 = vst [vmem:[#allocation30_spill] sm:$0xff] %v19422_v62  ;;  %v19491_v17 = vmov 0 }
 0x341   : > { %v13225_v54 = vpop.f32.mrb[0].mxu0 }
 0x342   : > { %v4876_v29 = vadd.f32 %v13225_v54, %v16637_v19  ;;  %v4688_v48 = vpop.f32.mrb[1].mxu0 }
 0x343   : > { %v4874_v11 = vadd.f32 %v16637_v19, %v4688_v48  ;;  %v13226_v9 = vpop.f32.mrb[2].mxu0  ;;  %v528_v48 = vmul.u32 18, %v527_v44  ;;  %v19428_v44 = vmov 0 }
 0x344   : > { %v4912_v12 = vmax.f32 %v4876_v29, 0.0  ;;  %v4877_v20 = vadd.f32 %v13226_v9, %v16637_v19  ;;  %v4691_v54 = vpop.f32.mrb[3].mxu0  ;;  %v19417_v29 = vmov 0  ;;  %v16739_v9 = vadd.s32 18, %v16677_v33 }
 0x345   : > { %v4910_v5 = vmax.f32 %v4874_v11, 0.0  ;;  %v4875_v15 = vadd.f32 %v16637_v19, %v4691_v54  ;;  %v19418_v29 = vsel %vm16701_vm13, 4294967295, %v19417_v29  ;;  %v19425_v11 = vld [vmem:[#allocation10_spill] sm:$0xff]  ;;  %v561_v54 = vmul.u32 18, %v560_v45 }
 0x346   : > { %19419 = vst [vmem:[#allocation29_spill] sm:$0xff] %v19418_v29  ;;  %v4913_v35 = vmax.f32 %v4877_v20, 0.0  ;;  %v19427_v8 = vsel %vm16332_vm11, %v19425_v11, %v19426_v23  ;;  %19431 = vst [vmem:[#allocation10_spill] sm:$0xff] %v16736_v56  ;;  %v16742_v20 = vadd.s32 18, %v16680_v16  ;;  %v5020_v28 = vsel %vm16586_vm0, %v4912_v12, 0.0 }
 0x347   : > { %vm16725_vm4 = vcmp.lt.s32.totalorder %v19427_v8, 16  ;;  %v4911_v43 = vmax.f32 %v4875_v15, 0.0  ;;  %19432 = vst [vmem:[#allocation6_spill] sm:$0xff] %v16739_v9  ;;  %v16749_v53 = vsub.s32 %v19434_v34, %v528_v48  ;;  %v16752_v11 = vsub.s32 %v19435_v1, %v506_v39  ;;  %v5234_v34 = vld [vmem:[#allocation2 + $0x4] sm:$0xc] }
 0x348   : > { %v19429_v44 = vsel %vm16725_vm4, 4294967295, %v19428_v44  ;;  %19433 = vst [vmem:[#allocation31_spill] sm:$0xff] %v16742_v20  ;;  %v5021_v46 = vsel %vm16595_vm14, %v4913_v35, 0.0  ;;  %v5018_v15 = vsel %vm16611_vm12, %v4910_v5, 0.0  ;;  %v538_v48 = vshrl.u32 %v16671_v51, 4  ;;  %v19449_v20 = vld [vmem:[#allocation14_spill] sm:$0xff] }
 0x349   : > { %19430 = vst [vmem:[#allocation13_spill] sm:$0xff] %v19429_v44  ;;  %v12115_v23 = vpack.c.bf16 %v5021_v46, %v5020_v28  ;;  %v5019_v8 = vsel %vm16620_vm7, %v4911_v43, 0.0  ;;  %v13229_v45 = vpop.f32.mrb[4].mxu0  ;;  %v16764_v39 = vadd.s32 272, %v16064_v55  ;;  %v16770_v43 = vsub.s32 %v16504_v32, %v561_v54  ;;  %v19450_v9 = vld [vmem:[#allocation9_spill] sm:$0xff] }
 0x34a   : > { %v12110_v12 = vpack.c.bf16 %v5019_v8, %v5018_v15  ;;  %v4880_v35 = vadd.f32 %v13229_v45, %v16637_v19  ;;  %v4704_v2 = vpop.f32.mrb[5].mxu0  ;;  %v16773_v46 = vadd.s32 256, %v16064_v55  ;;  %v16776_v51 = vadd.s32 280, %v16064_v55  ;;  %v19439_v45 = vld [vmem:[#allocation15_spill] sm:$0xff] }
 0x34b   : > { %12288 = vst [vmem:[#allocation2 + $0x18] sm:$0xff] %v12115_v23   ;;  %v4878_v5 = vadd.f32 %v16637_v19, %v4704_v2  ;;  %v13230_v28 = vpop.f32.mrb[6].mxu0  ;;  %19436 = vst [vmem:[#allocation20_spill] sm:$0xff] %v16770_v43  ;;  %v16782_v2 = vadd.s32 18, %v16749_v53  ;;  %v16785_v32 = vadd.s32 18, %v16752_v11  ;;  %vm19440_vm11 = vnez %v19439_v45 }
 0x34c   : > { %12287 = vst [vmem:[#allocation2 + $0x10] sm:$0xff] %v12110_v12   ;;  %v4916_v1 = vmax.f32 %v4880_v35, 0.0  ;;  %v4881_v15 = vadd.f32 %v13230_v28, %v16637_v19  ;;  %v4707_v23 = vpop.f32.mrb[7].mxu0  ;;  %v19441_v12 = vld [vmem:[#allocation11_spill] sm:$0xff]  ;;  %v19444_v28 = vmov 0  ;;  %v19452_v56 = vmov 0 }
 0x34d   : > { %19437 = vst [vmem:[#allocation21_spill] sm:$0xff] %v16782_v2  ;;  %19438 = vst [vmem:[#allocation32_spill] sm:$0xff] %v16785_v32  ;;  %v4914_v54 = vmax.f32 %v4878_v5, 0.0  ;;  %v4879_v8 = vadd.f32 %v16637_v19, %v4707_v23  ;;  %v19442_v35 = vld [vmem:[#allocation7_spill] sm:$0xff]  ;;  %v19451_v2 = vsel %vm19448_vm2, %v19449_v20, %v19450_v9  ;;  %v571_v5 = vshrl.u32 %v16709_v30, 4  ;;  %v19455_v23 = vld [vmem:[#allocation18_spill] sm:$0xff] }
 0x34e   : > { %v19443_v18 = vsel %vm19440_vm11, %v19441_v12, %v19442_v35  ;;  %vm16802_vm3 = vcmp.lt.s32.totalorder %v19451_v2, 16  ;;  %v4917_v45 = vmax.f32 %v4881_v15, 0.0  ;;  %v19456_v12 = vld [vmem:[#allocation16_spill] sm:$0xff]  ;;  %v19461_v9 = vmov 0 }
 0x34f   : > { %vm16793_vm1 = vcmp.lt.s32.totalorder %v19443_v18, 16  ;;  %v19453_v56 = vsel %vm16802_vm3, 4294967295, %v19452_v56  ;;  %v16810_v18 = vcombine.low %v5234_v34, %v19455_v23  ;;  %vm19457_vm11 = vnez %v19456_v12  ;;  %v19459_v35 = vld [vmem:[#allocation8_spill] sm:$0xff] }
 0x350   : > { %v19445_v28 = vsel %vm16793_vm1, 4294967295, %v19444_v28  ;;  %19454 = vst [vmem:[#allocation11_spill] sm:$0xff] %v19453_v56  ;;  %v19460_v32 = vsel %vm19457_vm11, %v19458_v38, %v19459_v35  ;;  %v19464_v20 = vsel %vm16510_vm5, %v16441_v31, %v16387_v3  ;;  %v19465_v30 = vmov 0  ;;  %v17009_v56 = vld [vmem:[%s19137_s1 + $0x250] sm:$0xff]  }
 0x351   : > { %19446 = vst [vmem:[#allocation15_spill] sm:$0xff] %v19445_v28  ;;  %vm16817_vm2 = vcmp.lt.s32.totalorder %v19460_v32, 16  ;;  %vm16826_vm12 = vcmp.lt.s32.totalorder %v19464_v20, 16  ;;  %vm19468_vm7 = vcmp.ne.s32.totalorder %v16544_v4, 0  ;;  %vm19469_vm14 = vcmp.lt.s32.totalorder %v16544_v4, 0 }
 0x352   : > { %v19462_v9 = vsel %vm16817_vm2, 4294967295, %v19461_v9  ;;  %v19466_v30 = vsel %vm16826_vm12, 4294967295, %v19465_v30  ;;  %vm16834_vm0 = vmand %vm19469_vm14, %vm19468_vm7  ;;  %v539_v15 = vmul.u32 18, %v538_v48  ;;  %v4915_v22 = vmax.f32 %v4879_v8, 0.0  ;;  %v19477_v48 = vld [vmem:[#allocation19_spill] sm:$0xff] }
 0x353   : > { %19463 = vst [vmem:[#allocation7_spill] sm:$0xff] %v19462_v9  ;;  %19467 = vst [vmem:[#allocation17_spill] sm:$0xff] %v19466_v30  ;;  %v16839_v2 = vmul.u32.u64.low 3817748708, %v16759_v7  ;;  %v16840_v32 = vmul.u32.u64.high 3817748708, %v16759_v7, %v16839_v2  ;;  %vm19472_vm5 = vcmp.ne.s32.totalorder %v16547_v36, 0  ;;  %vm19473_vm11 = vcmp.lt.s32.totalorder %v16547_v36, 0 }
 0x354   : > { %vm16846_vm2 = vmand %vm19473_vm11, %vm19472_vm5  ;;  %v16851_v31 = vadd.s32 18, %v16770_v43  ;;  %v16854_v23 = vadd.s32 264, %v16064_v55  ;;  %v5024_v38 = vsel %vm16692_vm8, %v4916_v1, 0.0  ;;  %v5025_v8 = vsel %vm16701_vm13, %v4917_v45, 0.0  ;;  %v13233_v45 = vpop.f32.mrb[8].mxu0 }
 0x355   : > { %vm19478_vm14 = vcmp.ne.s32.totalorder %v16550_v27, 0  ;;  %vm19479_vm7 = vcmp.lt.s32.totalorder %v16550_v27, 0  ;;  %v16870_v20 = vmul.u32.u64.low 3817748708, %v16764_v39  ;;  %v16871_v2 = vmul.u32.u64.high 3817748708, %v16764_v39, %v16870_v20  ;;  %v4720_v43 = vpop.f32.mrb[9].mxu0 }
 0x356   : > { %19476 = vst [vmem:[#allocation14_spill] sm:$0xff] %v16851_v31  ;;  %vm16865_vm5 = vmand %vm19479_vm7, %vm19478_vm14  ;;  %v5022_v12 = vsel %vm16716_vm9, %v4914_v54, 0.0  ;;  %v12125_v55 = vpack.c.bf16 %v5025_v8, %v5024_v38  ;;  %v5023_v1 = vsel %vm16725_vm4, %v4915_v22, 0.0  ;;  %v572_v29 = vmul.u32 18, %v571_v5  ;;  %v13234_v8 = vpop.f32.mrb[10].mxu0  ;;  %v16887_v20 = vld [vmem:[#allocation2 + $0xc] sm:$0xff]  }
 0x357   : > { %v12120_v40 = vpack.c.bf16 %v5023_v1, %v5022_v12  ;;  %v4884_v31 = vadd.f32 %v13233_v45, %v16637_v19  ;;  %v16883_v54 = vsub.s32 %v16632_v50, %v539_v15  ;;  %v5683_v38 = vshrl.u32 %v16810_v18, 16  ;;  %v4723_v15 = vpop.f32.mrb[11].mxu0  ;;  %v16902_v1 = vld [vmem:[#allocation2 + $0x14] sm:$0xff]  }
 0x358   : > { %12290 = vst [vmem:[#allocation2 + $0x28] sm:$0xff] %v12125_v55   ;;  %v4882_v22 = vadd.f32 %v16637_v19, %v4720_v43  ;;  %v777_v5 = vsel %vm16834_vm0, %v16629_v41, %v16544_v4  ;;  %v4885_v43 = vadd.f32 %v13234_v8, %v16637_v19  ;;  %v4883_v45 = vadd.f32 %v16637_v19, %v4723_v15  ;;  %v14570_v15 = vld [vmem:[%s19137_s1 + $0x248] sm:$0xff]  }
 0x359   : > { %12289 = vst [vmem:[#allocation2 + $0x20] sm:$0xff] %v12120_v40   ;;  %v4920_v50 = vmax.f32 %v4884_v31, 0.0  ;;  %v16905_v34 = vmul.u32.u64.low 3817748708, %v16773_v46  ;;  %v16906_v4 = vmul.u32.u64.high 3817748708, %v16773_v46, %v16905_v34  ;;  %v19482_v12 = vsel %vm16526_vm15, %v16486_v26, %v16390_v37  ;;  %v17223_v55 = vld [vmem:[%s19137_s1 + $0x268] sm:$0xff]  }
 0x35a   : > { %v4918_v41 = vmax.f32 %v4882_v22, 0.0  ;;  %vm16914_vm0 = vcmp.lt.s32.totalorder %v19482_v12, 16  ;;  %v19483_v40 = vmov 0  ;;  %v5400_v31 = vrot.slane %v16887_v20, 3 }
 0x35b   : > { %v19484_v40 = vsel %vm16914_vm0, 4294967295, %v19483_v40  ;;  %v19486_v8 = vsel %vm16557_vm10, %v16531_v0, %v16458_v6  ;;  %v19487_v22 = vmov 0  ;;  %v4921_v26 = vmax.f32 %v4885_v43, 0.0 }
 0x35c   : > { %19485 = vst [vmem:[#allocation9_spill] sm:$0xff] %v19484_v40  ;;  %vm16924_vm7 = vcmp.lt.s32.totalorder %v19486_v8, 16  ;;  %vm16936_vm15 = vcmp.lt.s32.totalorder %v19490_v60, 16  ;;  %v19216_v6 = vrot.slane %v16902_v1, 3  ;;  %vm16941_vm10 = vcmp.lt.s32.totalorder %v777_v5, 16  ;;  %v19579_v40 = vld [vmem:[#allocation31_spill] sm:$0xff] }
 0x35d   : > { %v19488_v22 = vsel %vm16924_vm7, 4294967295, %v19487_v22  ;;  %v19492_v17 = vsel %vm16936_vm15, 4294967295, %v19491_v17  ;;  %v19494_v0 = vmov 0  ;;  %vm19497_vm13 = vcmp.ne.s32.totalorder %v16576_v42, 0  ;;  %v16980_v8 = vld [vmem:[#allocation2 + $0x10] sm:$0xf] }
 0x35e   : > { %19489 = vst [vmem:[#allocation18_spill] sm:$0xff] %v19488_v22  ;;  %19493 = vst [vmem:[#allocation16_spill] sm:$0xff] %v19492_v17  ;;  %v19495_v0 = vsel %vm16941_vm10, 4294967295, %v19494_v0  ;;  %vm19498_vm14 = vcmp.lt.s32.totalorder %v16576_v42, 0  ;;  %v16956_v24 = vadd.s32 18, %v16883_v54  ;;  %v549_v14 = vshrl.u32 %v16840_v32, 4 }
 0x35f   : > { %19496 = vst [vmem:[#allocation12_spill] sm:$0xff] %v19495_v0  ;;  %vm16949_vm11 = vmand %vm19498_vm14, %vm19497_vm13  ;;  %v4919_v63 = vmax.f32 %v4883_v45, 0.0  ;;  %v19501_v5 = vrot.slane %v19477_v48, 3  ;;  %vm19502_vm9 = vcmask 1044480   ;;  %vm19503_vm13 = vcmp.ne.s32.totalorder %v16579_v25, 0  ;;  %v19559_v22 = vld [vmem:[#allocation20_spill] sm:$0xff] }
 0x360   : > { %vm19504_vm14 = vcmp.lt.s32.totalorder %v16579_v25, 0  ;;  %v16976_v32 = vmul.u32.u64.low 3817748708, %v16776_v51  ;;  %v16977_v45 = vmul.u32.u64.high 3817748708, %v16776_v51, %v16976_v32  ;;  %v5028_v60 = vsel %vm16793_vm1, %v4920_v50, 0.0  ;;  %v17000_v50 = vld [vmem:[#allocation2 + $0x14] sm:$0xf] }
 0x361   : > { %v5401_v43 = vsel %vm19502_vm9, %v19501_v5, %v5400_v31  ;;  %vm16969_vm6 = vmand %vm19504_vm14, %vm19503_vm13  ;;  %v5029_v5 = vsel %vm16802_vm3, %v4921_v26, 0.0  ;;  %v5403_v37 = vsel %vm19502_vm9, %v5400_v31, %v19216_v6  ;;  %vm19507_vm13 = vcmp.ne.s32.totalorder %v16604_v52, 0  ;;  %v13237_v6 = vpop.f32.mrb[12].mxu0  ;;  %v17023_v28 = vld [vmem:[#allocation2 + $0x1c] sm:$0xff]  }
 0x362   : > { %13275 = vmatprep.mubr.bf16.mxu1 %v5401_v43  ;;  %vm19508_vm14 = vcmp.lt.s32.totalorder %v16604_v52, 0  ;;  %v16998_v32 = vsub.s32 %v16663_v49, %v572_v29  ;;  %vm19511_vm4 = vnez %v19462_v9  ;;  %v12135_v43 = vpack.c.bf16 %v5029_v5, %v5028_v60  ;;  %v4736_v60 = vpop.f32.mrb[13].mxu0  ;;  %v19512_v5 = vld [vmem:[#allocation4_spill] sm:$0xff] }
 0x363   : > { %vm16993_vm8 = vmand %vm19508_vm14, %vm19507_vm13  ;;  %v5026_v26 = vsel %vm19511_vm4, %v4918_v41, 0.0  ;;  %v5027_v31 = vsel %vm16826_vm12, %v4919_v63, 0.0  ;;  %13276 = vmatmul.mubr.bf16.vlgmr.msra.gmra.mrb[0].mxu1 %v5403_v37  ;;  %v17013_v49 = vrot.slane %v5683_v38, 2  ;;  %v4888_v41 = vadd.f32 %v13237_v6, %v16637_v19  ;;  %v13238_v9 = vpop.f32.mrb[14].mxu0  ;;  %v19513_v38 = vld [vmem:[#allocation26_spill] sm:$0xff] }
 0x364   : > { %v12130_v29 = vpack.c.bf16 %v5027_v31, %v5026_v26  ;;  %13312 = vmatpush3.bf16.msra.mxu1 %v19512_v5  ;;  %v783_v37 = vsel %vm16949_vm11, %v16646_v58, %v16576_v42  ;;  %v604_v63 = vshrl.u32 %v16871_v2, 4  ;;  %12292 = vst [vmem:[#allocation2 + $0x38] sm:$0xff] %v12135_v43   ;;  %v4886_v30 = vadd.f32 %v16637_v19, %v4736_v60  ;;  %v19514_v26 = vld [vmem:[#allocation27_spill] sm:$0xff]  ;;  %v4739_v43 = vpop.f32.mrb[15].mxu0  ;;  %v17036_v31 = vld [vmem:[#allocation2 + $0x24] sm:$0xff]  }
 0x365   : > { %13313 = vmatprep.subr.bf16.mxu1 %v14570_v15  ;;  %v781_v6 = vsel %vm16969_vm6, %v19513_v38, %v16579_v25  ;;  %v4924_v58 = vmax.f32 %v4888_v41, 0.0  ;;  %v4889_v2 = vadd.f32 %v13238_v9, %v16637_v19  ;;  %vm19515_vm11 = vcmp.ne.s32.totalorder %v16657_v57, 0 }
 0x366   : > { %12291 = vst [vmem:[#allocation2 + $0x30] sm:$0xff] %v12130_v29   ;;  %vm19516_vm14 = vcmp.lt.s32.totalorder %v16657_v57, 0  ;;  %v17049_v34 = vadd.s32 18, %v16998_v32  ;;  %v550_v29 = vmul.u32 18, %v549_v14  ;;  %v4922_v9 = vmax.f32 %v4886_v30, 0.0 }
 0x367   : > { %vm17042_vm6 = vmand %vm19516_vm14, %vm19515_vm11  ;;  %v4887_v41 = vadd.f32 %v16637_v19, %v4739_v43  ;;  %v19519_v60 = vsel %vm16846_vm2, %v16640_v10, %v16547_v36  ;;  %v19520_v5 = vmov 0  ;;  %v5404_v38 = vrot.slane %v17023_v28, 3  ;;  %v17077_v36 = vld [vmem:[%s19137_s1 + $0x258] sm:$0xff]   ;;  %v17112_v43 = vld [vmem:[#allocation2 + $0x20] sm:$0xf] }
 0x368   : > { %vm17057_vm11 = vcmp.lt.s32.totalorder %v19519_v60, 16  ;;  %vm17062_vm14 = vcmp.lt.s32.totalorder %v783_v37, 16  ;;  %v19523_v42 = vmov 0  ;;  %vm19526_vm9 = vcmp.ne.s32.totalorder %v16660_v61, 0  ;;  %13314 = vmatpush3.bf16.msra.mxu1 %v14570_v15  ;;  %v17110_v15 = vld [vmem:[#allocation2 + $0x1c] sm:$0xf] }
 0x369   : > { %v19521_v5 = vsel %vm17057_vm11, 4294967295, %v19520_v5  ;;  %v19524_v42 = vsel %vm17062_vm14, 4294967295, %v19523_v42  ;;  %vm19527_vm13 = vcmp.lt.s32.totalorder %v16660_v61, 0  ;;  %v582_v10 = vshrl.u32 %v16906_v4, 4  ;;  %13315 = vmatprep.subr.bf16.mxu1 %v17009_v56  ;;  %19540 = vst [vmem:[#allocation33_spill] sm:$0xff] %v17110_v15  ;;  %19541 = vst [vmem:[#allocation34_spill] sm:$0xff] %v17112_v43 }
 0x36a   : > { %19522 = vst [vmem:[#allocation8_spill] sm:$0xff] %v19521_v5  ;;  %19525 = vst [vmem:[#allocation19_spill] sm:$0xff] %v19524_v42  ;;  %v4925_v3 = vmax.f32 %v4889_v2, 0.0  ;;  %v19530_v14 = vsel %vm16865_vm5, %v16643_v13, %v16550_v27  ;;  %v19531_v37 = vmov 0  ;;  %v19534_v60 = vmov 0 }
 0x36b   : > { %vm17070_vm12 = vmand %vm19527_vm13, %vm19526_vm9  ;;  %vm17085_vm2 = vcmp.lt.s32.totalorder %v19530_v14, 16  ;;  %vm17090_vm9 = vcmp.lt.s32.totalorder %v781_v6, 16  ;;  %v17095_v12 = vmul.u32.u64.low 3817748708, %v16854_v23  ;;  %v17096_v4 = vmul.u32.u64.high 3817748708, %v16854_v23, %v17095_v12  ;;  %v17098_v2 = vld [vmem:[#allocation2 + $0x18] sm:$0xf] }
 0x36c   : > { %v19532_v37 = vsel %vm17085_vm2, 4294967295, %v19531_v37  ;;  %v19535_v60 = vsel %vm17090_vm9, 4294967295, %v19534_v60  ;;  %19537 = vst [vmem:[#allocation27_spill] sm:$0xff] %v17098_v2  ;;  %v4923_v35 = vmax.f32 %v4887_v41, 0.0  ;;  %v19538_v27 = vrot.slane %v16902_v1, 3  ;;  %13316 = vmatpush3.bf16.msra.mxu1 %v17009_v56 }
 0x36d   : > { %19533 = vst [vmem:[#allocation4_spill] sm:$0xff] %v19532_v37  ;;  %19536 = vst [vmem:[#allocation26_spill] sm:$0xff] %v19535_v60  ;;  %vm19539_vm5 = vcmask 1044480   ;;  %v784_v6 = vsel %vm17042_vm6, %v16730_v59, %v16657_v57  ;;  %v17108_v14 = vmul.u32 18, %v604_v63  ;;  %v5032_v12 = vsel %vm16914_vm0, %v4924_v58, 0.0  ;;  %v17172_v56 = vld [vmem:[#allocation2 + $0x2c] sm:$0xff]   ;;  %13317 = vmatprep.subr.bf16.mxu1 %v17077_v36 }
 0x36e   : > { %v5405_v13 = vsel %vm19539_vm5, %v19538_v27, %v5404_v38  ;;  %v5033_v41 = vsel %vm16924_vm7, %v4925_v3, 0.0  ;;  %v19542_v27 = vrot.slane %v17036_v31, 3  ;;  %vm19543_vm13 = vmmov %vm19539_vm5  ;;  %v787_v57 = vsel %vm17070_vm12, %v16733_v47, %v16660_v61  ;;  %v17133_v63 = vld [vmem:[#allocation2 + $0x24] sm:$0xf] }
 0x36f   : > { %13279 = vmatprep.mubr.bf16.mxu1 %v5405_v13  ;;  %vm19544_vm6 = vcmp.ne.s32.totalorder %v16667_v21, 0  ;;  %vm19545_vm5 = vcmp.lt.s32.totalorder %v16667_v21, 0  ;;  %19548 = vst [vmem:[#allocation35_spill] sm:$0xff] %v17133_v63  ;;  %v5030_v58 = vsel %vm16936_vm15, %v4922_v9, 0.0  ;;  %v12145_v3 = vpack.c.bf16 %v5033_v41, %v5032_v12  ;;  %v13241_v13 = vpop.f32.mrb[16].mxu0  ;;  %v17150_v47 = vld [vmem:[%s19137_s1 + $0x260] sm:$0xff]  }
 0x370   : > { %v5407_v25 = vsel %vm19543_vm13, %v5404_v38, %v19542_v27  ;;  %vm17129_vm4 = vmand %vm19545_vm5, %vm19544_vm6  ;;  %v5031_v38 = vsel %vm16941_vm10, %v4923_v35, 0.0  ;;  %vm19549_vm12 = vcmp.ne.s32.totalorder %v16677_v33, 0  ;;  %vm19550_vm13 = vcmp.lt.s32.totalorder %v16677_v33, 0  ;;  %v4752_v12 = vpop.f32.mrb[17].mxu0  ;;  %13318 = vmatpush3.bf16.msra.mxu1 %v17077_v36  ;;  %v19584_v61 = vld [vmem:[#allocation21_spill] sm:$0xff] }
 0x371   : > { %13280 = vmatmul.mubr.bf16.gmra.mrb[4].mxu1 %v5407_v25  ;;  %vm17143_vm7 = vmand %vm19550_vm13, %vm19549_vm12  ;;  %v17152_v9 = vmul.u32 18, %v582_v10  ;;  %v12140_v30 = vpack.c.bf16 %v5031_v38, %v5030_v58  ;;  %v4892_v35 = vadd.f32 %v13241_v13, %v16637_v19  ;;  %vm19553_vm6 = vcmp.ne.s32.totalorder %v16680_v16, 0  ;;  %12294 = vst [vmem:[#allocation2 + $0x48] sm:$0xff] %v12145_v3   ;;  %v13242_v38 = vpop.f32.mrb[18].mxu0  ;;  %v19558_v13 = vld [vmem:[#allocation10_spill] sm:$0xff]  ;;  %13319 = vmatprep.subr.bf16.mxu1 %v17150_v47 }
 0x372   : > { %vm19554_vm5 = vcmp.lt.s32.totalorder %v16680_v16, 0  ;;  %v17165_v27 = vsub.s32 %v16759_v7, %v550_v29  ;;  %v19557_v10 = vshll.u32 %v16810_v18, 16  ;;  %v4890_v58 = vadd.f32 %v16637_v19, %v4752_v12  ;;  %v4755_v12 = vpop.f32.mrb[19].mxu0  ;;  %v17267_v41 = vld [vmem:[#allocation2 + $0x30] sm:$0xf] }
 0x373   : > { %vm17160_vm12 = vmand %vm19554_vm5, %vm19553_vm6  ;;  %v785_v0 = vsel %vm17129_vm4, %v19558_v13, %v16667_v21  ;;  %12293 = vst [vmem:[#allocation2 + $0x40] sm:$0xff] %v12140_v30   ;;  %v4928_v29 = vmax.f32 %v4892_v35, 0.0  ;;  %v4893_v3 = vadd.f32 %v13242_v38, %v16637_v19  ;;  %vm19560_vm4 = vcmp.ne.s32.totalorder %v16749_v53, 0  ;;  %v13245_v42 = vpop.f32.mrb[20].mxu0 }
 0x374   : > { %v17169_v25 = vrot.slane %v19557_v10, 3  ;;  %v17186_v10 = vld [vmem:[#allocation2 + $0x34] sm:$0xff]   ;;  %vm19561_vm5 = vcmp.lt.s32.totalorder %v16749_v53, 0  ;;  %v615_v59 = vshrl.u32 %v16977_v45, 4  ;;  %v19564_v30 = vshrl.u32 %v19477_v48, 16  ;;  %19589 = vst [vmem:[#allocation21_spill] sm:$0xff] %v17267_v41  ;;  %13320 = vmatpush3.bf16.msra.mxu1 %v17150_v47 }
 0x375   : > { %vm17192_vm13 = vmand %vm19561_vm5, %vm19560_vm4  ;;  %v4926_v38 = vmax.f32 %v4890_v58, 0.0  ;;  %v4891_v13 = vadd.f32 %v16637_v19, %v4755_v12  ;;  %v19565_v18 = vsel %vm16993_vm8, %v19514_v26, %v16604_v52  ;;  %v19566_v7 = vmov 0  ;;  %v19578_v12 = vld [vmem:[#allocation6_spill] sm:$0xff]  ;;  %13321 = vmatprep.subr.bf16.mxu1 %v17223_v55 }
 0x376   : > { %v17201_v35 = vrot.slane %v19564_v30, 3  ;;  %vm17209_vm4 = vcmp.lt.s32.totalorder %v19565_v18, 16  ;;  %v5408_v17 = vrot.slane %v17172_v56, 3  ;;  %vm17214_vm5 = vcmp.lt.s32.totalorder %v787_v57, 16 }
 0x377   : > { %v19567_v7 = vsel %vm17209_vm4, 4294967295, %v19566_v7  ;;  %v19569_v45 = vmov 0  ;;  %v4929_v26 = vmax.f32 %v4893_v3, 0.0  ;;  %vm17226_vm8 = vcmp.lt.s32.totalorder %v784_v6, 16  ;;  %v17248_v6 = vld [vmem:[#allocation2 + $0x2c] sm:$0xf] }
 0x378   : > { %19568 = vst [vmem:[#allocation10_spill] sm:$0xff] %v19567_v7  ;;  %v19570_v45 = vsel %vm17214_vm5, 4294967295, %v19569_v45  ;;  %v19572_v58 = vmov 0  ;;  %vm17231_vm15 = vcmp.lt.s32.totalorder %v785_v0, 16  ;;  %v19575_v18 = vmov 0  ;;  %19581 = vst [vmem:[#allocation31_spill] sm:$0xff] %v17248_v6  ;;  %13322 = vmatpush3.bf16.msra.mxu1 %v17223_v55 }
 0x379   : > { %19571 = vst [vmem:[#allocation20_spill] sm:$0xff] %v19570_v45  ;;  %v19573_v58 = vsel %vm17226_vm8, 4294967295, %v19572_v58  ;;  %v19576_v18 = vsel %vm17231_vm15, 4294967295, %v19575_v18  ;;  %v790_v30 = vsel %vm17143_vm7, %v19578_v12, %v16677_v33  ;;  %v788_v3 = vsel %vm17160_vm12, %v19579_v40, %v16680_v16  ;;  %v17246_v0 = vld [vmem:[#allocation2 + $0x28] sm:$0xf]  ;;  %v14589_v55 = vld [vmem:[%s19137_s1 + $0x278] sm:$0xff]  }
 0x37a   : > { %19574 = vst [vmem:[#allocation36_spill] sm:$0xff] %v19573_v58  ;;  %19577 = vst [vmem:[#allocation37_spill] sm:$0xff] %v19576_v18  ;;  %v4927_v52 = vmax.f32 %v4891_v13, 0.0  ;;  %v19582_v57 = vrot.slane %v17036_v31, 3  ;;  %vm19583_vm0 = vcmask 1044480   ;;  %v791_v16 = vsel %vm17192_vm13, %v19584_v61, %v16749_v53 }
 0x37b   : > { %19580 = vst [vmem:[#allocation6_spill] sm:$0xff] %v17246_v0  ;;  %vm19585_vm7 = vcmp.ne.s32.totalorder %v16752_v11, 0  ;;  %vm19586_vm12 = vcmp.lt.s32.totalorder %v16752_v11, 0  ;;  %v593_v36 = vshrl.u32 %v17096_v4, 4  ;;  %v5036_v13 = vsel %vm17057_vm11, %v4928_v29, 0.0 }
 0x37c   : > { %v5409_v33 = vsel %vm19583_vm0, %v19582_v57, %v5408_v17  ;;  %vm17261_vm6 = vmand %vm19586_vm12, %vm19585_vm7  ;;  %v5037_v53 = vsel %vm17062_vm14, %v4929_v26, 0.0  ;;  %v19590_v21 = vrot.slane %v17186_v10, 3  ;;  %v17278_v12 = vsub.s32 %v16764_v39, %v17108_v14  ;;  %v17280_v61 = vld [vmem:[#allocation2 + $0x34] sm:$0xf]  ;;  %v4768_v14 = vpop.f32.mrb[21].mxu0 }
 0x37d   : > { %13283 = vmatprep.mubr.bf16.mxu1 %v5409_v33  ;;  %19591 = vst [vmem:[#allocation38_spill] sm:$0xff] %v17280_v61  ;;  %v5034_v4 = vsel %vm17085_vm2, %v4926_v38, 0.0  ;;  %v12155_v44 = vpack.c.bf16 %v5037_v53, %v5036_v13  ;;  %v5035_v29 = vsel %vm17090_vm9, %v4927_v52, 0.0  ;;  %v616_v26 = vmul.u32 18, %v615_v59  ;;  %v13246_v52 = vpop.f32.mrb[22].mxu0  ;;  %v17301_v53 = vld [vmem:[#allocation2 + $0x3c] sm:$0xff]  }
 0x37e   : > { %v5411_v57 = vsel %vm19583_vm0, %v5408_v17, %v19590_v21  ;;  %v17289_v17 = vld [vmem:[%s19137_s1 + $0x270] sm:$0xff]   ;;  %v12150_v33 = vpack.c.bf16 %v5035_v29, %v5034_v4  ;;  %v4896_v39 = vadd.f32 %v13245_v42, %v16637_v19  ;;  %v19592_v21 = vld [vmem:[#allocation32_spill] sm:$0xff]  ;;  %v17297_v13 = vadd.s32 18, %v17165_v27  ;;  %v17313_v4 = vld [vmem:[#allocation2 + $0x44] sm:$0xff]  }
 0x37f   : > { %13284 = vmatmul.mubr.bf16.gmra.mrb[8].mxu1 %v5411_v57  ;;  %v789_v38 = vsel %vm17261_vm6, %v19592_v21, %v16752_v11  ;;  %12296 = vst [vmem:[#allocation2 + $0x58] sm:$0xff] %v12155_v44   ;;  %v4894_v59 = vadd.f32 %v16637_v19, %v4768_v14  ;;  %v17305_v42 = vsub.s32 %v16773_v46, %v17152_v9  ;;  %v4771_v57 = vpop.f32.mrb[23].mxu0  ;;  %v594_v29 = vmul.u32 18, %v593_v36  ;;  %v8538_v0 = vld [vmem:[#allocation2 + $0x18] sm:$0xe] }
 0x380   : > { %12295 = vst [vmem:[#allocation2 + $0x50] sm:$0xff] %v12150_v33   ;;  %v4932_v47 = vmax.f32 %v4896_v39, 0.0  ;;  %v4897_v44 = vadd.f32 %v13246_v52, %v16637_v19  ;;  %v4895_v9 = vadd.f32 %v16637_v19, %v4771_v57  ;;  %vm17317_vm6 = vcmp.lt.s32.totalorder %v790_v30, 16  ;;  %13323 = vmatprep.subr.bf16.mxu1 %v17289_v17 }
 0x381   : > { %v4930_v46 = vmax.f32 %v4894_v59, 0.0  ;;  %v19593_v14 = vmov 0  ;;  %v5412_v21 = vrot.slane %v17301_v53, 3  ;;  %vm17322_vm7 = vcmp.lt.s32.totalorder %v791_v16, 16  ;;  %13324 = vmatpush3.bf16.msra.mxu1 %v17289_v17 }
 0x382   : > { %v19594_v14 = vsel %vm17317_vm6, 4294967295, %v19593_v14  ;;  %v19596_v33 = vmov 0  ;;  %v17327_v39 = vsub.s32 %v16776_v51, %v616_v26  ;;  %v4933_v52 = vmax.f32 %v4897_v44, 0.0  ;;  %v17368_v44 = vld [vmem:[#allocation2 + $0x38] sm:$0xf]  ;;  %13325 = vmatprep.subr.bf16.mxu1 %v14589_v55 }
 0x383   : > { %19595 = vst [vmem:[#allocation32_spill] sm:$0xff] %v19594_v14  ;;  %v19597_v33 = vsel %vm17322_vm7, 4294967295, %v19596_v33  ;;  %vm17329_vm12 = vcmp.lt.s32.totalorder %v788_v3, 16  ;;  %v19599_v40 = vmov 0  ;;  %v19238_v36 = vrot.slane %v17313_v4, 3  ;;  %19615 = vst [vmem:[#allocation42_spill] sm:$0xff] %v17368_v44 }
 0x384   : > { %19598 = vst [vmem:[#allocation39_spill] sm:$0xff] %v19597_v33  ;;  %v19600_v40 = vsel %vm17329_vm12, 4294967295, %v19599_v40  ;;  %vm17334_vm0 = vcmp.lt.s32.totalorder %v789_v38, 16  ;;  %v19602_v30 = vmov 0  ;;  %vm19605_vm13 = vcmp.ne.s32.totalorder %v19559_v22, 0 }
 0x385   : > { %19601 = vst [vmem:[#allocation40_spill] sm:$0xff] %v19600_v40  ;;  %v19603_v30 = vsel %vm17334_vm0, 4294967295, %v19602_v30  ;;  %vm19606_vm10 = vcmp.lt.s32.totalorder %v19559_v22, 0  ;;  %v17348_v51 = vadd.s32 18, %v17278_v12  ;;  %v4931_v3 = vmax.f32 %v4895_v9, 0.0  ;;  %13326 = vmatpush3.bf16.msra.mxu1 %v14589_v55 }
 0x386   : > { %19604 = vst [vmem:[#allocation41_spill] sm:$0xff] %v19603_v30  ;;  %vm17342_vm9 = vmand %vm19606_vm10, %vm19605_vm13  ;;  %v19609_v26 = vrot.slane %v17186_v10, 3  ;;  %vm19610_vm2 = vcmask 1044480   ;;  %vm19611_vm11 = vcmp.ne.s32.totalorder %v16998_v32, 0  ;;  %vm19612_vm3 = vcmp.lt.s32.totalorder %v16998_v32, 0 }
 0x387   : > { %vm17358_vm10 = vmand %vm19612_vm3, %vm19611_vm11  ;;  %v5040_v57 = vsel %vm17209_vm4, %v4932_v47, 0.0  ;;  %v5041_v9 = vsel %vm17214_vm5, %v4933_v52, 0.0  ;;  %vm19617_vm11 = vcmp.ne.s32.totalorder %v16883_v54, 0  ;;  %v17386_v60 = vsub.s32 %v16854_v23, %v594_v29  ;;  %v17388_v47 = vld [vmem:[#allocation2 + $0x3c] sm:$0xf]  ;;  %v17428_v59 = vld [vmem:[#allocation2 + $0x54] sm:$0xff]  }
 0x388   : > { %v5413_v38 = vsel %vm19610_vm2, %v19609_v26, %v5412_v21  ;;  %vm19616_vm3 = vmmov %vm19610_vm2  ;;  %vm19618_vm2 = vcmp.lt.s32.totalorder %v16883_v54, 0  ;;  %19621 = vst [vmem:[#allocation43_spill] sm:$0xff] %v17388_v47  ;;  %v5038_v52 = vsel %vm17226_vm8, %v4930_v46, 0.0  ;;  %v19630_v11 = vmov 0  ;;  %v17608_v5 = vld [vmem:[#allocation2 + $0x58] sm:$0xf] }
 0x389   : > { %13287 = vmatprep.mubr.bf16.mxu1 %v5413_v38  ;;  %v5415_v26 = vsel %vm19616_vm3, %v5412_v21, %v19238_v36  ;;  %vm17381_vm14 = vmand %vm19618_vm2, %vm19617_vm11  ;;  %v12165_v38 = vpack.c.bf16 %v5041_v9, %v5040_v57  ;;  %v5039_v21 = vsel %vm17231_vm15, %v4931_v3, 0.0  ;;  %v13249_v36 = vpop.f32.mrb[24].mxu0  ;;  %vm19622_vm3 = vcmp.ne.s32.totalorder %v17165_v27, 0  ;;  %v19626_v57 = vld [vmem:[#allocation14_spill] sm:$0xff]  ;;  %19681 = vst [vmem:[#allocation57_spill] sm:$0xff] %v17608_v5 }
 0x38a   : > { %13288 = vmatmul.mubr.bf16.gmra.mrb[12].mxu1 %v5415_v26  ;;  %vm19623_vm11 = vcmp.lt.s32.totalorder %v17165_v27, 0  ;;  %v12160_v23 = vpack.c.bf16 %v5039_v21, %v5038_v52  ;;  %v4900_v29 = vadd.f32 %v13249_v36, %v16637_v19  ;;  %v4784_v46 = vpop.f32.mrb[25].mxu0  ;;  %v794_v3 = vsel %vm17342_vm9, %v19626_v57, %v19559_v22  ;;  %v17416_v26 = vld [vmem:[%s19137_s1 + $0x2c0] sm:$0xff]   ;;  %v17419_v21 = vld [vmem:[#allocation2 + $0x4c] sm:$0xff]  }
 0x38b   : > { %vm17398_vm2 = vmand %vm19623_vm11, %vm19622_vm3  ;;  %v795_v9 = vsel %vm17358_vm10, %v17049_v34, %v16998_v32  ;;  %12298 = vst [vmem:[#allocation2 + $0x68] sm:$0xff] %v12165_v38   ;;  %v4898_v36 = vadd.f32 %v16637_v19, %v4784_v46  ;;  %v13250_v52 = vpop.f32.mrb[26].mxu0  ;;  %v792_v22 = vsel %vm17381_vm14, %v16956_v24, %v16883_v54  ;;  %vm17433_vm3 = vcmp.lt.s32.totalorder %v794_v3, 16  ;;  %13363 = vmatprep.subr.bf16.mxu1 %v17416_v26 }
 0x38c   : > { %12297 = vst [vmem:[#allocation2 + $0x60] sm:$0xff] %v12160_v23   ;;  %v4936_v34 = vmax.f32 %v4900_v29, 0.0  ;;  %v4901_v17 = vadd.f32 %v13250_v52, %v16637_v19  ;;  %v4787_v16 = vpop.f32.mrb[27].mxu0  ;;  %v19627_v54 = vmov 0  ;;  %v5416_v24 = vrot.slane %v17419_v21, 3 }
 0x38d   : > { %v4934_v38 = vmax.f32 %v4898_v36, 0.0  ;;  %v4899_v46 = vadd.f32 %v16637_v19, %v4787_v16  ;;  %v19628_v54 = vsel %vm17433_vm3, 4294967295, %v19627_v54  ;;  %vm17438_vm14 = vcmp.lt.s32.totalorder %v795_v9, 16  ;;  %v13253_v33 = vpop.f32.mrb[28].mxu0 }
 0x38e   : > { %19629 = vst [vmem:[#allocation14_spill] sm:$0xff] %v19628_v54  ;;  %v19631_v11 = vsel %vm17438_vm14, 4294967295, %v19630_v11  ;;  %vm19633_vm11 = vcmp.ne.s32.totalorder %v17278_v12, 0  ;;  %vm19634_vm13 = vcmp.lt.s32.totalorder %v17278_v12, 0  ;;  %v4937_v29 = vmax.f32 %v4901_v17, 0.0  ;;  %v4800_v14 = vpop.f32.mrb[29].mxu0 }
 0x38f   : > { %19632 = vst [vmem:[#allocation44_spill] sm:$0xff] %v19631_v11  ;;  %vm17446_vm9 = vmand %vm19634_vm13, %vm19633_vm11  ;;  %vm17451_vm15 = vcmp.lt.s32.totalorder %v792_v22, 16  ;;  %v19637_v57 = vmov 0  ;;  %v5418_v3 = vrot.slane %v17428_v59, 3  ;;  %v793_v9 = vsel %vm17398_vm2, %v17297_v13, %v17165_v27  ;;  %v17483_v13 = vld [vmem:[#allocation2 + $0x40] sm:$0xf] }
 0x390   : > { %v19638_v57 = vsel %vm17451_vm15, 4294967295, %v19637_v57  ;;  %vm19640_vm8 = vcmp.ne.s32.totalorder %v17305_v42, 0  ;;  %vm19641_vm13 = vcmp.lt.s32.totalorder %v17305_v42, 0  ;;  %v763_v52 = vadd.s32 18, %v17327_v39  ;;  %19650 = vst [vmem:[#allocation46_spill] sm:$0xff] %v17483_v13 }
 0x391   : > { %19639 = vst [vmem:[#allocation45_spill] sm:$0xff] %v19638_v57  ;;  %vm17464_vm11 = vmand %vm19641_vm13, %vm19640_vm8  ;;  %v4935_v22 = vmax.f32 %v4899_v46, 0.0  ;;  %v19644_v17 = vrot.slane %v17313_v4, 3  ;;  %vm19645_vm10 = vcmask 1044480   ;;  %v760_v32 = vadd.s32 18, %v17305_v42 }
 0x392   : > { %vm19646_vm2 = vcmp.ne.s32.totalorder %v17327_v39, 0  ;;  %vm19647_vm5 = vcmp.lt.s32.totalorder %v17327_v39, 0  ;;  %v761_v45 = vadd.s32 18, %v17386_v60  ;;  %v5044_v55 = vsel %vm17317_vm6, %v4936_v34, 0.0  ;;  %vm19651_vm8 = vmmov %vm19645_vm10  ;;  %v17502_v34 = vld [vmem:[#allocation2 + $0x44] sm:$0xf] }
 0x393   : > { %v5417_v16 = vsel %vm19645_vm10, %v19644_v17, %v5416_v24  ;;  %vm17477_vm4 = vmand %vm19647_vm5, %vm19646_vm2  ;;  %v5045_v46 = vsel %vm17322_vm7, %v4937_v29, 0.0  ;;  %v5419_v17 = vsel %vm19651_vm8, %v5416_v24, %v5418_v3  ;;  %v798_v18 = vsel %vm17446_vm9, %v17348_v51, %v17278_v12  ;;  %19656 = vst [vmem:[#allocation47_spill] sm:$0xff] %v17502_v34 }
 0x394   : > { %13291 = vmatprep.mubr.bf16.mxu1 %v5417_v16  ;;  %vm19652_vm5 = vcmp.ne.s32.totalorder %v17386_v60, 0  ;;  %vm19653_vm10 = vcmp.lt.s32.totalorder %v17386_v60, 0  ;;  %v5042_v29 = vsel %vm17329_vm12, %v4934_v38, 0.0  ;;  %v12175_v16 = vpack.c.bf16 %v5045_v46, %v5044_v55  ;;  %v13254_v55 = vpop.f32.mrb[30].mxu0  ;;  %v17515_v46 = vld [vmem:[#allocation2 + $0x5c] sm:$0xff]  }
 0x395   : > { %vm17498_vm13 = vmand %vm19653_vm10, %vm19652_vm5  ;;  %v5043_v24 = vsel %vm17334_vm0, %v4935_v22, 0.0  ;;  %13292 = vmatmul.mubr.bf16.gmra.mrb[16].mxu1 %v5419_v17  ;;  %v19251_v12 = vshrl.u32 %v16887_v20, 16  ;;  %v4904_v23 = vadd.f32 %v13253_v33, %v16637_v19  ;;  %v799_v7 = vsel %vm17477_vm4, %v763_v52, %v17327_v39  ;;  %v4803_v17 = vpop.f32.mrb[31].mxu0 }
 0x396   : > { %v12170_v51 = vpack.c.bf16 %v5043_v24, %v5042_v29  ;;  %v19250_v37 = vshll.u32 %v16887_v20, 16  ;;  %12300 = vst [vmem:[#allocation2 + $0x78] sm:$0xff] %v12175_v16   ;;  %v4902_v38 = vadd.f32 %v16637_v19, %v4800_v14  ;;  %v796_v22 = vsel %vm17464_vm11, %v760_v32, %v17305_v42  ;;  %v17530_v29 = vld [vmem:[#allocation2 + $0x64] sm:$0xff]  }
 0x397   : > { %v797_v33 = vsel %vm17498_vm13, %v761_v45, %v17386_v60  ;;  %v4940_v39 = vmax.f32 %v4904_v23, 0.0  ;;  %v4905_v52 = vadd.f32 %v13254_v55, %v16637_v19  ;;  %vm17526_vm4 = vcmp.lt.s32.totalorder %v793_v9, 16  ;;  %v13257_v23 = vpop.f32.mrb[32].mxu0 }
 0x398   : > { %12299 = vst [vmem:[#allocation2 + $0x70] sm:$0xff] %v12170_v51   ;;  %v19657_v14 = vmov 0  ;;  %v19660_v42 = vshll.u32 %v19477_v48, 16  ;;  %v4938_v58 = vmax.f32 %v4902_v38, 0.0  ;;  %v4903_v60 = vadd.f32 %v16637_v19, %v4803_v17  ;;  %v17564_v38 = vld [vmem:[#allocation2 + $0x48] sm:$0xf] }
 0x399   : > { %v19658_v14 = vsel %vm17526_vm4, 4294967295, %v19657_v14  ;;  %vm17537_vm9 = vcmp.lt.s32.totalorder %v798_v18, 16  ;;  %v19661_v36 = vmov 0  ;;  %v5420_v45 = vrot.slane %v17515_v46, 3  ;;  %19673 = vst [vmem:[#allocation53_spill] sm:$0xff] %v17564_v38 }
 0x39a   : > { %19659 = vst [vmem:[#allocation48_spill] sm:$0xff] %v19658_v14  ;;  %v17534_v32 = vrot.slane %v19660_v42, 4  ;;  %v19662_v36 = vsel %vm17537_vm9, 4294967295, %v19661_v36  ;;  %vm17542_vm11 = vcmp.lt.s32.totalorder %v799_v7, 16  ;;  %v19664_v9 = vmov 0 }
 0x39b   : > { %19663 = vst [vmem:[#allocation49_spill] sm:$0xff] %v19662_v36  ;;  %v19665_v9 = vsel %vm17542_vm11, 4294967295, %v19664_v9  ;;  %v17548_v16 = vrot.slane %v19251_v12, 2  ;;  %v4941_v48 = vmax.f32 %v4905_v52, 0.0  ;;  %vm17550_vm2 = vcmp.lt.s32.totalorder %v796_v22, 16 }
 0x39c   : > { %19666 = vst [vmem:[#allocation50_spill] sm:$0xff] %v19665_v9  ;;  %v19667_v24 = vmov 0  ;;  %v5422_v18 = vrot.slane %v17530_v29, 3  ;;  %vm17555_vm8 = vcmp.lt.s32.totalorder %v797_v33, 16  ;;  %v19670_v51 = vmov 0 }
 0x39d   : > { %v19668_v24 = vsel %vm17550_vm2, 4294967295, %v19667_v24  ;;  %v19671_v51 = vsel %vm17555_vm8, 4294967295, %v19670_v51  ;;  %v17561_v7 = vrot.slane %v19250_v37, 3  ;;  %v4939_v55 = vmax.f32 %v4903_v60, 0.0  ;;  %v17568_v17 = vld [vmem:[#allocation2 + $0x4c] sm:$0xf] }
 0x39e   : > { %19669 = vst [vmem:[#allocation51_spill] sm:$0xff] %v19668_v24  ;;  %19672 = vst [vmem:[#allocation52_spill] sm:$0xff] %v19671_v51  ;;  %vm19674_vm5 = vcmask 1044480   ;;  %v17570_v42 = vld [vmem:[#allocation2 + $0x50] sm:$0xf]  ;;  %v5048_v33 = vsel %vm17433_vm3, %v4940_v39, 0.0  ;;  %v4908_v11 = vadd.f32 %v13257_v23, %v16637_v19 }
 0x39f   : > { %v5421_v22 = vsel %vm19674_vm5, %v5418_v3, %v5420_v45  ;;  %19675 = vst [vmem:[#allocation54_spill] sm:$0xff] %v17568_v17  ;;  %19676 = vst [vmem:[#allocation55_spill] sm:$0xff] %v17570_v42  ;;  %v5049_v27 = vsel %vm17438_vm14, %v4941_v48, 0.0  ;;  %v17577_v12 = vld [vmem:[#allocation2 + $0x54] sm:$0xf]  ;;  %v5046_v3 = vsel %vm17451_vm15, %v4938_v58, 0.0 }
 0x3a0   : > { %13295 = vmatprep.mubr.bf16.mxu1 %v5421_v22  ;;  %vm19677_vm10 = vmmov %vm19674_vm5  ;;  %19678 = vst [vmem:[#allocation56_spill] sm:$0xff] %v17577_v12  ;;  %v12185_v60 = vpack.c.bf16 %v5049_v27, %v5048_v33  ;;  %v5047_v52 = vsel %vm17526_vm4, %v4939_v55, 0.0  ;;  %v19260_v54 = vshrl.u32 %v17023_v28, 16  ;;  %v4816_v48 = vpop.f32.mrb[33].mxu0  ;;  %v17587_v57 = vld [vmem:[#allocation2 + $0x6c] sm:$0xff]   ;;  %v4944_v58 = vmax.f32 %v4908_v11, 0.0 }
 0x3a1   : > { %v5423_v37 = vsel %vm19677_vm10, %v5420_v45, %v5422_v18  ;;  %v12180_v39 = vpack.c.bf16 %v5047_v52, %v5046_v3  ;;  %v4906_v45 = vadd.f32 %v16637_v19, %v4816_v48  ;;  %v13258_v30 = vpop.f32.mrb[34].mxu0  ;;  %v14726_v23 = vld [vmem:[%s19138_s2] ss:$0 sm:$0xff]  ;;  %v17596_v33 = vld [vmem:[#allocation2 + $0x74] sm:$0xff]   ;;  %v19679_v19 = vshrl.u32 %v16902_v1, 16  ;;  %vm19682_vm13 = vmmov %vm19674_vm5 }
 0x3a2   : > { %13296 = vmatmul.mubr.bf16.gmra.mrb[20].mxu1 %v5423_v37  ;;  %12302 = vst [vmem:[#allocation2 + $0x88] sm:$0xff] %v12185_v60   ;;  %v4909_v55 = vadd.f32 %v14726_v23, %v13258_v30  ;;  %v4819_v52 = vpop.f32.mrb[35].mxu0  ;;  %v19680_v60 = vshll.u32 %v16902_v1, 16  ;;  %v5424_v37 = vrot.slane %v17587_v57, 3  ;;  %v5711_v11 = vrot.slane %v19260_v54, 2  ;;  %vm19692_vm10 = vmmov %vm19674_vm5 }
 0x3a3   : > { %12301 = vst [vmem:[#allocation2 + $0x80] sm:$0xff] %v12180_v39   ;;  %v5702_v3 = vrot.slane %v19679_v19, 2  ;;  %v4942_v27 = vmax.f32 %v4906_v45, 0.0  ;;  %v4907_v22 = vadd.f32 %v14726_v23, %v4819_v52  ;;  %v5426_v14 = vrot.slane %v17596_v33, 3  ;;  %v17613_v52 = vld [vmem:[#allocation2 + $0x5c] sm:$0xf] }
 0x3a4   : > { %v5705_v48 = vrot.slane %v19680_v60, 3  ;;  %v4945_v39 = vmax.f32 %v4909_v55, 0.0  ;;  %v5425_v62 = vsel %vm19682_vm13, %v5422_v18, %v5424_v37  ;;  %v19683_v45 = vshll.u32 %v17023_v28, 16  ;;  %19684 = vst [vmem:[#allocation58_spill] sm:$0xff] %v17613_v52  ;;  %v17615_v60 = vld [vmem:[#allocation2 + $0x60] sm:$0xf]  ;;  %vm19693_vm13 = vmmov %vm19674_vm5 }
 0x3a5   : > { %v4943_v19 = vmax.f32 %v4907_v22, 0.0  ;;  %19685 = vst [vmem:[#allocation59_spill] sm:$0xff] %v17615_v60  ;;  %v5052_v55 = vsel %vm17537_vm9, %v4944_v58, 0.0  ;;  %13299 = vmatprep.mubr.bf16.mxu1 %v5425_v62  ;;  %v5427_v40 = vsel %vm19674_vm5, %v5424_v37, %v5426_v14  ;;  %v17622_v30 = vld [vmem:[#allocation2 + $0x64] sm:$0xf]  ;;  %v5050_v18 = vsel %vm17550_vm2, %v4942_v27, 0.0 }
 0x3a6   : > { %v5714_v23 = vrot.slane %v19683_v45, 3  ;;  %v5053_v54 = vsel %vm17542_vm11, %v4945_v39, 0.0  ;;  %19686 = vst [vmem:[#allocation60_spill] sm:$0xff] %v17622_v30  ;;  %v5689_v58 = vor.u32 %v17169_v25, %v17013_v49  ;;  %v19263_v9 = vshrl.u32 %v17172_v56, 16 }
 0x3a7   : > { %v12195_v22 = vpack.c.bf16 %v5053_v54, %v5052_v55  ;;  %v5051_v45 = vsel %vm17555_vm8, %v4943_v19, 0.0  ;;  %v6123_v39 = vor.u32 %v17534_v32, %v17201_v35  ;;  %v19687_v54 = vshrl.u32 %v16887_v20, 16 }
 0x3a8   : > { %v12190_v12 = vpack.c.bf16 %v5051_v45, %v5050_v18  ;;  %v5697_v25 = vor.u32 %v17561_v7, %v17548_v16  ;;  %v5706_v55 = vor.u32 %v5705_v48, %v5702_v3  ;;  %v17646_v18 = vor.u32 %v5714_v23, %v5711_v11 }
 0x3a9   : > { %12304 = vst [vmem:[#allocation2 + $0x98] sm:$0xff] %v12195_v22   ;;  %v6124_v27 = vrot.slane %v19687_v54, 3  ;;  %v19688_v35 = vshrl.u32 %v17036_v31, 16  ;;  %v19689_v45 = vshll.u32 %v17036_v31, 16  ;;  %v5729_v16 = vrot.slane %v19263_v9, 2 }
 0x3aa   : > { %13300 = vmatmul.mubr.bf16.gmra.mrb[24].mxu1 %v5427_v40  ;;  %v17632_v37 = vld [vmem:[#allocation2 + $0x7c] sm:$0xff]   ;;  %12303 = vst [vmem:[#allocation2 + $0x90] sm:$0xff] %v12190_v12   ;;  %v17642_v49 = vld [vmem:[#allocation2 + $0x84] sm:$0xff]   ;;  %v19690_v12 = vshll.u32 %v16887_v20, 16  ;;  %v19691_v7 = vshll.u32 %v17172_v56, 16  ;;  %v19695_v23 = vshrl.u32 %v16902_v1, 16 }
 0x3ab   : > { %v5720_v32 = vrot.slane %v19688_v35, 2  ;;  %v5428_v22 = vrot.slane %v17632_v37, 3  ;;  %v5723_v54 = vrot.slane %v19689_v45, 3  ;;  %v5430_v62 = vrot.slane %v17642_v49, 3 }
 0x3ac   : > { %v6125_v19 = vrot.slane %v19690_v12, 4  ;;  %v5732_v3 = vrot.slane %v19691_v7, 3  ;;  %vm19694_vm5 = vsmask.f32 5376  ;;  %v6128_v35 = vrot.slane %v19695_v23, 3 }
 0x3ad   : > { %v5429_v11 = vsel %vm19692_vm10, %v5426_v14, %v5428_v22  ;;  %v5431_v20 = vsel %vm19693_vm13, %v5428_v22, %v5430_v62  ;;  %v5698_v7 = vsel %vm19694_vm5, %v5689_v58, %v5697_v25  ;;  %v19696_v12 = vshll.u32 %v16902_v1, 16  ;;  %vm19697_vm10 = vmmov %vm19694_vm5 }
 0x3ae   : > { %13303 = vmatprep.mubr.bf16.mxu1 %v5429_v11  ;;  %v6126_v48 = vor.u32 %v6125_v19, %v6124_v27  ;;  %vm19698_vm13 = vmmov %vm19694_vm5  ;;  %vm19699_vm5 = vsmask.f32 4352  ;;  %v19700_v1 = vshrl.u32 %v17023_v28, 16  ;;  %v19701_v45 = vshll.u32 %v17023_v28, 16 }
 0x3af   : > { %v6129_v40 = vrot.slane %v19696_v12, 4  ;;  %v17684_v58 = vsel %vm19698_vm13, %v5706_v55, %v17646_v18  ;;  %v19702_v27 = vshrl.u32 %v17036_v31, 16  ;;  %vm19705_vm13 = vmmov %vm19699_vm5  ;;  %vm19743_vm8 = vsmask.f32 5376 }
 0x3b0   : > { %v17688_v19 = vsel %vm19699_vm5, %v6123_v39, %v6126_v48  ;;  %v6132_v12 = vrot.slane %v19700_v1, 3  ;;  %v19703_v39 = vshll.u32 %v17036_v31, 16  ;;  %v19771_v34 = vshrl.u32 %v17632_v37, 16 }
 0x3b1   : > { %v17679_v51 = vld [vmem:[#allocation2 + $0x8c] sm:$0xff]   ;;  %v17690_v23 = vld [vmem:[#allocation2 + $0x94] ss:$0 sps:$4 sm:$0x77]   ;;  %v6130_v11 = vor.u32 %v6129_v40, %v6128_v35  ;;  %v6136_v9 = vrot.slane %v19702_v27, 3  ;;  %v17716_v35 = vor.u32 %v5723_v54, %v5720_v32  ;;  %v19772_v13 = vshll.u32 %v17632_v37, 16 }
 0x3b2   : > { %13304 = vmatmul.mubr.bf16.gmra.mrb[28].mxu1 %v5431_v20  ;;  %v5707_v20 = vsel %vm19697_vm10, %v5697_v25, %v5706_v55  ;;  %v6133_v25 = vrot.slane %v19701_v45, 4  ;;  %v5432_v14 = vrot.slane %v17679_v51, 3  ;;  %v6137_v24 = vrot.slane %v19703_v39, 4 }
 0x3b3   : > { %v5434_v36 = vrot.slane %v17690_v23, 3  ;;  %vm19704_vm10 = vcmask 1044480   ;;  %v17711_v22 = vsel %vm19705_vm13, %v6126_v48, %v6130_v11  ;;  %v19708_v55 = vshll.u32 %v17172_v56, 16 }
 0x3b4   : > { %v5433_v28 = vsel %vm19704_vm10, %v5430_v62, %v5432_v14  ;;  %vm19706_vm5 = vmmov %vm19704_vm10  ;;  %v6134_v40 = vor.u32 %v6133_v25, %v6132_v12  ;;  %v6138_v1 = vor.u32 %v6137_v24, %v6136_v9  ;;  %v19707_v62 = vshrl.u32 %v17172_v56, 16 }
 0x3b5   : > { %13307 = vmatprep.mubr.bf16.mxu1 %v5433_v28  ;;  %v5435_v31 = vsel %vm19706_vm5, %v5432_v14, %v5434_v36  ;;  %v6141_v30 = vrot.slane %v19708_v55, 4  ;;  %vm19709_vm10 = vmmov %vm19705_vm13  ;;  %v19710_v14 = vshrl.u32 %v17186_v10, 16  ;;  %v19711_v12 = vshll.u32 %v17186_v10, 16 }
 0x3b6   : > { %v6140_v45 = vrot.slane %v19707_v62, 3  ;;  %v17724_v36 = vsel %vm19709_vm10, %v6130_v11, %v6134_v40  ;;  %vm19712_vm13 = vmmov %vm19709_vm10  ;;  %v19713_v56 = vshrl.u32 %v17301_v53, 16  ;;  %v17736_v25 = vor.u32 %v5732_v3, %v5729_v16 }
 0x3b7   : > { %v6144_v28 = vrot.slane %v19710_v14, 3  ;;  %v6145_v32 = vrot.slane %v19711_v12, 4  ;;  %v17732_v24 = vsel %vm19712_vm13, %v6134_v40, %v6138_v1  ;;  %v19714_v11 = vshll.u32 %v17301_v53, 16  ;;  %v14593_v12 = vld [vmem:[%s19137_s1 + $0x2c8] sm:$0xff]   ;;  %vm19716_vm5 = vmmov %vm19709_vm10 }
 0x3b8   : > { %v6142_v54 = vor.u32 %v6141_v30, %v6140_v45  ;;  %v19715_v62 = vshrl.u32 %v17313_v4, 16  ;;  %v19717_v30 = vshll.u32 %v17313_v4, 16  ;;  %v19718_v16 = vshrl.u32 %v17419_v21, 16  ;;  %vm19720_vm10 = vmmov %vm19716_vm5 }
 0x3b9   : > { %v6146_v55 = vor.u32 %v6145_v32, %v6144_v28  ;;  %v19719_v28 = vshll.u32 %v17419_v21, 16  ;;  %v19722_v48 = vshll.u32 %v17428_v59, 16  ;;  %vm19725_vm13 = vmmov %vm19716_vm5  ;;  %v19774_v44 = vshrl.u32 %v17642_v49, 16 }
 0x3ba   : > { %13308 = vmatmul.mubr.bf16.gmra.mrb[32].mxu1 %v5435_v31  ;;  %v6149_v31 = vrot.slane %v19714_v11, 4  ;;  %v6152_v14 = vrot.slane %v19715_v62, 3  ;;  %v17746_v40 = vsel %vm19716_vm5, %v6138_v1, %v6142_v54  ;;  %v6153_v45 = vrot.slane %v19717_v30, 4 }
 0x3bb   : > { %13327 = vmatprep.mubr.bf16.mxu1 %v5698_v7  ;;  %v6148_v7 = vrot.slane %v19713_v56, 3  ;;  %v6156_v3 = vrot.slane %v19718_v16, 3  ;;  %v6157_v32 = vrot.slane %v19719_v28, 4  ;;  %v17755_v56 = vsel %vm19720_vm10, %v6142_v54, %v6146_v55  ;;  %vm19728_vm10 = vmmov %vm19716_vm5 }
 0x3bc   : > { %v19721_v62 = vshrl.u32 %v17428_v59, 16  ;;  %v6161_v1 = vrot.slane %v19722_v48, 4  ;;  %v6154_v39 = vor.u32 %v6153_v45, %v6152_v14  ;;  %v19723_v30 = vshrl.u32 %v17515_v46, 16 }
 0x3bd   : > { %v6150_v11 = vor.u32 %v6149_v31, %v6148_v7  ;;  %v6158_v27 = vor.u32 %v6157_v32, %v6156_v3  ;;  %v19724_v16 = vshll.u32 %v17515_v46, 16  ;;  %v19726_v7 = vshrl.u32 %v17530_v29, 16 }
 0x3be   : > { %v6160_v9 = vrot.slane %v19721_v62, 3  ;;  %v6164_v60 = vrot.slane %v19723_v30, 3  ;;  %v19727_v62 = vshll.u32 %v17530_v29, 16  ;;  %v19729_v3 = vshrl.u32 %v17587_v57, 16 }
 0x3bf   : > { %v6165_v52 = vrot.slane %v19724_v16, 4  ;;  %v17766_v28 = vsel %vm19725_vm13, %v6146_v55, %v6150_v11  ;;  %v6168_v31 = vrot.slane %v19726_v7, 3  ;;  %v17773_v48 = vsel %vm19716_vm5, %v6150_v11, %v6154_v39  ;;  %vm19730_vm13 = vmmov %vm19716_vm5 }
 0x3c0   : > { %v6162_v54 = vor.u32 %v6161_v1, %v6160_v9  ;;  %v6169_v5 = vrot.slane %v19727_v62, 4  ;;  %v17776_v14 = vsel %vm19728_vm10, %v6154_v39, %v6158_v27  ;;  %v6172_v32 = vrot.slane %v19729_v3, 3  ;;  %vm19736_vm10 = vmmov %vm19716_vm5 }
 0x3c1   : > { %v6166_v45 = vor.u32 %v6165_v52, %v6164_v60  ;;  %v19732_v11 = vshrl.u32 %v17596_v33, 16  ;;  %v14594_v52 = vld [vmem:[%s19137_s1 + $0x2d0] sm:$0xff]   ;;  %v19735_v39 = vshll.u32 %v17632_v37, 16  ;;  %v19737_v62 = vshrl.u32 %v17642_v49, 16 }
 0x3c2   : > { %13328 = vmatmul.mubr.bf16.vlgmr.msra.gmra.mrb[0].mxu1 %v5707_v20  ;;  %v17783_v9 = vsel %vm19730_vm13, %v6158_v27, %v6162_v54  ;;  %v6170_v55 = vor.u32 %v6169_v5, %v6168_v31  ;;  %v19731_v20 = vshll.u32 %v17587_v57, 16  ;;  %v19734_v27 = vshrl.u32 %v17632_v37, 16  ;;  %vm19741_vm13 = vmmov %vm19716_vm5 }
 0x3c3   : > { %13331 = vmatprep.mubr.bf16.mxu1 %v17684_v58  ;;  %13364 = vmatpush3.bf16.msra.mxu1 %v17416_v26  ;;  %v6176_v30 = vrot.slane %v19732_v11, 3  ;;  %v17793_v60 = vsel %vm19716_vm5, %v6162_v54, %v6166_v45  ;;  %v19733_v26 = vshll.u32 %v17596_v33, 16  ;;  %v6181_v16 = vrot.slane %v19735_v39, 4 }
 0x3c4   : > { %v6173_v1 = vrot.slane %v19731_v20, 4  ;;  %13365 = vmatprep.subr.bf16.mxu1 %v14593_v12  ;;  %v6180_v5 = vrot.slane %v19734_v27, 3  ;;  %v17802_v7 = vsel %vm19736_vm10, %v6166_v45, %v6170_v55  ;;  %v6184_v3 = vrot.slane %v19737_v62, 3  ;;  %vm19742_vm10 = vmmov %vm19716_vm5 }
 0x3c5   : > { %v6177_v58 = vrot.slane %v19733_v26, 4  ;;  %v19738_v20 = vshll.u32 %v17642_v49, 16  ;;  %v19739_v26 = vshrl.u32 %v17679_v51, 16  ;;  %v19740_v27 = vshll.u32 %v17679_v51, 16 }
 0x3c6   : > { %v6174_v31 = vor.u32 %v6173_v1, %v6172_v32  ;;  %v6182_v42 = vor.u32 %v6181_v16, %v6180_v5  ;;  %v14595_v32 = vld [vmem:[%s19137_s1 + $0x2d8] sm:$0xff]   ;;  %v19745_v16 = vshll.u32 %v17186_v10, 16  ;;  %v19778_v37 = vshll.u32 %v17679_v51, 16 }
 0x3c7   : > { %v6185_v54 = vrot.slane %v19738_v20, 4  ;;  %v6178_v11 = vor.u32 %v6177_v58, %v6176_v30  ;;  %v6188_v17 = vrot.slane %v19739_v26, 3  ;;  %v6189_v38 = vrot.slane %v19740_v27, 4  ;;  %13366 = vmatpush3.bf16.msra.mxu1 %v14593_v12 }
 0x3c8   : > { %v17813_v39 = vsel %vm19741_vm13, %v6170_v55, %v6174_v31  ;;  %13367 = vmatprep.subr.bf16.mxu1 %v14594_v52  ;;  %v5725_v12 = vsel %vm19743_vm8, %v17646_v18, %v17716_v35  ;;  %v19744_v55 = vshrl.u32 %v17186_v10, 16  ;;  %v5741_v62 = vrot.slane %v19745_v16, 3  ;;  %vm19746_vm13 = vmmov %vm19716_vm5  ;;  %v14596_v10 = vld [vmem:[%s19137_s1 + $0x2e0] sm:$0xff]  }
 0x3c9   : > { %v6186_v45 = vor.u32 %v6185_v54, %v6184_v3  ;;  %v17819_v1 = vsel %vm19716_vm5, %v6174_v31, %v6178_v11  ;;  %v17822_v30 = vsel %vm19742_vm10, %v6178_v11, %v6182_v42  ;;  %v17824_v58 = vor.u32 %v6189_v38, %v6188_v17  ;;  %vm19747_vm5 = vmmov %vm19743_vm8 }
 0x3ca   : > { %v5738_v5 = vrot.slane %v19744_v55, 2  ;;  %13332 = vmatmul.mubr.bf16.gmra.mrb[4].mxu1 %v5725_v12  ;;  %v5734_v31 = vsel %vm19747_vm5, %v17716_v35, %v17736_v25  ;;  %v19748_v38 = vshrl.u32 %v17301_v53, 16  ;;  %v19749_v20 = vshll.u32 %v17301_v53, 16  ;;  %vm19750_vm8 = vmmov %vm19742_vm10  ;;  %v14597_v53 = vld [vmem:[%s19137_s1 + $0x2e8] sm:$0xff]  }
 0x3cb   : > { %v17834_v3 = vsel %vm19746_vm13, %v6182_v42, %v6186_v45  ;;  %v17845_v54 = vsel %vm19750_vm8, %v6186_v45, %v17824_v58  ;;  %13335 = vmatprep.mubr.bf16.mxu1 %v5734_v31  ;;  %13368 = vmatpush3.bf16.msra.mxu1 %v14594_v52  ;;  %vm19751_vm10 = vmmov %vm19747_vm5  ;;  %v19752_v26 = vshrl.u32 %v17313_v4, 16  ;;  %v19753_v52 = vshll.u32 %v17313_v4, 16  ;;  %v14599_v4 = vld [vmem:[%s19137_s1 + $0x2f8] sm:$0xff]  }
 0x3cc   : > { %v5747_v17 = vrot.slane %v19748_v38, 2  ;;  %v5750_v18 = vrot.slane %v19749_v20, 3  ;;  %13369 = vmatprep.subr.bf16.mxu1 %v14595_v32  ;;  %v5742_v42 = vor.u32 %v5741_v62, %v5738_v5  ;;  %vm19754_vm13 = vmmov %vm19747_vm5  ;;  %v19755_v55 = vshrl.u32 %v17419_v21, 16 }
 0x3cd   : > { %v5756_v27 = vrot.slane %v19752_v26, 2  ;;  %v5759_v45 = vrot.slane %v19753_v52, 3  ;;  %v19756_v5 = vshll.u32 %v17419_v21, 16  ;;  %v19757_v21 = vshrl.u32 %v17428_v59, 16  ;;  %vm19759_vm8 = vmmov %vm19747_vm5  ;;  %v17886_v52 = vld [vmem:[#allocation2 + $0x68] sm:$0xf] }
 0x3ce   : > { %v5751_v11 = vor.u32 %v5750_v18, %v5747_v17  ;;  %v5743_v35 = vsel %vm19751_vm10, %v17736_v25, %v5742_v42  ;;  %v14598_v25 = vld [vmem:[%s19137_s1 + $0x2f0] sm:$0xff]   ;;  %v19758_v20 = vshll.u32 %v17428_v59, 16  ;;  %vm19762_vm10 = vmmov %vm19747_vm5 }
 0x3cf   : > { %13370 = vmatpush3.bf16.msra.mxu1 %v14595_v32  ;;  %v5765_v32 = vrot.slane %v19755_v55, 2  ;;  %v5768_v16 = vrot.slane %v19756_v5, 3  ;;  %v5760_v62 = vor.u32 %v5759_v45, %v5756_v27  ;;  %v5774_v17 = vrot.slane %v19757_v21, 2  ;;  %v17893_v5 = vld [vmem:[#allocation2 + $0x6c] sm:$0xf] }
 0x3d0   : > { %13371 = vmatprep.subr.bf16.mxu1 %v14596_v10  ;;  %v5752_v12 = vsel %vm19754_vm13, %v5742_v42, %v5751_v11  ;;  %v5777_v18 = vrot.slane %v19758_v20, 3  ;;  %v19760_v42 = vshrl.u32 %v17515_v46, 16  ;;  %v19764_v55 = vshll.u32 %v17530_v29, 16  ;;  %vm19765_vm13 = vmmov %vm19747_vm5  ;;  %v17908_v20 = vld [vmem:[#allocation2 + $0x80] sm:$0xf] }
 0x3d1   : > { %v5769_v31 = vor.u32 %v5768_v16, %v5765_v32  ;;  %v5761_v38 = vsel %vm19747_vm5, %v5751_v11, %v5760_v62  ;;  %v17883_v11 = vld [vmem:[%s19137_s1 + $0x300] sm:$0xff]   ;;  %v17895_v16 = vld [vmem:[#allocation2 + $0x70] sm:$0xf] }
 0x3d2   : > { %13336 = vmatmul.mubr.bf16.gmra.mrb[8].mxu1 %v5743_v35  ;;  %v5783_v35 = vrot.slane %v19760_v42, 2  ;;  %v5778_v27 = vor.u32 %v5777_v18, %v5774_v17  ;;  %v5795_v32 = vrot.slane %v19764_v55, 3  ;;  %v17904_v17 = vld [vmem:[#allocation2 + $0x78] sm:$0xf]  ;;  %v17910_v18 = vld [vmem:[#allocation2 + $0x84] sm:$0xf] }
 0x3d3   : > { %13339 = vmatprep.mubr.bf16.mxu1 %v5752_v12  ;;  %13372 = vmatpush3.bf16.msra.mxu1 %v14596_v10  ;;  %v5770_v10 = vsel %vm19759_vm8, %v5760_v62, %v5769_v31  ;;  %v19766_v62 = vshrl.u32 %v17587_v57, 16  ;;  %v17914_v42 = vld [vmem:[#allocation2 + $0x8c] sm:$0xf]  ;;  %vm19770_vm8 = vmmov %vm19747_vm5 }
 0x3d4   : > { %13373 = vmatprep.subr.bf16.mxu1 %v14597_v53  ;;  %v5779_v45 = vsel %vm19762_vm10, %v5769_v31, %v5778_v27  ;;  %v17902_v31 = vld [vmem:[#allocation2 + $0x74] sm:$0xf]  ;;  %vm19773_vm10 = vmmov %vm19747_vm5 }
 0x3d7   : > { %13374 = vmatpush3.bf16.msra.mxu1 %v14597_v53  ;;  %v19761_v53 = vshll.u32 %v17515_v46, 16  ;;  %v19763_v46 = vshrl.u32 %v17530_v29, 16  ;;  %v17906_v29 = vld [vmem:[#allocation2 + $0x7c] sm:$0xf] }
 0x3d8   : > { %13375 = vmatprep.subr.bf16.mxu1 %v14598_v25 }
 0x3d9   : > { %v5786_v26 = vrot.slane %v19761_v53, 3  ;;  %v5792_v12 = vrot.slane %v19763_v46, 2 }
 0x3da   : > { %13340 = vmatmul.mubr.bf16.gmra.mrb[12].mxu1 %v5761_v38  ;;  %v19767_v38 = vshll.u32 %v17587_v57, 16  ;;  %v19769_v57 = vshll.u32 %v17596_v33, 16 }
 0x3db   : > { %13343 = vmatprep.mubr.bf16.mxu1 %v5770_v10  ;;  %13376 = vmatpush3.bf16.msra.mxu1 %v14598_v25  ;;  %v5787_v59 = vor.u32 %v5786_v26, %v5783_v35  ;;  %v17912_v10 = vld [vmem:[#allocation2 + $0x88] sm:$0xf]  ;;  %v17916_v35 = vld [vmem:[#allocation2 + $0x98] sm:$0xf]  ;;  %v5796_v53 = vor.u32 %v5795_v32, %v5792_v12  ;;  %v17920_v26 = vld [vmem:[#allocation2 + $0x90] sm:$0xf] }
 0x3dc   : > { %13377 = vmatprep.subr.bf16.mxu1 %v14599_v4  ;;  %v5804_v21 = vrot.slane %v19767_v38, 3  ;;  %v5819_v38 = vrot.slane %v19771_v34, 2  ;;  %v5822_v12 = vrot.slane %v19772_v13, 3  ;;  %v5840_v13 = vrot.slane %v19778_v37, 3  ;;  %v14604_v37 = vld [vmem:[%s19137_s1 + $0x320] sm:$0xff]  }
 0x3dd   : > { %v5788_v25 = vsel %vm19765_vm13, %v5778_v27, %v5787_v59  ;;  %v17922_v27 = vld [vmem:[#allocation2 + $0x94] sm:$0xf]  ;;  %vm19776_vm13 = vmmov %vm19747_vm5 }
 0x3de   : > { %v5823_v32 = vor.u32 %v5822_v12, %v5819_v38 }
 0x3df   : > { %13378 = vmatpush3.bf16.msra.mxu1 %v14599_v4  ;;  %v5801_v4 = vrot.slane %v19766_v62, 2 }
 0x3e0   : > { %13415 = vmatprep.subr.bf16.mxu1 %v17883_v11 }
 0x3e1   : > { %v5805_v46 = vor.u32 %v5804_v21, %v5801_v4  ;;  %v5797_v4 = vsel %vm19747_vm5, %v5787_v59, %v5796_v53  ;;  %v19768_v21 = vshrl.u32 %v17596_v33, 16  ;;  %v19775_v33 = vshll.u32 %v17642_v49, 16 }
 0x3e2   : > { %13344 = vmatmul.mubr.bf16.gmra.mrb[16].mxu1 %v5779_v45  ;;  %v17924_v45 = vld [vmem:[#allocation2 + $0x9c] sm:$0xf] }
 0x3e3   : > { %13347 = vmatprep.mubr.bf16.mxu1 %v5788_v25  ;;  %v5810_v55 = vrot.slane %v19768_v21, 2  ;;  %v5813_v25 = vrot.slane %v19769_v57, 3  ;;  %v5806_v62 = vsel %vm19770_vm8, %v5796_v53, %v5805_v46  ;;  %v5828_v21 = vrot.slane %v19774_v44, 2  ;;  %vm19779_vm8 = vmmov %vm19747_vm5 }
 0x3e4   : > { %v5831_v57 = vrot.slane %v19775_v33, 3  ;;  %v17976_v33 = vld [vmem:[#allocation2 + $0x38] sm:$0xff]  }
 0x3e5   : > { %v5814_v47 = vor.u32 %v5813_v25, %v5810_v55  ;;  %v5844_v25 = vshrl.u32 %v17690_v23, 16  ;;  %v8566_v41 = vrot.slane %v17976_v33, 1 }
 0x3e6   : > { %v5832_v55 = vor.u32 %v5831_v57, %v5828_v21  ;;  %v17974_v21 = vld [vmem:[#allocation2 + $0x30] sm:$0xff]  }
 0x3e7   : > { %v5815_v59 = vsel %vm19773_vm10, %v5805_v46, %v5814_v47  ;;  %v5824_v53 = vsel %vm19776_vm13, %v5814_v47, %v5823_v32  ;;  %v5847_v46 = vshll.u32 %v17690_v23, 16  ;;  %v5846_v49 = vrot.slane %v5844_v25, 2  ;;  %vm19780_vm10 = vmmov %vm19747_vm5  ;;  %v17967_v23 = vld [vmem:[#allocation2 + $0x28] sm:$0xff]   ;;  %v17999_v25 = vld [vmem:[#allocation2 + $0x70] sm:$0xff]  }
 0x3e8   : > { %v5833_v44 = vsel %vm19747_vm5, %v5823_v32, %v5832_v55  ;;  %19781 = vst [vmem:[#allocation61_spill] sm:$0xff] %v17967_v23  ;;  %v17970_v32 = vld [vmem:[#allocation2 + $0x20] sm:$0xff]   ;;  %v19281_v57 = vshrl.u32 %v17967_v23, 16  ;;  %v8562_v6 = vrot.slane %v17967_v23, 1  ;;  %v8564_v43 = vrot.slane %v17974_v21, 1 }
 0x3e9   : > { %v5849_v38 = vrot.slane %v5847_v46, 3  ;;  %v18001_v46 = vld [vmem:[#allocation2 + $0x78] sm:$0xff]   ;;  %vm19783_vm13 = vcmask 1046528  }
 0x3ea   : > { %13348 = vmatmul.mubr.bf16.gmra.mrb[20].mxu1 %v5797_v4  ;;  %v19777_v4 = vshrl.u32 %v17679_v51, 16  ;;  %v14601_v51 = vld [vmem:[%s19137_s1 + $0x308] sm:$0xff]   ;;  %vm19785_vm5 = vmmov %vm19783_vm13 }
 0x3eb   : > { %13351 = vmatprep.mubr.bf16.mxu1 %v5806_v62  ;;  %v5850_v12 = vor.u32 %v5849_v38, %v5846_v49  ;;  %v18020_v49 = vld [vmem:[#allocation2 + $0x98] sm:$0xff]   ;;  %vm19791_vm11 = vmmov %vm19785_vm5 }
 0x3ec   : > { %v5837_v34 = vrot.slane %v19777_v4, 2  ;;  %v17986_v4 = vld [vmem:[#allocation2 + $0x50] sm:$0xff]   ;;  %v7965_v38 = vld [vmem:[#allocation2 + $0x1c] sm:$0xf]  ;;  %vm19804_vm2 = vmmov %vm19785_vm5 }
 0x3ed   : > { %v8572_v2 = vrot.slane %v17986_v4, 1 }
 0x3ee   : > { %v5841_v62 = vor.u32 %v5840_v13, %v5837_v34  ;;  %v14603_v34 = vld [vmem:[%s19137_s1 + $0x318] sm:$0xff]   ;;  %v18043_v13 = vld [vmem:[#allocation2 + $0xa0] sm:$0xff]  }
 0x3f0   : > { %v5842_v47 = vsel %vm19779_vm8, %v5832_v55, %v5841_v62  ;;  %v17997_v55 = vld [vmem:[#allocation2 + $0x68] sm:$0xff]   ;;  %vm19787_vm8 = vmmov %vm19785_vm5 }
 0x3f2   : > { %13352 = vmatmul.mubr.bf16.gmra.mrb[24].mxu1 %v5815_v59  ;;  %v5851_v59 = vsel %vm19780_vm10, %v5841_v62, %v5850_v12  ;;  %v18009_v12 = vld [vmem:[#allocation2 + $0x88] sm:$0xff]   ;;  %vm19789_vm10 = vmmov %vm19785_vm5 }
 0x3f3   : > { %13355 = vmatprep.mubr.bf16.mxu1 %v5824_v53  ;;  %v17982_v53 = vld [vmem:[#allocation2 + $0x40] sm:$0xff]   ;;  %v18072_v15 = vsel %vm19789_vm10, %v8564_v43, %v8566_v41  ;;  %vm19800_vm10 = vmmov %vm19785_vm5 }
 0x3f4   : > { %19782 = vst [vmem:[#allocation62_spill] sm:$0xff] %v17982_v53  ;;  %v8568_v62 = vrot.slane %v17982_v53, 1  ;;  %19790 = vst [vmem:[#allocation66_spill] sm:$0xff] %v18072_v15 }
 0x3fa   : > { %13356 = vmatmul.mubr.bf16.gmra.mrb[28].mxu1 %v5833_v44  ;;  %v18018_v44 = vld [vmem:[#allocation2 + $0x90] sm:$0xff]  }
 0x3fb   : > { %13359 = vmatprep.mubr.bf16.mxu1 %v5842_v47  ;;  %v18007_v47 = vld [vmem:[#allocation2 + $0x80] sm:$0xff]  }
 0x402   : > { %13360 = vmatmul.mubr.bf16.gmra.mrb[32].mxu1 %v5851_v59  ;;  %v18013_v59 = vrot.slane %v19281_v57, 1  ;;  %v18069_v57 = vsel %vm19787_vm8, %v8562_v6, %v8564_v43  ;;  %v8578_v43 = vrot.slane %v17997_v55, 1  ;;  %vm19798_vm8 = vmmov %vm19785_vm5 }
 0x403   : > { %13379 = vmatprep.mubr.bf16.mxu1 %v17688_v19  ;;  %v14602_v19 = vld [vmem:[%s19137_s1 + $0x310] sm:$0xff]   ;;  %19788 = vst [vmem:[#allocation65_spill] sm:$0xff] %v18069_v57 }
 0x40a   : > { %13380 = vmatmul.mubr.bf16.vlgmr.msra.gmra.mrb[0].mxu1 %v17711_v22  ;;  %v17984_v22 = vld [vmem:[#allocation2 + $0x48] sm:$0xff]  }
 0x40b   : > { %13383 = vmatprep.mubr.bf16.mxu1 %v17724_v36  ;;  %13416 = vmatpush3.bf16.msra.mxu1 %v17883_v11  ;;  %v17988_v36 = vld [vmem:[#allocation2 + $0x58] sm:$0xff]   ;;  %v17990_v11 = vld [vmem:[#allocation2 + $0x60] sm:$0xff]  }
 0x40c   : > { %13417 = vmatprep.subr.bf16.mxu1 %v14601_v51 }
 0x40f   : > { %13418 = vmatpush3.bf16.msra.mxu1 %v14601_v51  ;;  %v8560_v51 = vrot.slane %v17970_v32, 1 }
 0x410   : > { %13419 = vmatprep.subr.bf16.mxu1 %v14602_v19 }
 0x411   : > { %v18060_v61 = vsel %vm19783_vm13, %v8560_v51, %v8562_v6  ;;  %vm19793_vm13 = vmmov %vm19785_vm5  ;;  %v8576_v6 = vrot.slane %v17990_v11, 1 }
 0x412   : > { %13384 = vmatmul.mubr.bf16.gmra.mrb[4].mxu1 %v17732_v24  ;;  %v11945_v24 = vcombine.low %v8538_v0, %v7965_v38  ;;  %v14605_v0 = vld [vmem:[%s19137_s1 + $0x328] sm:$0xff]   ;;  %19784 = vst [vmem:[#allocation63_spill] sm:$0xff] %v18060_v61  ;;  %v18076_v38 = vsel %vm19791_vm11, %v8566_v41, %v8568_v62  ;;  %v14606_v41 = vld [vmem:[%s19137_s1 + $0x330] sm:$0xff]   ;;  %vm19795_vm11 = vmmov %vm19785_vm5 }
 0x413   : > { %13387 = vmatprep.mubr.bf16.mxu1 %v17746_v40  ;;  %13420 = vmatpush3.bf16.msra.mxu1 %v14602_v19  ;;  %19792 = vst [vmem:[#allocation67_spill] sm:$0xff] %v18076_v38  ;;  %v8574_v40 = vrot.slane %v17988_v36, 1  ;;  %v18103_v38 = vsel %vm19800_vm10, %v8576_v6, %v8578_v43  ;;  %vm19817_vm10 = vmmov %vm19804_vm2 }
 0x414   : > { %13421 = vmatprep.subr.bf16.mxu1 %v14603_v34  ;;  %v8559_v19 = vrot.slane %v11945_v24, 1  ;;  %19801 = vst [vmem:[#allocation72_spill] sm:$0xff] %v18103_v38  ;;  %v8897_v38 = vshrl.u32 %v11945_v24, 16 }
 0x416   : > { %v18066_v63 = vsel %vm19785_vm5, %v8559_v19, %v8560_v51  ;;  %v8580_v51 = vrot.slane %v17999_v25, 1  ;;  %v18095_v19 = vsel %vm19785_vm5, %v8572_v2, %v8574_v40 }
 0x417   : > { %13422 = vmatpush3.bf16.msra.mxu1 %v14603_v34  ;;  %v8570_v34 = vrot.slane %v17984_v22, 1  ;;  %19786 = vst [vmem:[#allocation64_spill] sm:$0xff] %v18066_v63  ;;  %19797 = vst [vmem:[#allocation70_spill] sm:$0xff] %v18095_v19  ;;  %v8588_v19 = vrot.slane %v18018_v44, 1  ;;  %v19819_v63 = vshrl.u32 %v17974_v21, 16 }
 0x418   : > { %13423 = vmatprep.subr.bf16.mxu1 %v14604_v37 }
 0x419   : > { %v18079_v61 = vsel %vm19793_vm13, %v8568_v62, %v8570_v34  ;;  %v18092_v62 = vsel %vm19795_vm11, %v8570_v34, %v8572_v2  ;;  %vm19802_vm13 = vmmov %vm19785_vm5 }
 0x41a   : > { %13388 = vmatmul.mubr.bf16.gmra.mrb[8].mxu1 %v17755_v56  ;;  %19794 = vst [vmem:[#allocation68_spill] sm:$0xff] %v18079_v61  ;;  %v8582_v56 = vrot.slane %v18001_v46, 1  ;;  %19796 = vst [vmem:[#allocation69_spill] sm:$0xff] %v18092_v62  ;;  %v18100_v61 = vsel %vm19798_vm8, %v8574_v40, %v8576_v6  ;;  %v18106_v15 = vsel %vm19802_vm13, %v8578_v43, %v8580_v51  ;;  %v8590_v40 = vrot.slane %v18020_v49, 1 }
 0x41b   : > { %13391 = vmatprep.mubr.bf16.mxu1 %v17766_v28  ;;  %13424 = vmatpush3.bf16.msra.mxu1 %v14604_v37  ;;  %v8584_v28 = vrot.slane %v18007_v47, 1  ;;  %v8586_v37 = vrot.slane %v18009_v12, 1  ;;  %19799 = vst [vmem:[#allocation71_spill] sm:$0xff] %v18100_v61  ;;  %19803 = vst [vmem:[#allocation73_spill] sm:$0xff] %v18106_v15  ;;  %v8900_v61 = vshll.u32 %v11945_v24, 16  ;;  %v19810_v43 = vshrl.u32 %v17970_v32, 16 }
 0x41c   : > { %13425 = vmatprep.subr.bf16.mxu1 %v14605_v0  ;;  %v18109_v57 = vsel %vm19804_vm2, %v8580_v51, %v8582_v56  ;;  %vm19806_vm11 = vmmov %vm19804_vm2  ;;  %v14607_v51 = vld [vmem:[%s19137_s1 + $0x338] sm:$0xff]   ;;  %v19815_v6 = vshll.u32 %v17967_v23, 16  ;;  %vm19825_vm13 = vsmask.f32 6400 }
 0x41d   : > { %19805 = vst [vmem:[#allocation74_spill] sm:$0xff] %v18109_v57  ;;  %v18112_v34 = vsel %vm19806_vm11, %v8582_v56, %v8584_v28  ;;  %vm19808_vm5 = vmmov %vm19804_vm2  ;;  %v8904_v15 = vrot.slane %v19810_v43, 1  ;;  %v18126_v56 = vsel %vm19804_vm2, %v8586_v37, %v8588_v19  ;;  %v8899_v57 = vrot.slane %v8897_v38, 1 }
 0x41e   : > { %19807 = vst [vmem:[#allocation75_spill] sm:$0xff] %v18112_v34  ;;  %v18115_v2 = vsel %vm19808_vm5, %v8584_v28, %v8586_v37  ;;  %19811 = vst [vmem:[#allocation77_spill] sm:$0xff] %v18126_v56  ;;  %v8909_v24 = vrot.slane %v19815_v6, 2  ;;  %v19816_v34 = vrot.slane %v18043_v13, 1  ;;  %v8902_v62 = vrot.slane %v8900_v61, 2 }
 0x41f   : > { %19809 = vst [vmem:[#allocation76_spill] sm:$0xff] %v18115_v2  ;;  %13426 = vmatpush3.bf16.msra.mxu1 %v14605_v0  ;;  %vm19812_vm8 = vmmov %vm19804_vm2  ;;  %v19814_v0 = vshll.u32 %v17970_v32, 16  ;;  %v8912_v37 = vrot.slane %v19819_v63, 1  ;;  %v19821_v6 = vshrl.u32 %v17976_v33, 16  ;;  %v19822_v61 = vshll.u32 %v17976_v33, 16 }
 0x420   : > { %13427 = vmatprep.subr.bf16.mxu1 %v14606_v41  ;;  %v18129_v28 = vsel %vm19812_vm8, %v8588_v19, %v8590_v40  ;;  %v18138_v43 = vsel %vm19817_vm10, %v8590_v40, %v19816_v34  ;;  %v8903_v34 = vor.u32 %v8902_v62, %v8899_v57  ;;  %v19823_v63 = vshrl.u32 %v17982_v53, 16  ;;  %vm19829_vm11 = vmmov %vm19825_vm13 }
 0x421   : > { %19813 = vst [vmem:[#allocation78_spill] sm:$0xff] %v18129_v28  ;;  %v8905_v2 = vrot.slane %v19814_v0, 2  ;;  %19818 = vst [vmem:[#allocation79_spill] sm:$0xff] %v18138_v43  ;;  %v8910_v28 = vor.u32 %v8909_v24, %v18013_v59  ;;  %v19820_v0 = vshll.u32 %v17974_v21, 16  ;;  %v8916_v23 = vrot.slane %v19821_v6, 1  ;;  %v18158_v59 = vld [vmem:[%s19137_s1 + $0x340] sm:$0xff]  }
 0x422   : > { %13392 = vmatmul.mubr.bf16.gmra.mrb[12].mxu1 %v17773_v48  ;;  %v8917_v38 = vrot.slane %v19822_v61, 2  ;;  %v8920_v40 = vrot.slane %v19823_v63, 1  ;;  %v19827_v57 = vshrl.u32 %v17984_v22, 16  ;;  %v19828_v62 = vshll.u32 %v17984_v22, 16  ;;  %vm19831_vm5 = vmmov %vm19829_vm11 }
 0x423   : > { %v8906_v19 = vor.u32 %v8905_v2, %v8904_v15  ;;  %v8913_v56 = vrot.slane %v19820_v0, 2  ;;  %13395 = vmatprep.mubr.bf16.mxu1 %v17776_v14  ;;  %13428 = vmatpush3.bf16.msra.mxu1 %v14606_v41  ;;  %v19824_v15 = vshll.u32 %v17982_v53, 16  ;;  %v19830_v63 = vshrl.u32 %v17986_v4, 16  ;;  %vm19834_vm2 = vmmov %vm19831_vm5 }
 0x424   : > { %13429 = vmatprep.subr.bf16.mxu1 %v14607_v51  ;;  %v8924_v41 = vrot.slane %v19827_v57, 1  ;;  %v8925_v24 = vrot.slane %v19828_v62, 2  ;;  %v8918_v6 = vor.u32 %v8917_v38, %v8916_v23  ;;  %v19833_v57 = vshrl.u32 %v17988_v36, 16  ;;  %vm19835_vm8 = vmmov %vm19834_vm2 }
 0x425   : > { %v8921_v48 = vrot.slane %v19824_v15, 2  ;;  %v18161_v2 = vsel %vm19825_vm13, %v8906_v19, %v8910_v28  ;;  %v8914_v14 = vor.u32 %v8913_v56, %v8912_v37  ;;  %v18168_v0 = vsel %vm19829_vm11, %v8903_v34, %v8906_v19  ;;  %vm19839_vm10 = vmmov %vm19834_vm2 }
 0x426   : > { %19826 = vst [vmem:[#allocation80_spill] sm:$0xff] %v18161_v2  ;;  %v8928_v15 = vrot.slane %v19830_v63, 1  ;;  %v8926_v53 = vor.u32 %v8925_v24, %v8924_v41  ;;  %v19832_v56 = vshll.u32 %v17986_v4, 16  ;;  %v8932_v2 = vrot.slane %v19833_v57, 1  ;;  %vm19845_vm13 = vmmov %vm19834_vm2 }
 0x427   : > { %v8922_v61 = vor.u32 %v8921_v48, %v8920_v40  ;;  %v18173_v43 = vsel %vm19831_vm5, %v8910_v28, %v8914_v14  ;;  %13430 = vmatpush3.bf16.msra.mxu1 %v14607_v51  ;;  %v18180_v62 = vsel %vm19834_vm2, %v8914_v14, %v8918_v6  ;;  %v19837_v19 = vshll.u32 %v17988_v36, 16  ;;  %vm19849_vm11 = vmmov %vm19834_vm2 }
 0x428   : > { %v8929_v37 = vrot.slane %v19832_v56, 2  ;;  %v19838_v28 = vshrl.u32 %v17990_v11, 16  ;;  %13467 = vmatprep.subr.bf16.mxu1 %v18158_v59  ;;  %v19840_v51 = vshll.u32 %v17990_v11, 16  ;;  %v19841_v14 = vshrl.u32 %v17997_v55, 16  ;;  %vm19851_vm5 = vmmov %vm19834_vm2 }
 0x429   : > { %v18183_v23 = vsel %vm19835_vm8, %v8918_v6, %v8922_v61  ;;  %v8933_v34 = vrot.slane %v19837_v19, 2  ;;  %v18191_v40 = vsel %vm19839_vm10, %v8922_v61, %v8926_v53  ;;  %v19842_v63 = vshll.u32 %v17997_v55, 16  ;;  %vm19856_vm8 = vmmov %vm19834_vm2 }
 0x42a   : > { %19836 = vst [vmem:[#allocation81_spill] sm:$0xff] %v18183_v23  ;;  %v8936_v38 = vrot.slane %v19838_v28, 1  ;;  %v8930_v48 = vor.u32 %v8929_v37, %v8928_v15  ;;  %v8937_v41 = vrot.slane %v19840_v51, 2  ;;  %v8940_v24 = vrot.slane %v19841_v14, 1  ;;  %13396 = vmatmul.mubr.bf16.gmra.mrb[16].mxu1 %v17783_v9  ;;  %vm19860_vm10 = vmmov %vm19834_vm2 }
 0x42b   : > { %v8934_v6 = vor.u32 %v8933_v34, %v8932_v2  ;;  %v8941_v56 = vrot.slane %v19842_v63, 2  ;;  %v19843_v57 = vshrl.u32 %v17999_v25, 16  ;;  %v19844_v28 = vshll.u32 %v17999_v25, 16  ;;  %13399 = vmatprep.mubr.bf16.mxu1 %v17793_v60 }
 0x42c   : > { %v18205_v61 = vsel %vm19845_vm13, %v8926_v53, %v8930_v48  ;;  %v8938_v15 = vor.u32 %v8937_v41, %v8936_v38  ;;  %v19847_v37 = vshrl.u32 %v18001_v46, 16  ;;  %v19848_v2 = vshll.u32 %v18001_v46, 16  ;;  %vm19867_vm13 = vmmov %vm19834_vm2 }
 0x42d   : > { %v8944_v19 = vrot.slane %v19843_v57, 1  ;;  %v8945_v23 = vrot.slane %v19844_v28, 2  ;;  %19846 = vst [vmem:[#allocation82_spill] sm:$0xff] %v18205_v61  ;;  %v18213_v14 = vsel %vm19849_vm11, %v8930_v48, %v8934_v6  ;;  %v8942_v63 = vor.u32 %v8941_v56, %v8940_v24  ;;  %vm19868_vm11 = vmmov %vm19834_vm2 }
 0x42e   : > { %v8948_v51 = vrot.slane %v19847_v37, 1  ;;  %v8949_v34 = vrot.slane %v19848_v2, 2  ;;  %v19850_v28 = vshrl.u32 %v18007_v47, 16  ;;  %v18218_v53 = vsel %vm19851_vm5, %v8934_v6, %v8938_v15  ;;  %vm19871_vm5 = vmmov %vm19834_vm2 }
 0x42f   : > { %v8946_v57 = vor.u32 %v8945_v23, %v8944_v19  ;;  %19852 = vst [vmem:[#allocation83_spill] sm:$0xff] %v18218_v53  ;;  %v19853_v41 = vshll.u32 %v18007_v47, 16  ;;  %v19854_v61 = vshrl.u32 %v18009_v12, 16  ;;  %v18225_v60 = vsel %vm19834_vm2, %v8938_v15, %v8942_v63 }
 0x430   : > { %v8952_v9 = vrot.slane %v19850_v28, 1  ;;  %v8950_v38 = vor.u32 %v8949_v34, %v8948_v51  ;;  %19855 = vst [vmem:[#allocation84_spill] sm:$0xff] %v18225_v60  ;;  %v19858_v23 = vshll.u32 %v18009_v12, 16  ;;  %v19859_v56 = vshrl.u32 %v18018_v44, 16 }
 0x431   : > { %v8953_v37 = vrot.slane %v19853_v41, 2  ;;  %v8956_v2 = vrot.slane %v19854_v61, 1  ;;  %v18228_v48 = vsel %vm19856_vm8, %v8942_v63, %v8946_v57  ;;  %v19862_v34 = vshll.u32 %v18018_v44, 16  ;;  %vm19874_vm8 = vmmov %vm19834_vm2 }
 0x432   : > { %19857 = vst [vmem:[#allocation85_spill] sm:$0xff] %v18228_v48  ;;  %v8957_v24 = vrot.slane %v19858_v23, 2  ;;  %v8960_v6 = vrot.slane %v19859_v56, 1  ;;  %v18235_v19 = vsel %vm19860_vm10, %v8946_v57, %v8950_v38  ;;  %v19863_v61 = vshrl.u32 %v18020_v49, 16  ;;  %13400 = vmatmul.mubr.bf16.gmra.mrb[20].mxu1 %v17802_v7  ;;  %v14729_v7 = vld [vmem:[#allocation2 + $0x18] sm:$0xf] }
 0x433   : > { %19861 = vst [vmem:[#allocation86_spill] sm:$0xff] %v18235_v19  ;;  %v8954_v51 = vor.u32 %v8953_v37, %v8952_v9  ;;  %v8961_v28 = vrot.slane %v19862_v34, 2  ;;  %v19864_v63 = vshll.u32 %v18020_v49, 16  ;;  %v19865_v60 = vshrl.u32 %v18043_v13, 16  ;;  %13403 = vmatprep.mubr.bf16.mxu1 %v17813_v39 }
 0x434   : > { %v8964_v15 = vrot.slane %v19863_v61, 1  ;;  %v8958_v41 = vor.u32 %v8957_v24, %v8956_v2  ;;  %v19866_v53 = vshll.u32 %v18043_v13, 16  ;;  %v14608_v24 = vld [vmem:[#allocation2 + $0x94] ss:$0 sps:$4 sm:$0xff]   ;;  %vm19876_vm10 = vsmask.f32 4352 }
 0x435   : > { %v8965_v48 = vrot.slane %v19864_v63, 2  ;;  %v8968_v23 = vrot.slane %v19865_v60, 1  ;;  %v18248_v57 = vsel %vm19867_vm13, %v8950_v38, %v8954_v51  ;;  %v8962_v9 = vor.u32 %v8961_v28, %v8960_v6  ;;  %v6480_v38 = vld [vmem:[#allocation2 + $0xc] sm:$0x8]  ;;  %vm19877_vm13 = vmmov %vm19876_vm10 }
 0x436   : > { %v8969_v56 = vrot.slane %v19866_v53, 2  ;;  %v18251_v37 = vsel %vm19868_vm11, %v8954_v51, %v8958_v41  ;;  %v14728_v51 = vld [vmem:[#allocation2 + $0x14] sm:$0xf]  ;;  %v6193_v61 = vshrl.u32 %v14608_v24, 16  ;;  %v6196_v39 = vshll.u32 %v14608_v24, 16  ;;  %vm19878_vm11 = vmmov %vm19876_vm10 }
 0x437   : > { %19869 = vst [vmem:[#allocation87_spill] sm:$0xff] %v18251_v37  ;;  %v8966_v34 = vor.u32 %v8965_v48, %v8964_v15  ;;  %v18257_v2 = vsel %vm19871_vm5, %v8958_v41, %v8962_v9  ;;  %v14727_v48 = vld [vmem:[#allocation2 + $0x10] sm:$0xf]  ;;  %v11775_v28 = vcombine.low %v14728_v51, %v14729_v7  ;;  %vm19879_vm5 = vmmov %vm19876_vm10 }
 0x438   : > { %v18253_v19 = vor.u32 %v8969_v56, %v8968_v23  ;;  %19872 = vst [vmem:[#allocation89_spill] sm:$0xff] %v18257_v2  ;;  %v11774_v6 = vcombine.low %v6480_v38, %v14727_v48  ;;  %v6195_v56 = vrot.slane %v6193_v61, 3 }
 0x439   : > { %v18261_v60 = vsel %vm19834_vm2, %v8962_v9, %v8966_v34  ;;  %v6636_v63 = vshrl.u32 %v11775_v28, 16  ;;  %v6639_v23 = vshll.u32 %v11775_v28, 16  ;;  %v6198_v9 = vrot.slane %v6196_v39, 4  ;;  %vm19880_vm2 = vmmov %vm19879_vm5 }
 0x43a   : > { %19870 = vst [vmem:[#allocation88_spill] sm:$0xff] %v18253_v19  ;;  %19873 = vst [vmem:[#allocation90_spill] sm:$0xff] %v18261_v60  ;;  %v18265_v53 = vsel %vm19874_vm8, %v8966_v34, %v18253_v19  ;;  %13404 = vmatmul.mubr.bf16.gmra.mrb[24].mxu1 %v17819_v1  ;;  %v6628_v15 = vshrl.u32 %v11774_v6, 16  ;;  %v6631_v41 = vshll.u32 %v11774_v6, 16  ;;  %v14730_v34 = vld [vmem:[#allocation2 + $0x1c] sm:$0xf] }
 0x43b   : > { %19875 = vst [vmem:[#allocation91_spill] sm:$0xff] %v18265_v53  ;;  %13407 = vmatprep.mubr.bf16.mxu1 %v17822_v30  ;;  %v14731_v19 = vld [vmem:[#allocation2 + $0x20] sm:$0xf]  ;;  %v14732_v60 = vld [vmem:[#allocation2 + $0x24] sm:$0xf]  ;;  %v6638_v51 = vrot.slane %v6636_v63, 3  ;;  %v6199_v24 = vor.u32 %v6198_v9, %v6195_v56  ;;  %vm19881_vm8 = vmmov %vm19880_vm2 }
 0x43c   : > { %v11776_v53 = vcombine.low %v14730_v34, %v14731_v19  ;;  %v14733_v1 = vld [vmem:[#allocation2 + $0x28] sm:$0xf]  ;;  %v6630_v38 = vrot.slane %v6628_v15, 3  ;;  %v6633_v48 = vrot.slane %v6631_v41, 4  ;;  %v6641_v30 = vrot.slane %v6639_v23, 4 }
 0x43d   : > { %v11777_v2 = vcombine.low %v14732_v60, %v14733_v1  ;;  %v6200_v19 = vsel %vm19876_vm10, %v17824_v58, %v6199_v24  ;;  %v14734_v1 = vld [vmem:[#allocation2 + $0x2c] sm:$0xf]  ;;  %v14736_v23 = vld [vmem:[#allocation2 + $0x34] sm:$0xf]  ;;  %v14737_v56 = vld [vmem:[#allocation2 + $0x38] sm:$0xf] }
 0x43e   : > { %v6645_v6 = vshrl.u32 %v11776_v53, 16  ;;  %v6648_v7 = vshll.u32 %v11776_v53, 16  ;;  %v6634_v28 = vor.u32 %v6633_v48, %v6630_v38  ;;  %v6642_v61 = vor.u32 %v6641_v30, %v6638_v51  ;;  %v14616_v30 = vld [vmem:[%s19137_s1 + $0x348] sm:$0xff]   ;;  %vm19882_vm10 = vmmov %vm19880_vm2 }
 0x43f   : > { %v6654_v39 = vshrl.u32 %v11777_v2, 16  ;;  %v6657_v37 = vshll.u32 %v11777_v2, 16  ;;  %v11779_v53 = vcombine.low %v14736_v23, %v14737_v56 }
 0x440   : > { %v6647_v34 = vrot.slane %v6645_v6, 3  ;;  %v6650_v60 = vrot.slane %v6648_v7, 4  ;;  %v6643_v41 = vsel %vm19877_vm13, %v6634_v28, %v6642_v61  ;;  %v14738_v28 = vld [vmem:[#allocation2 + $0x3c] sm:$0xf]  ;;  %vm19883_vm13 = vmmov %vm19880_vm2 }
 0x441   : > { %v6656_v63 = vrot.slane %v6654_v39, 3  ;;  %v6672_v51 = vshrl.u32 %v11779_v53, 16  ;;  %v6675_v58 = vshll.u32 %v11779_v53, 16 }
 0x442   : > { %13408 = vmatmul.mubr.bf16.gmra.mrb[28].mxu1 %v17834_v3  ;;  %v14735_v3 = vld [vmem:[#allocation2 + $0x30] sm:$0xf]  ;;  %v6651_v9 = vor.u32 %v6650_v60, %v6647_v34 }
 0x443   : > { %13411 = vmatprep.mubr.bf16.mxu1 %v17845_v54  ;;  %v11778_v15 = vcombine.low %v14734_v1, %v14735_v3  ;;  %v6659_v54 = vrot.slane %v6657_v37, 4  ;;  %v14739_v37 = vld [vmem:[#allocation2 + $0x40] sm:$0xf]  ;;  %v6674_v34 = vrot.slane %v6672_v51, 3  ;;  %v6677_v60 = vrot.slane %v6675_v58, 4 }
 0x444   : > { %v6652_v24 = vsel %vm19878_vm11, %v6642_v61, %v6651_v9  ;;  %v11780_v39 = vcombine.low %v14738_v28, %v14739_v37  ;;  %v14740_v1 = vld [vmem:[#allocation2 + $0x44] sm:$0xf]  ;;  %v14741_v3 = vld [vmem:[#allocation2 + $0x48] sm:$0xf]  ;;  %v14619_v61 = vld [vmem:[%s19137_s1 + $0x350] sm:$0xff]  }
 0x445   : > { %v6663_v38 = vshrl.u32 %v11778_v15, 16  ;;  %v6666_v2 = vshll.u32 %v11778_v15, 16  ;;  %v6660_v48 = vor.u32 %v6659_v54, %v6656_v63  ;;  %v11781_v15 = vcombine.low %v14740_v1, %v14741_v3  ;;  %v14742_v51 = vld [vmem:[#allocation2 + $0x4c] sm:$0xf]  ;;  %v14743_v58 = vld [vmem:[#allocation2 + $0x50] sm:$0xf]  ;;  %vm19884_vm11 = vmmov %vm19880_vm2 }
 0x446   : > { %v6681_v63 = vshrl.u32 %v11780_v39, 16  ;;  %v6684_v54 = vshll.u32 %v11780_v39, 16  ;;  %v6678_v23 = vor.u32 %v6677_v60, %v6674_v34  ;;  %v14744_v37 = vld [vmem:[#allocation2 + $0x54] sm:$0xf]  ;;  %v14745_v39 = vld [vmem:[#allocation2 + $0x58] sm:$0xf] }
 0x447   : > { %v6665_v6 = vrot.slane %v6663_v38, 3  ;;  %v6668_v7 = vrot.slane %v6666_v2, 4  ;;  %v6690_v56 = vshrl.u32 %v11781_v15, 16  ;;  %v6693_v53 = vshll.u32 %v11781_v15, 16 }
 0x448   : > { %v6686_v2 = vrot.slane %v6684_v54, 4 }
 0x449   : > { %v6695_v28 = vrot.slane %v6693_v53, 4  ;;  %v14747_v53 = vld [vmem:[#allocation2 + $0x60] sm:$0xf] }
 0x44a   : > { %13412 = vmatmul.mubr.bf16.gmra.mrb[32].mxu1 %v6200_v19  ;;  %v6661_v19 = vsel %vm19879_vm5, %v6651_v9, %v6660_v48  ;;  %v14622_v9 = vld [vmem:[%s19137_s1 + $0x358] sm:$0xff]   ;;  %vm19885_vm5 = vmmov %vm19880_vm2 }
 0x44b   : > { %13431 = vmatprep.mubr.bf16.mxu1 %v6643_v41  ;;  %v6669_v41 = vor.u32 %v6668_v7, %v6665_v6  ;;  %v6692_v7 = vrot.slane %v6690_v56, 3  ;;  %v14746_v56 = vld [vmem:[#allocation2 + $0x5c] sm:$0xf] }
 0x44d   : > { %v6670_v38 = vsel %vm19880_vm2, %v6660_v48, %v6669_v41  ;;  %v6679_v6 = vsel %vm19881_vm8, %v6669_v41, %v6678_v23  ;;  %v14625_v48 = vld [vmem:[%s19137_s1 + $0x360] sm:$0xff]   ;;  %v6696_v1 = vor.u32 %v6695_v28, %v6692_v7  ;;  %v14628_v41 = vld [vmem:[%s19137_s1 + $0x368] sm:$0xff]   ;;  %vm19886_vm8 = vmmov %vm19880_vm2 }
 0x452   : > { %13432 = vmatmul.mubr.bf16.vlgmr.msra.gmra.mrb[0].mxu1 %v6652_v24  ;;  %v11782_v24 = vcombine.low %v14742_v51, %v14743_v58  ;;  %v14748_v58 = vld [vmem:[#allocation2 + $0x64] sm:$0xf] }
 0x453   : > { %13435 = vmatprep.mubr.bf16.mxu1 %v6661_v19  ;;  %13468 = vmatpush3.bf16.msra.mxu1 %v18158_v59  ;;  %v6683_v59 = vrot.slane %v6681_v63, 3 }
 0x454   : > { %13469 = vmatprep.subr.bf16.mxu1 %v14616_v30  ;;  %v6699_v34 = vshrl.u32 %v11782_v24, 16  ;;  %v6702_v60 = vshll.u32 %v11782_v24, 16 }
 0x455   : > { %v6687_v19 = vor.u32 %v6686_v2, %v6683_v59 }
 0x456   : > { %v6704_v54 = vrot.slane %v6702_v60, 4  ;;  %v11786_v60 = vcombine.low %v17893_v5, %v17895_v16 }
 0x457   : > { %13470 = vmatpush3.bf16.msra.mxu1 %v14616_v30  ;;  %v11783_v30 = vcombine.low %v14744_v37, %v14745_v39  ;;  %v6688_v63 = vsel %vm19882_vm10, %v6678_v23, %v6687_v19  ;;  %v6697_v59 = vsel %vm19883_vm13, %v6687_v19, %v6696_v1  ;;  %v14631_v23 = vld [vmem:[%s19137_s1 + $0x370] sm:$0xff]   ;;  %vm19887_vm10 = vmmov %vm19880_vm2 }
 0x458   : > { %13471 = vmatprep.subr.bf16.mxu1 %v14619_v61  ;;  %vm19888_vm13 = vmmov %vm19880_vm2 }
 0x459   : > { %v6708_v3 = vshrl.u32 %v11783_v30, 16  ;;  %v6711_v15 = vshll.u32 %v11783_v30, 16  ;;  %v14634_v30 = vld [vmem:[%s19137_s1 + $0x378] sm:$0xff]  }
 0x45a   : > { %13436 = vmatmul.mubr.bf16.gmra.mrb[4].mxu1 %v6670_v38  ;;  %v11784_v38 = vcombine.low %v14746_v56, %v14747_v53  ;;  %v6738_v56 = vshll.u32 %v11786_v60, 16 }
 0x45b   : > { %13439 = vmatprep.mubr.bf16.mxu1 %v6679_v6  ;;  %13472 = vmatpush3.bf16.msra.mxu1 %v14619_v61  ;;  %v6701_v61 = vrot.slane %v6699_v34, 3  ;;  %v6710_v2 = vrot.slane %v6708_v3, 3  ;;  %v6713_v51 = vrot.slane %v6711_v15, 4 }
 0x45c   : > { %13473 = vmatprep.subr.bf16.mxu1 %v14622_v9  ;;  %v6717_v6 = vshrl.u32 %v11784_v38, 16  ;;  %v6720_v7 = vshll.u32 %v11784_v38, 16 }
 0x45d   : > { %v6705_v24 = vor.u32 %v6704_v54, %v6701_v61  ;;  %v6714_v28 = vor.u32 %v6713_v51, %v6710_v2  ;;  %v6735_v54 = vshrl.u32 %v11786_v60, 16 }
 0x45e   : > { %v6722_v34 = vrot.slane %v6720_v7, 4  ;;  %v11789_v7 = vcombine.low %v17910_v18, %v17912_v10 }
 0x45f   : > { %13474 = vmatpush3.bf16.msra.mxu1 %v14622_v9  ;;  %v11785_v9 = vcombine.low %v14748_v58, %v17886_v52  ;;  %v6706_v19 = vsel %vm19884_vm11, %v6696_v1, %v6705_v24  ;;  %v6715_v3 = vsel %vm19885_vm5, %v6705_v24, %v6714_v28  ;;  %v18312_v1 = vld [vmem:[%s19137_s1 + $0x380] sm:$0xff]   ;;  %v6737_v51 = vrot.slane %v6735_v54, 3  ;;  %vm19889_vm11 = vmmov %vm19880_vm2 }
 0x460   : > { %13475 = vmatprep.subr.bf16.mxu1 %v14625_v48  ;;  %v6740_v58 = vrot.slane %v6738_v56, 4  ;;  %v11791_v54 = vcombine.low %v17922_v27, %v17916_v35  ;;  %vm19890_vm5 = vmmov %vm19880_vm2 }
 0x461   : > { %v6726_v37 = vshrl.u32 %v11785_v9, 16  ;;  %v6729_v39 = vshll.u32 %v11785_v9, 16  ;;  %v11788_v9 = vcombine.low %v17906_v29, %v17908_v20 }
 0x462   : > { %13440 = vmatmul.mubr.bf16.gmra.mrb[8].mxu1 %v6688_v63 }
 0x463   : > { %13443 = vmatprep.mubr.bf16.mxu1 %v6697_v59  ;;  %13476 = vmatpush3.bf16.msra.mxu1 %v14625_v48  ;;  %v6719_v48 = vrot.slane %v6717_v6, 3  ;;  %v6728_v15 = vrot.slane %v6726_v37, 3  ;;  %v6731_v63 = vrot.slane %v6729_v39, 4  ;;  %v6741_v37 = vor.u32 %v6740_v58, %v6737_v51 }
 0x464   : > { %13477 = vmatprep.subr.bf16.mxu1 %v14628_v41  ;;  %v6753_v39 = vshrl.u32 %v11788_v9, 16  ;;  %v6780_v51 = vshrl.u32 %v11791_v54, 16 }
 0x465   : > { %v6723_v61 = vor.u32 %v6722_v34, %v6719_v48  ;;  %v6732_v53 = vor.u32 %v6731_v63, %v6728_v15  ;;  %v6762_v48 = vshrl.u32 %v11789_v7, 16  ;;  %v11790_v15 = vcombine.low %v17914_v42, %v17920_v26 }
 0x466   : > { %v6755_v60 = vrot.slane %v6753_v39, 3 }
 0x467   : > { %13478 = vmatpush3.bf16.msra.mxu1 %v14628_v41  ;;  %v11787_v41 = vcombine.low %v17902_v31, %v17904_v17  ;;  %v6724_v2 = vsel %vm19880_vm2, %v6714_v28, %v6723_v61  ;;  %v6765_v28 = vshll.u32 %v11789_v7, 16  ;;  %v6742_v34 = vsel %vm19887_vm10, %v6732_v53, %v6741_v37  ;;  %vm19892_vm10 = vmmov %vm19880_vm2 }
 0x468   : > { %13479 = vmatprep.subr.bf16.mxu1 %v14631_v23  ;;  %v6782_v7 = vrot.slane %v6780_v51, 3 }
 0x469   : > { %v6744_v38 = vshrl.u32 %v11787_v41, 16  ;;  %v6747_v59 = vshll.u32 %v11787_v41, 16  ;;  %v6764_v41 = vrot.slane %v6762_v48, 3 }
 0x46a   : > { %13444 = vmatmul.mubr.bf16.gmra.mrb[12].mxu1 %v6706_v19 }
 0x46b   : > { %13447 = vmatprep.mubr.bf16.mxu1 %v6715_v3  ;;  %13480 = vmatpush3.bf16.msra.mxu1 %v14631_v23  ;;  %v6733_v23 = vsel %vm19886_vm8, %v6723_v61, %v6732_v53  ;;  %v6746_v24 = vrot.slane %v6744_v38, 3  ;;  %v6749_v6 = vrot.slane %v6747_v59, 4  ;;  %v6767_v61 = vrot.slane %v6765_v28, 4  ;;  %vm19891_vm8 = vmmov %vm19880_vm2 }
 0x46c   : > { %13481 = vmatprep.subr.bf16.mxu1 %v14634_v30  ;;  %v6771_v38 = vshrl.u32 %v11790_v15, 16  ;;  %v6774_v59 = vshll.u32 %v11790_v15, 16  ;;  %v6783_v53 = vshll.u32 %v11791_v54, 16  ;;  %v19894_v54 = vld [vmem:[#allocation27_spill] sm:$0xff] }
 0x46d   : > { %v6750_v19 = vor.u32 %v6749_v6, %v6746_v24  ;;  %v11792_v24 = vcombine.low %v17924_v45, %v17924_v45 }
 0x46f   : > { %13482 = vmatpush3.bf16.msra.mxu1 %v14634_v30  ;;  %v6756_v30 = vshll.u32 %v11788_v9, 16  ;;  %v6751_v63 = vsel %vm19888_vm13, %v6741_v37, %v6750_v19  ;;  %v6773_v9 = vrot.slane %v6771_v38, 3  ;;  %v6785_v37 = vrot.slane %v6783_v53, 4  ;;  %v19900_v53 = vld [vmem:[#allocation6_spill] sm:$0xff] }
 0x470   : > { %13519 = vmatprep.subr.bf16.mxu1 %v18312_v1  ;;  %v6792_v48 = vshll.u32 %v11792_v24, 16  ;;  %vm19931_vm13 = vsmask.f32 7424 }
 0x471   : > { %v6758_v3 = vrot.slane %v6756_v30, 4  ;;  %v6789_v30 = vshrl.u32 %v11792_v24, 16  ;;  %v6786_v28 = vor.u32 %v6785_v37, %v6782_v7  ;;  %v19904_v24 = vld [vmem:[#allocation38_spill] sm:$0xff] }
 0x472   : > { %13448 = vmatmul.mubr.bf16.gmra.mrb[16].mxu1 %v6724_v2  ;;  %v6768_v2 = vor.u32 %v6767_v61, %v6764_v41  ;;  %v19893_v41 = vcombine.low %v16980_v8, %v17000_v50  ;;  %v14642_v61 = vld [vmem:[%s19137_s1 + $0x388] sm:$0xff]   ;;  %v14645_v8 = vld [vmem:[%s19137_s1 + $0x390] sm:$0xff]   ;;  %v14648_v50 = vld [vmem:[%s19137_s1 + $0x398] sm:$0xff]  }
 0x473   : > { %13451 = vmatprep.mubr.bf16.mxu1 %v6733_v23  ;;  %v6759_v56 = vor.u32 %v6758_v3, %v6755_v60  ;;  %v6776_v23 = vrot.slane %v6774_v59, 4  ;;  %v6791_v60 = vrot.slane %v6789_v30, 3  ;;  %v6794_v3 = vrot.slane %v6792_v48, 4  ;;  %v19897_v59 = vld [vmem:[#allocation34_spill] sm:$0xff] }
 0x474   : > { %v14654_v7 = vld [vmem:[%s19137_s1 + $0x3a8] sm:$0xff]  }
 0x475   : > { %v6760_v58 = vsel %vm19889_vm11, %v6750_v19, %v6759_v56  ;;  %v6769_v6 = vsel %vm19890_vm5, %v6759_v56, %v6768_v2  ;;  %v6777_v39 = vor.u32 %v6776_v23, %v6773_v9  ;;  %v6795_v15 = vor.u32 %v6794_v3, %v6791_v60  ;;  %v19895_v56 = vld [vmem:[#allocation33_spill] sm:$0xff]  ;;  %v19906_v37 = vld [vmem:[#allocation42_spill] sm:$0xff]  ;;  %v14657_v60 = vld [vmem:[%s19137_s1 + $0x3b0] sm:$0xff]  }
 0x476   : > { %v19896_v38 = vcombine.low %v19894_v54, %v19895_v56  ;;  %v19903_v23 = vld [vmem:[#allocation21_spill] sm:$0xff]  ;;  %v19909_v48 = vld [vmem:[#allocation46_spill] sm:$0xff]  ;;  %v14660_v3 = vld [vmem:[%s19137_s1 + $0x3b8] sm:$0xff]  }
 0x477   : > { %v6787_v19 = vsel %vm19891_vm8, %v6777_v39, %v6786_v28  ;;  %v14665_v56 = vld [vmem:[%s19137_s1 + $0x3c0] sm:$0xff]   ;;  %vm19932_vm11 = vmmov %vm19931_vm13 }
 0x478   : > { %vm19933_vm5 = vmmov %vm19932_vm11 }
 0x47a   : > { %13452 = vmatmul.mubr.bf16.gmra.mrb[20].mxu1 %v6742_v34  ;;  %v6778_v34 = vsel %vm19880_vm2, %v6768_v2, %v6777_v39  ;;  %v19898_v2 = vld [vmem:[#allocation35_spill] sm:$0xff]  ;;  %vm19934_vm2 = vmmov %vm19933_vm5 }
 0x47b   : > { %13455 = vmatprep.mubr.bf16.mxu1 %v6751_v63  ;;  %v6796_v63 = vsel %vm19892_vm10, %v6786_v28, %v6795_v15  ;;  %v19899_v51 = vcombine.low %v19897_v59, %v19898_v2  ;;  %v19907_v39 = vld [vmem:[#allocation43_spill] sm:$0xff]  ;;  %v19913_v15 = vld [vmem:[#allocation54_spill] sm:$0xff]  ;;  %vm19935_vm8 = vmmov %vm19934_vm2 }
 0x47c   : > { %v19908_v30 = vcombine.low %v19906_v37, %v19907_v39  ;;  %v19910_v28 = vld [vmem:[#allocation47_spill] sm:$0xff]  ;;  %v19919_v59 = vld [vmem:[#allocation58_spill] sm:$0xff]  ;;  %vm19936_vm10 = vmmov %vm19934_vm2 }
 0x482   : > { %13456 = vmatmul.mubr.bf16.gmra.mrb[24].mxu1 %v6760_v58  ;;  %v19901_v58 = vld [vmem:[#allocation31_spill] sm:$0xff] }
 0x483   : > { %13459 = vmatprep.mubr.bf16.mxu1 %v6769_v6  ;;  %v19902_v9 = vcombine.low %v19900_v53, %v19901_v58  ;;  %v19905_v6 = vcombine.low %v19903_v23, %v19904_v24  ;;  %v19924_v53 = vcombine.low %v17886_v52, %v17893_v5  ;;  %v19925_v58 = vcombine.low %v17895_v16, %v17902_v31  ;;  %v14662_v23 = vld [vmem:[#allocation2 + $0x10] sm:$0xff]   ;;  %v14664_v5 = vld [vmem:[#allocation2 + $0x20] sm:$0xff]  }
 0x484   : > { %v19927_v24 = vcombine.low %v17908_v20, %v17910_v18  ;;  %v19929_v16 = vcombine.low %v17920_v26, %v17922_v27  ;;  %v7538_v31 = vshrl.u32 %v14662_v23, 16  ;;  %v7553_v37 = vshll.u32 %v14664_v5, 16 }
 0x485   : > { %v19930_v20 = vcombine.low %v17916_v35, %v17924_v45 }
 0x48a   : > { %13460 = vmatmul.mubr.bf16.gmra.mrb[28].mxu1 %v6778_v34  ;;  %v19911_v34 = vcombine.low %v19909_v48, %v19910_v28  ;;  %v7557_v48 = vshrl.u32 %v14664_v5, 16 }
 0x48b   : > { %13463 = vmatprep.mubr.bf16.mxu1 %v6787_v19  ;;  %v19912_v19 = vld [vmem:[#allocation53_spill] sm:$0xff] }
 0x492   : > { %13464 = vmatmul.mubr.bf16.gmra.mrb[32].mxu1 %v6796_v63  ;;  %v19914_v63 = vcombine.low %v19912_v19, %v19913_v15  ;;  %v14668_v19 = vld [vmem:[#allocation2 + $0x38] sm:$0xff]   ;;  %v14669_v15 = vld [vmem:[%s19137_s1 + $0x3c8] sm:$0xff]  }
 0x493   : > { %13483 = vmatprep.mubr.bf16.mxu1 %v19893_v41  ;;  %v19915_v41 = vld [vmem:[#allocation55_spill] sm:$0xff] }
 0x49a   : > { %13484 = vmatmul.mubr.bf16.vlgmr.msra.gmra.mrb[0].mxu1 %v19896_v38  ;;  %v19918_v38 = vld [vmem:[#allocation57_spill] sm:$0xff] }
 0x49b   : > { %13487 = vmatprep.mubr.bf16.mxu1 %v19899_v51  ;;  %13520 = vmatpush3.bf16.msra.mxu1 %v18312_v1  ;;  %v14651_v1 = vld [vmem:[%s19137_s1 + $0x3a0] sm:$0xff]   ;;  %v19920_v2 = vcombine.low %v19918_v38, %v19919_v59  ;;  %v19921_v51 = vld [vmem:[#allocation59_spill] sm:$0xff] }
 0x49c   : > { %13521 = vmatprep.subr.bf16.mxu1 %v14642_v61  ;;  %v14672_v38 = vld [vmem:[%s19137_s1 + $0x3d0] sm:$0xff]  }
 0x49f   : > { %13522 = vmatpush3.bf16.msra.mxu1 %v14642_v61  ;;  %v19916_v61 = vld [vmem:[#allocation56_spill] sm:$0xff] }
 0x4a0   : > { %13523 = vmatprep.subr.bf16.mxu1 %v14645_v8  ;;  %v19917_v54 = vcombine.low %v19915_v41, %v19916_v61  ;;  %v14670_v41 = vld [vmem:[#allocation2 + $0x40] sm:$0xff]  }
 0x4a2   : > { %13488 = vmatmul.mubr.bf16.gmra.mrb[4].mxu1 %v19902_v9  ;;  %v19926_v9 = vcombine.low %v17904_v17, %v17906_v29 }
 0x4a3   : > { %13491 = vmatprep.mubr.bf16.mxu1 %v19905_v6  ;;  %13524 = vmatpush3.bf16.msra.mxu1 %v14645_v8  ;;  %v19922_v8 = vld [vmem:[#allocation60_spill] sm:$0xff]  ;;  %v7540_v6 = vshll.u32 %v14662_v23, 16 }
 0x4a4   : > { %13525 = vmatprep.subr.bf16.mxu1 %v14648_v50 }
 0x4a5   : > { %v7542_v52 = vrot.slane %v7540_v6, 1  ;;  %v7589_v6 = vshrl.u32 %v14670_v41, 16 }
 0x4a7   : > { %13526 = vmatpush3.bf16.msra.mxu1 %v14648_v50  ;;  %v19923_v50 = vcombine.low %v19921_v51, %v19922_v8  ;;  %v7543_v29 = vor.u32 %v7542_v52, %v7538_v31  ;;  %v7585_v51 = vshll.u32 %v14670_v41, 16  ;;  %v7581_v52 = vshrl.u32 %v14668_v19, 16 }
 0x4a8   : > { %13527 = vmatprep.subr.bf16.mxu1 %v14651_v1 }
 0x4a9   : > { %v7587_v23 = vrot.slane %v7585_v51, 1 }
 0x4aa   : > { %13492 = vmatmul.mubr.bf16.gmra.mrb[8].mxu1 %v19908_v30  ;;  %v14666_v30 = vld [vmem:[#allocation2 + $0x28] sm:$0xff]  }
 0x4ab   : > { %13495 = vmatprep.mubr.bf16.mxu1 %v19911_v34  ;;  %13528 = vmatpush3.bf16.msra.mxu1 %v14651_v1  ;;  %v14663_v1 = vld [vmem:[#allocation2 + $0x18] sm:$0xff]   ;;  %v7561_v28 = vshll.u32 %v14666_v30, 16  ;;  %v7565_v59 = vshrl.u32 %v14666_v30, 16  ;;  %v7591_v5 = vor.u32 %v7589_v6, %v7587_v23 }
 0x4ac   : > { %13529 = vmatprep.subr.bf16.mxu1 %v14654_v7  ;;  %v7545_v17 = vshll.u32 %v14663_v1, 16  ;;  %v7549_v34 = vshrl.u32 %v14663_v1, 16 }
 0x4ae   : > { %v7547_v39 = vrot.slane %v7545_v17, 1 }
 0x4af   : > { %13530 = vmatpush3.bf16.msra.mxu1 %v14654_v7  ;;  %v19928_v7 = vcombine.low %v17912_v10, %v17914_v42  ;;  %v7555_v10 = vrot.slane %v7553_v37, 1  ;;  %v14667_v42 = vld [vmem:[#allocation2 + $0x30] sm:$0xff]   ;;  %v14681_v37 = vld [vmem:[%s19137_s1 + $0x3e8] sm:$0xff]  }
 0x4b0   : > { %13531 = vmatprep.subr.bf16.mxu1 %v14657_v60  ;;  %v7548_v18 = vsel %vm19931_vm13, %v7543_v29, %v7547_v39  ;;  %v7569_v27 = vshll.u32 %v14667_v42, 16  ;;  %v7573_v61 = vshrl.u32 %v14667_v42, 16  ;;  %v14674_v29 = vld [vmem:[#allocation2 + $0x58] sm:$0xff]   ;;  %vm19937_vm13 = vmmov %vm19934_vm2 }
 0x4b1   : > { %v7559_v26 = vor.u32 %v7557_v48, %v7555_v10  ;;  %v7609_v42 = vshll.u32 %v14674_v29, 16  ;;  %v14684_v48 = vld [vmem:[%s19137_s1 + $0x3f0] sm:$0xff]  }
 0x4b2   : > { %13496 = vmatmul.mubr.bf16.gmra.mrb[12].mxu1 %v19914_v63  ;;  %v7571_v63 = vrot.slane %v7569_v27, 1 }
 0x4b3   : > { %13499 = vmatprep.mubr.bf16.mxu1 %v19917_v54  ;;  %13532 = vmatpush3.bf16.msra.mxu1 %v14657_v60  ;;  %v7551_v60 = vor.u32 %v7549_v34, %v7547_v39  ;;  %v7577_v54 = vshll.u32 %v14668_v19, 16  ;;  %v14687_v19 = vld [vmem:[%s19137_s1 + $0x3f8] sm:$0xff]  }
 0x4b4   : > { %13533 = vmatprep.subr.bf16.mxu1 %v14660_v3 }
 0x4b5   : > { %v7556_v35 = vsel %vm19932_vm11, %v7551_v60, %v7555_v10  ;;  %v7611_v60 = vrot.slane %v7609_v42, 1  ;;  %vm19938_vm11 = vmmov %vm19934_vm2 }
 0x4b7   : > { %13534 = vmatpush3.bf16.msra.mxu1 %v14660_v3  ;;  %v7563_v3 = vrot.slane %v7561_v28, 1 }
 0x4b8   : > { %13571 = vmatprep.subr.bf16.mxu1 %v14665_v56 }
 0x4b9   : > { %v7564_v45 = vsel %vm19933_vm5, %v7559_v26, %v7563_v3  ;;  %v7567_v8 = vor.u32 %v7565_v59, %v7563_v3  ;;  %v14677_v3 = vld [vmem:[#allocation2 + $0x68] sm:$0xff]   ;;  %vm19939_vm5 = vmmov %vm19934_vm2 }
 0x4ba   : > { %13500 = vmatmul.mubr.bf16.gmra.mrb[16].mxu1 %v19920_v2  ;;  %v7575_v2 = vor.u32 %v7573_v61, %v7571_v63  ;;  %v7625_v61 = vshll.u32 %v14677_v3, 16  ;;  %v7629_v6 = vshrl.u32 %v14677_v3, 16 }
 0x4bb   : > { %13503 = vmatprep.mubr.bf16.mxu1 %v19923_v50  ;;  %v7579_v50 = vrot.slane %v7577_v54, 1  ;;  %v18446_v54 = vld [vmem:[%s19137_s1 + $0x400] sm:$0xff]  }
 0x4bd   : > { %v7583_v31 = vor.u32 %v7581_v52, %v7579_v50 }
 0x4bf   : > { %v7588_v39 = vsel %vm19936_vm10, %v7583_v31, %v7587_v23  ;;  %vm19941_vm10 = vmmov %vm19934_vm2 }
 0x4c2   : > { %13504 = vmatmul.mubr.bf16.gmra.mrb[20].mxu1 %v19924_v53  ;;  %v14671_v53 = vld [vmem:[#allocation2 + $0x48] sm:$0xff]  }
 0x4c3   : > { %13507 = vmatprep.mubr.bf16.mxu1 %v19925_v58  ;;  %v14675_v58 = vld [vmem:[%s19137_s1 + $0x3d8] sm:$0xff]   ;;  %v7593_v1 = vshll.u32 %v14671_v53, 16  ;;  %v7597_v28 = vshrl.u32 %v14671_v53, 16 }
 0x4c5   : > { %v7595_v17 = vrot.slane %v7593_v1, 1 }
 0x4c7   : > { %v7596_v30 = vsel %vm19937_vm13, %v7591_v5, %v7595_v17  ;;  %v7599_v27 = vor.u32 %v7597_v28, %v7595_v17  ;;  %vm19942_vm13 = vmmov %vm19934_vm2  ;;  %v14686_v28 = vld [vmem:[#allocation2 + $0x98] sm:$0xff]  }
 0x4ca   : > { %13508 = vmatmul.mubr.bf16.gmra.mrb[24].mxu1 %v19926_v9  ;;  %v7580_v9 = vsel %vm19935_vm8, %v7575_v2, %v7579_v50  ;;  %v14680_v50 = vld [vmem:[#allocation2 + $0x78] sm:$0xff]   ;;  %vm19940_vm8 = vmmov %vm19934_vm2 }
 0x4cb   : > { %13511 = vmatprep.mubr.bf16.mxu1 %v19927_v24  ;;  %v14673_v24 = vld [vmem:[#allocation2 + $0x50] sm:$0xff]  }
 0x4cc   : > { %v7605_v10 = vshrl.u32 %v14673_v24, 16 }
 0x4d2   : > { %13512 = vmatmul.mubr.bf16.gmra.mrb[28].mxu1 %v19928_v7  ;;  %v14678_v7 = vld [vmem:[%s19137_s1 + $0x3e0] sm:$0xff]  }
 0x4d3   : > { %13515 = vmatprep.mubr.bf16.mxu1 %v19929_v16  ;;  %v7601_v16 = vshll.u32 %v14673_v24, 16  ;;  %v7641_v24 = vshll.u32 %v14680_v50, 16 }
 0x4d5   : > { %v7643_v5 = vrot.slane %v7641_v24, 1 }
 0x4da   : > { %13516 = vmatmul.mubr.bf16.gmra.mrb[32].mxu1 %v19930_v20  ;;  %v7603_v20 = vrot.slane %v7601_v16, 1  ;;  %v14683_v16 = vld [vmem:[#allocation2 + $0x88] sm:$0xff]  }
 0x4db   : > { %13535 = vmatprep.mubr.bf16.mxu1 %v7548_v18  ;;  %v14676_v18 = vld [vmem:[#allocation2 + $0x60] sm:$0xff]  }
 0x4dc   : > { %v7607_v34 = vor.u32 %v7605_v10, %v7603_v20  ;;  %v7617_v26 = vshll.u32 %v14676_v18, 16  ;;  %v7621_v41 = vshrl.u32 %v14676_v18, 16 }
 0x4e2   : > { %13536 = vmatmul.mubr.bf16.vlgmr.msra.gmra.mrb[0].mxu1 %v7556_v35  ;;  %v7612_v35 = vsel %vm19939_vm5, %v7607_v34, %v7611_v60  ;;  %vm19944_vm5 = vmmov %vm19934_vm2 }
 0x4e3   : > { %13539 = vmatprep.mubr.bf16.mxu1 %v7564_v45  ;;  %13572 = vmatpush3.bf16.msra.mxu1 %v14665_v56  ;;  %v7572_v56 = vsel %vm19934_vm2, %v7567_v8, %v7571_v63  ;;  %v7619_v45 = vrot.slane %v7617_v26, 1  ;;  %v14679_v63 = vld [vmem:[#allocation2 + $0x70] sm:$0xff]   ;;  %v7627_v8 = vrot.slane %v7625_v61, 1  ;;  %v7964_v26 = vld [vmem:[#allocation2 + $0x18] sm:$0xf] }
 0x4e4   : > { %13573 = vmatprep.subr.bf16.mxu1 %v14669_v15  ;;  %v7633_v2 = vshll.u32 %v14679_v63, 16  ;;  %v7637_v23 = vshrl.u32 %v14679_v63, 16  ;;  %v14688_v63 = vld [vmem:[#allocation2 + $0xa0] ss:$0 sps:$4 sm:$0x11]  }
 0x4e5   : > { %v7623_v59 = vor.u32 %v7621_v41, %v7619_v45  ;;  %v7631_v52 = vor.u32 %v7629_v6, %v7627_v8 }
 0x4e7   : > { %13574 = vmatpush3.bf16.msra.mxu1 %v14669_v15  ;;  %v7604_v15 = vsel %vm19938_vm11, %v7599_v27, %v7603_v20  ;;  %v7645_v20 = vshrl.u32 %v14680_v50, 16  ;;  %vm19943_vm11 = vmmov %vm19934_vm2  ;;  %v7677_v50 = vshrl.u32 %v14686_v28, 16 }
 0x4e8   : > { %13575 = vmatprep.subr.bf16.mxu1 %v14672_v38 }
 0x4e9   : > { %v7647_v42 = vor.u32 %v7645_v20, %v7643_v5  ;;  %v14696_v20 = vld [vmem:[%s19137_s1 + $0x408] sm:$0xff]  }
 0x4ea   : > { %13540 = vmatmul.mubr.bf16.gmra.mrb[4].mxu1 %v7572_v56  ;;  %v7635_v56 = vrot.slane %v7633_v2, 1 }
 0x4eb   : > { %13543 = vmatprep.mubr.bf16.mxu1 %v7580_v9  ;;  %13576 = vmatpush3.bf16.msra.mxu1 %v14672_v38  ;;  %v7613_v38 = vshrl.u32 %v14674_v29, 16  ;;  %v14682_v9 = vld [vmem:[#allocation2 + $0x80] sm:$0xff]  }
 0x4ec   : > { %13577 = vmatprep.subr.bf16.mxu1 %v14675_v58  ;;  %v7639_v1 = vor.u32 %v7637_v23, %v7635_v56  ;;  %v7636_v31 = vsel %vm19941_vm10, %v7631_v52, %v7635_v56  ;;  %v19946_v23 = vshll.u32 %v17970_v32, 16  ;;  %vm19947_vm10 = vmmov %vm19934_vm2  ;;  %v19949_v52 = vld [vmem:[#allocation61_spill] sm:$0xff] }
 0x4ed   : > { %v7615_v51 = vor.u32 %v7613_v38, %v7611_v60 }
 0x4ee   : > { %v7644_v17 = vsel %vm19942_vm13, %v7639_v1, %v7643_v5  ;;  %v8121_v24 = vrot.slane %v19946_v23, 1  ;;  %vm19948_vm13 = vmmov %vm19934_vm2  ;;  %v19950_v5 = vshll.u32 %v19949_v52, 16  ;;  %v19970_v23 = vshll.u32 %v17990_v11, 16 }
 0x4ef   : > { %13578 = vmatpush3.bf16.msra.mxu1 %v14675_v58  ;;  %v7620_v53 = vsel %vm19934_vm2, %v7615_v51, %v7619_v45  ;;  %v7628_v58 = vsel %vm19940_vm8, %v7623_v59, %v7627_v8  ;;  %v7661_v45 = vshrl.u32 %v14683_v16, 16  ;;  %v7681_v51 = vshll.u32 %v14688_v63, 16  ;;  %vm19945_vm8 = vmmov %vm19934_vm2 }
 0x4f0   : > { %13579 = vmatprep.subr.bf16.mxu1 %v14678_v7 }
 0x4f1   : > { %v7683_v56 = vrot.slane %v7681_v51, 1  ;;  %v14708_v51 = vld [vmem:[%s19137_s1 + $0x428] sm:$0xff]  }
 0x4f2   : > { %13544 = vmatmul.mubr.bf16.gmra.mrb[8].mxu1 %v7588_v39  ;;  %v7653_v39 = vshrl.u32 %v14682_v9, 16 }
 0x4f3   : > { %13547 = vmatprep.mubr.bf16.mxu1 %v7596_v30  ;;  %13580 = vmatpush3.bf16.msra.mxu1 %v14678_v7  ;;  %v7649_v7 = vshll.u32 %v14682_v9, 16  ;;  %v7657_v30 = vshll.u32 %v14683_v16, 16  ;;  %v8129_v16 = vrot.slane %v19950_v5, 1 }
 0x4f4   : > { %13581 = vmatprep.subr.bf16.mxu1 %v14681_v37 }
 0x4f5   : > { %v7651_v29 = vrot.slane %v7649_v7, 1 }
 0x4f7   : > { %13582 = vmatpush3.bf16.msra.mxu1 %v14681_v37  ;;  %v14685_v37 = vld [vmem:[#allocation2 + $0x90] sm:$0xff]   ;;  %v7655_v18 = vor.u32 %v7653_v39, %v7651_v29  ;;  %v7652_v34 = vsel %vm19943_vm11, %v7647_v42, %v7651_v29  ;;  %v19952_v29 = vshll.u32 %v17974_v21, 16  ;;  %v19953_v39 = vshrl.u32 %v19949_v52, 16  ;;  %vm19954_vm11 = vmmov %vm19934_vm2 }
 0x4f8   : > { %13583 = vmatprep.subr.bf16.mxu1 %v14684_v48  ;;  %v7665_v10 = vshll.u32 %v14685_v37, 16  ;;  %v7669_v3 = vshrl.u32 %v14685_v37, 16 }
 0x4f9   : > { %v8137_v37 = vrot.slane %v19952_v29, 1  ;;  %v19976_v29 = vshll.u32 %v17999_v25, 16 }
 0x4fa   : > { %13548 = vmatmul.mubr.bf16.gmra.mrb[12].mxu1 %v7604_v15  ;;  %v7667_v60 = vrot.slane %v7665_v10, 1  ;;  %v14749_v15 = vld [vmem:[#allocation2 + $0x1c] sm:$0xf] }
 0x4fb   : > { %13551 = vmatprep.mubr.bf16.mxu1 %v7612_v35  ;;  %13584 = vmatpush3.bf16.msra.mxu1 %v14684_v48  ;;  %v7659_v48 = vrot.slane %v7657_v30, 1  ;;  %v11902_v35 = vcombine.low %v7964_v26, %v14749_v15  ;;  %v8133_v30 = vor.u32 %v19953_v39, %v8129_v16  ;;  %v19958_v26 = vld [vmem:[#allocation62_spill] sm:$0xff]  ;;  %v19977_v39 = vshrl.u32 %v17997_v55, 16 }
 0x4fc   : > { %13585 = vmatprep.subr.bf16.mxu1 %v14687_v19  ;;  %v7671_v41 = vor.u32 %v7669_v3, %v7667_v60  ;;  %v19960_v3 = vshrl.u32 %v17976_v33, 16  ;;  %v19963_v63 = vshrl.u32 %v19958_v26, 16 }
 0x4fd   : > { %v7660_v27 = vsel %vm19944_vm5, %v7655_v18, %v7659_v48  ;;  %v7663_v61 = vor.u32 %v7661_v45, %v7659_v48  ;;  %v8114_v59 = vshll.u32 %v11902_v35, 16  ;;  %v8112_v9 = vshrl.u32 %v11902_v35, 16  ;;  %vm19955_vm5 = vmmov %vm19934_vm2  ;;  %v14699_v48 = vld [vmem:[%s19137_s1 + $0x410] sm:$0xff]  }
 0x4fe   : > { %v8138_v10 = vsel %vm19955_vm5, %v8133_v30, %v8137_v37  ;;  %vm19973_vm5 = vmmov %vm19934_vm2 }
 0x4ff   : > { %13586 = vmatpush3.bf16.msra.mxu1 %v14687_v19  ;;  %v7673_v19 = vshll.u32 %v14686_v28, 16  ;;  %v7668_v2 = vsel %vm19934_vm2, %v7663_v61, %v7667_v60  ;;  %v19957_v28 = vshrl.u32 %v17974_v21, 16  ;;  %v19962_v21 = vshll.u32 %v17984_v22, 16 }
 0x500   : > { %13623 = vmatprep.subr.bf16.mxu1 %v18446_v54  ;;  %v19964_v61 = vshll.u32 %v17986_v4, 16 }
 0x501   : > { %v7675_v38 = vrot.slane %v7673_v19, 1  ;;  %v8161_v45 = vrot.slane %v19962_v21, 1 }
 0x502   : > { %13552 = vmatmul.mubr.bf16.gmra.mrb[16].mxu1 %v7620_v53  ;;  %v8116_v53 = vrot.slane %v8114_v59, 1  ;;  %v19965_v59 = vshrl.u32 %v17984_v22, 16  ;;  %v14711_v22 = vld [vmem:[%s19137_s1 + $0x430] sm:$0xff]  }
 0x503   : > { %13555 = vmatprep.mubr.bf16.mxu1 %v7628_v58  ;;  %v7676_v8 = vsel %vm19945_vm8, %v7671_v41, %v7675_v38  ;;  %v7679_v58 = vor.u32 %v7677_v50, %v7675_v38  ;;  %vm19961_vm8 = vmmov %vm19934_vm2  ;;  %v8169_v38 = vrot.slane %v19964_v61, 1  ;;  %v19992_v61 = vshrl.u32 %v18018_v44, 16 }
 0x504   : > { %v8117_v6 = vor.u32 %v8116_v53, %v8112_v9  ;;  %v19968_v53 = vshll.u32 %v17988_v36, 16 }
 0x505   : > { %v7684_v1 = vsel %vm19947_vm10, %v7679_v58, %v7683_v56  ;;  %vm19966_vm10 = vmmov %vm19934_vm2  ;;  %v19969_v56 = vshrl.u32 %v17986_v4, 16  ;;  %v19974_v4 = vshll.u32 %v17997_v55, 16 }
 0x506   : > { %v8122_v7 = vsel %vm19948_vm13, %v8117_v6, %v8121_v24  ;;  %vm19967_vm13 = vmmov %vm19934_vm2  ;;  %v8177_v58 = vrot.slane %v19968_v53, 1  ;;  %v19971_v6 = vshrl.u32 %v17988_v36, 16  ;;  %v14717_v36 = vld [vmem:[%s19137_s1 + $0x440] sm:$0xff]   ;;  %v19996_v53 = vshrl.u32 %v18043_v13, 16 }
 0x507   : > { %v8173_v9 = vor.u32 %v19969_v56, %v8169_v38  ;;  %v19998_v56 = vld [vmem:[#allocation64_spill] sm:$0xff] }
 0x50a   : > { %13556 = vmatmul.mubr.bf16.gmra.mrb[20].mxu1 %v7636_v31  ;;  %v19951_v31 = vshrl.u32 %v17970_v32, 16  ;;  %v19956_v32 = vshll.u32 %v17976_v33, 16  ;;  %v14705_v33 = vld [vmem:[%s19137_s1 + $0x420] sm:$0xff]  }
 0x50b   : > { %13559 = vmatprep.mubr.bf16.mxu1 %v7644_v17 }
 0x50c   : > { %v8125_v17 = vor.u32 %v19951_v31, %v8121_v24  ;;  %v8145_v42 = vrot.slane %v19956_v32, 1  ;;  %v8185_v24 = vrot.slane %v19970_v23, 1  ;;  %v19975_v31 = vshrl.u32 %v17990_v11, 16  ;;  %v20000_v23 = vld [vmem:[#allocation65_spill] sm:$0xff] }
 0x50d   : > { %v19980_v11 = vshrl.u32 %v17999_v25, 16  ;;  %v19987_v25 = vshll.u32 %v18018_v44, 16 }
 0x50e   : > { %v8130_v18 = vsel %vm19954_vm11, %v8125_v17, %v8129_v16  ;;  %v8149_v19 = vor.u32 %v19960_v3, %v8145_v42  ;;  %vm19972_vm11 = vmmov %vm19934_vm2  ;;  %v8193_v16 = vrot.slane %v19974_v4, 1  ;;  %v8189_v17 = vor.u32 %v19975_v31, %v8185_v24  ;;  %v20003_v4 = vld [vmem:[#allocation68_spill] sm:$0xff] }
 0x50f   : > { %v8178_v52 = vsel %vm19972_vm11, %v8173_v9, %v8177_v58  ;;  %vm19989_vm11 = vmmov %vm19934_vm2  ;;  %v19999_v9 = vld [vmem:[#allocation63_spill] sm:$0xff]  ;;  %v14724_v31 = vld [vmem:[%s19137_s1 + $0x478] sm:$0xff]  }
 0x510   : > { %v8197_v30 = vor.u32 %v19977_v39, %v8193_v16  ;;  %v20008_v39 = vld [vmem:[#allocation73_spill] sm:$0xff] }
 0x512   : > { %13560 = vmatmul.mubr.bf16.gmra.mrb[24].mxu1 %v7652_v34  ;;  %v8141_v34 = vor.u32 %v19957_v28, %v8137_v37  ;;  %v8201_v37 = vrot.slane %v19976_v29, 1  ;;  %v20006_v29 = vld [vmem:[#allocation71_spill] sm:$0xff] }
 0x513   : > { %13563 = vmatprep.mubr.bf16.mxu1 %v7660_v27  ;;  %v19959_v27 = vshll.u32 %v19958_v26, 16 }
 0x514   : > { %v8146_v15 = vsel %vm19934_vm2, %v8141_v34, %v8145_v42  ;;  %v8205_v42 = vor.u32 %v19980_v11, %v8201_v37  ;;  %v19982_v34 = vshrl.u32 %v18001_v46, 16  ;;  %v20014_v11 = vld [vmem:[#allocation79_spill] sm:$0xff] }
 0x515   : > { %v8153_v60 = vrot.slane %v19959_v27, 1 }
 0x517   : > { %v8154_v35 = vsel %vm19961_vm8, %v8149_v19, %v8153_v60  ;;  %v8157_v41 = vor.u32 %v19963_v63, %v8153_v60  ;;  %vm19978_vm8 = vmmov %vm19934_vm2  ;;  %v19985_v60 = vshll.u32 %v18009_v12, 16  ;;  %v19986_v19 = vshrl.u32 %v18007_v47, 16 }
 0x519   : > { %v8225_v3 = vrot.slane %v19985_v60, 1  ;;  %v20022_v60 = vld [vmem:[#allocation85_spill] sm:$0xff] }
 0x51a   : > { %13564 = vmatmul.mubr.bf16.gmra.mrb[28].mxu1 %v7668_v2  ;;  %v8165_v2 = vor.u32 %v19965_v59, %v8161_v45 }
 0x51b   : > { %13567 = vmatprep.mubr.bf16.mxu1 %v7676_v8  ;;  %v8162_v8 = vsel %vm19966_vm10, %v8157_v41, %v8161_v45  ;;  %vm19983_vm10 = vmmov %vm19934_vm2  ;;  %v14715_v41 = vld [vmem:[#allocation2 + $0xa8] ss:$0 sps:$4 sm:$0x11]  }
 0x51c   : > { %v8170_v50 = vsel %vm19967_vm13, %v8165_v2, %v8169_v38  ;;  %vm19984_vm13 = vmmov %vm19934_vm2  ;;  %v19993_v38 = vshrl.u32 %v18020_v49, 16  ;;  %v19994_v2 = vshll.u32 %v18043_v13, 16 }
 0x522   : > { %13568 = vmatmul.mubr.bf16.gmra.mrb[32].mxu1 %v7684_v1  ;;  %v8181_v1 = vor.u32 %v19971_v6, %v8177_v58  ;;  %v14720_v6 = vld [vmem:[%s19137_s1 + $0x458] sm:$0xff]  }
 0x523   : > { %13587 = vmatprep.mubr.bf16.mxu1 %v8122_v7  ;;  %v14714_v7 = vld [vmem:[%s19137_s1 + $0x438] sm:$0xff]  }
 0x524   : > { %v8186_v5 = vsel %vm19973_vm5, %v8181_v1, %v8185_v24  ;;  %vm19990_vm5 = vmmov %vm19934_vm2  ;;  %v14719_v24 = vld [vmem:[%s19137_s1 + $0x450] sm:$0xff]   ;;  %v20001_v1 = vld [vmem:[#allocation66_spill] sm:$0xff] }
 0x52a   : > { %13588 = vmatmul.mubr.bf16.vlgmr.msra.gmra.mrb[0].mxu1 %v8130_v18  ;;  %v8202_v18 = vsel %vm19978_vm8, %v8197_v30, %v8201_v37  ;;  %vm19995_vm8 = vmmov %vm19934_vm2  ;;  %v20007_v37 = vld [vmem:[#allocation72_spill] sm:$0xff]  ;;  %v20009_v30 = vld [vmem:[#allocation74_spill] sm:$0xff] }
 0x52b   : > { %13591 = vmatprep.mubr.bf16.mxu1 %v8138_v10  ;;  %13624 = vmatpush3.bf16.msra.mxu1 %v18446_v54  ;;  %v14702_v54 = vld [vmem:[%s19137_s1 + $0x418] sm:$0xff]   ;;  %v19979_v10 = vshll.u32 %v18001_v46, 16 }
 0x52c   : > { %13625 = vmatprep.subr.bf16.mxu1 %v14696_v20 }
 0x52d   : > { %v8209_v32 = vrot.slane %v19979_v10, 1  ;;  %v20012_v10 = vld [vmem:[#allocation77_spill] sm:$0xff] }
 0x52f   : > { %13626 = vmatpush3.bf16.msra.mxu1 %v14696_v20  ;;  %v8194_v20 = vsel %vm19934_vm2, %v8189_v17, %v8193_v16  ;;  %v8213_v55 = vor.u32 %v19982_v34, %v8209_v32  ;;  %v8210_v26 = vsel %vm19983_vm10, %v8205_v42, %v8209_v32  ;;  %vm19997_vm10 = vmmov %vm19934_vm2  ;;  %v20004_v16 = vld [vmem:[#allocation69_spill] sm:$0xff]  ;;  %v20005_v17 = vld [vmem:[#allocation70_spill] sm:$0xff]  ;;  %v8594_v42 = vrot.slane %v14715_v41, 1 }
 0x530   : > { %13627 = vmatprep.subr.bf16.mxu1 %v14699_v48  ;;  %v20013_v32 = vld [vmem:[#allocation78_spill] sm:$0xff]  ;;  %v20017_v34 = vld [vmem:[#allocation80_spill] sm:$0xff] }
 0x532   : > { %13592 = vmatmul.mubr.bf16.gmra.mrb[4].mxu1 %v8146_v15  ;;  %v8233_v15 = vrot.slane %v19987_v25, 1 }
 0x533   : > { %13595 = vmatprep.mubr.bf16.mxu1 %v8154_v35  ;;  %13628 = vmatpush3.bf16.msra.mxu1 %v14699_v48  ;;  %v19981_v48 = vshll.u32 %v18007_v47, 16  ;;  %v19988_v35 = vshrl.u32 %v18009_v12, 16  ;;  %v8249_v12 = vrot.slane %v19994_v2, 1 }
 0x534   : > { %13629 = vmatprep.subr.bf16.mxu1 %v14702_v54  ;;  %v8237_v47 = vor.u32 %v19992_v61, %v8233_v15 }
 0x535   : > { %v8217_v28 = vrot.slane %v19981_v48, 1  ;;  %v8229_v21 = vor.u32 %v19988_v35, %v8225_v3  ;;  %v8253_v58 = vor.u32 %v19996_v53, %v8249_v12  ;;  %v20015_v48 = vrot.slane %v18043_v13, 1  ;;  %v20020_v13 = vld [vmem:[#allocation83_spill] sm:$0xff] }
 0x537   : > { %13630 = vmatpush3.bf16.msra.mxu1 %v14702_v54  ;;  %v8218_v27 = vsel %vm19984_vm13, %v8213_v55, %v8217_v28  ;;  %v8221_v54 = vor.u32 %v19986_v19, %v8217_v28  ;;  %v8234_v45 = vsel %vm19990_vm5, %v8229_v21, %v8233_v15  ;;  %vm20016_vm13 = vcmask 1046528   ;;  %v20018_v55 = vld [vmem:[#allocation81_spill] sm:$0xff]  ;;  %v20027_v15 = vld [vmem:[#allocation91_spill] sm:$0xff]  ;;  %v20028_v21 = vld [vmem:[#allocation88_spill] sm:$0xff] }
 0x538   : > { %13631 = vmatprep.subr.bf16.mxu1 %v14705_v33  ;;  %v8595_v28 = vsel %vm20016_vm13, %v20015_v48, %v8594_v42  ;;  %vm9564_vm13 = vcmask 1042432   ;;  %v20042_v42 = vld [vmem:[#allocation30_spill] sm:$0xff] }
 0x539   : > { %v8226_v46 = vsel %vm19989_vm11, %v8221_v54, %v8225_v3  ;;  %v20025_v3 = vld [vmem:[#allocation89_spill] sm:$0xff]  ;;  %vm20029_vm11 = vsmask.f32 6400 }
 0x53a   : > { %13596 = vmatmul.mubr.bf16.gmra.mrb[8].mxu1 %v8162_v8 }
 0x53b   : > { %13599 = vmatprep.mubr.bf16.mxu1 %v8170_v50  ;;  %13632 = vmatpush3.bf16.msra.mxu1 %v14705_v33  ;;  %v19991_v33 = vshll.u32 %v18020_v49, 16  ;;  %v14718_v49 = vld [vmem:[%s19137_s1 + $0x448] sm:$0xff]  }
 0x53c   : > { %13633 = vmatprep.subr.bf16.mxu1 %v14708_v51 }
 0x53d   : > { %v8241_v63 = vrot.slane %v19991_v33, 1 }
 0x53f   : > { %13634 = vmatpush3.bf16.msra.mxu1 %v14708_v51  ;;  %v8245_v59 = vor.u32 %v19993_v38, %v8241_v63  ;;  %v8255_v51 = vshll.u32 %v14715_v41, 16  ;;  %v8242_v8 = vsel %vm19934_vm2, %v8237_v47, %v8241_v63 }
 0x540   : > { %13635 = vmatprep.subr.bf16.mxu1 %v14711_v22 }
 0x541   : > { %v8250_v50 = vsel %vm19995_vm8, %v8245_v59, %v8249_v12 }
 0x542   : > { %13600 = vmatmul.mubr.bf16.gmra.mrb[12].mxu1 %v8178_v52  ;;  %v14721_v52 = vld [vmem:[%s19137_s1 + $0x460] sm:$0xff]  }
 0x543   : > { %13603 = vmatprep.mubr.bf16.mxu1 %v8186_v5  ;;  %13636 = vmatpush3.bf16.msra.mxu1 %v14711_v22  ;;  %v8257_v22 = vrot.slane %v8255_v51, 1  ;;  %v14722_v5 = vld [vmem:[%s19137_s1 + $0x468] sm:$0xff]  }
 0x544   : > { %13637 = vmatprep.subr.bf16.mxu1 %v14714_v7 }
 0x545   : > { %v8258_v44 = vsel %vm19997_vm10, %v8253_v58, %v8257_v22  ;;  %v20032_v58 = vld [vmem:[#allocation23_spill] sm:$0xff] }
 0x546   : > { %vm20033_vm2 = vnez %v20032_v58 }
 0x547   : > { %13638 = vmatpush3.bf16.msra.mxu1 %v14714_v7  ;;  %v20002_v7 = vld [vmem:[#allocation67_spill] sm:$0xff] }
 0x548   : > { %13675 = vmatprep.subr.bf16.mxu1 %v14717_v36 }
 0x54a   : > { %13604 = vmatmul.mubr.bf16.gmra.mrb[16].mxu1 %v8194_v20  ;;  %v20010_v20 = vld [vmem:[#allocation75_spill] sm:$0xff] }
 0x54b   : > { %13607 = vmatprep.mubr.bf16.mxu1 %v8202_v18  ;;  %v20011_v18 = vld [vmem:[#allocation76_spill] sm:$0xff] }
 0x552   : > { %13608 = vmatmul.mubr.bf16.gmra.mrb[20].mxu1 %v8210_v26  ;;  %v20019_v26 = vld [vmem:[#allocation82_spill] sm:$0xff] }
 0x553   : > { %13611 = vmatprep.mubr.bf16.mxu1 %v8218_v27  ;;  %v20021_v27 = vld [vmem:[#allocation84_spill] sm:$0xff] }
 0x55a   : > { %13612 = vmatmul.mubr.bf16.gmra.mrb[24].mxu1 %v8226_v46 }
 0x55b   : > { %13615 = vmatprep.mubr.bf16.mxu1 %v8234_v45 }
 0x562   : > { %13616 = vmatmul.mubr.bf16.gmra.mrb[28].mxu1 %v8242_v8 }
 0x563   : > { %13619 = vmatprep.mubr.bf16.mxu1 %v8250_v50  ;;  %v20030_v50 = vld [vmem:[#allocation22_spill] sm:$0xff] }
 0x564   : > { %vm20031_vm5 = vnez %v20030_v50 }
 0x56a   : > { %13620 = vmatmul.mubr.bf16.gmra.mrb[32].mxu1 %v8258_v44  ;;  %v20034_v44 = vld [vmem:[#allocation24_spill] sm:$0xff] }
 0x56b   : > { %13639 = vmatprep.mubr.bf16.mxu1 %v19998_v56  ;;  %vm20035_vm8 = vnez %v20034_v44 }
 0x572   : > { %13640 = vmatmul.mubr.bf16.vlgmr.msra.gmra.mrb[0].mxu1 %v19999_v9  ;;  %v20036_v9 = vld [vmem:[#allocation25_spill] sm:$0xff] }
 0x573   : > { %13643 = vmatprep.mubr.bf16.mxu1 %v20000_v23  ;;  %13676 = vmatpush3.bf16.msra.mxu1 %v14717_v36  ;;  %v14723_v36 = vld [vmem:[%s19137_s1 + $0x470] sm:$0xff]   ;;  %vm20037_vm10 = vnez %v20036_v9 }
 0x574   : > { %13677 = vmatprep.subr.bf16.mxu1 %v14718_v49 }
 0x577   : > { %13678 = vmatpush3.bf16.msra.mxu1 %v14718_v49 }
 0x578   : > { %13679 = vmatprep.subr.bf16.mxu1 %v14719_v24 }
 0x57a   : > { %13644 = vmatmul.mubr.bf16.gmra.mrb[4].mxu1 %v20001_v1 }
 0x57b   : > { %13647 = vmatprep.mubr.bf16.mxu1 %v20002_v7  ;;  %13680 = vmatpush3.bf16.msra.mxu1 %v14719_v24 }
 0x57c   : > { %13681 = vmatprep.subr.bf16.mxu1 %v14720_v6 }
 0x57f   : > { %13682 = vmatpush3.bf16.msra.mxu1 %v14720_v6 }
 0x580   : > { %13683 = vmatprep.subr.bf16.mxu1 %v14721_v52 }
 0x582   : > { %13648 = vmatmul.mubr.bf16.gmra.mrb[8].mxu1 %v20003_v4  ;;  %v14760_v4 = vmov 1966171168  }
 0x583   : > { %13651 = vmatprep.mubr.bf16.mxu1 %v20004_v16  ;;  %13684 = vmatpush3.bf16.msra.mxu1 %v14721_v52  ;;  %v9581_v16 = vunpack.c.l.s4 %v14760_v4 }
 0x584   : > { %13685 = vmatprep.subr.bf16.mxu1 %v14722_v5 }
 0x587   : > { %13686 = vmatpush3.bf16.msra.mxu1 %v14722_v5 }
 0x588   : > { %13687 = vmatprep.subr.bf16.mxu1 %v14723_v36 }
 0x58a   : > { %13652 = vmatmul.mubr.bf16.gmra.mrb[12].mxu1 %v20005_v17 }
 0x58b   : > { %13655 = vmatprep.mubr.bf16.mxu1 %v20006_v29  ;;  %13688 = vmatpush3.bf16.msra.mxu1 %v14723_v36 }
 0x58c   : > { %13689 = vmatprep.subr.bf16.mxu1 %v14724_v31 }
 0x58f   : > { %13690 = vmatpush3.bf16.msra.mxu1 %v14724_v31 }
 0x592   : > { %13656 = vmatmul.mubr.bf16.gmra.mrb[16].mxu1 %v20007_v37 }
 0x593   : > { %13659 = vmatprep.mubr.bf16.mxu1 %v20008_v39 }
 0x59a   : > { %13660 = vmatmul.mubr.bf16.gmra.mrb[20].mxu1 %v20009_v30 }
 0x59b   : > { %13663 = vmatprep.mubr.bf16.mxu1 %v20010_v20  ;;  %v9582_v20 = vunpack.c.0.s8 %v9581_v16 }
 0x5a2   : > { %13664 = vmatmul.mubr.bf16.gmra.mrb[24].mxu1 %v20011_v18  ;;  %v20038_v18 = vld [vmem:[#allocation28_spill] sm:$0xff] }
 0x5a3   : > { %13667 = vmatprep.mubr.bf16.mxu1 %v20012_v10 }
 0x5aa   : > { %13668 = vmatmul.mubr.bf16.gmra.mrb[28].mxu1 %v20013_v32  ;;  %v20040_v32 = vld [vmem:[#allocation29_spill] sm:$0xff] }
 0x5ab   : > { %13671 = vmatprep.mubr.bf16.mxu1 %v20014_v11 }
 0x5b2   : > { %13672 = vmatmul.mubr.bf16.gmra.mrb[32].mxu1 %v8595_v28 }
 0x5b3   : > { %13691 = vmatprep.mubr.bf16.mxu1 %v18168_v0  ;;  %v20023_v0 = vld [vmem:[#allocation86_spill] sm:$0xff] }
 0x5ba   : > { %13692 = vmatmul.mubr.bf16.vlgmr.msra.gmra.mrb[0].mxu1 %v20017_v34  ;;  %v20044_v34 = vld [vmem:[#allocation13_spill] sm:$0xff] }
 0x5bb   : > { %13695 = vmatprep.mubr.bf16.mxu1 %v18173_v43  ;;  %v14725_v43 = vld [vmem:[#allocation2 + $0xa8] ss:$0 sps:$4 sm:$0x33]  }
 0x5bc   : > { %v8976_v19 = vshll.u32 %v14725_v43, 16 }
 0x5be   : > { %v8978_v25 = vrot.slane %v8976_v19, 2 }
 0x5c2   : > { %13696 = vmatmul.mubr.bf16.gmra.mrb[4].mxu1 %v18180_v62  ;;  %v20024_v62 = vld [vmem:[#allocation87_spill] sm:$0xff] }
 0x5c3   : > { %13699 = vmatprep.mubr.bf16.mxu1 %v20018_v55 }
 0x5ca   : > { %13700 = vmatmul.mubr.bf16.gmra.mrb[8].mxu1 %v18191_v40  ;;  %v8973_v40 = vshrl.u32 %v14725_v43, 16 }
 0x5cb   : > { %13703 = vmatprep.mubr.bf16.mxu1 %v20019_v26 }
 0x5cc   : > { %v8975_v54 = vrot.slane %v8973_v40, 1 }
 0x5ce   : > { %v8979_v35 = vor.u32 %v8978_v25, %v8975_v54  ;;  %v20048_v54 = vld [vmem:[#allocation5_spill] sm:$0xff] }
 0x5cf   : > { %v18665_v25 = vsub.s32 %v9582_v20, %v20048_v54 }
 0x5d0   : > { %v8980_v46 = vsel %vm20029_vm11, %v20028_v21, %v8979_v35  ;;  %vm9565_vm11 = vcmask 1046532  }
 0x5d1   : > { %vm18658_vm9 = vmor %vm9564_vm13, %vm9565_vm11  ;;  %vm19298_vm13 = vcmask 1040384  }
 0x5d2   : > { %13704 = vmatmul.mubr.bf16.gmra.mrb[12].mxu1 %v18213_v14  ;;  %v20026_v14 = vld [vmem:[#allocation90_spill] sm:$0xff] }
 0x5d3   : > { %13707 = vmatprep.mubr.bf16.mxu1 %v20020_v13 }
 0x5da   : > { %13708 = vmatmul.mubr.bf16.gmra.mrb[16].mxu1 %v20021_v27 }
 0x5db   : > { %13711 = vmatprep.mubr.bf16.mxu1 %v20022_v60 }
 0x5e2   : > { %13712 = vmatmul.mubr.bf16.gmra.mrb[20].mxu1 %v20023_v0 }
 0x5e3   : > { %13715 = vmatprep.mubr.bf16.mxu1 %v18248_v57  ;;  %v18632_v57 = vld [vmem:[%s19138_s2 + $0x1] ss:$0 sm:$0xff] }
 0x5ea   : > { %13716 = vmatmul.mubr.bf16.gmra.mrb[24].mxu1 %v20024_v62 }
 0x5eb   : > { %13719 = vmatprep.mubr.bf16.mxu1 %v20025_v3 }
 0x5f2   : > { %13720 = vmatmul.mubr.bf16.gmra.mrb[28].mxu1 %v20026_v14 }
 0x5f3   : > { %13723 = vmatprep.mubr.bf16.mxu1 %v20027_v15 }
 0x5fa   : > { %13724 = vmatmul.mubr.bf16.gmra.mrb[32].mxu1 %v8980_v46 }
 0x68d   : > { %v13693_v45 = vpop.f32.mrb[0].mxu1 }
 0x68e   : > { %v9270_v33 = vadd.f32 %v13693_v45, %v18632_v57  ;;  %v9081_v63 = vpop.f32.mrb[1].mxu1 }
 0x68f   : > { %v9268_v41 = vadd.f32 %v18632_v57, %v9081_v63  ;;  %v13694_v61 = vpop.f32.mrb[2].mxu1 }
 0x690   : > { %v9306_v47 = vmax.f32 %v9270_v33, 0.0  ;;  %v9271_v38 = vadd.f32 %v13694_v61, %v18632_v57  ;;  %v9084_v59 = vpop.f32.mrb[3].mxu1 }
 0x691   : > { %v9304_v2 = vmax.f32 %v9268_v41, 0.0  ;;  %v9269_v12 = vadd.f32 %v18632_v57, %v9084_v59 }
 0x692   : > { %v9307_v51 = vmax.f32 %v9271_v38, 0.0  ;;  %v9342_v53 = vsel %vm20031_vm5, %v9306_v47, 0.0  ;;  %vm20039_vm5 = vnez %v20038_v18 }
 0x693   : > { %v9305_v8 = vmax.f32 %v9269_v12, 0.0  ;;  %v9340_v56 = vsel %vm20035_vm8, %v9304_v2, 0.0  ;;  %vm20043_vm8 = vnez %v20042_v42  ;;  %v20050_v2 = vld [vmem:[#allocation11_spill] sm:$0xff] }
 0x694   : > { %v9343_v22 = vsel %vm20033_vm2, %v9307_v51, 0.0  ;;  %vm20041_vm2 = vnez %v20040_v32  ;;  %vm20051_vm11 = vnez %v20050_v2 }
 0x695   : > { %v12205_v49 = vpack.c.bf16 %v9343_v22, %v9342_v53  ;;  %v9341_v23 = vsel %vm20037_vm10, %v9305_v8, 0.0  ;;  %v13697_v24 = vpop.f32.mrb[4].mxu1  ;;  %vm20045_vm10 = vnez %v20044_v34 }
 0x696   : > { %v12200_v6 = vpack.c.bf16 %v9341_v23, %v9340_v56  ;;  %v9274_v1 = vadd.f32 %v13697_v24, %v18632_v57  ;;  %v9097_v7 = vpop.f32.mrb[5].mxu1  ;;  %v20052_v23 = vld [vmem:[#allocation7_spill] sm:$0xff] }
 0x697   : > { %12306 = vst [vmem:[#allocation3 + $0x18] sm:$0xff] %v12205_v49   ;;  %v9272_v52 = vadd.f32 %v18632_v57, %v9097_v7  ;;  %v13698_v5 = vpop.f32.mrb[6].mxu1 }
 0x698   : > { %12305 = vst [vmem:[#allocation3 + $0x10] sm:$0xff] %v12200_v6   ;;  %v9310_v36 = vmax.f32 %v9274_v1, 0.0  ;;  %v9275_v31 = vadd.f32 %v13698_v5, %v18632_v57  ;;  %v9100_v17 = vpop.f32.mrb[7].mxu1 }
 0x699   : > { %v9308_v29 = vmax.f32 %v9272_v52, 0.0  ;;  %v9273_v37 = vadd.f32 %v18632_v57, %v9100_v17 }
 0x69a   : > { %v9311_v39 = vmax.f32 %v9275_v31, 0.0  ;;  %v9346_v10 = vsel %vm20039_vm5, %v9310_v36, 0.0  ;;  %vm20053_vm5 = vnez %v20052_v23 }
 0x69b   : > { %v9309_v30 = vmax.f32 %v9273_v37, 0.0  ;;  %v9344_v48 = vsel %vm20043_vm8, %v9308_v29, 0.0  ;;  %vm19296_vm8 = vcmask 1042434  }
 0x69c   : > { %v9347_v11 = vsel %vm20041_vm2, %v9311_v39, 0.0  ;;  %vm19299_vm2 = vcmask 1041409  }
 0x69d   : > { %v12215_v28 = vpack.c.bf16 %v9347_v11, %v9346_v10  ;;  %v9345_v55 = vsel %vm20045_vm10, %v9309_v30, 0.0  ;;  %v13701_v26 = vpop.f32.mrb[8].mxu1  ;;  %vm9754_vm10 = vcmask 1043459  }
 0x69e   : > { %v9558_v13 = vld [vmem:[#allocation3 + $0x18] sm:$0xe]  ;;  %v9559_v27 = vld [vmem:[#allocation3 + $0x1c] sm:$0xf]  ;;  %v12210_v0 = vpack.c.bf16 %v9345_v55, %v9344_v48  ;;  %v9278_v43 = vadd.f32 %v13701_v26, %v18632_v57  ;;  %v9113_v62 = vpop.f32.mrb[9].mxu1 }
 0x69f   : > { %v12017_v3 = vrot.slane %v9558_v13, 9  ;;  %v9569_v40 = vrot.slane %v9559_v27, 5  ;;  %12308 = vst [vmem:[#allocation3 + $0x28] sm:$0xff] %v12215_v28   ;;  %v9276_v19 = vadd.f32 %v18632_v57, %v9113_v62  ;;  %v13702_v14 = vpop.f32.mrb[10].mxu1  ;;  %v9556_v15 = vld [vmem:[#allocation3 + $0x10] sm:$0xf] }
 0x6a0   : > { %12307 = vst [vmem:[#allocation3 + $0x20] sm:$0xff] %v12210_v0   ;;  %v9314_v21 = vmax.f32 %v9278_v43, 0.0  ;;  %v9279_v46 = vadd.f32 %v13702_v14, %v18632_v57  ;;  %v9116_v45 = vpop.f32.mrb[11].mxu1  ;;  %v9557_v10 = vld [vmem:[#allocation3 + $0x14] sm:$0xf] }
 0x6a1   : > { %v9570_v35 = vsel %vm18658_vm9, %v12017_v3, %v9569_v40  ;;  %v9312_v63 = vmax.f32 %v9276_v19, 0.0  ;;  %v9277_v61 = vadd.f32 %v18632_v57, %v9116_v45  ;;  %v9571_v8 = vrot.slane %v9569_v40, 4  ;;  %v20054_v14 = vld [vmem:[#allocation17_spill] sm:$0xff] }
 0x6a2   : > { %v9576_v33 = vmax.bf16 %v9570_v35, %v9556_v15  ;;  %v9315_v41 = vmax.f32 %v9279_v46, 0.0  ;;  %v9350_v59 = vsel %vm16793_vm1, %v9314_v21, 0.0  ;;  %vm20055_vm1 = vnez %v20054_v14 }
 0x6a3   : > { %v9348_v24 = vsel %vm20053_vm5, %v9312_v63, 0.0  ;;  %v9313_v6 = vmax.f32 %v9277_v61, 0.0  ;;  %vm9758_vm5 = vcmask 1045509  }
 0x6a4   : > { %v9586_v47 = vrot.slane %v9576_v33, %v18665_v25  ;;  %v9351_v12 = vsel %vm20051_vm11, %v9315_v41, 0.0  ;;  %vm19297_vm11 = vcmask 1044484  }
 0x6a5   : > { %v13705_v51 = vpop.f32.mrb[12].mxu1  ;;  %v12225_v44 = vpack.c.bf16 %v9351_v12, %v9350_v59  ;;  %v9349_v15 = vsel %vm20055_vm1, %v9313_v6, 0.0  ;;  %vm9760_vm1 = vcmask 1046534  }
 0x6a6   : > { %v9587_v50 = vcombine.high %v9586_v47, %v9586_v47  ;;  %v9594_v53 = vrot.slane %v9586_v47, %v18665_v25  ;;  %v9769_v58 = vld [vmem:[#allocation3 + $0x28] sm:$0x8]  ;;  %v18677_v22 = vld [vmem:[#allocation3 + $0x2c] sm:$0xf]  ;;  %v18684_v4 = vpop.f32.mrb[13].mxu1  ;;  %v18691_v17 = vadd.f32 %v13705_v51, %v18632_v57  ;;  %v12220_v33 = vpack.c.bf16 %v9349_v15, %v9348_v24 }
 0x6a7   : > { %v12018_v56 = vrot.slane %v9769_v58, 9  ;;  %v9777_v49 = vrot.slane %v18677_v22, 5  ;;  %v9560_v9 = vld [vmem:[#allocation3 + $0x20] sm:$0x1]  ;;  %12310 = vst [vmem:[#allocation3 + $0x38] sm:$0xff] %v12225_v44   ;;  %v18693_v29 = vpop.f32.mrb[14].mxu1 }
 0x6a8   : > { %v9601_v1 = vrot.slane %v9587_v50, %v18665_v25  ;;  %v9602_v7 = vcombine.high %v9594_v53, %v9594_v53  ;;  %v9631_v52 = vsel %vm19298_vm13, %v9594_v53, 4286644096  ;;  %v9572_v5 = vrot.slane %v9560_v9, 5  ;;  %v18699_v18 = vpop.f32.mrb[15].mxu1  ;;  %v9766_v28 = vld [vmem:[#allocation3 + $0x20] sm:$0xc] }
 0x6a9   : > { %v9633_v16 = vunpack.i.l.bf16 %v9631_v52  ;;  %v9634_v36 = vunpack.i.h.bf16 %v9631_v52  ;;  %v9778_v31 = vsel %vm18658_vm9, %v12018_v56, %v9777_v49  ;;  %12309 = vst [vmem:[#allocation3 + $0x30] sm:$0xff] %v12220_v33  }
 0x6aa   : > { %v9603_v37 = vcombine.high %v9601_v1, %v9601_v1  ;;  %v9644_v39 = vsel %vm19298_vm13, %v9601_v1, 4286644096  ;;  %v9657_v30 = vsel %vm19298_vm13, %v9602_v7, 4286644096  ;;  %v9573_v20 = vsel %vm18658_vm9, %v9571_v8, %v9572_v5 }
 0x6ab   : > { %v9635_v32 = vmax.f32 %v9633_v16, %v9634_v36  ;;  %v9646_v11 = vunpack.i.l.bf16 %v9644_v39  ;;  %v9647_v42 = vunpack.i.h.bf16 %v9644_v39  ;;  %v9659_v48 = vunpack.i.l.bf16 %v9657_v30 }
 0x6ac   : > { %v9660_v34 = vunpack.i.h.bf16 %v9657_v30  ;;  %v9670_v55 = vsel %vm19298_vm13, %v9603_v37, 4286644096  ;;  %v9577_v26 = vmax.bf16 %v9573_v20, %v9557_v10  ;;  %v9786_v13 = vmax.bf16 %v9778_v31, %v9766_v28 }
 0x6ad   : > { %v9636_v27 = vrot.slane %v9635_v32, 4  ;;  %v9648_v0 = vmax.f32 %v9646_v11, %v9647_v42  ;;  %v9672_v43 = vunpack.i.l.bf16 %v9670_v55  ;;  %v9673_v62 = vunpack.i.h.bf16 %v9670_v55  ;;  %v18702_v3 = vpop.f32.mrb[16].mxu1 }
 0x6ae   : > { %v9661_v40 = vmax.f32 %v9659_v48, %v9660_v34  ;;  %v9610_v19 = vrot.slane %v9577_v26, %v18665_v25  ;;  %v18706_v54 = vrot.slane %v9786_v13, %v18665_v25  ;;  %v18710_v35 = vpop.f32.mrb[17].mxu1 }
 0x6af   : > { %v9637_v21 = vmax.f32 %v9635_v32, %v9636_v27  ;;  %v9649_v46 = vrot.slane %v9648_v0, 4  ;;  %v9674_v45 = vmax.f32 %v9672_v43, %v9673_v62  ;;  %v18712_v63 = vpop.f32.mrb[18].mxu1 }
 0x6b0   : > { %v9662_v41 = vrot.slane %v9661_v40, 4  ;;  %v9611_v61 = vcombine.high %v9610_v19, %v9610_v19  ;;  %v9618_v47 = vrot.slane %v9610_v19, %v18665_v25  ;;  %v9799_v38 = vcombine.high %v18706_v54, %v18706_v54  ;;  %v18717_v59 = vpop.f32.mrb[19].mxu1 }
 0x6b1   : > { %v9638_v2 = vrot.slane %v9637_v21, 2  ;;  %v9650_v12 = vmax.f32 %v9648_v0, %v9649_v46  ;;  %v9675_v51 = vrot.slane %v9674_v45, 4  ;;  %v18721_v8 = vrot.slane %v18706_v54, %v18665_v25 }
 0x6b2   : > { %v9663_v50 = vmax.f32 %v9661_v40, %v9662_v41  ;;  %v9625_v53 = vrot.slane %v9611_v61, %v18665_v25  ;;  %v9626_v58 = vcombine.high %v9618_v47, %v9618_v47  ;;  %v9683_v44 = vsel %vm19298_vm13, %v9618_v47, 4286644096 }
 0x6b3   : > { %v9639_v56 = vmax.f32 %v9637_v21, %v9638_v2  ;;  %v9651_v9 = vrot.slane %v9650_v12, 2  ;;  %v9676_v23 = vmax.f32 %v9674_v45, %v9675_v51  ;;  %v9685_v24 = vunpack.i.l.bf16 %v9683_v44 }
 0x6b4   : > { %v9664_v6 = vrot.slane %v9663_v50, 2  ;;  %v9627_v1 = vcombine.high %v9625_v53, %v9625_v53  ;;  %v9686_v7 = vunpack.i.h.bf16 %v9683_v44  ;;  %v9696_v52 = vsel %vm19298_vm13, %v9625_v53, 4286644096 }
 0x6b5   : > { %v9640_v5 = vrot.slane %v9639_v56, 1  ;;  %v9652_v16 = vmax.f32 %v9650_v12, %v9651_v9  ;;  %v9677_v36 = vrot.slane %v9676_v23, 2  ;;  %v9698_v31 = vunpack.i.l.bf16 %v9696_v52  ;;  %v18728_v46 = vpop.f32.mrb[20].mxu1 }
 0x6b6   : > { %v9665_v37 = vmax.f32 %v9663_v50, %v9664_v6  ;;  %v9687_v39 = vmax.f32 %v9685_v24, %v9686_v7  ;;  %v9699_v30 = vunpack.i.h.bf16 %v9696_v52  ;;  %v9709_v20 = vsel %vm19298_vm13, %v9626_v58, 4286644096  ;;  %v18730_v47 = vpop.f32.mrb[21].mxu1 }
 0x6b7   : > { %v9641_v10 = vmax.f32 %v9639_v56, %v9640_v5  ;;  %v9653_v32 = vrot.slane %v9652_v16, 1  ;;  %v9678_v11 = vmax.f32 %v9676_v23, %v9677_v36  ;;  %v9711_v42 = vunpack.i.l.bf16 %v9709_v20  ;;  %v18733_v53 = vpop.f32.mrb[22].mxu1 }
 0x6b8   : > { %v9666_v48 = vrot.slane %v9665_v37, 1  ;;  %v9688_v28 = vrot.slane %v9687_v39, 4  ;;  %v9700_v34 = vmax.f32 %v9698_v31, %v9699_v30  ;;  %v9712_v55 = vunpack.i.h.bf16 %v9709_v20  ;;  %v18735_v23 = vpop.f32.mrb[23].mxu1 }
 0x6b9   : > { %v9642_v26 = vpack.i.bf16 %v9641_v10, %v9641_v10  ;;  %v9654_v13 = vmax.f32 %v9652_v16, %v9653_v32  ;;  %v9679_v27 = vrot.slane %v9678_v11, 1  ;;  %v9722_v0 = vsel %vm19298_vm13, %v9627_v1, 4286644096 }
 0x6ba   : > { %v9667_v43 = vmax.f32 %v9665_v37, %v9666_v48  ;;  %v9689_v62 = vmax.f32 %v9687_v39, %v9688_v28  ;;  %v9701_v40 = vrot.slane %v9700_v34, 4  ;;  %v9713_v19 = vmax.f32 %v9711_v42, %v9712_v55 }
 0x6bb   : > { %v9655_v54 = vpack.i.bf16 %v9654_v13, %v9654_v13  ;;  %v9680_v14 = vmax.f32 %v9678_v11, %v9679_v27  ;;  %v9734_v15 = vunpack.c.l.bf16 %v9642_v26  ;;  %v9724_v21 = vunpack.i.l.bf16 %v9722_v0  ;;  %v9771_v11 = vld [vmem:[#allocation3 + $0x30] sm:$0x7] }
 0x6bc   : > { %v9668_v45 = vpack.i.bf16 %v9667_v43, %v9667_v43  ;;  %v9690_v33 = vrot.slane %v9689_v62, 2  ;;  %v9702_v41 = vmax.f32 %v9700_v34, %v9701_v40  ;;  %v9714_v61 = vrot.slane %v9713_v19, 4 }
 0x6bd   : > { %v9681_v2 = vpack.i.bf16 %v9680_v14, %v9680_v14  ;;  %v9735_v12 = vunpack.c.l.bf16 %v9655_v54  ;;  %v9725_v51 = vunpack.i.h.bf16 %v9722_v0  ;;  %v9813_v50 = vrot.slane %v9799_v38, %v18665_v25 }
 0x6be   : > { %v9736_v58 = vunpack.c.l.bf16 %v9668_v45  ;;  %v9691_v44 = vmax.f32 %v9689_v62, %v9690_v33  ;;  %v9703_v56 = vrot.slane %v9702_v41, 2  ;;  %v9715_v9 = vmax.f32 %v9713_v19, %v9714_v61 }
 0x6bf   : > { %v9737_v24 = vunpack.c.l.bf16 %v9681_v2  ;;  %v9751_v6 = vsel %vm19299_vm2, %v9735_v12, %v9734_v15  ;;  %v9726_v1 = vmax.f32 %v9724_v21, %v9725_v51  ;;  %v9814_v7 = vcombine.high %v18721_v8, %v18721_v8  ;;  %v18747_v21 = vld [vmem:[#allocation3 + $0x3c] sm:$0xe]  ;;  %v9767_v2 = vld [vmem:[#allocation3 + $0x24] sm:$0xf]  ;;  %v9768_v51 = vld [vmem:[#allocation3 + $0x28] sm:$0x3] }
 0x6c0   : > { %v9753_v52 = vsel %vm19296_vm8, %v9736_v58, %v9751_v6  ;;  %v9692_v5 = vrot.slane %v9691_v44, 1  ;;  %v9704_v38 = vmax.f32 %v9702_v41, %v9703_v56  ;;  %v9716_v16 = vrot.slane %v9715_v9, 2 }
 0x6c1   : > { %v9779_v36 = vrot.slane %v9777_v49, 4  ;;  %v9727_v31 = vrot.slane %v9726_v1, 4  ;;  %v9815_v37 = vcombine.high %v9813_v50, %v9813_v50  ;;  %v9863_v39 = vsel %vm19298_vm13, %v9814_v7, 4286644096 }
 0x6c2   : > { %v9693_v30 = vmax.f32 %v9691_v44, %v9692_v5  ;;  %v9705_v20 = vrot.slane %v9704_v38, 1  ;;  %v9717_v10 = vmax.f32 %v9715_v9, %v9716_v16  ;;  %v9865_v32 = vunpack.i.l.bf16 %v9863_v39 }
 0x6c3   : > { %v9755_v8 = vsel %vm9754_vm10, %v9737_v24, %v9753_v52  ;;  %v9728_v42 = vmax.f32 %v9726_v1, %v9727_v31  ;;  %v9866_v48 = vunpack.i.h.bf16 %v9863_v39  ;;  %v9876_v28 = vsel %vm19298_vm13, %v9815_v37, 4286644096 }
 0x6c4   : > { %v9694_v34 = vpack.i.bf16 %v9693_v30, %v9693_v30  ;;  %v9706_v55 = vmax.f32 %v9704_v38, %v9705_v20  ;;  %v9718_v22 = vrot.slane %v9717_v10, 1  ;;  %v9878_v49 = vunpack.i.l.bf16 %v9876_v28 }
 0x6c5   : > { %v9729_v26 = vrot.slane %v9728_v42, 2  ;;  %v9867_v13 = vmax.f32 %v9865_v32, %v9866_v48  ;;  %v9879_v27 = vunpack.i.h.bf16 %v9876_v28  ;;  %v9780_v0 = vrot.slane %v9771_v11, 5 }
 0x6c6   : > { %v9707_v43 = vpack.i.bf16 %v9706_v55, %v9706_v55  ;;  %v9719_v62 = vmax.f32 %v9717_v10, %v9718_v22  ;;  %v9738_v40 = vunpack.c.l.bf16 %v9694_v34  ;;  %vm19300_vm8 = vcmask 1047559  }
 0x6c7   : > { %v9318_v19 = vmax.f32 %v18691_v17, 0.0  ;;  %v9730_v54 = vmax.f32 %v9728_v42, %v9729_v26  ;;  %v9868_v14 = vrot.slane %v9867_v13, 4  ;;  %v9880_v15 = vmax.f32 %v9878_v49, %v9879_v27 }
 0x6c8   : > { %v9781_v45 = vsel %vm18658_vm9, %v9779_v36, %v9780_v0  ;;  %v9720_v33 = vpack.i.bf16 %v9719_v62, %v9719_v62  ;;  %v9739_v41 = vunpack.c.l.bf16 %v9707_v43  ;;  %v9757_v61 = vsel %vm19297_vm11, %v9738_v40, %v9755_v8  ;;  %v20056_v36 = vld [vmem:[#allocation9_spill] sm:$0xff] }
 0x6c9   : > { %v9782_v12 = vrot.slane %v9780_v0, 4  ;;  %v9731_v50 = vrot.slane %v9730_v54, 1  ;;  %v9869_v58 = vmax.f32 %v9867_v13, %v9868_v14  ;;  %v9881_v44 = vrot.slane %v9880_v15, 4 }
 0x6ca   : > { %v9787_v17 = vmax.bf16 %v9781_v45, %v9767_v2  ;;  %v9740_v56 = vunpack.c.l.bf16 %v9720_v33  ;;  %v9759_v9 = vsel %vm9758_vm5, %v9739_v41, %v9757_v61  ;;  %v12020_v24 = vrot.slane %v18747_v21, 9 }
 0x6cb   : > { %v9788_v6 = vmax.bf16 %v9782_v12, %v9768_v51  ;;  %v9732_v1 = vmax.f32 %v9730_v54, %v9731_v50  ;;  %v9870_v7 = vrot.slane %v9869_v58, 2  ;;  %v9882_v52 = vmax.f32 %v9880_v15, %v9881_v44 }
 0x6cc   : > { %v9822_v5 = vrot.slane %v9787_v17, %v18665_v25  ;;  %v9761_v38 = vsel %vm9760_vm1, %v9740_v56, %v9759_v9  ;;  %vm20057_vm11 = vnez %v20056_v36  ;;  %v9280_v37 = vadd.f32 %v18632_v57, %v18684_v4 }
 0x6cd   : > { %v9846_v16 = vrot.slane %v9788_v6, %v18665_v25  ;;  %v18760_v31 = vsel %vm20057_vm11, %v9318_v19, 0.0  ;;  %v9733_v39 = vpack.i.bf16 %v9732_v1, %v9732_v1  ;;  %v9871_v30 = vmax.f32 %v9869_v58, %v9870_v7 }
 0x6ce   : > { %v9883_v20 = vrot.slane %v9882_v52, 2  ;;  %v9823_v10 = vcombine.high %v9822_v5, %v9822_v5  ;;  %v9830_v32 = vrot.slane %v9822_v5, %v18665_v25  ;;  %v18768_v42 = vadd.f32 %v18693_v29, %v18632_v57 }
 0x6cf   : > { %v9847_v11 = vcombine.high %v9846_v16, %v9846_v16  ;;  %v9854_v8 = vrot.slane %v9846_v16, %v18665_v25  ;;  %v9741_v4 = vunpack.c.l.bf16 %v9733_v39  ;;  %v9872_v48 = vrot.slane %v9871_v30, 1 }
 0x6d0   : > { %v9884_v28 = vmax.f32 %v9882_v52, %v9883_v20  ;;  %v9837_v34 = vrot.slane %v9823_v10, %v18665_v25  ;;  %v9838_v55 = vcombine.high %v9830_v32, %v9830_v32  ;;  %v9889_v49 = vsel %vm19298_vm13, %v9830_v32, 4286644096  ;;  %v18787_v32 = vpop.f32.mrb[24].mxu1 }
 0x6d1   : > { %v9861_v22 = vrot.slane %v9847_v11, %v18665_v25  ;;  %v9941_v26 = vsel %vm19298_vm13, %v9854_v8, 4286644096  ;;  %v9763_v29 = vsel %vm19300_vm8, %v9741_v4, %v9761_v38  ;;  %v9873_v13 = vmax.f32 %v9871_v30, %v9872_v48  ;;  %v20058_v4 = vld [vmem:[#allocation16_spill] sm:$0xff] }
 0x6d2   : > { %v9885_v27 = vrot.slane %v9884_v28, 1  ;;  %v9839_v0 = vcombine.high %v9837_v34, %v9837_v34  ;;  %9765 = vst [vmem:[%s18773_s19] sm:$0xff] %v9763_v29  ;;  %v9891_v43 = vunpack.i.l.bf16 %v9889_v49  ;;  %v9892_v62 = vunpack.i.h.bf16 %v9889_v49 }
 0x6d3   : > { %v9902_v40 = vsel %vm19298_vm13, %v9837_v34, 4286644096  ;;  %v9915_v19 = vsel %vm19298_vm13, %v9838_v55, 4286644096  ;;  %v9874_v54 = vpack.i.bf16 %v9873_v13, %v9873_v13  ;;  %v9316_v58 = vmax.f32 %v9280_v37, 0.0 }
 0x6d4   : > { %v9886_v14 = vmax.f32 %v9884_v28, %v9885_v27  ;;  %v9904_v15 = vunpack.i.l.bf16 %v9902_v40  ;;  %v9905_v45 = vunpack.i.h.bf16 %v9902_v40  ;;  %v9893_v33 = vmax.f32 %v9891_v43, %v9892_v62  ;;  %v18791_v28 = vpop.f32.mrb[25].mxu1 }
 0x6d5   : > { %v9917_v41 = vunpack.i.l.bf16 %v9915_v19  ;;  %v9918_v61 = vunpack.i.h.bf16 %v9915_v19  ;;  %v9928_v2 = vsel %vm19298_vm13, %v9839_v0, 4286644096  ;;  %v9943_v9 = vunpack.i.l.bf16 %v9941_v26 }
 0x6d6   : > { %v9887_v12 = vpack.i.bf16 %v9886_v14, %v9886_v14  ;;  %v9906_v51 = vmax.f32 %v9904_v15, %v9905_v45  ;;  %v9930_v50 = vunpack.i.l.bf16 %v9928_v2  ;;  %v9894_v44 = vrot.slane %v9893_v33, 4 }
 0x6d7   : > { %v9919_v17 = vmax.f32 %v9917_v41, %v9918_v61  ;;  %v9931_v56 = vunpack.i.h.bf16 %v9928_v2  ;;  %v18784_v6 = vunpack.c.l.bf16 %v9874_v54  ;;  %v9944_v7 = vunpack.i.h.bf16 %v9941_v26  ;;  %v18794_v26 = vpop.f32.mrb[26].mxu1  ;;  %v20060_v54 = vld [vmem:[#allocation18_spill] sm:$0xff] }
 0x6d8   : > { %v9907_v1 = vrot.slane %v9906_v51, 4  ;;  %v9954_v52 = vsel %vm19298_vm13, %v9861_v22, 4286644096  ;;  %v9895_v5 = vmax.f32 %v9893_v33, %v9894_v44  ;;  %v9967_v39 = vunpack.c.l.bf16 %v9887_v12  ;;  %v18798_v43 = vpop.f32.mrb[27].mxu1 }
 0x6d9   : > { %v9920_v38 = vrot.slane %v9919_v17, 4  ;;  %v9932_v16 = vmax.f32 %v9930_v50, %v9931_v56  ;;  %v9956_v36 = vunpack.i.l.bf16 %v9954_v52  ;;  %v9945_v20 = vmax.f32 %v9943_v9, %v9944_v7  ;;  %v20062_v9 = vld [vmem:[#allocation12_spill] sm:$0xff] }
 0x6da   : > { %v9908_v30 = vmax.f32 %v9906_v51, %v9907_v1  ;;  %v9957_v10 = vunpack.i.h.bf16 %v9954_v52  ;;  %v9896_v37 = vrot.slane %v9895_v5, 2  ;;  %vm20059_vm11 = vnez %v20058_v4 }
 0x6db   : > { %v9921_v11 = vmax.f32 %v9919_v17, %v9920_v38  ;;  %v9933_v8 = vrot.slane %v9932_v16, 4  ;;  %v9352_v48 = vsel %vm20059_vm11, %v9316_v58, 0.0  ;;  %v9946_v55 = vrot.slane %v9945_v20, 4 }
 0x6dc   : > { %v9909_v34 = vrot.slane %v9908_v30, 2  ;;  %v9958_v22 = vmax.f32 %v9956_v36, %v9957_v10  ;;  %v9319_v49 = vmax.f32 %v18768_v42, 0.0  ;;  %v9897_v29 = vmax.f32 %v9895_v5, %v9896_v37 }
 0x6dd   : > { %v9922_v13 = vrot.slane %v9921_v11, 2  ;;  %v9934_v27 = vmax.f32 %v9932_v16, %v9933_v8  ;;  %v9281_v0 = vadd.f32 %v18632_v57, %v18699_v18  ;;  %v9947_v40 = vmax.f32 %v9945_v20, %v9946_v55 }
 0x6de   : > { %v9910_v62 = vmax.f32 %v9908_v30, %v9909_v34  ;;  %v9959_v19 = vrot.slane %v9958_v22, 4  ;;  %vm20061_vm11 = vnez %v20060_v54  ;;  %v9898_v15 = vrot.slane %v9897_v29, 1 }
 0x6df   : > { %v9355_v14 = vsel %vm20061_vm11, %v9319_v49, 0.0  ;;  %v9923_v45 = vmax.f32 %v9921_v11, %v9922_v13  ;;  %v9935_v33 = vrot.slane %v9934_v27, 2  ;;  %v9948_v61 = vrot.slane %v9947_v40, 2 }
 0x6e0   : > { %v12235_v42 = vpack.c.bf16 %v9355_v14, %v18760_v31  ;;  %v9911_v41 = vrot.slane %v9910_v62, 1  ;;  %v9960_v2 = vmax.f32 %v9958_v22, %v9959_v19  ;;  %v9317_v12 = vmax.f32 %v9281_v0, 0.0 }
 0x6e1   : > { %v9899_v51 = vmax.f32 %v9897_v29, %v9898_v15  ;;  %v9924_v50 = vrot.slane %v9923_v45, 1  ;;  %v9936_v18 = vmax.f32 %v9934_v27, %v9935_v33  ;;  %v9286_v58 = vadd.f32 %v18702_v3, %v18632_v57 }
 0x6e2   : > { %12312 = vst [vmem:[#allocation3 + $0x48] sm:$0xff] %v12235_v42   ;;  %v9912_v44 = vmax.f32 %v9910_v62, %v9911_v41  ;;  %v9949_v17 = vmax.f32 %v9947_v40, %v9948_v61  ;;  %v9961_v56 = vrot.slane %v9960_v2, 2  ;;  %vm20063_vm11 = vnez %v20062_v9  ;;  %v20066_v40 = vld [vmem:[#allocation8_spill] sm:$0xff] }
 0x6e3   : > { %v9353_v1 = vsel %vm20063_vm11, %v9317_v12, 0.0  ;;  %v9900_v7 = vpack.i.bf16 %v9899_v51, %v9899_v51  ;;  %v9925_v52 = vmax.f32 %v9923_v45, %v9924_v50  ;;  %v9937_v31 = vrot.slane %v9936_v18, 1 }
 0x6e4   : > { %v12230_v5 = vpack.c.bf16 %v9353_v1, %v9352_v48  ;;  %v9913_v38 = vpack.i.bf16 %v9912_v44, %v9912_v44  ;;  %v9950_v16 = vrot.slane %v9949_v17, 1  ;;  %v9962_v36 = vmax.f32 %v9960_v2, %v9961_v56  ;;  %v9992_v1 = vld [vmem:[#allocation3 + $0x34] sm:$0xf] }
 0x6e5   : > { %v9322_v30 = vmax.f32 %v9286_v58, 0.0  ;;  %v9926_v20 = vpack.i.bf16 %v9925_v52, %v9925_v52  ;;  %v9938_v10 = vmax.f32 %v9936_v18, %v9937_v31  ;;  %v9968_v37 = vunpack.c.l.bf16 %v9900_v7  ;;  %v20070_v58 = vld [vmem:[#allocation19_spill] sm:$0xff] }
 0x6e6   : > { %12311 = vst [vmem:[#allocation3 + $0x40] sm:$0xff] %v12230_v5   ;;  %v9284_v3 = vadd.f32 %v18632_v57, %v18710_v35  ;;  %v9982_v11 = vsel %vm19299_vm2, %v9967_v39, %v18784_v6  ;;  %v9951_v8 = vmax.f32 %v9949_v17, %v9950_v16  ;;  %v9963_v4 = vrot.slane %v9962_v36, 1  ;;  %v20068_v39 = vld [vmem:[#allocation4_spill] sm:$0xff]  ;;  %v13721_v5 = vpop.f32.mrb[28].mxu1 }
 0x6e7   : > { %v9969_v34 = vunpack.c.l.bf16 %v9913_v38  ;;  %v9939_v55 = vpack.i.bf16 %v9938_v10, %v9938_v10  ;;  %v9970_v22 = vunpack.c.l.bf16 %v9926_v20  ;;  %vm20064_vm11 = vcmask 1042434   ;;  %v9193_v20 = vpop.f32.mrb[29].mxu1  ;;  %v9993_v10 = vld [vmem:[#allocation3 + $0x38] sm:$0xf] }
 0x6e8   : > { %v9983_v48 = vsel %vm20064_vm11, %v9968_v37, %v9982_v11  ;;  %v9320_v49 = vmax.f32 %v9284_v3, 0.0  ;;  %v9952_v29 = vpack.i.bf16 %v9951_v8, %v9951_v8  ;;  %v9964_v13 = vmax.f32 %v9962_v36, %v9963_v4  ;;  %v20075_v36 = vld [vmem:[#allocation10_spill] sm:$0xff]  ;;  %v20077_v37 = vld [vmem:[#allocation20_spill] sm:$0xff]  ;;  %v18850_v8 = vpop.f32.mrb[30].mxu1 }
 0x6e9   : > { %v9984_v27 = vsel %vm9754_vm10, %v9969_v34, %v9983_v48  ;;  %v9287_v0 = vadd.f32 %v18712_v63, %v18632_v57  ;;  %v9971_v62 = vunpack.c.l.bf16 %v9939_v55  ;;  %vm20065_vm13 = vcmask 1044484   ;;  %v18852_v4 = vld [vmem:[#allocation3 + $0x4c] sm:$0x8] }
 0x6ea   : > { %v9985_v35 = vsel %vm20065_vm13, %v9970_v22, %v9984_v27  ;;  %vm20067_vm2 = vnez %v20066_v40  ;;  %vm20069_vm8 = vnez %v20068_v39  ;;  %v9965_v54 = vpack.i.bf16 %v9964_v13, %v9964_v13  ;;  %v20081_v27 = vld [vmem:[#allocation37_spill] sm:$0xff] }
 0x6eb   : > { %v9358_v6 = vsel %vm20067_vm2, %v9322_v30, 0.0  ;;  %v9356_v19 = vsel %vm20069_vm8, %v9320_v49, 0.0  ;;  %v9972_v14 = vunpack.c.l.bf16 %v9952_v29  ;;  %v9323_v15 = vmax.f32 %v9287_v0, 0.0  ;;  %v18859_v49 = vpop.f32.mrb[31].mxu1  ;;  %v20079_v29 = vld [vmem:[#allocation36_spill] sm:$0xff] }
 0x6ec   : > { %v9285_v45 = vadd.f32 %v18632_v57, %v18717_v59  ;;  %v9986_v33 = vsel %vm9758_vm5, %v9971_v62, %v9985_v35  ;;  %v9290_v63 = vadd.f32 %v18728_v46, %v18632_v57  ;;  %v9288_v42 = vadd.f32 %v18632_v57, %v18730_v47 }
 0x6ed   : > { %v9291_v41 = vadd.f32 %v18733_v53, %v18632_v57  ;;  %v9973_v61 = vunpack.c.l.bf16 %v9965_v54  ;;  %v9987_v2 = vsel %vm9760_vm1, %v9972_v14, %v9986_v33  ;;  %v9995_v12 = vld [vmem:[#allocation3 + $0x40] sm:$0xf]  ;;  %v9996_v51 = vld [vmem:[#allocation3 + $0x44] sm:$0x1]  ;;  %v9289_v59 = vadd.f32 %v18632_v57, %v18735_v23 }
 0x6ee   : > { %v9294_v50 = vadd.f32 %v18787_v32, %v18632_v57  ;;  %v10002_v18 = vrot.slane %v9995_v12, 5  ;;  %v10005_v46 = vrot.slane %v9996_v51, 5  ;;  %vm20071_vm13 = vnez %v20070_v58  ;;  %v20073_v32 = vld [vmem:[#allocation26_spill] sm:$0xff] }
 0x6ef   : > { %v9359_v47 = vsel %vm20071_vm13, %v9323_v15, 0.0  ;;  %v9321_v44 = vmax.f32 %v9285_v45, 0.0  ;;  %vm20072_vm2 = vcmask 1047559   ;;  %v9326_v56 = vmax.f32 %v9290_v63, 0.0 }
 0x6f0   : > { %v9988_v17 = vsel %vm20072_vm2, %v9973_v61, %v9987_v2  ;;  %v12245_v53 = vpack.c.bf16 %v9359_v47, %v9358_v6  ;;  %v9324_v9 = vmax.f32 %v9288_v42, 0.0  ;;  %v10003_v23 = vsel %vm18658_vm9, %v12020_v24, %v10002_v18 }
 0x6f1   : > { %12019 = vst [vmem:[%s18773_s19 + $0x8] sm:$0xff] %v9988_v17  ;;  %v10004_v7 = vrot.slane %v10002_v18, 4  ;;  %vm20074_vm8 = vnez %v20073_v32  ;;  %v9327_v31 = vmax.f32 %v9291_v41, 0.0  ;;  %v10009_v38 = vmax.bf16 %v10003_v23, %v9992_v1  ;;  %v18893_v18 = vpop.f32.mrb[32].mxu1 }
 0x6f2   : > { %v9357_v52 = vsel %vm20074_vm8, %v9321_v44, 0.0  ;;  %12314 = vst [vmem:[#allocation3 + $0x58] sm:$0xff] %v12245_v53   ;;  %vm20076_vm11 = vnez %v20075_v36  ;;  %vm20078_vm13 = vnez %v20077_v37  ;;  %v9325_v3 = vmax.f32 %v9289_v59, 0.0 }
 0x6f3   : > { %v12240_v16 = vpack.c.bf16 %v9357_v52, %v9356_v19  ;;  %v9362_v30 = vsel %vm20076_vm11, %v9326_v56, 0.0  ;;  %v10006_v21 = vsel %vm18658_vm9, %v10004_v7, %v10005_v46  ;;  %v9363_v24 = vsel %vm20078_vm13, %v9327_v31, 0.0 }
 0x6f4   : > { %v9330_v11 = vmax.f32 %v9294_v50, 0.0  ;;  %v10010_v34 = vmax.bf16 %v10006_v21, %v9993_v10  ;;  %v10019_v55 = vrot.slane %v10009_v38, %v18665_v25  ;;  %v12255_v22 = vpack.c.bf16 %v9363_v24, %v9362_v30 }
 0x6f5   : > { %12313 = vst [vmem:[#allocation3 + $0x50] sm:$0xff] %v12240_v16   ;;  %v18857_v48 = vadd.f32 %v18632_v57, %v18791_v28  ;;  %vm20080_vm2 = vnez %v20079_v29  ;;  %vm20082_vm8 = vnez %v20081_v27  ;;  %v18867_v62 = vadd.f32 %v18794_v26, %v18632_v57 }
 0x6f6   : > { %v9360_v13 = vsel %vm20080_vm2, %v9324_v9, 0.0  ;;  %v9361_v0 = vsel %vm20082_vm8, %v9325_v3, 0.0  ;;  %v18871_v35 = vadd.f32 %v18632_v57, %v18798_v43  ;;  %v10020_v40 = vcombine.high %v10019_v55, %v10019_v55  ;;  %12316 = vst [vmem:[#allocation3 + $0x68] sm:$0xff] %v12255_v22  }
 0x6f7   : > { %v10027_v28 = vrot.slane %v10019_v55, %v18665_v25  ;;  %v10043_v6 = vrot.slane %v10010_v34, %v18665_v25  ;;  %v12250_v39 = vpack.c.bf16 %v9361_v0, %v9360_v13  ;;  %v12022_v19 = vrot.slane %v18852_v4, 9 }
 0x6f8   : > { %v18878_v14 = vsel %vm17317_vm6, %v9330_v11, 0.0  ;;  %v9328_v26 = vmax.f32 %v18857_v48, 0.0  ;;  %v9331_v15 = vmax.f32 %v18867_v62, 0.0  ;;  %v10034_v43 = vrot.slane %v10020_v40, %v18665_v25 }
 0x6f9   : > { %v10035_v45 = vcombine.high %v10027_v28, %v10027_v28  ;;  %v10044_v33 = vcombine.high %v10043_v6, %v10043_v6  ;;  %v10051_v63 = vrot.slane %v10043_v6, %v18665_v25  ;;  %12315 = vst [vmem:[#allocation3 + $0x60] sm:$0xff] %v12250_v39   ;;  %vm20084_vm11 = vcmask 1040384  }
 0x6fa   : > { %v10062_v42 = vsel %vm20084_vm11, %v10027_v28, 4286644096  ;;  %v9329_v41 = vmax.f32 %v18871_v35, 0.0  ;;  %v18887_v61 = vadd.f32 %v13721_v5, %v18632_v57  ;;  %v18890_v2 = vadd.f32 %v18632_v57, %v9193_v20  ;;  %vm20085_vm6 = vmmov %vm20084_vm11  ;;  %v18898_v57 = vpop.f32.mrb[33].mxu1 }
 0x6fb   : > { %v10036_v12 = vcombine.high %v10034_v43, %v10034_v43  ;;  %v10058_v51 = vrot.slane %v10044_v33, %v18665_v25  ;;  %v10059_v59 = vcombine.high %v10051_v63, %v10051_v63  ;;  %v10064_v50 = vunpack.i.l.bf16 %v10062_v42  ;;  %vm20086_vm13 = vmmov %vm20085_vm6  ;;  %v18901_v16 = vpop.f32.mrb[34].mxu1 }
 0x6fc   : > { %v10065_v46 = vunpack.i.h.bf16 %v10062_v42  ;;  %v10075_v58 = vsel %vm20085_vm6, %v10034_v43, 4286644096  ;;  %v10088_v47 = vsel %vm20086_vm13, %v10035_v45, 4286644096  ;;  %vm20087_vm2 = vmmov %vm20085_vm6 }
 0x6fd   : > { %v10114_v44 = vsel %vm20087_vm2, %v10051_v63, 4286644096  ;;  %v10060_v17 = vcombine.high %v10058_v51, %v10058_v51  ;;  %v10077_v53 = vunpack.i.l.bf16 %v10075_v58  ;;  %v10078_v56 = vunpack.i.h.bf16 %v10075_v58  ;;  %vm20088_vm8 = vmmov %vm20087_vm2 }
 0x6fe   : > { %v10090_v9 = vunpack.i.l.bf16 %v10088_v47  ;;  %v10066_v1 = vmax.f32 %v10064_v50, %v10065_v46  ;;  %v10091_v23 = vunpack.i.h.bf16 %v10088_v47  ;;  %v10101_v7 = vsel %vm20088_vm8, %v10036_v12, 4286644096  ;;  %vm20089_vm11 = vmmov %vm20087_vm2 }
 0x6ff   : > { %v10116_v32 = vunpack.i.l.bf16 %v10114_v44  ;;  %v10079_v52 = vmax.f32 %v10077_v53, %v10078_v56  ;;  %v10103_v31 = vunpack.i.l.bf16 %v10101_v7  ;;  %v10104_v5 = vunpack.i.h.bf16 %v10101_v7  ;;  %vm20090_vm6 = vmmov %vm20087_vm2 }
 0x700   : > { %v10117_v38 = vunpack.i.h.bf16 %v10114_v44  ;;  %v10067_v36 = vrot.slane %v10066_v1, 4  ;;  %v10092_v30 = vmax.f32 %v10090_v9, %v10091_v23  ;;  %v10127_v20 = vsel %vm20089_vm11, %v10058_v51, 4286644096  ;;  %vm20091_vm13 = vmmov %vm20087_vm2 }
 0x701   : > { %v10140_v10 = vsel %vm20090_vm6, %v10059_v59, 4286644096  ;;  %v10080_v21 = vrot.slane %v10079_v52, 4  ;;  %v10105_v37 = vmax.f32 %v10103_v31, %v10104_v5  ;;  %v10129_v3 = vunpack.i.l.bf16 %v10127_v20 }
 0x702   : > { %v10118_v24 = vmax.f32 %v10116_v32, %v10117_v38  ;;  %v10068_v11 = vmax.f32 %v10066_v1, %v10067_v36  ;;  %v10093_v34 = vrot.slane %v10092_v30, 4  ;;  %v10130_v55 = vunpack.i.h.bf16 %v10127_v20  ;;  %v18906_v20 = vpop.f32.mrb[35].mxu1 }
 0x703   : > { %v10142_v22 = vunpack.i.l.bf16 %v10140_v10  ;;  %v10081_v29 = vmax.f32 %v10079_v52, %v10080_v21  ;;  %v10106_v13 = vrot.slane %v10105_v37, 4  ;;  %v10143_v0 = vunpack.i.h.bf16 %v10140_v10 }
 0x704   : > { %v10119_v27 = vrot.slane %v10118_v24, 4  ;;  %v10069_v40 = vrot.slane %v10068_v11, 2  ;;  %v10094_v28 = vmax.f32 %v10092_v30, %v10093_v34  ;;  %v10131_v6 = vmax.f32 %v10129_v3, %v10130_v55 }
 0x705   : > { %v10153_v39 = vsel %vm20091_vm13, %v10060_v17, 4286644096  ;;  %v10082_v54 = vrot.slane %v10081_v29, 2  ;;  %v10107_v43 = vmax.f32 %v10105_v37, %v10106_v13  ;;  %v10144_v33 = vmax.f32 %v10142_v22, %v10143_v0  ;;  %v10195_v22 = vld [vmem:[#allocation3 + $0x50] sm:$0xf] }
 0x706   : > { %v10120_v45 = vmax.f32 %v10118_v24, %v10119_v27  ;;  %v10070_v63 = vmax.f32 %v10068_v11, %v10069_v40  ;;  %v10095_v42 = vrot.slane %v10094_v28, 2  ;;  %v10132_v12 = vrot.slane %v10131_v6, 4 }
 0x707   : > { %v10155_v51 = vunpack.i.l.bf16 %v10153_v39  ;;  %v10083_v59 = vmax.f32 %v10081_v29, %v10082_v54  ;;  %v10108_v50 = vrot.slane %v10107_v43, 2  ;;  %v10145_v58 = vrot.slane %v10144_v33, 4 }
 0x708   : > { %v10121_v46 = vrot.slane %v10120_v45, 2  ;;  %v10071_v47 = vrot.slane %v10070_v63, 1  ;;  %v10096_v44 = vmax.f32 %v10094_v28, %v10095_v42  ;;  %v10133_v53 = vmax.f32 %v10131_v6, %v10132_v12 }
 0x709   : > { %v10156_v56 = vunpack.i.h.bf16 %v10153_v39  ;;  %v10084_v9 = vrot.slane %v10083_v59, 1  ;;  %v10109_v1 = vmax.f32 %v10107_v43, %v10108_v50  ;;  %v10146_v17 = vmax.f32 %v10144_v33, %v10145_v58  ;;  %v10196_v33 = vld [vmem:[#allocation3 + $0x54] sm:$0x7] }
 0x70a   : > { %v10122_v23 = vmax.f32 %v10120_v45, %v10121_v46  ;;  %v10072_v7 = vmax.f32 %v10070_v63, %v10071_v47  ;;  %v10097_v32 = vrot.slane %v10096_v44, 1  ;;  %v10134_v52 = vrot.slane %v10133_v53, 2 }
 0x70b   : > { %v10157_v31 = vmax.f32 %v10155_v51, %v10156_v56  ;;  %v10085_v5 = vmax.f32 %v10083_v59, %v10084_v9  ;;  %v10110_v38 = vrot.slane %v10109_v1, 1  ;;  %v10147_v30 = vrot.slane %v10146_v17, 2  ;;  %v10191_v56 = vld [vmem:[#allocation3 + $0x44] sm:$0xc] }
 0x70c   : > { %v10123_v36 = vrot.slane %v10122_v23, 1  ;;  %v10073_v10 = vpack.i.bf16 %v10072_v7, %v10072_v7  ;;  %v10098_v21 = vmax.f32 %v10096_v44, %v10097_v32  ;;  %v10135_v37 = vmax.f32 %v10133_v53, %v10134_v52 }
 0x70d   : > { %v10158_v24 = vrot.slane %v10157_v31, 4  ;;  %v10086_v3 = vpack.i.bf16 %v10085_v5, %v10085_v5  ;;  %v10111_v11 = vmax.f32 %v10109_v1, %v10110_v38  ;;  %v10148_v55 = vmax.f32 %v10146_v17, %v10147_v30  ;;  %v10420_v5 = vld [vmem:[#allocation3 + $0x64] sm:$0xf]  ;;  %v10192_v38 = vld [vmem:[#allocation3 + $0x48] sm:$0xf] }
 0x70e   : > { %v10124_v34 = vmax.f32 %v10122_v23, %v10123_v36  ;;  %v10099_v29 = vpack.i.bf16 %v10098_v21, %v10098_v21  ;;  %v10136_v13 = vrot.slane %v10135_v37, 1  ;;  %v10165_v0 = vunpack.c.l.bf16 %v10073_v10  ;;  %v10421_v23 = vld [vmem:[#allocation3 + $0x68] sm:$0x1]  ;;  %v18921_v30 = vld [vmem:[%s19138_s2 + $0x1] ss:$0 sm:$0xff] }
 0x70f   : > { %v10159_v27 = vmax.f32 %v10157_v31, %v10158_v24  ;;  %v10112_v40 = vpack.i.bf16 %v10111_v11, %v10111_v11  ;;  %v10149_v6 = vrot.slane %v10148_v55, 1  ;;  %v10166_v39 = vunpack.c.l.bf16 %v10086_v3  ;;  %v10419_v31 = vld [vmem:[#allocation3 + $0x60] sm:$0xe]  ;;  %v10193_v21 = vld [vmem:[#allocation3 + $0x4c] sm:$0x3] }
 0x710   : > { %v10125_v28 = vpack.i.bf16 %v10124_v34, %v10124_v34  ;;  %v10137_v54 = vmax.f32 %v10135_v37, %v10136_v13  ;;  %v10167_v45 = vunpack.c.l.bf16 %v10099_v29  ;;  %v10202_v63 = vrot.slane %v10195_v22, 5 }
 0x711   : > { %v10160_v43 = vrot.slane %v10159_v27, 2  ;;  %v10150_v42 = vmax.f32 %v10148_v55, %v10149_v6  ;;  %v10168_v12 = vunpack.c.l.bf16 %v10112_v40  ;;  %vm20092_vm2 = vcmask 1041409  }
 0x712   : > { %v10169_v51 = vunpack.c.l.bf16 %v10125_v28  ;;  %v10181_v59 = vsel %vm20092_vm2, %v10166_v39, %v10165_v0  ;;  %v10138_v50 = vpack.i.bf16 %v10137_v54, %v10137_v54  ;;  %vm20093_vm8 = vcmask 1042434   ;;  %vm20096_vm2 = vmmov %vm20091_vm13 }
 0x713   : > { %v10161_v46 = vmax.f32 %v10159_v27, %v10160_v43  ;;  %v10182_v58 = vsel %vm20093_vm8, %v10167_v45, %v10181_v59  ;;  %v10203_v47 = vsel %vm18658_vm9, %v12022_v19, %v10202_v63  ;;  %v10151_v44 = vpack.i.bf16 %v10150_v42, %v10150_v42  ;;  %vm20097_vm8 = vmmov %vm20096_vm2 }
 0x714   : > { %v10183_v53 = vsel %vm9754_vm10, %v10168_v12, %v10182_v58  ;;  %v10204_v9 = vrot.slane %v10202_v63, 4  ;;  %v10205_v1 = vrot.slane %v10196_v33, 5  ;;  %v10170_v7 = vunpack.c.l.bf16 %v10138_v50 }
 0x715   : > { %v10162_v17 = vrot.slane %v10161_v46, 1  ;;  %vm20094_vm11 = vcmask 1044484   ;;  %v10211_v52 = vmax.bf16 %v10203_v47, %v10191_v56  ;;  %v10171_v36 = vunpack.c.l.bf16 %v10151_v44 }
 0x716   : > { %v10184_v32 = vsel %vm20094_vm11, %v10169_v51, %v10183_v53  ;;  %v10206_v4 = vsel %vm18658_vm9, %v10204_v9, %v10205_v1  ;;  %v10207_v19 = vrot.slane %v10205_v1, 4  ;;  %v18925_v10 = vadd.f32 %v18921_v30, %v18850_v8  ;;  %vm20098_vm11 = vmmov %vm20096_vm2 }
 0x717   : > { %v10163_v37 = vmax.f32 %v10161_v46, %v10162_v17  ;;  %v10185_v24 = vsel %vm9758_vm5, %v10170_v7, %v10184_v32  ;;  %v10212_v3 = vmax.bf16 %v10206_v4, %v10192_v38  ;;  %v10223_v11 = vrot.slane %v10211_v52, %v18665_v25 }
 0x718   : > { %v10213_v34 = vmax.bf16 %v10207_v19, %v10193_v21  ;;  %v10430_v55 = vrot.slane %v10421_v23, 5  ;;  %v12024_v22 = vrot.slane %v10419_v31, 9  ;;  %v10427_v29 = vrot.slane %v10420_v5, 5 }
 0x719   : > { %v10164_v13 = vpack.i.bf16 %v10163_v37, %v10163_v37  ;;  %v10224_v27 = vcombine.high %v10223_v11, %v10223_v11  ;;  %v10231_v0 = vrot.slane %v10223_v11, %v18665_v25  ;;  %v10247_v40 = vrot.slane %v10212_v3, %v18665_v25 }
 0x71a   : > { %v10186_v8 = vsel %vm9760_vm1, %v10171_v36, %v10185_v24  ;;  %v10271_v28 = vrot.slane %v10213_v34, %v18665_v25  ;;  %v18935_v6 = vsel %vm18658_vm9, %v12024_v22, %v10427_v29  ;;  %v10429_v39 = vrot.slane %v10427_v29, 4 }
 0x71b   : > { %v10172_v54 = vunpack.c.l.bf16 %v10164_v13  ;;  %v10238_v43 = vrot.slane %v10224_v27, %v18665_v25  ;;  %v10239_v45 = vcombine.high %v10231_v0, %v10231_v0  ;;  %v10248_v33 = vcombine.high %v10247_v40, %v10247_v40 }
 0x71c   : > { %v10255_v63 = vrot.slane %v10247_v40, %v18665_v25  ;;  %v10272_v42 = vcombine.high %v10271_v28, %v10271_v28  ;;  %v10279_v12 = vrot.slane %v10271_v28, %v18665_v25  ;;  %v18942_v51 = vsel %vm18658_vm9, %v10429_v39, %v10430_v55 }
 0x71d   : > { %vm20095_vm6 = vcmask 1047559   ;;  %v10240_v50 = vcombine.high %v10238_v43, %v10238_v43  ;;  %v10262_v46 = vrot.slane %v10248_v33, %v18665_v25  ;;  %v10288_v58 = vsel %vm20091_vm13, %v10239_v45, 4286644096  ;;  %vm20100_vm13 = vmmov %vm20096_vm2 }
 0x71e   : > { %v10187_v59 = vsel %vm20095_vm6, %v10172_v54, %v10186_v8  ;;  %v10263_v47 = vcombine.high %v10255_v63, %v10255_v63  ;;  %v10286_v44 = vrot.slane %v10272_v42, %v18665_v25  ;;  %v10290_v53 = vunpack.i.l.bf16 %v10288_v58  ;;  %vm20099_vm6 = vmmov %vm20096_vm2 }
 0x71f   : > { %12021 = vst [vmem:[%s18773_s19 + $0x10] sm:$0xff] %v10187_v59  ;;  %v10291_v56 = vunpack.i.h.bf16 %v10288_v58  ;;  %v10264_v9 = vcombine.high %v10262_v46, %v10262_v46  ;;  %v10301_v1 = vsel %vm20096_vm2, %v10240_v50, 4286644096  ;;  %v10314_v23 = vsel %vm20097_vm8, %v10255_v63, 4286644096  ;;  %vm20101_vm8 = vmmov %vm20096_vm2 }
 0x720   : > { %v10327_v17 = vsel %vm20098_vm11, %v10262_v46, 4286644096  ;;  %v10303_v32 = vunpack.i.l.bf16 %v10301_v1  ;;  %v10304_v52 = vunpack.i.h.bf16 %v10301_v1  ;;  %v10316_v31 = vunpack.i.l.bf16 %v10314_v23 }
 0x721   : > { %v10292_v7 = vmax.f32 %v10290_v53, %v10291_v56  ;;  %v10317_v5 = vunpack.i.h.bf16 %v10314_v23  ;;  %v10329_v38 = vunpack.i.l.bf16 %v10327_v17  ;;  %v10330_v36 = vunpack.i.h.bf16 %v10327_v17 }
 0x722   : > { %v10340_v4 = vsel %vm20099_vm6, %v10263_v47, 4286644096  ;;  %v10305_v21 = vmax.f32 %v10303_v32, %v10304_v52  ;;  %v10353_v34 = vsel %vm20100_vm13, %v10264_v9, 4286644096  ;;  %v10366_v55 = vsel %vm20096_vm2, %v10279_v12, 4286644096 }
 0x723   : > { %v10293_v19 = vrot.slane %v10292_v7, 4  ;;  %v10342_v37 = vunpack.i.l.bf16 %v10340_v4  ;;  %v10343_v24 = vunpack.i.h.bf16 %v10340_v4  ;;  %v10318_v3 = vmax.f32 %v10316_v31, %v10317_v5 }
 0x724   : > { %v10331_v11 = vmax.f32 %v10329_v38, %v10330_v36  ;;  %v10306_v29 = vrot.slane %v10305_v21, 4  ;;  %v10355_v27 = vunpack.i.l.bf16 %v10353_v34  ;;  %v10356_v8 = vunpack.i.h.bf16 %v10353_v34 }
 0x725   : > { %v10294_v22 = vmax.f32 %v10292_v7, %v10293_v19  ;;  %v10344_v13 = vmax.f32 %v10342_v37, %v10343_v24  ;;  %v10319_v0 = vrot.slane %v10318_v3, 4  ;;  %v10368_v28 = vunpack.i.l.bf16 %v10366_v55 }
 0x726   : > { %v10332_v40 = vrot.slane %v10331_v11, 4  ;;  %v10307_v54 = vmax.f32 %v10305_v21, %v10306_v29  ;;  %v10369_v45 = vunpack.i.h.bf16 %v10366_v55  ;;  %v10357_v42 = vmax.f32 %v10355_v27, %v10356_v8 }
 0x727   : > { %v10295_v39 = vrot.slane %v10294_v22, 2  ;;  %v10345_v43 = vrot.slane %v10344_v13, 4  ;;  %v10320_v33 = vmax.f32 %v10318_v3, %v10319_v0  ;;  %v10379_v59 = vsel %vm20101_vm8, %v10286_v44, 4286644096  ;;  %vm20107_vm8 = vmmov %vm20096_vm2 }
 0x728   : > { %v10333_v63 = vmax.f32 %v10331_v11, %v10332_v40  ;;  %v10308_v46 = vrot.slane %v10307_v54, 2  ;;  %v10370_v58 = vmax.f32 %v10368_v28, %v10369_v45  ;;  %v10358_v56 = vrot.slane %v10357_v42, 4 }
 0x729   : > { %v10296_v50 = vmax.f32 %v10294_v22, %v10295_v39  ;;  %v10346_v12 = vmax.f32 %v10344_v13, %v10345_v43  ;;  %v10321_v47 = vrot.slane %v10320_v33, 2  ;;  %v10381_v9 = vunpack.i.l.bf16 %v10379_v59  ;;  %v10417_v39 = vld [vmem:[#allocation3 + $0x58] sm:$0xf] }
 0x72a   : > { %v10334_v53 = vrot.slane %v10333_v63, 2  ;;  %v10309_v23 = vmax.f32 %v10307_v54, %v10308_v46  ;;  %v10371_v7 = vrot.slane %v10370_v58, 4  ;;  %v10359_v31 = vmax.f32 %v10357_v42, %v10358_v56  ;;  %v10418_v46 = vld [vmem:[#allocation3 + $0x5c] sm:$0xf] }
 0x72b   : > { %v10297_v1 = vrot.slane %v10296_v50, 1  ;;  %v10347_v17 = vrot.slane %v10346_v12, 2  ;;  %v10322_v32 = vmax.f32 %v10320_v33, %v10321_v47  ;;  %v10382_v5 = vunpack.i.h.bf16 %v10379_v59 }
 0x72c   : > { %v10335_v52 = vmax.f32 %v10333_v63, %v10334_v53  ;;  %v10310_v36 = vrot.slane %v10309_v23, 1  ;;  %v10372_v44 = vmax.f32 %v10370_v58, %v10371_v7  ;;  %v10360_v37 = vrot.slane %v10359_v31, 2 }
 0x72d   : > { %v10298_v38 = vmax.f32 %v10296_v50, %v10297_v1  ;;  %v10348_v4 = vmax.f32 %v10346_v12, %v10347_v17  ;;  %v10323_v19 = vrot.slane %v10322_v32, 1  ;;  %v10383_v24 = vmax.f32 %v10381_v9, %v10382_v5 }
 0x72e   : > { %v10336_v21 = vrot.slane %v10335_v52, 1  ;;  %v10311_v11 = vmax.f32 %v10309_v23, %v10310_v36  ;;  %v10373_v55 = vrot.slane %v10372_v44, 2  ;;  %v10361_v13 = vmax.f32 %v10359_v31, %v10360_v37 }
 0x72f   : > { %v10299_v3 = vpack.i.bf16 %v10298_v38, %v10298_v38  ;;  %v10349_v34 = vrot.slane %v10348_v4, 1  ;;  %v10324_v22 = vmax.f32 %v10322_v32, %v10323_v19  ;;  %v10384_v27 = vrot.slane %v10383_v24, 4 }
 0x730   : > { %v10337_v29 = vmax.f32 %v10335_v52, %v10336_v21  ;;  %v10312_v0 = vpack.i.bf16 %v10311_v11, %v10311_v11  ;;  %v10374_v8 = vmax.f32 %v10372_v44, %v10373_v55  ;;  %v10362_v45 = vrot.slane %v10361_v13, 1 }
 0x731   : > { %v10350_v40 = vmax.f32 %v10348_v4, %v10349_v34  ;;  %v10391_v28 = vunpack.c.l.bf16 %v10299_v3  ;;  %v10325_v54 = vpack.i.bf16 %v10324_v22, %v10324_v22  ;;  %v10385_v33 = vmax.f32 %v10383_v24, %v10384_v27 }
 0x732   : > { %v10338_v43 = vpack.i.bf16 %v10337_v29, %v10337_v29  ;;  %v10375_v42 = vrot.slane %v10374_v8, 1  ;;  %v10392_v59 = vunpack.c.l.bf16 %v10312_v0  ;;  %v10434_v50 = vmax.bf16 %v18935_v6, %v10417_v39 }
 0x733   : > { %v10351_v63 = vpack.i.bf16 %v10350_v40, %v10350_v40  ;;  %v10363_v12 = vmax.f32 %v10361_v13, %v10362_v45  ;;  %v10386_v58 = vrot.slane %v10385_v33, 2  ;;  %v10393_v47 = vunpack.c.l.bf16 %v10325_v54 }
 0x734   : > { %v10394_v53 = vunpack.c.l.bf16 %v10338_v43  ;;  %v10376_v56 = vmax.f32 %v10374_v8, %v10375_v42  ;;  %vm20102_vm11 = vcmask 1041409   ;;  %v10435_v23 = vmax.bf16 %v18942_v51, %v10418_v46 }
 0x735   : > { %v10395_v9 = vunpack.c.l.bf16 %v10351_v63  ;;  %v10407_v1 = vsel %vm20102_vm11, %v10392_v59, %v10391_v28  ;;  %v10364_v17 = vpack.i.bf16 %v10363_v12, %v10363_v12  ;;  %v10387_v7 = vmax.f32 %v10385_v33, %v10386_v58  ;;  %vm20108_vm11 = vmmov %vm20096_vm2 }
 0x736   : > { %vm20103_vm6 = vcmask 1042434   ;;  %v10444_v52 = vrot.slane %v10434_v50, %v18665_v25  ;;  %v10377_v31 = vpack.i.bf16 %v10376_v56, %v10376_v56  ;;  %v10468_v5 = vrot.slane %v10435_v23, %v18665_v25 }
 0x737   : > { %v10408_v32 = vsel %vm20103_vm6, %v10393_v47, %v10407_v1  ;;  %v9367_v36 = vsel %vm17322_vm7, %v9331_v15, 0.0  ;;  %v10388_v4 = vrot.slane %v10387_v7, 1  ;;  %v10396_v44 = vunpack.c.l.bf16 %v10364_v17  ;;  %vm20106_vm7 = vmmov %vm20096_vm2 }
 0x738   : > { %v10409_v6 = vsel %vm9754_vm10, %v10394_v53, %v10408_v32  ;;  %vm20105_vm13 = vcmask 1044484   ;;  %v10445_v19 = vcombine.high %v10444_v52, %v10444_v52  ;;  %v10397_v21 = vunpack.c.l.bf16 %v10377_v31 }
 0x739   : > { %v10410_v51 = vsel %vm20105_vm13, %v10395_v9, %v10409_v6  ;;  %v10452_v37 = vrot.slane %v10444_v52, %v18665_v25  ;;  %v10469_v24 = vcombine.high %v10468_v5, %v10468_v5  ;;  %v10476_v3 = vrot.slane %v10468_v5, %v18665_v25  ;;  %vm20110_vm13 = vmmov %vm20096_vm2 }
 0x73a   : > { %v10389_v11 = vmax.f32 %v10387_v7, %v10388_v4  ;;  %v10411_v34 = vsel %vm9758_vm5, %v10396_v44, %v10410_v51  ;;  %v10459_v55 = vrot.slane %v10445_v19, %v18665_v25  ;;  %v12265_v62 = vpack.c.bf16 %v9367_v36, %v18878_v14 }
 0x73b   : > { %v10412_v15 = vsel %vm9760_vm1, %v10397_v21, %v10411_v34  ;;  %v10460_v22 = vcombine.high %v10452_v37, %v10452_v37  ;;  %v10483_v29 = vrot.slane %v10469_v24, %v18665_v25  ;;  %v10484_v13 = vcombine.high %v10476_v3, %v10476_v3 }
 0x73c   : > { %v10390_v27 = vpack.i.bf16 %v10389_v11, %v10389_v11  ;;  %v10461_v0 = vcombine.high %v10459_v55, %v10459_v55  ;;  %v10487_v40 = vsel %vm20106_vm7, %v10452_v37, 4286644096  ;;  %v10500_v8 = vsel %vm20096_vm2, %v10459_v55, 4286644096  ;;  %12318 = vst [vmem:[#allocation3 + $0x78] sm:$0xff] %v12265_v62   ;;  %vm20111_vm7 = vmmov %vm20096_vm2 }
 0x73d   : > { %v10485_v28 = vcombine.high %v10483_v29, %v10483_v29  ;;  %v10489_v39 = vunpack.i.l.bf16 %v10487_v40  ;;  %v10490_v54 = vunpack.i.h.bf16 %v10487_v40  ;;  %v10502_v43 = vunpack.i.l.bf16 %v10500_v8 }
 0x73e   : > { %v10398_v45 = vunpack.c.l.bf16 %v10390_v27  ;;  %v10503_v14 = vunpack.i.h.bf16 %v10500_v8  ;;  %v10513_v33 = vsel %vm20107_vm8, %v10460_v22, 4286644096  ;;  %v10526_v63 = vsel %vm20108_vm11, %v10461_v0, 4286644096  ;;  %vm20112_vm8 = vmmov %vm20096_vm2 }
 0x73f   : > { %v10491_v42 = vmax.f32 %v10489_v39, %v10490_v54  ;;  %v10515_v59 = vunpack.i.l.bf16 %v10513_v33  ;;  %v10516_v50 = vunpack.i.h.bf16 %v10513_v33  ;;  %v10528_v46 = vunpack.i.l.bf16 %v10526_v63 }
 0x740   : > { %vm20109_vm6 = vcmask 1047559   ;;  %v10504_v58 = vmax.f32 %v10502_v43, %v10503_v14  ;;  %v10529_v47 = vunpack.i.h.bf16 %v10526_v63  ;;  %v10539_v53 = vsel %vm20110_vm13, %v10476_v3, 4286644096 }
 0x741   : > { %v10413_v12 = vsel %vm20109_vm6, %v10398_v45, %v10412_v15  ;;  %v10492_v56 = vrot.slane %v10491_v42, 4  ;;  %v10517_v9 = vmax.f32 %v10515_v59, %v10516_v50  ;;  %v10541_v1 = vunpack.i.l.bf16 %v10539_v53 }
 0x742   : > { %12023 = vst [vmem:[%s18773_s19 + $0x18] sm:$0xff] %v10413_v12  ;;  %v10542_v23 = vunpack.i.h.bf16 %v10539_v53  ;;  %v10505_v17 = vrot.slane %v10504_v58, 4  ;;  %v10530_v7 = vmax.f32 %v10528_v46, %v10529_v47  ;;  %v10552_v32 = vsel %vm20111_vm7, %v10483_v29, 4286644096  ;;  %vm20132_vm7 = vmmov %vm20096_vm2 }
 0x743   : > { %v10565_v52 = vsel %vm20096_vm2, %v10484_v13, 4286644096  ;;  %v10493_v31 = vmax.f32 %v10491_v42, %v10492_v56  ;;  %v10518_v6 = vrot.slane %v10517_v9, 4  ;;  %v10554_v38 = vunpack.i.l.bf16 %v10552_v32 }
 0x744   : > { %v10543_v5 = vmax.f32 %v10541_v1, %v10542_v23  ;;  %v10506_v36 = vmax.f32 %v10504_v58, %v10505_v17  ;;  %v10531_v4 = vrot.slane %v10530_v7, 4  ;;  %v10555_v44 = vunpack.i.h.bf16 %v10552_v32 }
 0x745   : > { %v10567_v51 = vunpack.i.l.bf16 %v10565_v52  ;;  %v10494_v19 = vrot.slane %v10493_v31, 2  ;;  %v10519_v21 = vmax.f32 %v10517_v9, %v10518_v6  ;;  %v10568_v24 = vunpack.i.h.bf16 %v10565_v52 }
 0x746   : > { %v10544_v37 = vrot.slane %v10543_v5, 4  ;;  %v10507_v3 = vrot.slane %v10506_v36, 2  ;;  %v10532_v11 = vmax.f32 %v10530_v7, %v10531_v4  ;;  %v10556_v34 = vmax.f32 %v10554_v38, %v10555_v44 }
 0x747   : > { %v10578_v55 = vsel %vm20112_vm8, %v10485_v28, 4286644096  ;;  %v10495_v62 = vmax.f32 %v10493_v31, %v10494_v19  ;;  %v10520_v15 = vrot.slane %v10519_v21, 2  ;;  %v10569_v29 = vmax.f32 %v10567_v51, %v10568_v24  ;;  %vm20133_vm8 = vmmov %vm20096_vm2 }
 0x748   : > { %v10545_v22 = vmax.f32 %v10543_v5, %v10544_v37  ;;  %v10508_v13 = vmax.f32 %v10506_v36, %v10507_v3  ;;  %v10533_v27 = vrot.slane %v10532_v11, 2  ;;  %v10557_v0 = vrot.slane %v10556_v34, 4 }
 0x749   : > { %v10580_v40 = vunpack.i.l.bf16 %v10578_v55  ;;  %v10496_v8 = vrot.slane %v10495_v62, 1  ;;  %v10521_v39 = vmax.f32 %v10519_v21, %v10520_v15  ;;  %v10570_v43 = vrot.slane %v10569_v29, 4 }
 0x74a   : > { %v10546_v54 = vrot.slane %v10545_v22, 2  ;;  %v10509_v45 = vrot.slane %v10508_v13, 1  ;;  %v10534_v14 = vmax.f32 %v10532_v11, %v10533_v27  ;;  %v10558_v33 = vmax.f32 %v10556_v34, %v10557_v0 }
 0x74b   : > { %v10581_v63 = vunpack.i.h.bf16 %v10578_v55  ;;  %v10497_v42 = vmax.f32 %v10495_v62, %v10496_v8  ;;  %v10522_v59 = vrot.slane %v10521_v39, 1  ;;  %v10571_v28 = vmax.f32 %v10569_v29, %v10570_v43 }
 0x74c   : > { %v10547_v50 = vmax.f32 %v10545_v22, %v10546_v54  ;;  %v10510_v46 = vmax.f32 %v10508_v13, %v10509_v45  ;;  %v10535_v12 = vrot.slane %v10534_v14, 1  ;;  %v10559_v58 = vrot.slane %v10558_v33, 2 }
 0x74d   : > { %v10582_v47 = vmax.f32 %v10580_v40, %v10581_v63  ;;  %v10498_v53 = vpack.i.bf16 %v10497_v42, %v10497_v42  ;;  %v10523_v56 = vmax.f32 %v10521_v39, %v10522_v59  ;;  %v10572_v1 = vrot.slane %v10571_v28, 2  ;;  %v10621_v40 = vld [vmem:[#allocation3 + $0x78] sm:$0x7] }
 0x74e   : > { %v10548_v9 = vrot.slane %v10547_v50, 1  ;;  %v10511_v23 = vpack.i.bf16 %v10510_v46, %v10510_v46  ;;  %v10536_v17 = vmax.f32 %v10534_v14, %v10535_v12  ;;  %v10560_v7 = vmax.f32 %v10558_v33, %v10559_v58  ;;  %v19050_v58 = vld [vmem:[#allocation3 + $0x7c] sm:$0xf] }
 0x74f   : > { %v10583_v32 = vrot.slane %v10582_v47, 4  ;;  %v10524_v52 = vpack.i.bf16 %v10523_v56, %v10523_v56  ;;  %v10573_v6 = vmax.f32 %v10571_v28, %v10572_v1  ;;  %v10590_v5 = vunpack.c.l.bf16 %v10498_v53 }
 0x750   : > { %v10549_v31 = vmax.f32 %v10547_v50, %v10548_v9  ;;  %v10537_v38 = vpack.i.bf16 %v10536_v17, %v10536_v17  ;;  %v10561_v36 = vrot.slane %v10560_v7, 1  ;;  %v10591_v44 = vunpack.c.l.bf16 %v10511_v23 }
 0x751   : > { %v10584_v4 = vmax.f32 %v10582_v47, %v10583_v32  ;;  %v10574_v19 = vrot.slane %v10573_v6, 1  ;;  %v10592_v21 = vunpack.c.l.bf16 %v10524_v52  ;;  %v9297_v37 = vadd.f32 %v18921_v30, %v18859_v49 }
 0x752   : > { %v10550_v51 = vpack.i.bf16 %v10549_v31, %v10549_v31  ;;  %v10562_v24 = vmax.f32 %v10560_v7, %v10561_v36  ;;  %v10593_v11 = vunpack.c.l.bf16 %v10537_v38  ;;  %vm20113_vm11 = vcmask 1041409  }
 0x753   : > { %v10585_v3 = vrot.slane %v10584_v4, 2  ;;  %v10606_v34 = vsel %vm20113_vm11, %v10591_v44, %v10590_v5  ;;  %v10575_v55 = vmax.f32 %v10573_v6, %v10574_v19  ;;  %vm20114_vm6 = vcmask 1042434   ;;  %v20123_v19 = vld [vmem:[#allocation49_spill] sm:$0xff]  ;;  %vm20134_vm11 = vmmov %vm20096_vm2 }
 0x754   : > { %v10594_v62 = vunpack.c.l.bf16 %v10550_v51  ;;  %v10607_v15 = vsel %vm20114_vm6, %v10592_v21, %v10606_v34  ;;  %v9364_v29 = vsel %vm17329_vm12, %v9328_v26, 0.0  ;;  %v10563_v13 = vpack.i.bf16 %v10562_v24, %v10562_v24  ;;  %v10616_v34 = vld [vmem:[#allocation3 + $0x68] sm:$0xc]  ;;  %vm20135_vm6 = vmmov %vm20096_vm2 }
 0x755   : > { %v10586_v27 = vmax.f32 %v10584_v4, %v10585_v3  ;;  %v10608_v0 = vsel %vm9754_vm10, %v10593_v11, %v10607_v15  ;;  %v9365_v8 = vsel %vm17334_vm0, %v9329_v41, 0.0  ;;  %v10576_v39 = vpack.i.bf16 %v10575_v55, %v10575_v55  ;;  %v20129_v3 = vld [vmem:[#allocation52_spill] sm:$0xff] }
 0x756   : > { %vm20117_vm13 = vcmask 1044484   ;;  %v12260_v43 = vpack.c.bf16 %v9365_v8, %v9364_v29  ;;  %v9334_v45 = vmax.f32 %v18887_v61, 0.0  ;;  %v10595_v14 = vunpack.c.l.bf16 %v10563_v13 }
 0x757   : > { %v10609_v54 = vsel %vm20117_vm13, %v10594_v62, %v10608_v0  ;;  %v10587_v48 = vrot.slane %v10586_v27, 1  ;;  %v9332_v26 = vmax.f32 %v18890_v2, 0.0  ;;  %v9335_v33 = vmax.f32 %v18925_v10, 0.0  ;;  %vm20136_vm13 = vmmov %vm20096_vm2 }
 0x758   : > { %v10630_v63 = vrot.slane %v10621_v40, 5  ;;  %12317 = vst [vmem:[#allocation3 + $0x70] sm:$0xff] %v12260_v43   ;;  %v9370_v35 = vsel %vm17433_vm3, %v9334_v45, 0.0  ;;  %v9333_v59 = vmax.f32 %v9297_v37, 0.0  ;;  %v10610_v41 = vsel %vm9758_vm5, %v10595_v14, %v10609_v54  ;;  %v20125_v37 = vld [vmem:[#allocation51_spill] sm:$0xff] }
 0x759   : > { %v10588_v50 = vmax.f32 %v10586_v27, %v10587_v48  ;;  %v9371_v46 = vsel %vm17438_vm14, %v9335_v33, 0.0  ;;  %v9302_v61 = vadd.f32 %v18921_v30, %v18893_v18  ;;  %v10596_v12 = vunpack.c.l.bf16 %v10576_v39  ;;  %v10617_v40 = vld [vmem:[#allocation3 + $0x6c] sm:$0xf] }
 0x75a   : > { %v9368_v2 = vsel %vm17451_vm15, %v9332_v26, 0.0  ;;  %v12275_v10 = vpack.c.bf16 %v9371_v46, %v9370_v35  ;;  %v9369_v53 = vsel %vm17526_vm4, %v9333_v59, 0.0  ;;  %v9300_v1 = vadd.f32 %v18921_v30, %v18898_v57  ;;  %vm20131_vm4 = vmmov %vm20096_vm2 }
 0x75b   : > { %v10589_v56 = vpack.i.bf16 %v10588_v50, %v10588_v50  ;;  %v12270_v9 = vpack.c.bf16 %v9369_v53, %v9368_v2  ;;  %v9303_v23 = vadd.f32 %v18921_v30, %v18901_v16  ;;  %v10611_v17 = vsel %vm9760_vm1, %v10596_v12, %v10610_v41 }
 0x75c   : > { %v10632_v18 = vrot.slane %v10630_v63, 4  ;;  %12320 = vst [vmem:[#allocation3 + $0x88] sm:$0xff] %v12275_v10   ;;  %v9301_v7 = vadd.f32 %v18921_v30, %v18906_v20  ;;  %v9338_v52 = vmax.f32 %v9302_v61, 0.0  ;;  %v9336_v31 = vmax.f32 %v9300_v1, 0.0  ;;  %v20127_v30 = vld [vmem:[#allocation50_spill] sm:$0xff] }
 0x75d   : > { %v10597_v32 = vunpack.c.l.bf16 %v10589_v56  ;;  %12319 = vst [vmem:[#allocation3 + $0x80] sm:$0xff] %v12270_v9   ;;  %v9339_v6 = vmax.f32 %v9303_v23, 0.0  ;;  %vm20122_vm15 = vcmask 1047559   ;;  %vm20124_vm12 = vnez %v20123_v19 }
 0x75e   : > { %v9337_v5 = vmax.f32 %v9301_v7, 0.0  ;;  %v9374_v21 = vsel %vm20124_vm12, %v9338_v52, 0.0  ;;  %vm20126_vm0 = vnez %v20125_v37  ;;  %vm20128_vm3 = vnez %v20127_v30 }
 0x75f   : > { %v10612_v38 = vsel %vm20122_vm15, %v10597_v32, %v10611_v17  ;;  %v10618_v57 = vld [vmem:[#allocation3 + $0x70] sm:$0x3]  ;;  %v10619_v36 = vld [vmem:[#allocation3 + $0x70] sm:$0x8]  ;;  %v10620_v4 = vld [vmem:[#allocation3 + $0x74] sm:$0xf]  ;;  %vm20130_vm14 = vnez %v20129_v3 }
 0x760   : > { %12025 = vst [vmem:[%s18773_s19 + $0x20] sm:$0xff] %v10612_v38  ;;  %v12026_v16 = vrot.slane %v10619_v36, 9  ;;  %v10627_v44 = vrot.slane %v10620_v4, 5  ;;  %v10638_v51 = vmax.bf16 %v10632_v18, %v10618_v57  ;;  %v9372_v20 = vsel %vm20126_vm0, %v9336_v31, 0.0  ;;  %vm20137_vm15 = vmmov %vm20096_vm2 }
 0x761   : > { %v9375_v24 = vsel %vm20128_vm3, %v9339_v6, 0.0  ;;  %v9373_v11 = vsel %vm20130_vm14, %v9337_v5, 0.0  ;;  %vm20138_vm12 = vcmask 1041409   ;;  %vm20139_vm0 = vcmask 1042434   ;;  %vm20141_vm14 = vmmov %vm20096_vm2 }
 0x762   : > { %v10628_v55 = vsel %vm18658_vm9, %v12026_v16, %v10627_v44  ;;  %v10629_v62 = vrot.slane %v10627_v44, 4  ;;  %v10696_v15 = vrot.slane %v10638_v51, %v18665_v25  ;;  %v12285_v22 = vpack.c.bf16 %v9375_v24, %v9374_v21 }
 0x763   : > { %v10636_v29 = vmax.bf16 %v10628_v55, %v10616_v34  ;;  %v10845_v13 = vld [vmem:[#allocation3 + $0x88] sm:$0xf]  ;;  %v10846_v27 = vld [vmem:[#allocation3 + $0x8c] sm:$0x1]  ;;  %v12280_v0 = vpack.c.bf16 %v9373_v11, %v9372_v20  ;;  %vm20140_vm3 = vcmask 1044484  }
 0x764   : > { %v10631_v49 = vsel %vm18658_vm9, %v10629_v62, %v10630_v63  ;;  %v10697_v8 = vcombine.high %v10696_v15, %v10696_v15  ;;  %v10704_v39 = vrot.slane %v10696_v15, %v18665_v25  ;;  %v10852_v54 = vrot.slane %v10845_v13, 5  ;;  %v10844_v43 = vld [vmem:[#allocation3 + $0x84] sm:$0xe]  ;;  %12322 = vst [vmem:[#allocation3 + $0x98] sm:$0xff] %v12285_v22  }
 0x765   : > { %v10637_v45 = vmax.bf16 %v10631_v49, %v10617_v40  ;;  %v10648_v48 = vrot.slane %v10636_v29, %v18665_v25  ;;  %v12028_v14 = vrot.slane %v10844_v43, 9  ;;  %12321 = vst [vmem:[#allocation3 + $0x90] sm:$0xff] %v12280_v0   ;;  %v10855_v35 = vrot.slane %v10846_v27, 5 }
 0x766   : > { %v10711_v26 = vrot.slane %v10697_v8, %v18665_v25  ;;  %v10791_v33 = vsel %vm20131_vm4, %v10704_v39, 4286644096  ;;  %v10854_v42 = vrot.slane %v10852_v54, 4  ;;  %vm20142_vm4 = vmmov %vm20096_vm2 }
 0x767   : > { %v10649_v59 = vcombine.high %v10648_v48, %v10648_v48  ;;  %v10656_v63 = vrot.slane %v10648_v48, %v18665_v25  ;;  %v10672_v50 = vrot.slane %v10637_v45, %v18665_v25  ;;  %v10793_v41 = vunpack.i.l.bf16 %v10791_v33 }
 0x768   : > { %v10794_v28 = vunpack.i.h.bf16 %v10791_v33  ;;  %v10804_v46 = vsel %vm20132_vm7, %v10711_v26, 4286644096  ;;  %v19044_v61 = vsel %vm18658_vm9, %v12028_v14, %v10852_v54  ;;  %v19048_v12 = vsel %vm18658_vm9, %v10854_v42, %v10855_v35  ;;  %vm20143_vm7 = vmmov %vm20096_vm2 }
 0x769   : > { %v10663_v2 = vrot.slane %v10649_v59, %v18665_v25  ;;  %v10664_v10 = vcombine.high %v10656_v63, %v10656_v63  ;;  %v10673_v47 = vcombine.high %v10672_v50, %v10672_v50  ;;  %v10680_v53 = vrot.slane %v10672_v50, %v18665_v25 }
 0x76a   : > { %v10795_v56 = vmax.f32 %v10793_v41, %v10794_v28  ;;  %v10806_v9 = vunpack.i.l.bf16 %v10804_v46  ;;  %v10807_v1 = vunpack.i.h.bf16 %v10804_v46  ;;  %v10859_v23 = vmax.bf16 %v19044_v61, %v19050_v58 }
 0x76b   : > { %v10665_v17 = vcombine.high %v10663_v2, %v10663_v2  ;;  %v10687_v18 = vrot.slane %v10673_v47, %v18665_v25  ;;  %v10688_v7 = vcombine.high %v10680_v53, %v10680_v53  ;;  %v10713_v32 = vsel %vm20096_vm2, %v10664_v10, 4286644096 }
 0x76c   : > { %v10715_v52 = vunpack.i.l.bf16 %v10713_v32  ;;  %v10716_v31 = vunpack.i.h.bf16 %v10713_v32  ;;  %v10739_v6 = vsel %vm20133_vm8, %v10680_v53, 4286644096  ;;  %v10796_v5 = vrot.slane %v10795_v56, 4  ;;  %vm20145_vm8 = vmmov %vm20142_vm4 }
 0x76d   : > { %v10689_v38 = vcombine.high %v10687_v18, %v10687_v18  ;;  %v10726_v57 = vsel %vm20134_vm11, %v10665_v17, 4286644096  ;;  %v10741_v36 = vunpack.i.l.bf16 %v10739_v6  ;;  %v10742_v4 = vunpack.i.h.bf16 %v10739_v6  ;;  %vm20146_vm11 = vmmov %vm20142_vm4 }
 0x76e   : > { %v10717_v16 = vmax.f32 %v10715_v52, %v10716_v31  ;;  %v10728_v44 = vunpack.i.l.bf16 %v10726_v57  ;;  %v10729_v51 = vunpack.i.h.bf16 %v10726_v57  ;;  %v10752_v19 = vsel %vm20135_vm6, %v10687_v18, 4286644096  ;;  %vm20147_vm6 = vmmov %vm20142_vm4 }
 0x76f   : > { %v10743_v21 = vmax.f32 %v10741_v36, %v10742_v4  ;;  %v10754_v37 = vunpack.i.l.bf16 %v10752_v19  ;;  %v10755_v20 = vunpack.i.h.bf16 %v10752_v19  ;;  %v10765_v30 = vsel %vm20136_vm13, %v10688_v7, 4286644096  ;;  %vm20148_vm13 = vmmov %vm20142_vm4 }
 0x770   : > { %v10718_v24 = vrot.slane %v10717_v16, 4  ;;  %v10730_v3 = vmax.f32 %v10728_v44, %v10729_v51  ;;  %v10767_v11 = vunpack.i.l.bf16 %v10765_v30  ;;  %v10768_v34 = vunpack.i.h.bf16 %v10765_v30 }
 0x771   : > { %v10744_v55 = vrot.slane %v10743_v21, 4  ;;  %v10756_v62 = vmax.f32 %v10754_v37, %v10755_v20  ;;  %v10778_v15 = vsel %vm20137_vm15, %v10689_v38, 4286644096  ;;  %v10797_v22 = vmax.f32 %v10795_v56, %v10796_v5  ;;  %vm20149_vm15 = vmmov %vm20142_vm4 }
 0x772   : > { %v10719_v29 = vmax.f32 %v10717_v16, %v10718_v24  ;;  %v10731_v13 = vrot.slane %v10730_v3, 4  ;;  %v10769_v27 = vmax.f32 %v10767_v11, %v10768_v34  ;;  %v10780_v0 = vunpack.i.l.bf16 %v10778_v15  ;;  %v10843_v11 = vld [vmem:[#allocation3 + $0x80] sm:$0xf]  ;;  %v19063_v34 = vld [vmem:[#allocation3 + $0x98] sm:$0xf] }
 0x773   : > { %v10745_v40 = vmax.f32 %v10743_v21, %v10744_v55  ;;  %v10757_v49 = vrot.slane %v10756_v62, 4  ;;  %v10781_v8 = vunpack.i.h.bf16 %v10778_v15  ;;  %v10798_v39 = vrot.slane %v10797_v22, 2 }
 0x774   : > { %v10720_v54 = vrot.slane %v10719_v29, 2  ;;  %v10732_v43 = vmax.f32 %v10730_v3, %v10731_v13  ;;  %v10770_v45 = vrot.slane %v10769_v27, 4  ;;  %v10808_v48 = vmax.f32 %v10806_v9, %v10807_v1 }
 0x775   : > { %v10746_v14 = vrot.slane %v10745_v40, 2  ;;  %v10758_v26 = vmax.f32 %v10756_v62, %v10757_v49  ;;  %v10782_v33 = vmax.f32 %v10780_v0, %v10781_v8  ;;  %v10799_v42 = vmax.f32 %v10797_v22, %v10798_v39 }
 0x776   : > { %v10721_v35 = vmax.f32 %v10719_v29, %v10720_v54  ;;  %v10733_v59 = vrot.slane %v10732_v43, 2  ;;  %v10771_v63 = vmax.f32 %v10769_v27, %v10770_v45  ;;  %v10809_v50 = vrot.slane %v10808_v48, 4 }
 0x777   : > { %v10747_v41 = vmax.f32 %v10745_v40, %v10746_v14  ;;  %v10759_v28 = vrot.slane %v10758_v26, 2  ;;  %v10783_v46 = vrot.slane %v10782_v33, 4  ;;  %v10800_v2 = vrot.slane %v10799_v42, 1 }
 0x778   : > { %v10722_v10 = vrot.slane %v10721_v35, 1  ;;  %v10734_v47 = vmax.f32 %v10732_v43, %v10733_v59  ;;  %v10772_v53 = vrot.slane %v10771_v63, 2  ;;  %v10810_v56 = vmax.f32 %v10808_v48, %v10809_v50 }
 0x779   : > { %v10748_v17 = vrot.slane %v10747_v41, 1  ;;  %v10760_v18 = vmax.f32 %v10758_v26, %v10759_v28  ;;  %v10784_v7 = vmax.f32 %v10782_v33, %v10783_v46  ;;  %v10801_v9 = vmax.f32 %v10799_v42, %v10800_v2 }
 0x77a   : > { %v10723_v1 = vmax.f32 %v10721_v35, %v10722_v10  ;;  %v10735_v32 = vrot.slane %v10734_v47, 1  ;;  %v10773_v52 = vmax.f32 %v10771_v63, %v10772_v53  ;;  %v10811_v31 = vrot.slane %v10810_v56, 2 }
 0x77b   : > { %v10749_v6 = vmax.f32 %v10747_v41, %v10748_v17  ;;  %v10761_v5 = vrot.slane %v10760_v18, 1  ;;  %v10785_v38 = vrot.slane %v10784_v7, 2  ;;  %v10802_v57 = vpack.i.bf16 %v10801_v9, %v10801_v9 }
 0x77c   : > { %v10724_v36 = vpack.i.bf16 %v10723_v1, %v10723_v1  ;;  %v10736_v4 = vmax.f32 %v10734_v47, %v10735_v32  ;;  %v10774_v16 = vrot.slane %v10773_v52, 1  ;;  %v10812_v44 = vmax.f32 %v10810_v56, %v10811_v31 }
 0x77d   : > { %v10750_v51 = vpack.i.bf16 %v10749_v6, %v10749_v6  ;;  %v10762_v19 = vmax.f32 %v10760_v18, %v10761_v5  ;;  %v10786_v21 = vmax.f32 %v10784_v7, %v10785_v38  ;;  %v10822_v37 = vunpack.c.l.bf16 %v10802_v57 }
 0x77e   : > { %v10737_v20 = vpack.i.bf16 %v10736_v4, %v10736_v4  ;;  %v10775_v30 = vmax.f32 %v10773_v52, %v10774_v16  ;;  %v10813_v24 = vrot.slane %v10812_v44, 1  ;;  %v10816_v3 = vunpack.c.l.bf16 %v10724_v36 }
 0x77f   : > { %v10763_v55 = vpack.i.bf16 %v10762_v19, %v10762_v19  ;;  %v10787_v62 = vrot.slane %v10786_v21, 1  ;;  %v10818_v15 = vunpack.c.l.bf16 %v10750_v51  ;;  %v10860_v22 = vmax.bf16 %v19048_v12, %v10843_v11 }
 0x780   : > { %v10776_v29 = vpack.i.bf16 %v10775_v30, %v10775_v30  ;;  %v10814_v13 = vmax.f32 %v10812_v44, %v10813_v24  ;;  %v10817_v27 = vunpack.c.l.bf16 %v10737_v20  ;;  %v10869_v0 = vrot.slane %v10859_v23, %v18665_v25 }
 0x781   : > { %v10788_v40 = vmax.f32 %v10786_v21, %v10787_v62  ;;  %v10819_v49 = vunpack.c.l.bf16 %v10763_v55  ;;  %v10893_v8 = vrot.slane %v10860_v22, %v18665_v25  ;;  %v11052_v39 = vrot.slane %v19063_v34, 5 }
 0x782   : > { %v10815_v54 = vpack.i.bf16 %v10814_v13, %v10814_v13  ;;  %v10820_v43 = vunpack.c.l.bf16 %v10776_v29  ;;  %v10832_v45 = vsel %vm20138_vm12, %v10817_v27, %v10816_v3  ;;  %v10870_v48 = vcombine.high %v10869_v0, %v10869_v0 }
 0x783   : > { %v10789_v12 = vpack.i.bf16 %v10788_v40, %v10788_v40  ;;  %v10833_v14 = vsel %vm20139_vm0, %v10818_v15, %v10832_v45  ;;  %v10877_v26 = vrot.slane %v10869_v0, %v18665_v25  ;;  %v10894_v33 = vcombine.high %v10893_v8, %v10893_v8 }
 0x784   : > { %v10823_v42 = vunpack.c.l.bf16 %v10815_v54  ;;  %v10834_v61 = vsel %vm9754_vm10, %v10819_v49, %v10833_v14  ;;  %v10884_v58 = vrot.slane %v10870_v48, %v18665_v25  ;;  %v10901_v23 = vrot.slane %v10893_v8, %v18665_v25 }
 0x785   : > { %v10821_v35 = vunpack.c.l.bf16 %v10789_v12  ;;  %v10835_v59 = vsel %vm20140_vm3, %v10820_v43, %v10834_v61  ;;  %v10885_v63 = vcombine.high %v10877_v26, %v10877_v26  ;;  %v10908_v50 = vrot.slane %v10894_v33, %v18665_v25 }
 0x786   : > { %v10886_v41 = vcombine.high %v10884_v58, %v10884_v58  ;;  %v10909_v28 = vcombine.high %v10901_v23, %v10901_v23  ;;  %v10912_v46 = vsel %vm20141_vm14, %v10877_v26, 4286644096  ;;  %v10925_v2 = vsel %vm20142_vm4, %v10884_v58, 4286644096  ;;  %vm20151_vm14 = vmmov %vm20142_vm4 }
 0x787   : > { %v10836_v10 = vsel %vm9758_vm5, %v10821_v35, %v10835_v59  ;;  %v10910_v47 = vcombine.high %v10908_v50, %v10908_v50  ;;  %v10914_v53 = vunpack.i.l.bf16 %v10912_v46  ;;  %v10915_v56 = vunpack.i.h.bf16 %v10912_v46 }
 0x788   : > { %v10837_v17 = vsel %vm9760_vm1, %v10822_v37, %v10836_v10  ;;  %v10927_v18 = vunpack.i.l.bf16 %v10925_v2  ;;  %v10928_v7 = vunpack.i.h.bf16 %v10925_v2  ;;  %v10938_v9 = vsel %vm20143_vm7, %v10885_v63, 4286644096  ;;  %vm20152_vm7 = vmmov %vm20142_vm4 }
 0x789   : > { %vm20144_vm2 = vcmask 1047559   ;;  %v10916_v32 = vmax.f32 %v10914_v53, %v10915_v56  ;;  %v10940_v52 = vunpack.i.l.bf16 %v10938_v9  ;;  %v10941_v31 = vunpack.i.h.bf16 %v10938_v9 }
 0x78a   : > { %v10838_v1 = vsel %vm20144_vm2, %v10823_v42, %v10837_v17  ;;  %v10929_v6 = vmax.f32 %v10927_v18, %v10928_v7  ;;  %v10951_v5 = vsel %vm20145_vm8, %v10886_v41, 4286644096  ;;  %v10964_v38 = vsel %vm20146_vm11, %v10901_v23, 4286644096 }
 0x78b   : > { %12027 = vst [vmem:[%s18773_s19 + $0x28] sm:$0xff] %v10838_v1  ;;  %v10977_v57 = vsel %vm20147_vm6, %v10908_v50, 4286644096  ;;  %v10917_v36 = vrot.slane %v10916_v32, 4  ;;  %v10942_v4 = vmax.f32 %v10940_v52, %v10941_v31  ;;  %v10953_v16 = vunpack.i.l.bf16 %v10951_v5 }
 0x78c   : > { %v10954_v44 = vunpack.i.h.bf16 %v10951_v5  ;;  %v10930_v51 = vrot.slane %v10929_v6, 4  ;;  %v10966_v19 = vunpack.i.l.bf16 %v10964_v38  ;;  %v10967_v21 = vunpack.i.h.bf16 %v10964_v38 }
 0x78d   : > { %v10979_v37 = vunpack.i.l.bf16 %v10977_v57  ;;  %v10918_v20 = vmax.f32 %v10916_v32, %v10917_v36  ;;  %v10943_v30 = vrot.slane %v10942_v4, 4  ;;  %v10980_v3 = vunpack.i.h.bf16 %v10977_v57 }
 0x78e   : > { %v10955_v24 = vmax.f32 %v10953_v16, %v10954_v44  ;;  %v10931_v11 = vmax.f32 %v10929_v6, %v10930_v51  ;;  %v10968_v55 = vmax.f32 %v10966_v19, %v10967_v21  ;;  %v10990_v62 = vsel %vm20148_vm13, %v10909_v28, 4286644096  ;;  %v11046_v51 = vld [vmem:[#allocation3 + $0x9c] sm:$0x7] }
 0x78f   : > { %v11003_v15 = vsel %vm20149_vm15, %v10910_v47, 4286644096  ;;  %v10919_v22 = vrot.slane %v10918_v20, 2  ;;  %v10944_v29 = vmax.f32 %v10942_v4, %v10943_v30  ;;  %v10981_v27 = vmax.f32 %v10979_v37, %v10980_v3  ;;  %v11044_v30 = vld [vmem:[#allocation3 + $0x94] sm:$0x8]  ;;  %vm20158_vm15 = vmmov %vm20138_vm12 }
 0x790   : > { %v10956_v13 = vrot.slane %v10955_v24, 4  ;;  %v10932_v0 = vrot.slane %v10931_v11, 2  ;;  %v10969_v40 = vrot.slane %v10968_v55, 4  ;;  %v10992_v49 = vunpack.i.l.bf16 %v10990_v62 }
 0x791   : > { %v10993_v8 = vunpack.i.h.bf16 %v10990_v62  ;;  %v10920_v54 = vmax.f32 %v10918_v20, %v10919_v22  ;;  %v10945_v43 = vrot.slane %v10944_v29, 2  ;;  %v10982_v48 = vrot.slane %v10981_v27, 4 }
 0x792   : > { %v10957_v45 = vmax.f32 %v10955_v24, %v10956_v13  ;;  %v10933_v12 = vmax.f32 %v10931_v11, %v10932_v0  ;;  %v10970_v14 = vmax.f32 %v10968_v55, %v10969_v40  ;;  %v11005_v33 = vunpack.i.l.bf16 %v11003_v15 }
 0x793   : > { %v10994_v26 = vmax.f32 %v10992_v49, %v10993_v8  ;;  %v10921_v42 = vrot.slane %v10920_v54, 1  ;;  %v10946_v61 = vmax.f32 %v10944_v29, %v10945_v43  ;;  %v10983_v23 = vmax.f32 %v10981_v27, %v10982_v48  ;;  %v11041_v49 = vld [vmem:[#allocation3 + $0x8c] sm:$0xc] }
 0x794   : > { %v10958_v58 = vrot.slane %v10957_v45, 2  ;;  %v10934_v35 = vrot.slane %v10933_v12, 1  ;;  %v10971_v59 = vrot.slane %v10970_v14, 2  ;;  %v11006_v50 = vunpack.i.h.bf16 %v11003_v15 }
 0x795   : > { %v10995_v63 = vrot.slane %v10994_v26, 4  ;;  %v10922_v41 = vmax.f32 %v10920_v54, %v10921_v42  ;;  %v10947_v28 = vrot.slane %v10946_v61, 1  ;;  %v10984_v2 = vrot.slane %v10983_v23, 2 }
 0x796   : > { %v10959_v46 = vmax.f32 %v10957_v45, %v10958_v58  ;;  %v10935_v10 = vmax.f32 %v10933_v12, %v10934_v35  ;;  %v10972_v47 = vmax.f32 %v10970_v14, %v10971_v59  ;;  %v11007_v56 = vmax.f32 %v11005_v33, %v11006_v50  ;;  %v11043_v33 = vld [vmem:[#allocation3 + $0x94] sm:$0x3] }
 0x797   : > { %v10996_v53 = vmax.f32 %v10994_v26, %v10995_v63  ;;  %v10923_v17 = vpack.i.bf16 %v10922_v41, %v10922_v41  ;;  %v10948_v18 = vmax.f32 %v10946_v61, %v10947_v28  ;;  %v10985_v9 = vmax.f32 %v10983_v23, %v10984_v2  ;;  %v11042_v26 = vld [vmem:[#allocation3 + $0x90] sm:$0xf] }
 0x798   : > { %v10960_v7 = vrot.slane %v10959_v46, 1  ;;  %v10936_v1 = vpack.i.bf16 %v10935_v10, %v10935_v10  ;;  %v10973_v32 = vrot.slane %v10972_v47, 1  ;;  %v11008_v31 = vrot.slane %v11007_v56, 4 }
 0x799   : > { %v10997_v52 = vrot.slane %v10996_v53, 2  ;;  %v10949_v6 = vpack.i.bf16 %v10948_v18, %v10948_v18  ;;  %v10986_v38 = vrot.slane %v10985_v9, 1  ;;  %v11015_v57 = vunpack.c.l.bf16 %v10923_v17 }
 0x79a   : > { %v10961_v5 = vmax.f32 %v10959_v46, %v10960_v7  ;;  %v10974_v36 = vmax.f32 %v10972_v47, %v10973_v32  ;;  %v11009_v16 = vmax.f32 %v11007_v56, %v11008_v31  ;;  %v11016_v44 = vunpack.c.l.bf16 %v10936_v1 }
 0x79b   : > { %v10998_v4 = vmax.f32 %v10996_v53, %v10997_v52  ;;  %v10987_v21 = vmax.f32 %v10985_v9, %v10986_v38  ;;  %v11017_v37 = vunpack.c.l.bf16 %v10949_v6  ;;  %v11054_v20 = vrot.slane %v11052_v39, 4 }
 0x79c   : > { %v10962_v19 = vpack.i.bf16 %v10961_v5, %v10961_v5  ;;  %v10975_v24 = vpack.i.bf16 %v10974_v36, %v10974_v36  ;;  %v11010_v11 = vrot.slane %v11009_v16, 2  ;;  %v11031_v55 = vsel %vm20138_vm12, %v11016_v44, %v11015_v57  ;;  %vm20159_vm12 = vmmov %vm20139_vm0 }
 0x79d   : > { %v10999_v3 = vrot.slane %v10998_v4, 1  ;;  %v10988_v62 = vpack.i.bf16 %v10987_v21, %v10987_v21  ;;  %v11032_v22 = vsel %vm20139_vm0, %v11017_v37, %v11031_v55  ;;  %v11055_v29 = vrot.slane %v11046_v51, 5  ;;  %vm20160_vm0 = vmmov %vm20140_vm3 }
 0x79e   : > { %v11018_v15 = vunpack.c.l.bf16 %v10962_v19  ;;  %v11011_v27 = vmax.f32 %v11009_v16, %v11010_v11  ;;  %v11019_v0 = vunpack.c.l.bf16 %v10975_v24  ;;  %v12030_v40 = vrot.slane %v11044_v30, 9 }
 0x79f   : > { %v11000_v13 = vmax.f32 %v10998_v4, %v10999_v3  ;;  %v11020_v8 = vunpack.c.l.bf16 %v10988_v62  ;;  %v11057_v43 = vrot.slane %v11055_v29, 4  ;;  %v11056_v45 = vsel %vm18658_vm9, %v11054_v20, %v11055_v29 }
 0x7a0   : > { %v11033_v54 = vsel %vm9754_vm10, %v11018_v15, %v11032_v22  ;;  %v11012_v12 = vrot.slane %v11011_v27, 1  ;;  %v11053_v42 = vsel %vm18658_vm9, %v12030_v40, %v11052_v39  ;;  %v11062_v23 = vmax.bf16 %v11056_v45, %v11042_v26  ;;  %vm20150_vm9 = vmmov %vm20144_vm2 }
 0x7a1   : > { %v11001_v48 = vpack.i.bf16 %v11000_v13, %v11000_v13  ;;  %v11034_v14 = vsel %vm20140_vm3, %v11019_v0, %v11033_v54  ;;  %v11061_v58 = vmax.bf16 %v11053_v42, %v11041_v49  ;;  %v11063_v35 = vmax.bf16 %v11057_v43, %v11043_v33  ;;  %vm20153_vm2 = vmmov %vm20142_vm4 }
 0x7a2   : > { %v11035_v61 = vsel %vm9758_vm5, %v11020_v8, %v11034_v14  ;;  %v11013_v59 = vmax.f32 %v11011_v27, %v11012_v12  ;;  %v11097_v41 = vrot.slane %v11062_v23, %v18665_v25  ;;  %vm20154_vm8 = vmmov %vm20153_vm2 }
 0x7a3   : > { %v11021_v63 = vunpack.c.l.bf16 %v11001_v48  ;;  %v11073_v50 = vrot.slane %v11061_v58, %v18665_v25  ;;  %v11121_v28 = vrot.slane %v11063_v35, %v18665_v25  ;;  %vm20155_vm11 = vmmov %vm20153_vm2 }
 0x7a4   : > { %v11014_v46 = vpack.i.bf16 %v11013_v59, %v11013_v59  ;;  %v11098_v39 = vcombine.high %v11097_v41, %v11097_v41  ;;  %v11105_v10 = vrot.slane %v11097_v41, %v18665_v25  ;;  %vm20156_vm6 = vmmov %vm20153_vm2 }
 0x7a5   : > { %v11036_v2 = vsel %vm9760_vm1, %v11021_v63, %v11035_v61  ;;  %v11074_v34 = vcombine.high %v11073_v50, %v11073_v50  ;;  %v11081_v60 = vrot.slane %v11073_v50, %v18665_v25  ;;  %v11122_v53 = vcombine.high %v11121_v28, %v11121_v28  ;;  %vm20157_vm13 = vmmov %vm20153_vm2 }
 0x7a6   : > { %v11022_v47 = vunpack.c.l.bf16 %v11014_v46  ;;  %v11129_v56 = vrot.slane %v11121_v28, %v18665_v25  ;;  %v11112_v7 = vrot.slane %v11098_v39, %v18665_v25  ;;  %v11113_v9 = vcombine.high %v11105_v10, %v11105_v10  ;;  %vm20161_vm3 = vmmov %vm20150_vm9 }
 0x7a7   : > { %v11088_v17 = vrot.slane %v11074_v34, %v18665_v25  ;;  %v11089_v18 = vcombine.high %v11081_v60, %v11081_v60  ;;  %v11136_v32 = vrot.slane %v11122_v53, %v18665_v25  ;;  %v11164_v52 = vsel %vm20151_vm14, %v11105_v10, 4286644096 }
 0x7a8   : > { %v11037_v1 = vsel %vm20150_vm9, %v11022_v47, %v11036_v2  ;;  %v11216_v31 = vsel %vm20142_vm4, %v11129_v56, 4286644096  ;;  %v11114_v5 = vcombine.high %v11112_v7, %v11112_v7  ;;  %v11166_v57 = vunpack.i.l.bf16 %v11164_v52 }
 0x7a9   : > { %12029 = vst [vmem:[%s18773_s19 + $0x30] sm:$0xff] %v11037_v1  ;;  %v11090_v6 = vcombine.high %v11088_v17, %v11088_v17  ;;  %v11138_v38 = vsel %vm20152_vm7, %v11089_v18, 4286644096  ;;  %v11167_v16 = vunpack.i.h.bf16 %v11164_v52  ;;  %v11177_v44 = vsel %vm20153_vm2, %v11112_v7, 4286644096 }
 0x7aa   : > { %v11140_v36 = vunpack.i.l.bf16 %v11138_v38  ;;  %v11141_v4 = vunpack.i.h.bf16 %v11138_v38  ;;  %v11179_v19 = vunpack.i.l.bf16 %v11177_v44  ;;  %v11180_v21 = vunpack.i.h.bf16 %v11177_v44 }
 0x7ab   : > { %v11151_v51 = vsel %vm20154_vm8, %v11090_v6, 4286644096  ;;  %v11190_v25 = vsel %vm20155_vm11, %v11113_v9, 4286644096  ;;  %v11168_v24 = vmax.f32 %v11166_v57, %v11167_v16  ;;  %v11203_v62 = vsel %vm20156_vm6, %v11114_v5, 4286644096 }
 0x7ac   : > { %v11142_v37 = vmax.f32 %v11140_v36, %v11141_v4  ;;  %v11153_v20 = vunpack.i.l.bf16 %v11151_v51  ;;  %v11154_v30 = vunpack.i.h.bf16 %v11151_v51  ;;  %v11181_v3 = vmax.f32 %v11179_v19, %v11180_v21 }
 0x7ad   : > { %v11192_v11 = vunpack.i.l.bf16 %v11190_v25  ;;  %v11193_v55 = vunpack.i.h.bf16 %v11190_v25  ;;  %v11169_v29 = vrot.slane %v11168_v24, 4  ;;  %v11205_v13 = vunpack.i.l.bf16 %v11203_v62 }
 0x7ae   : > { %v11143_v15 = vrot.slane %v11142_v37, 4  ;;  %v11155_v22 = vmax.f32 %v11153_v20, %v11154_v30  ;;  %v11182_v27 = vrot.slane %v11181_v3, 4  ;;  %v11206_v40 = vunpack.i.h.bf16 %v11203_v62 }
 0x7af   : > { %v11194_v0 = vmax.f32 %v11192_v11, %v11193_v55  ;;  %v11218_v49 = vunpack.i.l.bf16 %v11216_v31  ;;  %v11170_v43 = vmax.f32 %v11168_v24, %v11169_v29  ;;  %v11219_v45 = vunpack.i.h.bf16 %v11216_v31 }
 0x7b0   : > { %v11144_v8 = vmax.f32 %v11142_v37, %v11143_v15  ;;  %v11156_v54 = vrot.slane %v11155_v22, 4  ;;  %v11183_v48 = vmax.f32 %v11181_v3, %v11182_v27  ;;  %v11207_v14 = vmax.f32 %v11205_v13, %v11206_v40 }
 0x7b1   : > { %v11195_v12 = vrot.slane %v11194_v0, 4  ;;  %v11229_v26 = vsel %vm20157_vm13, %v11136_v32, 4286644096  ;;  %v11171_v61 = vrot.slane %v11170_v43, 2  ;;  %v11220_v58 = vmax.f32 %v11218_v49, %v11219_v45 }
 0x7b2   : > { %v11145_v33 = vrot.slane %v11144_v8, 2  ;;  %v11157_v42 = vmax.f32 %v11155_v22, %v11156_v54  ;;  %v11184_v23 = vrot.slane %v11183_v48, 2  ;;  %v11208_v59 = vrot.slane %v11207_v14, 4 }
 0x7b3   : > { %v11196_v35 = vmax.f32 %v11194_v0, %v11195_v12  ;;  %v11231_v63 = vunpack.i.l.bf16 %v11229_v26  ;;  %v11172_v28 = vmax.f32 %v11170_v43, %v11171_v61  ;;  %v11221_v46 = vrot.slane %v11220_v58, 4 }
 0x7b4   : > { %v11146_v50 = vmax.f32 %v11144_v8, %v11145_v33  ;;  %v11158_v41 = vrot.slane %v11157_v42, 2  ;;  %v11185_v2 = vmax.f32 %v11183_v48, %v11184_v23  ;;  %v11209_v60 = vmax.f32 %v11207_v14, %v11208_v59 }
 0x7b5   : > { %v11197_v34 = vrot.slane %v11196_v35, 2  ;;  %v11232_v39 = vunpack.i.h.bf16 %v11229_v26  ;;  %v11173_v53 = vrot.slane %v11172_v28, 1  ;;  %v11222_v56 = vmax.f32 %v11220_v58, %v11221_v46 }
 0x7b6   : > { %v11147_v10 = vrot.slane %v11146_v50, 1  ;;  %v11159_v47 = vmax.f32 %v11157_v42, %v11158_v41  ;;  %v11186_v17 = vrot.slane %v11185_v2, 1  ;;  %v11210_v7 = vrot.slane %v11209_v60, 2 }
 0x7b7   : > { %v11198_v18 = vmax.f32 %v11196_v35, %v11197_v34  ;;  %v11233_v9 = vmax.f32 %v11231_v63, %v11232_v39  ;;  %v11174_v52 = vmax.f32 %v11172_v28, %v11173_v53  ;;  %v11223_v31 = vrot.slane %v11222_v56, 2 }
 0x7b8   : > { %v11148_v1 = vmax.f32 %v11146_v50, %v11147_v10  ;;  %v11160_v32 = vrot.slane %v11159_v47, 1  ;;  %v11187_v6 = vmax.f32 %v11185_v2, %v11186_v17  ;;  %v11211_v38 = vmax.f32 %v11209_v60, %v11210_v7 }
 0x7b9   : > { %v11199_v5 = vrot.slane %v11198_v18, 1  ;;  %v11234_v57 = vrot.slane %v11233_v9, 4  ;;  %v11224_v16 = vmax.f32 %v11222_v56, %v11223_v31  ;;  %v11175_v44 = vpack.i.bf16 %v11174_v52, %v11174_v52 }
 0x7ba   : > { %v11149_v36 = vpack.i.bf16 %v11148_v1, %v11148_v1  ;;  %v11161_v4 = vmax.f32 %v11159_v47, %v11160_v32  ;;  %v11212_v19 = vrot.slane %v11211_v38, 1  ;;  %v11188_v37 = vpack.i.bf16 %v11187_v6, %v11187_v6 }
 0x7bb   : > { %v11200_v51 = vmax.f32 %v11198_v18, %v11199_v5  ;;  %v11235_v21 = vmax.f32 %v11233_v9, %v11234_v57  ;;  %v11225_v20 = vrot.slane %v11224_v16, 1  ;;  %v11243_v29 = vunpack.c.l.bf16 %v11175_v44 }
 0x7bc   : > { %v11162_v25 = vpack.i.bf16 %v11161_v4, %v11161_v4  ;;  %v11213_v24 = vmax.f32 %v11211_v38, %v11212_v19  ;;  %v11241_v55 = vunpack.c.l.bf16 %v11149_v36  ;;  %v11244_v27 = vunpack.c.l.bf16 %v11188_v37 }
 0x7bd   : > { %v11201_v30 = vpack.i.bf16 %v11200_v51, %v11200_v51  ;;  %v11236_v3 = vrot.slane %v11235_v21, 2  ;;  %v11226_v11 = vmax.f32 %v11224_v16, %v11225_v20 }
 0x7be   : > { %v11242_v62 = vunpack.c.l.bf16 %v11162_v25  ;;  %v11214_v15 = vpack.i.bf16 %v11213_v24, %v11213_v24 }
 0x7bf   : > { %v11237_v22 = vmax.f32 %v11235_v21, %v11236_v3  ;;  %v11227_v13 = vpack.i.bf16 %v11226_v11, %v11226_v11  ;;  %v11245_v49 = vunpack.c.l.bf16 %v11201_v30 }
 0x7c0   : > { %v11257_v0 = vsel %vm20158_vm15, %v11242_v62, %v11241_v55  ;;  %v11246_v54 = vunpack.c.l.bf16 %v11214_v15 }
 0x7c1   : > { %v11238_v40 = vrot.slane %v11237_v22, 1  ;;  %v11258_v8 = vsel %vm20159_vm12, %v11243_v29, %v11257_v0  ;;  %v11247_v12 = vunpack.c.l.bf16 %v11227_v13 }
 0x7c2   : > { %v11259_v43 = vsel %vm9754_vm10, %v11244_v27, %v11258_v8 }
 0x7c3   : > { %v11239_v45 = vmax.f32 %v11237_v22, %v11238_v40  ;;  %v11260_v48 = vsel %vm20160_vm0, %v11245_v49, %v11259_v43 }
 0x7c4   : > { %v11261_v14 = vsel %vm9758_vm5, %v11246_v54, %v11260_v48 }
 0x7c5   : > { %v11240_v26 = vpack.i.bf16 %v11239_v45, %v11239_v45  ;;  %v11262_v33 = vsel %vm9760_vm1, %v11247_v12, %v11261_v14 }
 0x7c7   : > { %v11248_v42 = vunpack.c.l.bf16 %v11240_v26 }
 0x7c9   : > { %v11263_v61 = vsel %vm20161_vm3, %v11248_v42, %v11262_v33 }
 0x7ca   : > { %12031 = vst [vmem:[%s18773_s19 + $0x38] sm:$0xff] %v11263_v61 }
 0x7cb PF: > { %s13_s12 = sadd.s32 1, %s14757_s12  }
 0x7cc   : > { %p10_p4 = scmp.ge.s32.totalorder %s13_s12, 4  }
 0x7ce   :  { %12 = sbr.rel (!%p10_p4) target bundleno = 1 (0x1), region = 87 }

</bundles_post_ra>
